<compile_context>
chip_gen: v6e
topology: v6e:2x2x1
jax: 0.10.0
libtpu: 0.0.40
codegen_flags: <defaults>
</compile_context>

<pallas_src>
import functools

import jax
import jax.numpy as jnp
from jax.experimental import pallas as pl
from jax.experimental.pallas import tpu as pltpu


# ---------------------------------------------------------------------------
# Kernel: one (routing-iteration, batch-tile) grid step.
# ---------------------------------------------------------------------------
def _capsnet_kernel(x_ref, w_ref, gr_ref, ge_ref, v_ref, b_log_ref, delta_ref,
                    *, routings, inv_batch, mxu_projection):
    # x_ref : (I, Bt, K)  input-capsule tile (I-major layout)
    # w_ref : (I, K, N)   weights, N = J*D, j-major/d-minor lanes (VMEM resident)
    # gr_ref: (N, J)      one-hot n->j reduction matrix (constant input)
    # ge_ref: (J, N)      one-hot j->n expansion matrix (constant input)
    # v_ref : (Bt, N)     output-capsule tile (lane-dense)
    # b_log_ref, delta_ref: (I, J) persistent routing logits / batch-sum accumulator
    it = pl.program_id(0)                 # routing iteration (outer, "arbitrary")
    bt = pl.program_id(1)                 # batch tile        (inner)
    last_bt = pl.num_programs(1) - 1

    @pl.when(jnp.logical_and(it == 0, bt == 0))
    def _init_logits():
        b_log_ref[...] = jnp.zeros_like(b_log_ref)

    @pl.when(bt == 0)
    def _init_delta():
        delta_ref[...] = jnp.zeros_like(delta_ref)

    x = x_ref[...]                        # (I, Bt, K)
    w = w_ref[...]                        # (I, K, N)
    g_red = gr_ref[...]                   # (N, J)
    g_exp = ge_ref[...]                   # (J, N)
    K = x.shape[2]

    # --- u_hat[i,b,n] = sum_k x[i,b,k] * w[i,k,n] (recomputed per (it, tile)) ----
    if mxu_projection:
        # i-batched MXU matmul: (I, Bt, K) x (I, K, N) -> (I, Bt, N)
        u = jax.lax.dot_general(x, w, (((2,), (1,)), ((0,), (0,))),
                                preferred_element_type=jnp.float32)
    else:
        # tiny-tile path: K (=8) unrolled VPU MAC steps
        u = x[:, :, 0:1] * w[:, 0:1, :]
        for k in range(1, K):
            u = u + x[:, :, k:k + 1] * w[:, k:k + 1, :]

    # --- routing step against the CURRENT shared logits --------------------------
    b_log = b_log_ref[...]                                                    # (I, J)
    m = jnp.max(b_log, axis=1, keepdims=True)
    e = jnp.exp(b_log - m)
    c = e * pl.reciprocal(jnp.sum(e, axis=1, keepdims=True), approx=False)    # (I, J)
    c_exp = jnp.dot(c, g_exp, preferred_element_type=jnp.float32)             # (I, N)

    # s[b,n] = sum_i c[i, n//D] * u[i,b,n]
    s = jnp.sum(u * c_exp[:, None, :], axis=0)                                # (Bt, N)

    # squash over d: per-(b,j) scale computed compactly on (Bt, J); EUP rsqrt.
    # (1e-9 under the sqrt is the only deliberate deviation from torch, which NaNs
    #  for |s| == 0.)
    sum_sq = jnp.dot(s * s, g_red, preferred_element_type=jnp.float32)        # (Bt, J)
    scale = (sum_sq * jax.lax.rsqrt(sum_sq + 1e-9)
             * pl.reciprocal(1.0 + sum_sq, approx=False))                     # (Bt, J)
    v = s * jnp.dot(scale, g_exp, preferred_element_type=jnp.float32)         # (Bt, N)

    # Write every visit; the last routing iteration's write-back is the one that
    # survives in HBM (output block revisiting across the routing axis is safe).
    v_ref[...] = v

    # --- logit update, skipped on the last iteration (torch discards it) --------
    @pl.when(it < routings - 1)
    def _accumulate():
        t = jnp.sum(u * v[None, :, :], axis=1)                                # (I, N)
        delta_ref[...] += jnp.dot(t, g_red, preferred_element_type=jnp.float32)

    @pl.when(jnp.logical_and(it < routings - 1, bt == last_bt))
    def _apply_update():
        b_log_ref[...] = b_log_ref[...] + delta_ref[...] * inv_batch


# ---------------------------------------------------------------------------
# Wrapper
# ---------------------------------------------------------------------------
def capsnet_forward(x, W, *, routings=3, b_tile=None, projection=None):
    """x: [B, in_features, in_dim]; W: [1, in_features, out_features, in_dim, out_dim]."""
    B, I, K = map(int, x.shape)
    _, I_w, J, K_w, D = map(int, W.shape)
    assert (I_w, K_w) == (I, K)
    N = J * D

    # --- one-time layout glue (tiny XLA ops) -------------------------------------
    x_t = jnp.transpose(x.astype(jnp.float32), (1, 0, 2))                  # (I, B, K)
    # W[0,i,j,k,d] -> w_m[i, k, j*D + d]
    w_m = jnp.transpose(W[0].astype(jnp.float32), (0, 2, 1, 3)).reshape(I, K, N)
    g_expand = jnp.repeat(jnp.eye(J, dtype=jnp.float32), D, axis=1)        # (J, N)
    g_reduce = g_expand.T                                                  # (N, J)

    # --- generation-aware batch-tile sizing & VMEM limit -------------------------
    try:
        vmem_cap = int(pltpu.get_tpu_info().vmem_capacity_bytes)
    except Exception:
        vmem_cap = 64 << 20          # conservative fallback (v7x physical per-core)

    # rough f32 bytes of batch-scaled live data per sample: u + elementwise temps
    # + x / out pipeline buffers
    per_sample = 4 * (3 * I * N + 8 * N + 4 * I * K)
    if b_tile is None:
        budget = max(4 << 20, min(28 << 20, vmem_cap // 3))
        b_tile = max(8, min(512, budget // per_sample))
    b_tile = max(8, (int(b_tile) // 8) * 8)                  # sublane-aligned
    b_tile = min(b_tile, max(8, ((B + 7) // 8) * 8))
    num_bt = -(-B // b_tile)
    B_pad = num_bt * b_tile
    if B_pad != B:
        # Zero-padded samples have u_hat == 0, so they contribute nothing to the
        # batch-meaned logit update (we divide by the true B); rows sliced off below.
        x_t = jnp.pad(x_t, ((0, 0), (0, B_pad - B), (0, 0)))

    if projection is None:
        projection = "mxu" if b_tile >= 64 else "vpu"        # per review: VPU for tiny tiles

    fixed_bytes = 4 * (I * K * N + 2 * N * J + 2 * I * J)
    vmem_limit = int(min(vmem_cap - (2 << 20),
                         max(32 << 20, fixed_bytes + 2 * per_sample * b_tile + (8 << 20))))

    flops_per_iter = (2 * B_pad * I * K * N        # u_hat projection (recomputed per iter)
                      + 2 * B_pad * I * N          # c-weighted i-reduction (s)
                      + 4 * B_pad * N * J          # squash grouping dots
                      + 2 * B_pad * I * N          # logit-update contraction
                      + 2 * I * N * J)             # t @ g_reduce
    cost = pl.CostEstimate(
        flops=routings * flops_per_iter,
        transcendentals=routings * (I * J + 2 * B_pad * J),
        bytes_accessed=4 * (routings * (I * B_pad * K + B_pad * N)
                            + I * K * N + 2 * N * J),
    )

    kernel = functools.partial(_capsnet_kernel, routings=routings,
                               inv_batch=float(1.0 / B),
                               mxu_projection=(projection == "mxu"))

    v_flat = pl.pallas_call(
        kernel,
        out_shape=jax.ShapeDtypeStruct((B_pad, N), jnp.float32),
        grid_spec=pltpu.PrefetchScalarGridSpec(
            num_scalar_prefetch=0,
            grid=(routings, num_bt),
            in_specs=[
                pl.BlockSpec((I, b_tile, K), lambda it, bt: (0, bt, 0)),   # x tile (pipelined)
                pl.BlockSpec((I, K, N), lambda it, bt: (0, 0, 0)),         # weights (resident)
                pl.BlockSpec((N, J), lambda it, bt: (0, 0)),               # g_reduce (resident)
                pl.BlockSpec((J, N), lambda it, bt: (0, 0)),               # g_expand (resident)
            ],
            out_specs=pl.BlockSpec((b_tile, N), lambda it, bt: (bt, 0)),
            scratch_shapes=[pltpu.VMEM((I, J), jnp.float32),               # routing logits
                            pltpu.VMEM((I, J), jnp.float32)],              # delta accumulator
        ),
        compiler_params=pltpu.CompilerParams(
            # batch-tile axis must stay sequential: the logit delta accumulates in scratch
            dimension_semantics=("arbitrary", "arbitrary"),
            vmem_limit_bytes=vmem_limit,
        ),
        cost_estimate=cost,
    )(x_t, w_m, g_reduce, g_expand)

    # torch return: v.squeeze(1).transpose(2, 3) -> [B, out_features, out_dim, 1]
    return v_flat[:B].reshape(B, J, D, 1)


# ---------------------------------------------------------------------------
# Pure-JAX reference mirroring the torch forward line by line (sanity check).
# ---------------------------------------------------------------------------
def capsnet_ref(x, W, routings=3):
    B = x.shape[0]
    _, I, J, K, D = W.shape
    xs = jnp.broadcast_to(x[:, :, None, None, :], (B, I, J, 1, K))
    Wb = jnp.broadcast_to(W, (B, I, J, K, D))
    u_hat = jnp.matmul(xs, Wb)                                       # (B, I, J, 1, D)
    b = jnp.zeros((1, I, J, 1), jnp.float32)
    v = None
    for _ in range(routings):
        c = jax.nn.softmax(b, axis=2)                                # (1, I, J, 1)
        c = jnp.broadcast_to(c, (B, I, J, 1))[..., None]
        s = jnp.sum(u_hat * c, axis=1, keepdims=True)                # (B, 1, J, 1, D)
        sum_sq = jnp.sum(s * s, axis=-1, keepdims=True)
        v = sum_sq / (1.0 + sum_sq) * s / jnp.sqrt(sum_sq)           # squash(s, dim=-1)
        v_1 = jnp.broadcast_to(v, (B, I, J, 1, D))
        upd = jnp.matmul(u_hat, jnp.swapaxes(v_1, 3, 4))             # (B, I, J, 1, 1)
        upd = jnp.mean(upd[..., 0], axis=0, keepdims=True)           # (1, I, J, 1)
        b = b + upd
    return jnp.swapaxes(v[:, 0], 2, 3)                               # (B, J, D, 1)


if __name__ == "__main__":
    # Small shapes consistent with the module: x [batch, in_features, in_dim].
    # b_tile=8 forces 2 batch tiles x 3 routing iterations = 6 grid steps, exercising
    # the persistent-scratch / tile-accumulation path.
    batch, in_features, in_dim = 16, 32, 8
    out_features, out_dim = 10, 16

    key = jax.random.PRNGKey(0)
    k_x, k_w = jax.random.split(key)
    x = jax.random.normal(k_x, (batch, in_features, in_dim), dtype=jnp.float32)
    W = jax.random.normal(
        k_w, (1, in_features, out_features, in_dim, out_dim), dtype=jnp.float32
    )

    out = jax.block_until_ready(capsnet_forward(x, W, b_tile=8))
    ref = capsnet_ref(x, W)

    assert out.shape == (batch, out_features, out_dim, 1)
    assert jnp.allclose(out, ref, rtol=1e-4, atol=1e-5), "mismatch vs JAX reference"

    print("KERNEL_OK")
</pallas_src>

<mosaic_0001>
module attributes {stable_mosaic.version = 11 : i64} {
  func.func @_capsnet_kernel(%arg0: i32, %arg1: i32, %arg2: memref<32x8x8xf32, #tpu.memory_space<vmem>>, %arg3: memref<32x8x160xf32, #tpu.memory_space<vmem>>, %arg4: memref<160x10xf32, #tpu.memory_space<vmem>>, %arg5: memref<10x160xf32, #tpu.memory_space<vmem>>, %arg6: memref<8x160xf32, #tpu.memory_space<vmem>>, %arg7: memref<32x10xf32, #tpu.memory_space<vmem>>, %arg8: memref<32x10xf32, #tpu.memory_space<vmem>>) attributes {dimension_semantics = [#tpu.dimension_semantics<arbitrary>, #tpu.dimension_semantics<arbitrary>], iteration_bounds = array<i64: 3, 2>, scalar_prefetch = 0 : i64, scratch_operands = 2 : i64, tpu.core_type = #tpu.core_type<tc>, window_params = [{transform_indices = @transform_0, window_bounds = array<i64: 32, 8, 8>}, {pipeline_mode = #tpu.pipeline_mode<synchronous>, transform_indices = @transform_1, window_bounds = array<i64: 32, 8, 160>}, {pipeline_mode = #tpu.pipeline_mode<synchronous>, transform_indices = @transform_2, window_bounds = array<i64: 160, 10>}, {pipeline_mode = #tpu.pipeline_mode<synchronous>, transform_indices = @transform_3, window_bounds = array<i64: 10, 160>}, {transform_indices = @transform_4, window_bounds = array<i64: 8, 160>}]} {
    %c0_i32 = arith.constant 0 : i32
    %0 = arith.cmpi eq, %arg0, %c0_i32 : i32
    %c0_i32_0 = arith.constant 0 : i32
    %1 = arith.cmpi eq, %arg1, %c0_i32_0 : i32
    %2 = arith.andi %0, %1 : i1
    %3 = arith.extui %2 : i1 to i32
    %c0_i32_1 = arith.constant 0 : i32
    %4 = arith.cmpi ne, %3, %c0_i32_1 : i32
    scf.if %4 {
      %cst_27 = arith.constant 0.000000e+00 : f32
      %96 = vector.broadcast %cst_27 : f32 to vector<32x10xf32>
      %c0_28 = arith.constant 0 : index
      %c0_29 = arith.constant 0 : index
      %97 = vector.load %arg7[%c0_28, %c0_29] : memref<32x10xf32, #tpu.memory_space<vmem>>, vector<32x10xf32>
      tpu.vector_store %arg7[%c0_28, %c0_29], %96 {strides = array<i32>} : memref<32x10xf32, #tpu.memory_space<vmem>>, vector<32x10xf32>,
    } else {
    }
    %c0_i32_2 = arith.constant 0 : i32
    %5 = arith.cmpi eq, %arg1, %c0_i32_2 : i32
    %6 = arith.extui %5 : i1 to i32
    %c0_i32_3 = arith.constant 0 : i32
    %7 = arith.cmpi ne, %6, %c0_i32_3 : i32
    scf.if %7 {
      %cst_27 = arith.constant 0.000000e+00 : f32
      %96 = vector.broadcast %cst_27 : f32 to vector<32x10xf32>
      %c0_28 = arith.constant 0 : index
      %c0_29 = arith.constant 0 : index
      %97 = vector.load %arg8[%c0_28, %c0_29] : memref<32x10xf32, #tpu.memory_space<vmem>>, vector<32x10xf32>
      tpu.vector_store %arg8[%c0_28, %c0_29], %96 {strides = array<i32>} : memref<32x10xf32, #tpu.memory_space<vmem>>, vector<32x10xf32>,
    } else {
    }
    %c0 = arith.constant 0 : index
    %c0_4 = arith.constant 0 : index
    %c0_5 = arith.constant 0 : index
    %8 = vector.load %arg2[%c0, %c0_4, %c0_5] : memref<32x8x8xf32, #tpu.memory_space<vmem>>, vector<32x8x8xf32>
    %c0_6 = arith.constant 0 : index
    %c0_7 = arith.constant 0 : index
    %c0_8 = arith.constant 0 : index
    %9 = vector.load %arg3[%c0_6, %c0_7, %c0_8] : memref<32x8x160xf32, #tpu.memory_space<vmem>>, vector<32x8x160xf32>
    %c0_9 = arith.constant 0 : index
    %c0_10 = arith.constant 0 : index
    %10 = vector.load %arg4[%c0_9, %c0_10] : memref<160x10xf32, #tpu.memory_space<vmem>>, vector<160x10xf32>
    %c0_11 = arith.constant 0 : index
    %c0_12 = arith.constant 0 : index
    %11 = vector.load %arg5[%c0_11, %c0_12] : memref<10x160xf32, #tpu.memory_space<vmem>>, vector<10x160xf32>
    %12 = vector.extract_strided_slice %8 {offsets = [0, 0, 0], sizes = [32, 8, 1], strides = [1, 1, 1]} : vector<32x8x8xf32> to vector<32x8x1xf32>
    %13 = vector.extract_strided_slice %9 {offsets = [0, 0, 0], sizes = [32, 1, 160], strides = [1, 1, 1]} : vector<32x8x160xf32> to vector<32x1x160xf32>
    %14 = vector.broadcast %12 : vector<32x8x1xf32> to vector<32x8x160xf32>
    %15 = vector.broadcast %13 : vector<32x1x160xf32> to vector<32x8x160xf32>
    %16 = arith.mulf %14, %15 : vector<32x8x160xf32>
    %17 = vector.extract_strided_slice %8 {offsets = [0, 0, 1], sizes = [32, 8, 1], strides = [1, 1, 1]} : vector<32x8x8xf32> to vector<32x8x1xf32>
    %18 = vector.extract_strided_slice %9 {offsets = [0, 1, 0], sizes = [32, 1, 160], strides = [1, 1, 1]} : vector<32x8x160xf32> to vector<32x1x160xf32>
    %19 = vector.broadcast %17 : vector<32x8x1xf32> to vector<32x8x160xf32>
    %20 = vector.broadcast %18 : vector<32x1x160xf32> to vector<32x8x160xf32>
    %21 = arith.mulf %19, %20 : vector<32x8x160xf32>
    %22 = arith.addf %16, %21 : vector<32x8x160xf32>
    %23 = vector.extract_strided_slice %8 {offsets = [0, 0, 2], sizes = [32, 8, 1], strides = [1, 1, 1]} : vector<32x8x8xf32> to vector<32x8x1xf32>
    %24 = vector.extract_strided_slice %9 {offsets = [0, 2, 0], sizes = [32, 1, 160], strides = [1, 1, 1]} : vector<32x8x160xf32> to vector<32x1x160xf32>
    %25 = vector.broadcast %23 : vector<32x8x1xf32> to vector<32x8x160xf32>
    %26 = vector.broadcast %24 : vector<32x1x160xf32> to vector<32x8x160xf32>
    %27 = arith.mulf %25, %26 : vector<32x8x160xf32>
    %28 = arith.addf %22, %27 : vector<32x8x160xf32>
    %29 = vector.extract_strided_slice %8 {offsets = [0, 0, 3], sizes = [32, 8, 1], strides = [1, 1, 1]} : vector<32x8x8xf32> to vector<32x8x1xf32>
    %30 = vector.extract_strided_slice %9 {offsets = [0, 3, 0], sizes = [32, 1, 160], strides = [1, 1, 1]} : vector<32x8x160xf32> to vector<32x1x160xf32>
    %31 = vector.broadcast %29 : vector<32x8x1xf32> to vector<32x8x160xf32>
    %32 = vector.broadcast %30 : vector<32x1x160xf32> to vector<32x8x160xf32>
    %33 = arith.mulf %31, %32 : vector<32x8x160xf32>
    %34 = arith.addf %28, %33 : vector<32x8x160xf32>
    %35 = vector.extract_strided_slice %8 {offsets = [0, 0, 4], sizes = [32, 8, 1], strides = [1, 1, 1]} : vector<32x8x8xf32> to vector<32x8x1xf32>
    %36 = vector.extract_strided_slice %9 {offsets = [0, 4, 0], sizes = [32, 1, 160], strides = [1, 1, 1]} : vector<32x8x160xf32> to vector<32x1x160xf32>
    %37 = vector.broadcast %35 : vector<32x8x1xf32> to vector<32x8x160xf32>
    %38 = vector.broadcast %36 : vector<32x1x160xf32> to vector<32x8x160xf32>
    %39 = arith.mulf %37, %38 : vector<32x8x160xf32>
    %40 = arith.addf %34, %39 : vector<32x8x160xf32>
    %41 = vector.extract_strided_slice %8 {offsets = [0, 0, 5], sizes = [32, 8, 1], strides = [1, 1, 1]} : vector<32x8x8xf32> to vector<32x8x1xf32>
    %42 = vector.extract_strided_slice %9 {offsets = [0, 5, 0], sizes = [32, 1, 160], strides = [1, 1, 1]} : vector<32x8x160xf32> to vector<32x1x160xf32>
    %43 = vector.broadcast %41 : vector<32x8x1xf32> to vector<32x8x160xf32>
    %44 = vector.broadcast %42 : vector<32x1x160xf32> to vector<32x8x160xf32>
    %45 = arith.mulf %43, %44 : vector<32x8x160xf32>
    %46 = arith.addf %40, %45 : vector<32x8x160xf32>
    %47 = vector.extract_strided_slice %8 {offsets = [0, 0, 6], sizes = [32, 8, 1], strides = [1, 1, 1]} : vector<32x8x8xf32> to vector<32x8x1xf32>
    %48 = vector.extract_strided_slice %9 {offsets = [0, 6, 0], sizes = [32, 1, 160], strides = [1, 1, 1]} : vector<32x8x160xf32> to vector<32x1x160xf32>
    %49 = vector.broadcast %47 : vector<32x8x1xf32> to vector<32x8x160xf32>
    %50 = vector.broadcast %48 : vector<32x1x160xf32> to vector<32x8x160xf32>
    %51 = arith.mulf %49, %50 : vector<32x8x160xf32>
    %52 = arith.addf %46, %51 : vector<32x8x160xf32>
    %53 = vector.extract_strided_slice %8 {offsets = [0, 0, 7], sizes = [32, 8, 1], strides = [1, 1, 1]} : vector<32x8x8xf32> to vector<32x8x1xf32>
    %54 = vector.extract_strided_slice %9 {offsets = [0, 7, 0], sizes = [32, 1, 160], strides = [1, 1, 1]} : vector<32x8x160xf32> to vector<32x1x160xf32>
    %55 = vector.broadcast %53 : vector<32x8x1xf32> to vector<32x8x160xf32>
    %56 = vector.broadcast %54 : vector<32x1x160xf32> to vector<32x8x160xf32>
    %57 = arith.mulf %55, %56 : vector<32x8x160xf32>
    %58 = arith.addf %52, %57 : vector<32x8x160xf32>
    %c0_13 = arith.constant 0 : index
    %c0_14 = arith.constant 0 : index
    %59 = vector.load %arg7[%c0_13, %c0_14] : memref<32x10xf32, #tpu.memory_space<vmem>>, vector<32x10xf32>
    %cst = arith.constant dense<0xFF800000> : vector<32xf32>
    %60 = vector.multi_reduction <maximumf>, %59, %cst [1] : vector<32x10xf32> to vector<32xf32>
    %61 = vector.shape_cast %60 : vector<32xf32> to vector<32x1xf32>
    %62 = vector.broadcast %61 : vector<32x1xf32> to vector<32x10xf32>
    %63 = arith.subf %59, %62 : vector<32x10xf32>
    %64 = math.exp %63 : vector<32x10xf32>
    %cst_15 = arith.constant dense<0.000000e+00> : vector<32xf32>
    %65 = vector.multi_reduction <add>, %64, %cst_15 [1] : vector<32x10xf32> to vector<32xf32>
    %66 = vector.shape_cast %65 : vector<32xf32> to vector<32x1xf32>
    %67 = tpu.reciprocal %66 : vector<32x1xf32> -> vector<32x1xf32>
    %68 = vector.broadcast %67 : vector<32x1xf32> to vector<32x10xf32>
    %69 = arith.mulf %64, %68 : vector<32x10xf32>
    %cst_16 = arith.constant dense<0.000000e+00> : vector<32x160xf32>
    %70 = tpu.matmul %69, %11, %cst_16 {dimension_numbers = #tpu.dot_dimension_numbers<[1], [0], [0], [1], [0, 0, 1, 1], [], []>} : vector<32x10xf32>, vector<10x160xf32>, vector<32x160xf32> -> vector<32x160xf32>
    %71 = vector.shape_cast %70 : vector<32x160xf32> to vector<32x1x160xf32>
    %72 = vector.broadcast %71 : vector<32x1x160xf32> to vector<32x8x160xf32>
    %73 = arith.mulf %58, %72 : vector<32x8x160xf32>
    %cst_17 = arith.constant dense<0.000000e+00> : vector<8x160xf32>
    %74 = vector.multi_reduction <add>, %73, %cst_17 [0] : vector<32x8x160xf32> to vector<8x160xf32>
    %75 = arith.mulf %74, %74 : vector<8x160xf32>
    %cst_18 = arith.constant dense<0.000000e+00> : vector<8x10xf32>
    %76 = tpu.matmul %75, %10, %cst_18 {dimension_numbers = #tpu.dot_dimension_numbers<[1], [0], [0], [1], [0, 0, 1, 1], [], []>} : vector<8x160xf32>, vector<160x10xf32>, vector<8x10xf32> -> vector<8x10xf32>
    %cst_19 = arith.constant 9.99999971E-10 : f32
    %77 = vector.broadcast %cst_19 : f32 to vector<8x10xf32>
    %78 = arith.addf %76, %77 : vector<8x10xf32>
    %79 = math.rsqrt %78 : vector<8x10xf32>
    %80 = arith.mulf %76, %79 : vector<8x10xf32>
    %cst_20 = arith.constant 1.000000e+00 : f32
    %81 = vector.broadcast %cst_20 : f32 to vector<8x10xf32>
    %82 = arith.addf %81, %76 : vector<8x10xf32>
    %83 = tpu.reciprocal %82 : vector<8x10xf32> -> vector<8x10xf32>
    %84 = arith.mulf %80, %83 : vector<8x10xf32>
    %cst_21 = arith.constant dense<0.000000e+00> : vector<8x160xf32>
    %85 = tpu.matmul %84, %11, %cst_21 {dimension_numbers = #tpu.dot_dimension_numbers<[1], [0], [0], [1], [0, 0, 1, 1], [], []>} : vector<8x10xf32>, vector<10x160xf32>, vector<8x160xf32> -> vector<8x160xf32>
    %86 = arith.mulf %74, %85 : vector<8x160xf32>
    %c0_22 = arith.constant 0 : index
    %c0_23 = arith.constant 0 : index
    %87 = vector.load %arg6[%c0_22, %c0_23] : memref<8x160xf32, #tpu.memory_space<vmem>>, vector<8x160xf32>
    tpu.vector_store %arg6[%c0_22, %c0_23], %86 {strides = array<i32>} : memref<8x160xf32, #tpu.memory_space<vmem>>, vector<8x160xf32>,
    %c2_i32 = arith.constant 2 : i32
    %88 = arith.cmpi slt, %arg0, %c2_i32 : i32
    %89 = arith.extui %88 : i1 to i32
    %c0_i32_24 = arith.constant 0 : i32
    %90 = arith.cmpi ne, %89, %c0_i32_24 : i32
    scf.if %90 {
      %96 = vector.shape_cast %86 : vector<8x160xf32> to vector<1x8x160xf32>
      %97 = vector.broadcast %96 : vector<1x8x160xf32> to vector<32x8x160xf32>
      %98 = arith.mulf %58, %97 : vector<32x8x160xf32>
      %cst_27 = arith.constant dense<0.000000e+00> : vector<32x160xf32>
      %99 = vector.multi_reduction <add>, %98, %cst_27 [1] : vector<32x8x160xf32> to vector<32x160xf32>
      %c0_28 = arith.constant 0 : index
      %c0_29 = arith.constant 0 : index
      %100 = vector.load %arg8[%c0_28, %c0_29] : memref<32x10xf32, #tpu.memory_space<vmem>>, vector<32x10xf32>
      %cst_30 = arith.constant dense<0.000000e+00> : vector<32x10xf32>
      %101 = tpu.matmul %99, %10, %cst_30 {dimension_numbers = #tpu.dot_dimension_numbers<[1], [0], [0], [1], [0, 0, 1, 1], [], []>} : vector<32x160xf32>, vector<160x10xf32>, vector<32x10xf32> -> vector<32x10xf32>
      %102 = arith.addf %100, %101 : vector<32x10xf32>
      %c0_31 = arith.constant 0 : index
      %c0_32 = arith.constant 0 : index
      %103 = vector.load %arg8[%c0_31, %c0_32] : memref<32x10xf32, #tpu.memory_space<vmem>>, vector<32x10xf32>
      tpu.vector_store %arg8[%c0_31, %c0_32], %102 {strides = array<i32>} : memref<32x10xf32, #tpu.memory_space<vmem>>, vector<32x10xf32>,
    } else {
    }
    %c2_i32_25 = arith.constant 2 : i32
    %91 = arith.cmpi slt, %arg0, %c2_i32_25 : i32
    %c1_i32 = arith.constant 1 : i32
    %92 = arith.cmpi eq, %arg1, %c1_i32 : i32
    %93 = arith.andi %91, %92 : i1
    %94 = arith.extui %93 : i1 to i32
    %c0_i32_26 = arith.constant 0 : i32
    %95 = arith.cmpi ne, %94, %c0_i32_26 : i32
    scf.if %95 {
      %c0_27 = arith.constant 0 : index
      %c0_28 = arith.constant 0 : index
      %96 = vector.load %arg7[%c0_27, %c0_28] : memref<32x10xf32, #tpu.memory_space<vmem>>, vector<32x10xf32>
      %c0_29 = arith.constant 0 : index
      %c0_30 = arith.constant 0 : index
      %97 = vector.load %arg8[%c0_29, %c0_30] : memref<32x10xf32, #tpu.memory_space<vmem>>, vector<32x10xf32>
      %cst_31 = arith.constant 6.250000e-02 : f32
      %98 = vector.broadcast %cst_31 : f32 to vector<32x10xf32>
      %99 = arith.mulf %97, %98 : vector<32x10xf32>
      %100 = arith.addf %96, %99 : vector<32x10xf32>
      %c0_32 = arith.constant 0 : index
      %c0_33 = arith.constant 0 : index
      %101 = vector.load %arg7[%c0_32, %c0_33] : memref<32x10xf32, #tpu.memory_space<vmem>>, vector<32x10xf32>
      tpu.vector_store %arg7[%c0_32, %c0_33], %100 {strides = array<i32>} : memref<32x10xf32, #tpu.memory_space<vmem>>, vector<32x10xf32>,
    } else {
    }
    return
  }
  func.func @transform_0(%arg0: i32, %arg1: i32) -> (i32, i32, i32) {
    %c0_i32 = arith.constant 0 : i32
    %c0_i32_0 = arith.constant 0 : i32
    %c0_i32_1 = arith.constant 0 : i32
    return %c0_i32, %arg1, %c0_i32_0 : i32, i32, i32
  }
  func.func @transform_1(%arg0: i32, %arg1: i32) -> (i32, i32, i32) {
    %c0_i32 = arith.constant 0 : i32
    %c0_i32_0 = arith.constant 0 : i32
    %c0_i32_1 = arith.constant 0 : i32
    %c0_i32_2 = arith.constant 0 : i32
    return %c0_i32, %c0_i32_0, %c0_i32_1 : i32, i32, i32
  }
  func.func @transform_2(%arg0: i32, %arg1: i32) -> (i32, i32) {
    %c0_i32 = arith.constant 0 : i32
    %c0_i32_0 = arith.constant 0 : i32
    %c0_i32_1 = arith.constant 0 : i32
    return %c0_i32, %c0_i32_0 : i32, i32
  }
  func.func @transform_3(%arg0: i32, %arg1: i32) -> (i32, i32) {
    %c0_i32 = arith.constant 0 : i32
    %c0_i32_0 = arith.constant 0 : i32
    %c0_i32_1 = arith.constant 0 : i32
    return %c0_i32, %c0_i32_0 : i32, i32
  }
  func.func @transform_4(%arg0: i32, %arg1: i32) -> (i32, i32) {
    %c0_i32 = arith.constant 0 : i32
    %c0_i32_0 = arith.constant 0 : i32
    return %arg1, %c0_i32 : i32, i32
  }
}

</mosaic_0001>

<bundles_post_ra>
// kernel: tpu_custom_call.1
= control target key start
LH: loop header
LB: loop body
LE: loop exit
PB: predicated region body
PF: predicated region fallthrough
CT: control target
= control target key end

     0   :  { %9 = vsyncpa [#allocation6], 0  ;;  %s11609_s0 = inlined_call_operand.vmem [shape: f32[32,16,8], index: 0, kind: input, shape index: {}]   ;;  %s11610_s1 = inlined_call_operand.vmem [shape: f32[32,8,160], index: 1, kind: input, shape index: {}]   ;;  %s11611_s2 = inlined_call_operand.vmem [shape: f32[160,10], index: 2, kind: input, shape index: {}]   ;;  %s11612_s3 = inlined_call_operand.vmem [shape: f32[10,160], index: 3, kind: input, shape index: {}]   ;;  %s11613_s4 = inlined_call_operand.hbm [shape: f32[16,160], index: 4, kind: output, shape index: {}]  }
   0x1   :  { %11 = vsyncpa [#allocation6 + $0x1], 0  ;;  %s6872_s15 = smov 0   ;;  %s6874_s16 = smov 0  }
   0x2   :  { %s6876_s17 = smov 0   ;;  %s6878_s18 = smov 0  }
   0x3   :  { %s6880_s19 = smov 0   ;;  %s6882_s20 = smov 0  }
   0x4   :  { %s6884_s21 = smov 0   ;;  %s6886_s22 = smov 0  }
   0x5 LB: > { %s6409_s23 = sadd.s32 4294967295, %s6831_s22   ;;  %s6410_s24 = sadd.s32 4294967294, %s6831_s22   ;;  %s6831_s22 = sphi %s6886_s22, %s17_s22   ;;  %s6827_s21 = sphi %s6884_s21, %s12796_s21   ;;  %s6823_s20 = sphi %s6882_s20, %s12795_s20   ;;  %s6819_s19 = sphi %s6880_s19, %s12794_s19   ;;  %s6815_s18 = sphi %s6878_s18, %s12793_s18   ;;  %s6811_s17 = sphi %s6876_s17, %s12792_s17   ;;  %s6807_s16 = sphi %s6874_s16, %s12791_s16   ;;  %s6803_s15 = sphi %s6872_s15, %s12790_s15  }
   0x6   : > { %s26_s25 = sadd.s32 1, %s6823_s20  ;;  %s29_s26 = sadd.s32 1, %s6827_s21 }
   0x7   : > { %p27_p0 = scmp.ge.s32.totalorder %s26_s25, 2  ;;  %s36_s27 = sadd.s32 1, %s6811_s17 }
   0x8   : > { %p43_p1 = scmp.ne.s32.totalorder %s6811_s17, %s6807_s16  ;;  %p44_p2 = scmp.eq.s32.totalorder %s6831_s22, 0 }
   0x9   : > { %s12798_s25 = smov (%p27_p0, %s26_s25), 0  ;;  %s12800_s26 = smov (!%p27_p0, %s29_s26), %s6827_s21 }
   0xa   : > { %s33_s28 = ssub.s32 %s6823_s20, %s12798_s25  ;;  %p45_p3 = por %p44_p2, %p43_p1 }
   0xb   : > { %p31_p4 = scmp.ge.s32.totalorder %s12800_s26, 3  ;;  %p34_p5 = scmp.eq.s32.totalorder %s33_s28, 0 }
   0xc   : > { %p136_p6 = scmp.eq.s32.totalorder %s6409_s23, 5  ;;  %p141_p7 = scmp.ne.s32.totalorder %s6807_s16, %s6803_s15 }
   0xd   : > { %s12802_s26 = smov (%p31_p4, %s12800_s26), 0  ;;  %p142_p9 = scmp.eq.s32.totalorder %s6410_s24, 5 }
   0xe   : > { %s6930_s29 = scalar_select %p34_p5, %s6811_s17, %s36_s27  }
   0xf   : > { %p6932_p8 = por %p136_p6, %p43_p1  ;;  %p6936_p10 = por %p142_p9, %p141_p7 }
  0x10   : > { %p6412_p11 = scmp.ge.s32.totalorder %s6831_s22, 6 }
  0x12   : > { %167 = sbr.rel (%p6412_p11) target bundleno = 43 (0x2b), region = 28 }
  0x17   : > { %170 = sbr.rel (!%p45_p3) target bundleno = 43 (0x2b), region = 32  ;;  %s172_s6 = sand.u32 (%p45_p3), 1, %s6811_s17  }
  0x18   : > { %s6414_s7 = sshll.u32 (%p45_p3), %s6823_s20, 3  ;;  %s6413_s8 = sshll.u32 (%p45_p3), %s172_s6, 8 }
  0x19   : > { %s6946_s11 = scalar_lea.vmem (%p45_p3), %s11609_s0, %s6414_s7  ;;  %s6951_s12 = scalar_lea.vmem (%p45_p3), [#allocation4], %s6413_s8 }
  0x1a   : > { %v267_v0 = vld [vmem:[%s6946_s11] sm:$0xff] (%p45_p3)  ;;  %v269_v1 = vld [vmem:[%s6946_s11 + $0x10] sm:$0xff] (%p45_p3) }
  0x1b   : > { %v271_v2 = vld [vmem:[%s6946_s11 + $0x20] sm:$0xff] (%p45_p3)  ;;  %268 = vst [vmem:[%s6951_s12] sm:$0xff] (%p45_p3), %v267_v0  ;;  %270 = vst [vmem:[%s6951_s12 + $0x8] sm:$0xff] (%p45_p3), %v269_v1  ;;  %v273_v3 = vld [vmem:[%s6946_s11 + $0x30] sm:$0xff] (%p45_p3) }
  0x1c   : > { %272 = vst [vmem:[%s6951_s12 + $0x10] sm:$0xff] %v271_v2  ;;  %v275_v4 = vld [vmem:[%s6946_s11 + $0x40] sm:$0xff]  ;;  %v277_v5 = vld [vmem:[%s6946_s11 + $0x50] sm:$0xff]  ;;  %274 = vst [vmem:[%s6951_s12 + $0x18] sm:$0xff] %v273_v3 }
  0x1d   : > { %276 = vst [vmem:[%s6951_s12 + $0x20] sm:$0xff] %v275_v4  ;;  %278 = vst [vmem:[%s6951_s12 + $0x28] sm:$0xff] %v277_v5  ;;  %v279_v6 = vld [vmem:[%s6946_s11 + $0x60] sm:$0xff]  ;;  %v281_v7 = vld [vmem:[%s6946_s11 + $0x70] sm:$0xff] }
  0x1e   : > { %v283_v8 = vld [vmem:[%s6946_s11 + $0x80] sm:$0xff]  ;;  %280 = vst [vmem:[%s6951_s12 + $0x30] sm:$0xff] %v279_v6  ;;  %282 = vst [vmem:[%s6951_s12 + $0x38] sm:$0xff] %v281_v7  ;;  %v285_v9 = vld [vmem:[%s6946_s11 + $0x90] sm:$0xff] }
  0x1f   : > { %284 = vst [vmem:[%s6951_s12 + $0x40] sm:$0xff] %v283_v8  ;;  %v287_v10 = vld [vmem:[%s6946_s11 + $0xa0] sm:$0xff]  ;;  %v289_v11 = vld [vmem:[%s6946_s11 + $0xb0] sm:$0xff]  ;;  %286 = vst [vmem:[%s6951_s12 + $0x48] sm:$0xff] %v285_v9 }
  0x20   : > { %288 = vst [vmem:[%s6951_s12 + $0x50] sm:$0xff] %v287_v10  ;;  %290 = vst [vmem:[%s6951_s12 + $0x58] sm:$0xff] %v289_v11  ;;  %v291_v12 = vld [vmem:[%s6946_s11 + $0xc0] sm:$0xff]  ;;  %v293_v13 = vld [vmem:[%s6946_s11 + $0xd0] sm:$0xff] }
  0x21   : > { %v295_v14 = vld [vmem:[%s6946_s11 + $0xe0] sm:$0xff]  ;;  %292 = vst [vmem:[%s6951_s12 + $0x60] sm:$0xff] %v291_v12  ;;  %294 = vst [vmem:[%s6951_s12 + $0x68] sm:$0xff] %v293_v13  ;;  %v297_v15 = vld [vmem:[%s6946_s11 + $0xf0] sm:$0xff] }
  0x22   : > { %296 = vst [vmem:[%s6951_s12 + $0x70] sm:$0xff] %v295_v14  ;;  %v299_v16 = vld [vmem:[%s6946_s11 + $0x100] sm:$0xff]  ;;  %v301_v17 = vld [vmem:[%s6946_s11 + $0x110] sm:$0xff]  ;;  %298 = vst [vmem:[%s6951_s12 + $0x78] sm:$0xff] %v297_v15 }
  0x23   : > { %300 = vst [vmem:[%s6951_s12 + $0x80] sm:$0xff] %v299_v16  ;;  %302 = vst [vmem:[%s6951_s12 + $0x88] sm:$0xff] %v301_v17  ;;  %v303_v18 = vld [vmem:[%s6946_s11 + $0x120] sm:$0xff]  ;;  %v305_v19 = vld [vmem:[%s6946_s11 + $0x130] sm:$0xff] }
  0x24   : > { %v307_v20 = vld [vmem:[%s6946_s11 + $0x140] sm:$0xff]  ;;  %304 = vst [vmem:[%s6951_s12 + $0x90] sm:$0xff] %v303_v18  ;;  %306 = vst [vmem:[%s6951_s12 + $0x98] sm:$0xff] %v305_v19  ;;  %v309_v21 = vld [vmem:[%s6946_s11 + $0x150] sm:$0xff] }
  0x25   : > { %308 = vst [vmem:[%s6951_s12 + $0xa0] sm:$0xff] %v307_v20  ;;  %v311_v22 = vld [vmem:[%s6946_s11 + $0x160] sm:$0xff]  ;;  %v313_v23 = vld [vmem:[%s6946_s11 + $0x170] sm:$0xff]  ;;  %310 = vst [vmem:[%s6951_s12 + $0xa8] sm:$0xff] %v309_v21 }
  0x26   : > { %312 = vst [vmem:[%s6951_s12 + $0xb0] sm:$0xff] %v311_v22  ;;  %314 = vst [vmem:[%s6951_s12 + $0xb8] sm:$0xff] %v313_v23  ;;  %v315_v24 = vld [vmem:[%s6946_s11 + $0x180] sm:$0xff]  ;;  %v317_v25 = vld [vmem:[%s6946_s11 + $0x190] sm:$0xff] }
  0x27   : > { %v319_v26 = vld [vmem:[%s6946_s11 + $0x1a0] sm:$0xff]  ;;  %316 = vst [vmem:[%s6951_s12 + $0xc0] sm:$0xff] %v315_v24  ;;  %318 = vst [vmem:[%s6951_s12 + $0xc8] sm:$0xff] %v317_v25  ;;  %v321_v27 = vld [vmem:[%s6946_s11 + $0x1b0] sm:$0xff] }
  0x28   : > { %320 = vst [vmem:[%s6951_s12 + $0xd0] sm:$0xff] %v319_v26  ;;  %v323_v28 = vld [vmem:[%s6946_s11 + $0x1c0] sm:$0xff]  ;;  %v325_v29 = vld [vmem:[%s6946_s11 + $0x1d0] sm:$0xff]  ;;  %322 = vst [vmem:[%s6951_s12 + $0xd8] sm:$0xff] %v321_v27 }
  0x29   : > { %324 = vst [vmem:[%s6951_s12 + $0xe0] sm:$0xff] %v323_v28  ;;  %326 = vst [vmem:[%s6951_s12 + $0xe8] sm:$0xff] %v325_v29  ;;  %v327_v30 = vld [vmem:[%s6946_s11 + $0x1e0] sm:$0xff]  ;;  %v329_v31 = vld [vmem:[%s6946_s11 + $0x1f0] sm:$0xff] }
  0x2a   : > { %328 = vst [vmem:[%s6951_s12 + $0xf0] sm:$0xff] %v327_v30  ;;  %330 = vst [vmem:[%s6951_s12 + $0xf8] sm:$0xff] %v329_v31 }
  0x2b PF: > { %p6415_p12 = scmp.ge.s32.totalorder %s6831_s22, 1  ;;  %p335_p13 = scmp.lt.s32.totalorder %s6831_s22, 7 }
  0x2d   : > { %p336_p0 = pnand %p6415_p12, %p335_p13 }
  0x2f   : > { %339 = sbr.rel (%p336_p0) target bundleno = 1975 (0x7b7), region = 70 }
  0x34   : > { %s7017_s13 = sand.u32 1, %s6807_s16   ;;  %p367_p1 = scmp.eq.s32.totalorder %s6819_s19, 0 }
  0x35   : > { %s6416_s14 = sshll.u32 %s7017_s13, 8  ;;  %s6417_s23 = sshll.u32 %s7017_s13, 4 }
  0x36   : > { %p368_p2 = scmp.eq.s32.totalorder %s6815_s18, 0  ;;  %s7023_s24 = scalar_lea.vmem [#allocation4], %s6416_s14 }
  0x37   : > { %s7025_s27 = scalar_lea.vmem [#allocation5], %s6417_s23 }
  0x38   : > { %p369_p3 = pnand %p368_p2, %p367_p1 }
  0x3a   : > { %372 = sbr.rel (%p369_p3) target bundleno = 66 (0x42), region = 78 }
  0x3f   : > { %vm373_vm0 = vcmask 80896   ;;  %v6833_v32 = vmov 0.0  }
  0x40   : > { %374 = vst.msk [vmem:[#allocation2] sm:$0xff] %vm373_vm0, %v6833_v32  ;;  %375 = vst.msk [vmem:[#allocation2 + $0x8] sm:$0xff] %vm373_vm0, %v6833_v32 }
  0x41   : > { %376 = vst.msk [vmem:[#allocation2 + $0x10] sm:$0xff] %vm373_vm0, %v6833_v32  ;;  %377 = vst.msk [vmem:[#allocation2 + $0x18] sm:$0xff] %vm373_vm0, %v6833_v32 }
  0x42 PF: > { %p6418_p4 = scmp.ne.s32.totalorder %s6815_s18, 0 }
  0x44   : > { %380 = sbr.rel (%p6418_p4) target bundleno = 76 (0x4c), region = 82 }
  0x49   : > { %vm381_vm1 = vcmask 80896   ;;  %v6834_v33 = vmov 0.0  }
  0x4a   : > { %382 = vst.msk [vmem:[#allocation3] sm:$0xff] %vm381_vm1, %v6834_v33  ;;  %383 = vst.msk [vmem:[#allocation3 + $0x8] sm:$0xff] %vm381_vm1, %v6834_v33 }
  0x4b   : > { %384 = vst.msk [vmem:[#allocation3 + $0x10] sm:$0xff] %vm381_vm1, %v6834_v33  ;;  %385 = vst.msk [vmem:[#allocation3 + $0x18] sm:$0xff] %vm381_vm1, %v6834_v33 }
  0x4c PF: > { %v7029_v34 = vld [vmem:[%s7023_s24 + $0x10] sm:$0xff]  ;;  %v7032_v35 = vld [vmem:[%s7023_s24] sm:$0xff]  ;;  %v6835_v36 = vmov 0   ;;  %v7037_v37 = vld [vmem:[%s7023_s24 + $0x18] sm:$0xff]  ;;  %v6836_v3 = vmov 1   ;;  %vm4574_vm2 = vcmask 80896  }
  0x4d   : > { %6565 = vset.pattern.permute.xlu1 %v6835_v36  ;;  %6564 = vset.pattern.permute.xlu0 %v6835_v36  ;;  %v7040_v38 = vld [vmem:[%s7023_s24 + $0x8] sm:$0xff]  ;;  %v7048_v40 = vld [vmem:[%s7023_s24 + $0x20] sm:$0xff]  ;;  %v7053_v41 = vld [vmem:[%s7023_s24 + $0x38] sm:$0xff]  ;;  %vm4631_vm3 = vcmask 1041408   ;;  %vm5350_vm4 = vcmask 261120   ;;  %p5573_p5 = scmp.lt.s32.totalorder %s6819_s19, 2 }
  0x4e   : > { %518 = vperm.xlu1 %6565, %v7029_v34   ;;  %508 = vperm.xlu0 %6564, %v7032_v35   ;;  %v7045_v39 = vld [vmem:[%s7023_s24 + $0x28] sm:$0xff]  ;;  %v7056_v42 = vld [vmem:[%s7023_s24 + $0x30] sm:$0xff]  ;;  %v7064_v44 = vld [vmem:[%s7023_s24 + $0x40] sm:$0xff]  ;;  %p6429_p6 = scmp.ge.s32.totalorder %s6819_s19, 2 }
  0x4f   : > { %v7061_v43 = vld [vmem:[%s7023_s24 + $0x48] sm:$0xff]  ;;  %v7069_v45 = vld [vmem:[%s7023_s24 + $0x58] sm:$0xff]  ;;  %v7072_v46 = vld [vmem:[%s7023_s24 + $0x50] sm:$0xff] }
  0x50   : > { %v7077_v47 = vld [vmem:[%s7023_s24 + $0x68] sm:$0xff]  ;;  %v7080_v48 = vld [vmem:[%s7023_s24 + $0x60] sm:$0xff]  ;;  %v7085_v49 = vld [vmem:[%s7023_s24 + $0x78] sm:$0xff] }
  0x51   : > { %v7088_v50 = vld [vmem:[%s7023_s24 + $0x70] sm:$0xff]  ;;  %v7093_v51 = vld [vmem:[%s7023_s24 + $0x88] sm:$0xff]  ;;  %v7096_v52 = vld [vmem:[%s7023_s24 + $0x80] sm:$0xff] }
  0x52   : > { %523 = vperm.xlu1 %6565, %v7037_v37   ;;  %513 = vperm.xlu0 %6564, %v7040_v38   ;;  %v7101_v53 = vld [vmem:[%s7023_s24 + $0x98] sm:$0xff]  ;;  %v7104_v54 = vld [vmem:[%s7023_s24 + $0x90] sm:$0xff]  ;;  %v7109_v55 = vld [vmem:[%s7023_s24 + $0xa8] sm:$0xff] }
  0x53   : > { %v7112_v56 = vld [vmem:[%s7023_s24 + $0xa0] sm:$0xff]  ;;  %v7117_v57 = vld [vmem:[%s7023_s24 + $0xb8] sm:$0xff]  ;;  %v7120_v58 = vld [vmem:[%s7023_s24 + $0xb0] sm:$0xff] }
  0x54   : > { %v7125_v59 = vld [vmem:[%s7023_s24 + $0xc8] sm:$0xff]  ;;  %v7128_v60 = vld [vmem:[%s7023_s24 + $0xc0] sm:$0xff]  ;;  %v7133_v61 = vld [vmem:[%s7023_s24 + $0xd8] sm:$0xff] }
  0x55   : > { %11994 = vst [vmem:[#allocation8_spill] sm:$0xff] %v7125_v59  ;;  %v7136_v62 = vld [vmem:[%s7023_s24 + $0xd0] sm:$0xff]  ;;  %v7141_v63 = vld [vmem:[%s7023_s24 + $0xe8] sm:$0xff]  ;;  %v7144_v0 = vld [vmem:[%s7023_s24 + $0xe0] sm:$0xff] }
  0x56   : > { %533 = vperm.xlu1 %6565, %v7045_v39   ;;  %528 = vperm.xlu0 %6564, %v7048_v40   ;;  %v7149_v1 = vld [vmem:[%s7023_s24 + $0xf8] sm:$0xff]  ;;  %v7152_v2 = vld [vmem:[%s7023_s24 + $0xf0] sm:$0xff]  ;;  %v4571_v4 = vld [vmem:[#allocation2 + $0x8] sm:$0xff] }
  0x57   : > { %v4578_v5 = vsel %vm4574_vm2, %v4571_v4, -inf  ;;  %v4572_v6 = vld [vmem:[#allocation2 + $0x10] sm:$0xff]  ;;  %v7168_v8 = vld [vmem:[#allocation2 + $0x18] sm:$0xff]  ;;  %v4570_v10 = vld [vmem:[#allocation2] sm:$0xff] }
  0x58   : > { %v4581_v7 = vsel %vm4574_vm2, %v4572_v6, -inf  ;;  %v4584_v9 = vsel %vm4574_vm2, %v7168_v8, -inf  ;;  %v4575_v11 = vsel %vm4574_vm2, %v4570_v10, -inf }
  0x5a   : > { %543 = vperm.xlu1 %6565, %v7053_v41   ;;  %538 = vperm.xlu0 %6564, %v7056_v42  }
  0x5e   : > { %553 = vperm.xlu1 %6565, %v7061_v43   ;;  %548 = vperm.xlu0 %6564, %v7064_v44  }
  0x62   : > { %563 = vperm.xlu1 %6565, %v7069_v45   ;;  %558 = vperm.xlu0 %6564, %v7072_v46  }
  0x66   : > { %573 = vperm.xlu1 %6565, %v7077_v47   ;;  %568 = vperm.xlu0 %6564, %v7080_v48  }
  0x6a   : > { %583 = vperm.xlu1 %6565, %v7085_v49   ;;  %578 = vperm.xlu0 %6564, %v7088_v50  }
  0x6e   : > { %593 = vperm.xlu1 %6565, %v7093_v51   ;;  %588 = vperm.xlu0 %6564, %v7096_v52  }
  0x72   : > { %603 = vperm.xlu1 %6565, %v7101_v53   ;;  %598 = vperm.xlu0 %6564, %v7104_v54  }
  0x76   : > { %613 = vperm.xlu1 %6565, %v7109_v55   ;;  %608 = vperm.xlu0 %6564, %v7112_v56  }
  0x7a   : > { %623 = vperm.xlu1 %6565, %v7117_v57   ;;  %618 = vperm.xlu0 %6564, %v7120_v58  }
  0x7e   : > { %633 = vperm.xlu1 %6565, %v7125_v59   ;;  %628 = vperm.xlu0 %6564, %v7128_v60  }
  0x82   : > { %643 = vperm.xlu1 %6565, %v7133_v61   ;;  %638 = vperm.xlu0 %6564, %v7136_v62  }
  0x86   : > { %653 = vperm.xlu1 %6565, %v7141_v63   ;;  %648 = vperm.xlu0 %6564, %v7144_v0  }
  0x8a   : > { %663 = vperm.xlu1 %6565, %v7149_v1   ;;  %658 = vperm.xlu0 %6564, %v7152_v2  }
  0x8e   : > { %6567 = vset.pattern.permute.xlu1 %v6836_v3  ;;  %6566 = vset.pattern.permute.xlu0 %v6836_v3 }
  0x8f   : > { %991 = vperm.xlu1 %6567, %v7040_v38   ;;  %987 = vperm.xlu0 %6566, %v7032_v35  }
  0x93   : > { %995 = vperm.xlu1 %6567, %v7029_v34   ;;  %999 = vperm.xlu0 %6566, %v7037_v37  }
  0x97   : > { %1007 = vperm.xlu0 %6566, %v7045_v39  }
  0x9b   : > { %1015 = vperm.xlu0 %6566, %v7053_v41  }
  0x9f   : > { %1023 = vperm.xlu0 %6566, %v7061_v43  }
  0xa3   : > { %1031 = vperm.xlu0 %6566, %v7069_v45  }
  0xa7   : > { %1039 = vperm.xlu0 %6566, %v7077_v47  }
  0xab   : > { %1047 = vperm.xlu0 %6566, %v7085_v49  }
  0xb7   : > { %4579 = vmax.xlane.f32.xlu1 %v4578_v5 }
  0xbb   : > { %4582 = vmax.xlane.f32.xlu1 %v4581_v7 }
  0xbf   : > { %4585 = vmax.xlane.f32.xlu1 %v4584_v9 }
  0xc9   : > { %v7173_v12 = vpop.permute.xlu0 %508  ;;  %v7179_v15 = vpop.permute.xlu1 %518 }
  0xca   : > { %4576 = vmax.xlane.f32.xlu0 %v4575_v11 }
  0xcd   : > { %v7175_v13 = vpop.permute.xlu0 %513  ;;  %v7183_v17 = vpop.permute.xlu1 %523 }
  0xd1   : > { %v7177_v14 = vpop.permute.xlu0 %528  ;;  %v7187_v19 = vpop.permute.xlu1 %533 }
  0xd5   : > { %v7181_v16 = vpop.permute.xlu0 %538  ;;  %v7191_v21 = vpop.permute.xlu1 %543 }
  0xd9   : > { %v7185_v18 = vpop.permute.xlu0 %548  ;;  %v7195_v23 = vpop.permute.xlu1 %553 }
  0xda   : > { %11995 = vst [vmem:[#allocation9_spill] sm:$0xff] %v7185_v18  ;;  %11998 = vst [vmem:[#allocation12_spill] sm:$0xff] %v7195_v23 }
  0xdd   : > { %v7189_v20 = vpop.permute.xlu0 %558  ;;  %v7199_v25 = vpop.permute.xlu1 %563 }
  0xde   : > { %11996 = vst [vmem:[#allocation10_spill] sm:$0xff] %v7189_v20  ;;  %12000 = vst [vmem:[#allocation14_spill] sm:$0xff] %v7199_v25 }
  0xe1   : > { %v7193_v22 = vpop.permute.xlu0 %568  ;;  %v7203_v27 = vpop.permute.xlu1 %573 }
  0xe2   : > { %11997 = vst [vmem:[#allocation11_spill] sm:$0xff] %v7193_v22  ;;  %12001 = vst [vmem:[#allocation15_spill] sm:$0xff] %v7203_v27 }
  0xe5   : > { %v7197_v24 = vpop.permute.xlu0 %578  ;;  %v7207_v29 = vpop.permute.xlu1 %583 }
  0xe6   : > { %11999 = vst [vmem:[#allocation13_spill] sm:$0xff] %v7197_v24  ;;  %12003 = vst [vmem:[#allocation17_spill] sm:$0xff] %v7207_v29 }
  0xe9   : > { %v7201_v26 = vpop.permute.xlu0 %588  ;;  %v7211_v31 = vpop.permute.xlu1 %593 }
  0xea   : > { %12005 = vst [vmem:[#allocation19_spill] sm:$0xff] %v7211_v31 }
  0xed   : > { %v7205_v28 = vpop.permute.xlu0 %598  ;;  %v7215_v33 = vpop.permute.xlu1 %603 }
  0xee   : > { %12002 = vst [vmem:[#allocation16_spill] sm:$0xff] %v7205_v28  ;;  %12007 = vst [vmem:[#allocation21_spill] sm:$0xff] %v7215_v33 }
  0xf1   : > { %v7209_v30 = vpop.permute.xlu0 %608  ;;  %v7219_v3 = vpop.permute.xlu1 %613 }
  0xf2   : > { %12004 = vst [vmem:[#allocation18_spill] sm:$0xff] %v7209_v30  ;;  %12009 = vst [vmem:[#allocation23_spill] sm:$0xff] %v7219_v3 }
  0xf5   : > { %v7213_v32 = vpop.permute.xlu0 %618  ;;  %v7223_v7 = vpop.permute.xlu1 %623 }
  0xf6   : > { %12006 = vst [vmem:[#allocation20_spill] sm:$0xff] %v7213_v32  ;;  %12011 = vst [vmem:[#allocation25_spill] sm:$0xff] %v7223_v7 }
  0xf9   : > { %v7217_v36 = vpop.permute.xlu0 %628  ;;  %v7227_v11 = vpop.permute.xlu1 %633 }
  0xfa   : > { %12008 = vst [vmem:[#allocation22_spill] sm:$0xff] %v7217_v36  ;;  %12013 = vst [vmem:[#allocation27_spill] sm:$0xff] %v7227_v11 }
  0xfd   : > { %v7221_v5 = vpop.permute.xlu0 %638  ;;  %v7231_v30 = vpop.permute.xlu1 %643 }
  0xfe   : > { %12010 = vst [vmem:[#allocation24_spill] sm:$0xff] %v7221_v5  ;;  %12015 = vst [vmem:[#allocation29_spill] sm:$0xff] %v7231_v30 }
 0x101   : > { %v7225_v9 = vpop.permute.xlu0 %648  ;;  %v7235_v24 = vpop.permute.xlu1 %653 }
 0x102   : > { %12012 = vst [vmem:[#allocation26_spill] sm:$0xff] %v7225_v9  ;;  %12016 = vst [vmem:[#allocation30_spill] sm:$0xff] %v7235_v24 }
 0x105   : > { %v7229_v28 = vpop.permute.xlu0 %658  ;;  %v7239_v36 = vpop.permute.xlu1 %663 }
 0x106   : > { %12014 = vst [vmem:[#allocation28_spill] sm:$0xff] %v7229_v28  ;;  %12017 = vst [vmem:[#allocation31_spill] sm:$0xff] %v7239_v36 }
 0x10a   : > { %v7233_v31 = vpop.permute.xlu0 %987  ;;  %v7243_v5 = vpop.permute.xlu1 %991 }
 0x10e   : > { %v7237_v33 = vpop.permute.xlu0 %999  ;;  %v7247_v9 = vpop.permute.xlu1 %995 }
 0x112   : > { %v7241_v3 = vpop.permute.xlu0 %1007 }
 0x116   : > { %v7245_v7 = vpop.permute.xlu0 %1015 }
 0x117   : > { %12018 = vst [vmem:[#allocation32_spill] sm:$0xff] %v7245_v7 }
 0x11a   : > { %v7249_v11 = vpop.permute.xlu0 %1023 }
 0x11b   : > { %12019 = vst [vmem:[#allocation33_spill] sm:$0xff] %v7249_v11 }
 0x11e   : > { %v7251_v29 = vpop.permute.xlu0 %1031 }
 0x11f   : > { %12020 = vst [vmem:[#allocation34_spill] sm:$0xff] %v7251_v29 }
 0x122   : > { %v7253_v24 = vpop.permute.xlu0 %1039 }
 0x123   : > { %12021 = vst [vmem:[#allocation35_spill] sm:$0xff] %v7253_v24 }
 0x126   : > { %v7255_v25 = vpop.permute.xlu0 %1047 }
 0x127   : > { %12022 = vst [vmem:[#allocation36_spill] sm:$0xff] %v7255_v25  ;;  %v12067_v25 = vmov 5  }
 0x140   : > { %v4580_v28 = vpop.xlane.xlu1 %4579 }
 0x141   : > { %v4588_v30 = vsub.f32 %v4571_v4, %v4580_v28 }
 0x143   : > { %v4593_v22 = vmul.f32 1.442695, %v4588_v30 }
 0x144   : > { %v4583_v27 = vpop.xlane.xlu1 %4582 }
 0x145   : > { %6683 = vpow2.f32 %v4593_v22  ;;  %v4589_v20 = vsub.f32 %v4572_v6, %v4583_v27 }
 0x147   : > { %v4595_v11 = vmul.f32 1.442695, %v4589_v20 }
 0x148   : > { %v4586_v18 = vpop.xlane.xlu1 %4585 }
 0x149   : > { %v4590_v4 = vsub.f32 %v7168_v8, %v4586_v18  ;;  %6685 = vpow2.f32 %v4595_v11  ;;  %v505_v18 = vld [vmem:[%s11612_s3 + $0x18] sm:$0x3]  ;;  %v11643_v11 = vmov 0.0  }
 0x14a   : > { %6419 = vmatprep.subr.msk.mxu0 %vm4631_vm3, %v505_v18  ;;  %4702 = vmatprep.mubr.f32.mxu0 %v11643_v11 }
 0x14b   : > { %v4597_v22 = vmul.f32 1.442695, %v4590_v4  ;;  %5419 = vmatprep.subr.mxu1 %v11643_v11  ;;  %v11641_v4 = vmov 4  }
 0x152   : > { %v7257_v23 = vpop.eup %6683 }
 0x153   : > { %v4577_v36 = vpop.xlane.xlu0 %4576  ;;  %v4602_v7 = vsel %vm4574_vm2, %v7257_v23, 0.0 }
 0x154   : > { %v4587_v32 = vsub.f32 %v4570_v10, %v4577_v36  ;;  %4603 = vadd.xlane.f32.xlu0 %v4602_v7  ;;  %v7294_v36 = vld [vmem:[%s11612_s3 + $0x8] sm:$0xff]  ;;  %v7300_v7 = vld [vmem:[%s11612_s3] sm:$0xff] }
 0x156   : > { %v4591_v28 = vmul.f32 1.442695, %v4587_v32  ;;  %v7262_v30 = vpop.eup %6685  ;;  %v7286_v32 = vld [vmem:[%s11612_s3 + $0x10] sm:$0x3] }
 0x157   : > { %v4605_v20 = vsel %vm4574_vm2, %v7262_v30, 0.0  ;;  %6420 = vmatpush1.msk.msra.mxu0 %vm4631_vm3, %v7286_v32 }
 0x158   : > { %6687 = vpow2.f32 %v4591_v28  ;;  %4668 = vmatprep.subr.mxu0 %v7294_v36  ;;  %v6839_v28 = vmov 2  }
 0x159   : > { %6689 = vpow2.f32 %v4597_v22  ;;  %4669 = vmatpush1.msra.mxu0 %v7300_v7  ;;  %v11639_v22 = vmov 7  }
 0x15a   : > { %6426 = vmatprep.subr.msk.mxu0 %vm4631_vm3, %v505_v18 }
 0x165   : > { %v7264_v6 = vpop.eup %6687 }
 0x166   : > { %v4599_v27 = vsel %vm4574_vm2, %v7264_v6, 0.0  ;;  %v7270_v10 = vpop.eup %6689 }
 0x167   : > { %4600 = vadd.xlane.f32.xlu1 %v4599_v27  ;;  %v4608_v8 = vsel %vm4574_vm2, %v7270_v10, 0.0 }
 0x16a   : > { %1055 = vperm.xlu0 %6566, %v7093_v51  }
 0x16b   : > { %4606 = vadd.xlane.f32.xlu1 %v4605_v20 }
 0x16e   : > { %1063 = vperm.xlu0 %6566, %v7101_v53  }
 0x16f   : > { %4609 = vadd.xlane.f32.xlu1 %v4608_v8 }
 0x172   : > { %1067 = vperm.xlu0 %6566, %v7112_v56  }
 0x176   : > { %1071 = vperm.xlu0 %6566, %v7109_v55  }
 0x17a   : > { %1075 = vperm.xlu0 %6566, %v7120_v58  }
 0x17e   : > { %1083 = vperm.xlu0 %6566, %v7128_v60  }
 0x180   : > { %1003 = vperm.xlu1 %6567, %v7048_v40  }
 0x182   : > { %1087 = vperm.xlu0 %6566, %v7125_v59  }
 0x184   : > { %1011 = vperm.xlu1 %6567, %v7056_v42  }
 0x186   : > { %1095 = vperm.xlu0 %6566, %v7133_v61  }
 0x188   : > { %1019 = vperm.xlu1 %6567, %v7064_v44  }
 0x18a   : > { %1103 = vperm.xlu0 %6566, %v7141_v63  }
 0x18c   : > { %1027 = vperm.xlu1 %6567, %v7072_v46  }
 0x18e   : > { %1111 = vperm.xlu0 %6566, %v7149_v1  }
 0x190   : > { %1035 = vperm.xlu1 %6567, %v7080_v48  }
 0x192   : > { %6570 = vset.pattern.permute.xlu0 %v11641_v4 }
 0x193   : > { %2523 = vperm.xlu0 %6570, %v7032_v35  }
 0x194   : > { %1043 = vperm.xlu1 %6567, %v7088_v50  }
 0x197   : > { %2531 = vperm.xlu0 %6570, %v7029_v34  }
 0x198   : > { %1051 = vperm.xlu1 %6567, %v7096_v52  }
 0x19b   : > { %2551 = vperm.xlu0 %6570, %v7053_v41  }
 0x19c   : > { %1059 = vperm.xlu1 %6567, %v7104_v54  }
 0x19f   : > { %2563 = vperm.xlu0 %6570, %v7072_v46  }
 0x1a0   : > { %1079 = vperm.xlu1 %6567, %v7117_v57  }
 0x1a3   : > { %2575 = vperm.xlu0 %6570, %v7077_v47  }
 0x1a4   : > { %1091 = vperm.xlu1 %6567, %v7136_v62  }
 0x1a7   : > { %2587 = vperm.xlu0 %6570, %v7096_v52  }
 0x1a8   : > { %1099 = vperm.xlu1 %6567, %v7144_v0  }
 0x1ab   : > { %2599 = vperm.xlu0 %6570, %v7101_v53  }
 0x1ac   : > { %1107 = vperm.xlu1 %6567, %v7152_v2  }
 0x1af   : > { %2611 = vperm.xlu0 %6570, %v7120_v58  }
 0x1b0   : > { %6568 = vset.pattern.permute.xlu1 %v6839_v28 }
 0x1b1   : > { %1499 = vperm.xlu1 %6568, %v7032_v35  }
 0x1b3   : > { %6639 = vset.pattern.permute.xlu0 %v11639_v22  ;;  %v11648_v22 = vmov 5  }
 0x1b4   : > { %4063 = vperm.xlu0 %6639, %v7040_v38  }
 0x1b5   : > { %1507 = vperm.xlu1 %6568, %v7029_v34  }
 0x1b8   : > { %4075 = vperm.xlu0 %6639, %v7048_v40  }
 0x1b9   : > { %1511 = vperm.xlu1 %6568, %v7037_v37  }
 0x1bc   : > { %4087 = vperm.xlu0 %6639, %v7053_v41  }
 0x1bd   : > { %1519 = vperm.xlu1 %6568, %v7045_v39  }
 0x1c0   : > { %4099 = vperm.xlu0 %6639, %v7072_v46  }
 0x1c1   : > { %1527 = vperm.xlu1 %6568, %v7053_v41  }
 0x1c4   : > { %4111 = vperm.xlu0 %6639, %v7077_v47  }
 0x1c5   : > { %1535 = vperm.xlu1 %6568, %v7061_v43  }
 0x1c8   : > { %4123 = vperm.xlu0 %6639, %v7096_v52  }
 0x1c9   : > { %1543 = vperm.xlu1 %6568, %v7069_v45  }
 0x1cc   : > { %4135 = vperm.xlu0 %6639, %v7101_v53  }
 0x1cd   : > { %1551 = vperm.xlu1 %6568, %v7077_v47  }
 0x1d0   : > { %6642 = vset.pattern.permute.xlu0 %v6839_v28 }
 0x1d1   : > { %1503 = vperm.xlu0 %6642, %v7040_v38   ;;  %1559 = vperm.xlu1 %6568, %v7085_v49  }
 0x1d5   : > { %1515 = vperm.xlu0 %6642, %v7048_v40   ;;  %1567 = vperm.xlu1 %6568, %v7093_v51   ;;  %v11645_v51 = vmov 3  }
 0x1d9   : > { %1523 = vperm.xlu0 %6642, %v7056_v42   ;;  %1575 = vperm.xlu1 %6568, %v7101_v53  }
 0x1dd   : > { %1531 = vperm.xlu0 %6642, %v7064_v44   ;;  %1583 = vperm.xlu1 %6568, %v7109_v55   ;;  %v4604_v27 = vpop.xlane.xlu0 %4603 }
 0x1e1   : > { %1539 = vperm.xlu0 %6642, %v7072_v46   ;;  %1591 = vperm.xlu1 %6568, %v7117_v57  }
 0x1e5   : > { %1547 = vperm.xlu0 %6642, %v7080_v48   ;;  %1599 = vperm.xlu1 %6568, %v7125_v59   ;;  %v7359_v49 = vpop.permute.xlu0 %1055 }
 0x1e6   : > { %12023 = vst [vmem:[#allocation37_spill] sm:$0xff] %v7359_v49 }
 0x1e9   : > { %1555 = vperm.xlu0 %6642, %v7088_v50   ;;  %6569 = vset.pattern.permute.xlu1 %v11645_v51  ;;  %v7363_v20 = vpop.permute.xlu0 %1063 }
 0x1ea   : > { %12024 = vst [vmem:[#allocation38_spill] sm:$0xff] %v7363_v20  ;;  %2015 = vperm.xlu1 %6569, %v7040_v38   ;;  %v12058_v20 = vmov 6  }
 0x1ed   : > { %1563 = vperm.xlu0 %6642, %v7096_v52   ;;  %v7367_v55 = vpop.permute.xlu0 %1067 }
 0x1ee   : > { %12025 = vst [vmem:[#allocation39_spill] sm:$0xff] %v7367_v55  ;;  %2019 = vperm.xlu1 %6569, %v7029_v34  }
 0x1f0   : > { %v4601_v8 = vpop.xlane.xlu1 %4600 }
 0x1f1   : > { %6691 = vrcp.f32 %v4601_v8  ;;  %1571 = vperm.xlu0 %6642, %v7104_v54   ;;  %v7371_v18 = vpop.permute.xlu0 %1071 }
 0x1f2   : > { %12026 = vst [vmem:[#allocation40_spill] sm:$0xff] %v7371_v18  ;;  %6571 = vset.pattern.permute.xlu1 %v11641_v4  ;;  %6693 = vrcp.f32 %v4604_v27 }
 0x1f3   : > { %2527 = vperm.xlu1 %6571, %v7040_v38  }
 0x1f4   : > { %v4607_v50 = vpop.xlane.xlu1 %4606 }
 0x1f5   : > { %1579 = vperm.xlu0 %6642, %v7112_v56   ;;  %v7376_v28 = vpop.permute.xlu0 %1075  ;;  %6695 = vrcp.f32 %v4607_v50 }
 0x1f6   : > { %12027 = vst [vmem:[#allocation41_spill] sm:$0xff] %v7376_v28 }
 0x1f7   : > { %6572 = vset.pattern.permute.xlu1 %v11645_v51 }
 0x1f8   : > { %2023 = vperm.xlu1 %6572, %v7037_v37   ;;  %v4610_v8 = vpop.xlane.xlu1 %4609 }
 0x1f9   : > { %1587 = vperm.xlu0 %6642, %v7120_v58   ;;  %v7381_v54 = vpop.permute.xlu0 %1083  ;;  %6697 = vrcp.f32 %v4610_v8  ;;  %v12032_v8 = vmov 3  }
 0x1fa   : > { %12028 = vst [vmem:[#allocation42_spill] sm:$0xff] %v7381_v54 }
 0x1fc   : > { %6573 = vset.pattern.permute.xlu1 %v11648_v22  ;;  %v7384_v27 = vpop.permute.xlu1 %1003  ;;  %v12034_v22 = vmov 0.0  }
 0x1fd   : > { %12029 = vst [vmem:[#allocation43_spill] sm:$0xff] %v7384_v27  ;;  %1595 = vperm.xlu0 %6642, %v7128_v60   ;;  %3035 = vperm.xlu1 %6573, %v7032_v35   ;;  %v7388_v56 = vpop.permute.xlu0 %1087 }
 0x1fe   : > { %12030 = vst [vmem:[#allocation44_spill] sm:$0xff] %v7388_v56  ;;  %v6692_v50 = vpop.eup %6691 }
 0x1ff   : > { %v4615_v4 = vmul.f32 %v6692_v50, %v7264_v6  ;;  %v6694_v51 = vpop.eup %6693 }
 0x200   : > { %v7391_v11 = vpop.permute.xlu1 %1011  ;;  %v4616_v56 = vmul.f32 %v6694_v51, %v7257_v23 }
 0x201   : > { %12031 = vst [vmem:[#allocation45_spill] sm:$0xff] %v7391_v11  ;;  %1603 = vperm.xlu0 %6642, %v7136_v62   ;;  %6574 = vset.pattern.permute.xlu1 %v12032_v8  ;;  %v7395_v54 = vpop.permute.xlu0 %1095 }
 0x202   : > { %12033 = vst [vmem:[#allocation46_spill] sm:$0xff] %v7395_v54  ;;  %6421 = vmatmul.mubr.msk.f32.vlgmr.msra.gmra.mxu0 %vm4574_vm2, %v4615_v4  ;;  %2027 = vperm.xlu1 %6574, %v7048_v40   ;;  %v6696_v6 = vpop.eup %6695  ;;  %v12037_v4 = vmov 4  }
 0x203   : > { %4708 = vmatprep.mubr.f32.mxu0 %v12034_v22  ;;  %6427 = vmatpush1.msk.msra.mxu0 %vm4631_vm3, %v7286_v32  ;;  %v4617_v23 = vmul.f32 %v6696_v6, %v7262_v30 }
 0x204   : > { %v7400_v18 = vpop.permute.xlu1 %1019  ;;  %5528 = vmatprep.subr.mxu0 %v7294_v36  ;;  %v11655_v36 = vmov 6  }
 0x205   : > { %12035 = vst [vmem:[#allocation47_spill] sm:$0xff] %v7400_v18  ;;  %1607 = vperm.xlu0 %6642, %v7133_v61   ;;  %v7406_v62 = vpop.permute.xlu0 %1103  ;;  %5529 = vmatpush1.msra.mxu0 %v7300_v7  ;;  %v7654_v18 = vld [vmem:[%s11610_s1 + $0x18] sm:$0xff] }
 0x206   : > { %12036 = vst [vmem:[#allocation48_spill] sm:$0xff] %v7406_v62  ;;  %6422 = vmatmul.mubr.msk.f32.gmra.mxu0 %vm4574_vm2, %v4616_v56  ;;  %6575 = vset.pattern.permute.xlu1 %v12037_v4  ;;  %v6698_v32 = vpop.eup %6697  ;;  %v12050_v62 = vmov 7   ;;  %12107 = vst [vmem:[#allocation115_spill] sm:$0xff] %v7654_v18 }
 0x207   : > { %2535 = vperm.xlu1 %6575, %v7037_v37   ;;  %4714 = vmatprep.mubr.f32.mxu0 %v12034_v22  ;;  %v4618_v30 = vmul.f32 %v6698_v32, %v7270_v10 }
 0x208   : > { %v7413_v50 = vpop.permute.xlu1 %1027 }
 0x209   : > { %12038 = vst [vmem:[#allocation49_spill] sm:$0xff] %v7413_v50  ;;  %1611 = vperm.xlu0 %6642, %v7144_v0   ;;  %v7419_v61 = vpop.permute.xlu0 %1111 }
 0x20a   : > { %6423 = vmatmul.mubr.msk.f32.gmra.mxu0 %vm4574_vm2, %v4617_v23  ;;  %12039 = vst [vmem:[#allocation50_spill] sm:$0xff] %v7419_v61 }
 0x20b   : > { %6576 = vset.pattern.permute.xlu1 %v11655_v36  ;;  %4720 = vmatprep.mubr.f32.mxu0 %v12034_v22 }
 0x20c   : > { %3547 = vperm.xlu1 %6576, %v7032_v35   ;;  %v7424_v51 = vpop.permute.xlu1 %1035 }
 0x20d   : > { %12040 = vst [vmem:[#allocation51_spill] sm:$0xff] %v7424_v51  ;;  %1615 = vperm.xlu0 %6642, %v7141_v63  }
 0x20e   : > { %6424 = vmatmul.mubr.msk.f32.gmra.mxu0 %vm4574_vm2, %v4618_v30  ;;  %v7429_v7 = vpop.permute.xlu0 %2523 }
 0x20f   : > { %12041 = vst [vmem:[#allocation52_spill] sm:$0xff] %v7429_v7  ;;  %5562 = vmatprep.mubr.f32.mxu0 %v12034_v22  ;;  %v7734_v7 = vld [vmem:[%s11610_s1 + $0x160] sm:$0xff] }
 0x210   : > { %6577 = vset.pattern.permute.xlu1 %v12032_v8  ;;  %v7433_v56 = vpop.permute.xlu1 %1043  ;;  %12119 = vst [vmem:[#allocation127_spill] sm:$0xff] %v7734_v7 }
 0x211   : > { %12042 = vst [vmem:[#allocation53_spill] sm:$0xff] %v7433_v56  ;;  %1619 = vperm.xlu0 %6642, %v7152_v2   ;;  %2031 = vperm.xlu1 %6577, %v7045_v39  }
 0x212   : > { %v7437_v6 = vpop.permute.xlu0 %2531 }
 0x213   : > { %12043 = vst [vmem:[#allocation54_spill] sm:$0xff] %v7437_v6 }
 0x214   : > { %v7439_v23 = vpop.permute.xlu1 %1051 }
 0x215   : > { %12044 = vst [vmem:[#allocation55_spill] sm:$0xff] %v7439_v23  ;;  %1623 = vperm.xlu0 %6642, %v7149_v1   ;;  %6578 = vset.pattern.permute.xlu1 %v12037_v4 }
 0x216   : > { %2539 = vperm.xlu1 %6578, %v7048_v40   ;;  %v7444_v63 = vpop.permute.xlu0 %2551 }
 0x217   : > { %12045 = vst [vmem:[#allocation56_spill] sm:$0xff] %v7444_v63 }
 0x218   : > { %v7446_v10 = vpop.permute.xlu1 %1059 }
 0x219   : > { %12046 = vst [vmem:[#allocation57_spill] sm:$0xff] %v7446_v10  ;;  %6667 = vset.pattern.permute.xlu0 %v12032_v8 }
 0x21a   : > { %2011 = vperm.xlu0 %6667, %v7032_v35   ;;  %6579 = vset.pattern.permute.xlu1 %v11655_v36  ;;  %v7451_v2 = vpop.permute.xlu0 %2563 }
 0x21b   : > { %12047 = vst [vmem:[#allocation58_spill] sm:$0xff] %v7451_v2  ;;  %3555 = vperm.xlu1 %6579, %v7029_v34  }
 0x21c   : > { %v7454_v32 = vpop.permute.xlu1 %1079 }
 0x21d   : > { %12048 = vst [vmem:[#allocation59_spill] sm:$0xff] %v7454_v32 }
 0x21e   : > { %2039 = vperm.xlu0 %6667, %v7053_v41   ;;  %v7457_v30 = vpop.permute.xlu0 %2575 }
 0x21f   : > { %12049 = vst [vmem:[#allocation60_spill] sm:$0xff] %v7457_v30  ;;  %6580 = vset.pattern.permute.xlu1 %v12050_v62 }
 0x220   : > { %4059 = vperm.xlu1 %6580, %v7032_v35   ;;  %v7461_v54 = vpop.permute.xlu1 %1091 }
 0x221   : > { %12051 = vst [vmem:[#allocation61_spill] sm:$0xff] %v7461_v54 }
 0x222   : > { %2051 = vperm.xlu0 %6667, %v7072_v46   ;;  %v7464_v22 = vpop.permute.xlu0 %2587 }
 0x223   : > { %12052 = vst [vmem:[#allocation62_spill] sm:$0xff] %v7464_v22 }
 0x224   : > { %6581 = vset.pattern.permute.xlu1 %v12032_v8  ;;  %v7467_v36 = vpop.permute.xlu1 %1099 }
 0x225   : > { %12053 = vst [vmem:[#allocation63_spill] sm:$0xff] %v7467_v36  ;;  %2035 = vperm.xlu1 %6581, %v7056_v42  }
 0x226   : > { %2063 = vperm.xlu0 %6667, %v7077_v47   ;;  %v7471_v32 = vpop.permute.xlu0 %2599 }
 0x227   : > { %12054 = vst [vmem:[#allocation64_spill] sm:$0xff] %v7471_v32 }
 0x228   : > { %v7473_v55 = vpop.permute.xlu1 %1107 }
 0x229   : > { %12055 = vst [vmem:[#allocation65_spill] sm:$0xff] %v7473_v55  ;;  %6582 = vset.pattern.permute.xlu1 %v12037_v4 }
 0x22a   : > { %2543 = vperm.xlu1 %6582, %v7045_v39   ;;  %2075 = vperm.xlu0 %6667, %v7096_v52   ;;  %v7478_v35 = vpop.permute.xlu0 %2611 }
 0x22b   : > { %12056 = vst [vmem:[#allocation66_spill] sm:$0xff] %v7478_v35 }
 0x22c   : > { %v7480_v54 = vpop.permute.xlu1 %1499 }
 0x22d   : > { %12057 = vst [vmem:[#allocation67_spill] sm:$0xff] %v7480_v54 }
 0x22e   : > { %6583 = vset.pattern.permute.xlu1 %v12058_v20  ;;  %2087 = vperm.xlu0 %6667, %v7101_v53  }
 0x22f   : > { %3559 = vperm.xlu1 %6583, %v7037_v37   ;;  %v7485_v36 = vpop.permute.xlu0 %4063 }
 0x230   : > { %12059 = vst [vmem:[#allocation68_spill] sm:$0xff] %v7485_v36  ;;  %v7487_v32 = vpop.permute.xlu1 %1507  ;;  %v7715_v36 = vld [vmem:[%s11610_s1 + $0x100] sm:$0xff] }
 0x231   : > { %12060 = vst [vmem:[#allocation69_spill] sm:$0xff] %v7487_v32  ;;  %12116 = vst [vmem:[#allocation124_spill] sm:$0xff] %v7715_v36 }
 0x232   : > { %2099 = vperm.xlu0 %6667, %v7120_v58  }
 0x233   : > { %6584 = vset.pattern.permute.xlu1 %v12050_v62  ;;  %v7491_v55 = vpop.permute.xlu0 %4075 }
 0x234   : > { %12061 = vst [vmem:[#allocation70_spill] sm:$0xff] %v7491_v55  ;;  %4067 = vperm.xlu1 %6584, %v7029_v34   ;;  %v7494_v35 = vpop.permute.xlu1 %1511  ;;  %v7710_v55 = vld [vmem:[%s11610_s1 + $0x68] sm:$0xff] }
 0x235   : > { %12062 = vst [vmem:[#allocation71_spill] sm:$0xff] %v7494_v35  ;;  %12115 = vst [vmem:[#allocation123_spill] sm:$0xff] %v7710_v55  ;;  %v7720_v35 = vld [vmem:[%s11610_s1 + $0x108] sm:$0xff] }
 0x236   : > { %2135 = vperm.xlu0 %6667, %v7149_v1   ;;  %12117 = vst [vmem:[#allocation125_spill] sm:$0xff] %v7720_v35 }
 0x237   : > { %v7497_v49 = vpop.permute.xlu0 %4087 }
 0x238   : > { %12063 = vst [vmem:[#allocation72_spill] sm:$0xff] %v7497_v49  ;;  %6585 = vset.pattern.permute.xlu1 %v12037_v4  ;;  %v7500_v22 = vpop.permute.xlu1 %1519 }
 0x239   : > { %12064 = vst [vmem:[#allocation73_spill] sm:$0xff] %v7500_v22  ;;  %2547 = vperm.xlu1 %6585, %v7056_v42  }
 0x23a   : > { %6672 = vset.pattern.permute.xlu0 %v12058_v20 }
 0x23b   : > { %3551 = vperm.xlu0 %6672, %v7040_v38   ;;  %v7505_v10 = vpop.permute.xlu0 %4099 }
 0x23c   : > { %12065 = vst [vmem:[#allocation74_spill] sm:$0xff] %v7505_v10  ;;  %v7507_v56 = vpop.permute.xlu1 %1527 }
 0x23d   : > { %12066 = vst [vmem:[#allocation75_spill] sm:$0xff] %v7507_v56  ;;  %6586 = vset.pattern.permute.xlu1 %v12067_v25 }
 0x23e   : > { %3055 = vperm.xlu1 %6586, %v7045_v39  }
 0x23f   : > { %3563 = vperm.xlu0 %6672, %v7048_v40   ;;  %v7512_v1 = vpop.permute.xlu0 %4111 }
 0x240   : > { %12068 = vst [vmem:[#allocation76_spill] sm:$0xff] %v7512_v1  ;;  %v7514_v30 = vpop.permute.xlu1 %1535 }
 0x241   : > { %12069 = vst [vmem:[#allocation77_spill] sm:$0xff] %v7514_v30 }
 0x242   : > { %6587 = vset.pattern.permute.xlu1 %v12050_v62 }
 0x243   : > { %4071 = vperm.xlu1 %6587, %v7037_v37   ;;  %3575 = vperm.xlu0 %6672, %v7053_v41   ;;  %v7519_v51 = vpop.permute.xlu0 %4123 }
 0x244   : > { %12070 = vst [vmem:[#allocation78_spill] sm:$0xff] %v7519_v51  ;;  %v7521_v24 = vpop.permute.xlu1 %1543 }
 0x245   : > { %12071 = vst [vmem:[#allocation79_spill] sm:$0xff] %v7521_v24 }
 0x247   : > { %6588 = vset.pattern.permute.xlu1 %v12032_v8  ;;  %3587 = vperm.xlu0 %6672, %v7072_v46   ;;  %v7525_v29 = vpop.permute.xlu0 %4135 }
 0x248   : > { %12072 = vst [vmem:[#allocation80_spill] sm:$0xff] %v7525_v29  ;;  %2043 = vperm.xlu1 %6588, %v7064_v44   ;;  %v7528_v1 = vpop.permute.xlu1 %1551 }
 0x249   : > { %12073 = vst [vmem:[#allocation81_spill] sm:$0xff] %v7528_v1 }
 0x24b   : > { %3599 = vperm.xlu0 %6672, %v7077_v47  }
 0x24c   : > { %6589 = vset.pattern.permute.xlu1 %v12067_v25  ;;  %v7532_v10 = vpop.permute.xlu1 %1559  ;;  %v7534_v2 = vpop.permute.xlu0 %1503 }
 0x24d   : > { %12074 = vst [vmem:[#allocation82_spill] sm:$0xff] %v7532_v10  ;;  %12075 = vst [vmem:[#allocation83_spill] sm:$0xff] %v7534_v2  ;;  %3059 = vperm.xlu1 %6589, %v7056_v42  }
 0x24f   : > { %3611 = vperm.xlu0 %6672, %v7096_v52  }
 0x250   : > { %v7538_v51 = vpop.permute.xlu1 %1567  ;;  %v7540_v24 = vpop.permute.xlu0 %1515 }
 0x251   : > { %12076 = vst [vmem:[#allocation84_spill] sm:$0xff] %v7538_v51  ;;  %12077 = vst [vmem:[#allocation85_spill] sm:$0xff] %v7540_v24  ;;  %6590 = vset.pattern.permute.xlu1 %v12058_v20  ;;  %v7696_v24 = vld [vmem:[%s11610_s1 + $0x60] sm:$0xff] }
 0x252   : > { %3567 = vperm.xlu1 %6590, %v7045_v39   ;;  %12114 = vst [vmem:[#allocation122_spill] sm:$0xff] %v7696_v24 }
 0x253   : > { %3623 = vperm.xlu0 %6672, %v7101_v53  }
 0x254   : > { %v7545_v29 = vpop.permute.xlu1 %1575  ;;  %v7547_v1 = vpop.permute.xlu0 %1523 }
 0x255   : > { %12078 = vst [vmem:[#allocation86_spill] sm:$0xff] %v7545_v29  ;;  %12079 = vst [vmem:[#allocation87_spill] sm:$0xff] %v7547_v1  ;;  %v7691_v1 = vld [vmem:[%s11610_s1 + $0x78] sm:$0xff] }
 0x256   : > { %6591 = vset.pattern.permute.xlu1 %v12032_v8 }
 0x257   : > { %2047 = vperm.xlu1 %6591, %v7061_v43   ;;  %3659 = vperm.xlu0 %6672, %v7144_v0  }
 0x258   : > { %v7552_v10 = vpop.permute.xlu1 %1583  ;;  %v7554_v51 = vpop.permute.xlu0 %1531 }
 0x259   : > { %12080 = vst [vmem:[#allocation88_spill] sm:$0xff] %v7552_v10  ;;  %12081 = vst [vmem:[#allocation89_spill] sm:$0xff] %v7554_v51 }
 0x25b   : > { %6592 = vset.pattern.permute.xlu1 %v12037_v4  ;;  %6675 = vset.pattern.permute.xlu0 %v12067_v25 }
 0x25c   : > { %2555 = vperm.xlu1 %6592, %v7064_v44   ;;  %v7559_v30 = vpop.permute.xlu1 %1591  ;;  %v7561_v29 = vpop.permute.xlu0 %1539  ;;  %3039 = vperm.xlu0 %6675, %v7040_v38  }
 0x25d   : > { %12082 = vst [vmem:[#allocation90_spill] sm:$0xff] %v7559_v30  ;;  %12083 = vst [vmem:[#allocation91_spill] sm:$0xff] %v7561_v29 }
 0x260   : > { %6593 = vset.pattern.permute.xlu1 %v12058_v20  ;;  %v7565_v50 = vpop.permute.xlu1 %1599  ;;  %v7567_v0 = vpop.permute.xlu0 %1547  ;;  %3043 = vperm.xlu0 %6675, %v7029_v34  }
 0x261   : > { %12084 = vst [vmem:[#allocation92_spill] sm:$0xff] %v7565_v50  ;;  %12085 = vst [vmem:[#allocation93_spill] sm:$0xff] %v7567_v0  ;;  %3571 = vperm.xlu1 %6593, %v7056_v42   ;;  %v7642_v0 = vld [vmem:[%s11610_s1 + $0x38] sm:$0xff] }
 0x262   : > { %12104 = vst [vmem:[#allocation112_spill] sm:$0xff] %v7642_v0 }
 0x264   : > { %v7571_v10 = vpop.permute.xlu0 %1555  ;;  %3047 = vperm.xlu0 %6675, %v7037_v37  }
 0x265   : > { %12086 = vst [vmem:[#allocation94_spill] sm:$0xff] %v7571_v10  ;;  %v7574_v51 = vpop.permute.xlu1 %2015  ;;  %6594 = vset.pattern.permute.xlu1 %v12050_v62 }
 0x266   : > { %12087 = vst [vmem:[#allocation95_spill] sm:$0xff] %v7574_v51  ;;  %4079 = vperm.xlu1 %6594, %v7045_v39   ;;  %v7686_v51 = vld [vmem:[%s11610_s1 + $0x70] sm:$0xff] }
 0x267   : > { %12113 = vst [vmem:[#allocation121_spill] sm:$0xff] %v7686_v51 }
 0x268   : > { %v7578_v38 = vpop.permute.xlu0 %1563  ;;  %3051 = vperm.xlu0 %6675, %v7048_v40   ;;  %v666_v40 = vlaneseq }
 0x269   : > { %12088 = vst [vmem:[#allocation96_spill] sm:$0xff] %v7578_v38  ;;  %v7581_v50 = vpop.permute.xlu1 %2019  ;;  %v7761_v38 = vld [vmem:[%s11610_s1 + $0x1f8] sm:$0xff] }
 0x26a   : > { %12089 = vst [vmem:[#allocation97_spill] sm:$0xff] %v7581_v50  ;;  %6595 = vset.pattern.permute.xlu1 %v12037_v4  ;;  %v7677_v50 = vld [vmem:[%s11610_s1 + $0x48] sm:$0xff]  ;;  %12123 = vst [vmem:[#allocation131_spill] sm:$0xff] %v7761_v38 }
 0x26b   : > { %2559 = vperm.xlu1 %6595, %v7061_v43   ;;  %12112 = vst [vmem:[#allocation120_spill] sm:$0xff] %v7677_v50 }
 0x26c   : > { %v7585_v34 = vpop.permute.xlu0 %1571  ;;  %3063 = vperm.xlu0 %6675, %v7053_v41   ;;  %v7602_v41 = vshrl.u32 %v666_v40, 7  ;;  %v7632_v40 = vld [vmem:[%s11610_s1 + $0x8] sm:$0xff] }
 0x26d   : > { %12090 = vst [vmem:[#allocation98_spill] sm:$0xff] %v7585_v34  ;;  %12102 = vst [vmem:[#allocation110_spill] sm:$0xff] %v7632_v40 }
 0x26e   : > { %v7588_v37 = vpop.permute.xlu1 %2527  ;;  %12095 = vst [vmem:[#allocation103_spill] sm:$0xff] %v7602_v41 }
 0x26f   : > { %12091 = vst [vmem:[#allocation99_spill] sm:$0xff] %v7588_v37  ;;  %6596 = vset.pattern.permute.xlu1 %v12067_v25  ;;  %v7672_v37 = vld [vmem:[%s11610_s1 + $0x40] sm:$0xff] }
 0x270   : > { %v7591_v30 = vpop.permute.xlu0 %1579  ;;  %3067 = vperm.xlu1 %6596, %v7064_v44   ;;  %3075 = vperm.xlu0 %6675, %v7072_v46   ;;  %v7613_v46 = vld [vmem:[%s11610_s1 + $0x20] sm:$0xff]  ;;  %12111 = vst [vmem:[#allocation119_spill] sm:$0xff] %v7672_v37 }
 0x271   : > { %12092 = vst [vmem:[#allocation100_spill] sm:$0xff] %v7591_v30  ;;  %12098 = vst [vmem:[#allocation106_spill] sm:$0xff] %v7613_v46 }
 0x273   : > { %v7595_v39 = vpop.permute.xlu1 %2023 }
 0x274   : > { %12093 = vst [vmem:[#allocation101_spill] sm:$0xff] %v7595_v39  ;;  %v7597_v10 = vpop.permute.xlu0 %1587  ;;  %6597 = vset.pattern.permute.xlu1 %v12050_v62  ;;  %3087 = vperm.xlu0 %6675, %v7077_v47   ;;  %v7618_v47 = vld [vmem:[%s11610_s1 + $0x28] sm:$0xff] }
 0x275   : > { %12094 = vst [vmem:[#allocation102_spill] sm:$0xff] %v7597_v10  ;;  %4083 = vperm.xlu1 %6597, %v7056_v42   ;;  %12099 = vst [vmem:[#allocation107_spill] sm:$0xff] %v7618_v47  ;;  %v7623_v42 = vld [vmem:[%s11610_s1] sm:$0xff]  ;;  %v7747_v10 = vsub.s32 1, %v7602_v41 }
 0x276   : > { %12100 = vst [vmem:[#allocation108_spill] sm:$0xff] %v7623_v42 }
 0x277   : > { %12122 = vst [vmem:[#allocation130_spill] sm:$0xff] %v7747_v10 }
 0x278   : > { %v7604_v34 = vpop.permute.xlu1 %3035  ;;  %v7606_v30 = vpop.permute.xlu0 %1595  ;;  %3099 = vperm.xlu0 %6675, %v7096_v52   ;;  %v7627_v52 = vsub.s32 0, %v7602_v41 }
 0x279   : > { %12096 = vst [vmem:[#allocation104_spill] sm:$0xff] %v7604_v34  ;;  %12097 = vst [vmem:[#allocation105_spill] sm:$0xff] %v7606_v30  ;;  %6598 = vset.pattern.permute.xlu1 %v12032_v8  ;;  %v7637_v30 = vld [vmem:[%s11610_s1 + $0x30] sm:$0xff] }
 0x27a   : > { %2055 = vperm.xlu1 %6598, %v7069_v45   ;;  %12101 = vst [vmem:[#allocation109_spill] sm:$0xff] %v7627_v52  ;;  %12103 = vst [vmem:[#allocation111_spill] sm:$0xff] %v7637_v30  ;;  %v7649_v45 = vld [vmem:[%s11610_s1 + $0x10] sm:$0xff]  ;;  %v669_v2 = vrot.slane %v7623_v42, %v7627_v52  ;;  %v673_v56 = vrot.slane %v7632_v40, %v7627_v52  ;;  %v693_v49 = vrot.slane %v7637_v30, %v7627_v52 }
 0x27b   : > { %12106 = vst [vmem:[#allocation114_spill] sm:$0xff] %v7649_v45  ;;  %v7659_v34 = vld [vmem:[%s11610_s1 + $0x50] sm:$0xff]  ;;  %v697_v22 = vrot.slane %v7642_v0, %v7627_v52  ;;  %v677_v54 = vrot.slane %v7649_v45, %v7627_v52  ;;  %v681_v63 = vrot.slane %v7654_v18, %v7627_v52  ;;  %v701_v11 = vrot.slane %v7672_v37, %v7627_v52 }
 0x27c   : > { %v7644_v29 = vpop.permute.xlu0 %1603  ;;  %12108 = vst [vmem:[#allocation116_spill] sm:$0xff] %v7659_v34  ;;  %3111 = vperm.xlu0 %6675, %v7101_v53   ;;  %v685_v53 = vrot.slane %v7613_v46, %v7627_v52  ;;  %v709_v6 = vrot.slane %v7659_v34, %v7627_v52  ;;  %v705_v27 = vrot.slane %v7677_v50, %v7627_v52 }
 0x27d   : > { %12105 = vst [vmem:[#allocation113_spill] sm:$0xff] %v7644_v29  ;;  %v7662_v39 = vpop.permute.xlu1 %2027  ;;  %v7667_v29 = vld [vmem:[%s11610_s1 + $0x58] sm:$0xff]  ;;  %v717_v28 = vrot.slane %v7696_v24, %v7627_v52  ;;  %v721_v62 = vrot.slane %v7710_v55, %v7627_v52  ;;  %v797_v50 = vrot.slane %v7715_v36, %v7627_v52  ;;  %v801_v37 = vrot.slane %v7720_v35, %v7627_v52 }
 0x27e   : > { %12109 = vst [vmem:[#allocation117_spill] sm:$0xff] %v7662_v39  ;;  %12110 = vst [vmem:[#allocation118_spill] sm:$0xff] %v7667_v29  ;;  %v689_v39 = vrot.slane %v7618_v47, %v7627_v52  ;;  %6599 = vset.pattern.permute.xlu1 %v12067_v25  ;;  %v713_v61 = vrot.slane %v7667_v29, %v7627_v52  ;;  %v725_v25 = vrot.slane %v7686_v51, %v7627_v52 }
 0x27f   : > { %3071 = vperm.xlu1 %6599, %v7061_v43   ;;  %v7739_v43 = vld [vmem:[%s11610_s1 + $0x168] sm:$0xff]  ;;  %v845_v41 = vrot.slane %v7734_v7, %v7627_v52  ;;  %v921_v55 = vrot.slane %v7761_v38, %v7627_v52  ;;  %v1125_v36 = vrot.slane %v7649_v45, %v7747_v10  ;;  %v1129_v35 = vrot.slane %v7654_v18, %v7747_v10 }
 0x280   : > { %v7723_v32 = vpop.permute.xlu0 %1607  ;;  %12120 = vst [vmem:[#allocation128_spill] sm:$0xff] %v7739_v43  ;;  %3123 = vperm.xlu0 %6675, %v7120_v58   ;;  %v729_v58 = vrot.slane %v7691_v1, %v7627_v52  ;;  %v1117_v7 = vrot.slane %v7623_v42, %v7747_v10  ;;  %v1141_v45 = vrot.slane %v7637_v30, %v7747_v10 }
 0x281   : > { %12118 = vst [vmem:[#allocation126_spill] sm:$0xff] %v7723_v32  ;;  %v7744_v32 = vld [vmem:[%s11610_s1 + $0x1f0] sm:$0xff]  ;;  %v1145_v18 = vrot.slane %v7642_v0, %v7747_v10  ;;  %v927_v30 = vmul.f32 %v689_v39, %v7179_v15  ;;  %v1177_v0 = vrot.slane %v7691_v1, %v7747_v10  ;;  %v7828_v39 = vmul.f32 %v701_v11, %v7177_v14 }
 0x282   : > { %12121 = vst [vmem:[#allocation129_spill] sm:$0xff] %v7744_v32  ;;  %v7763_v23 = vpop.permute.xlu1 %2535  ;;  %v917_v59 = vrot.slane %v7744_v32, %v7627_v52  ;;  %v1121_v32 = vrot.slane %v7632_v40, %v7747_v10  ;;  %v1161_v40 = vrot.slane %v7667_v29, %v7747_v10  ;;  %v928_v29 = vmul.f32 %v693_v49, %v7183_v17 }
 0x283   : > { %12124 = vst [vmem:[#allocation132_spill] sm:$0xff] %v7763_v23  ;;  %v849_v23 = vrot.slane %v7739_v43, %v7627_v52  ;;  %6600 = vset.pattern.permute.xlu1 %v12058_v20  ;;  %v1137_v52 = vrot.slane %v7618_v47, %v7747_v10  ;;  %v926_v47 = vmul.f32 %v685_v53, %v7179_v15 }
 0x284   : > { %v7782_v24 = vpop.permute.xlu0 %1611  ;;  %3579 = vperm.xlu1 %6600, %v7064_v44   ;;  %3127 = vperm.xlu0 %6675, %v7117_v57   ;;  %v1157_v44 = vrot.slane %v7659_v34, %v7747_v10  ;;  %v922_v57 = vmul.f32 %v669_v2, %v7173_v12  ;;  %v923_v34 = vmul.f32 %v673_v56, %v7173_v12 }
 0x285   : > { %12125 = vst [vmem:[#allocation133_spill] sm:$0xff] %v7782_v24  ;;  %v1133_v24 = vrot.slane %v7613_v46, %v7747_v10  ;;  %v1173_v46 = vrot.slane %v7686_v51, %v7747_v10  ;;  %v929_v43 = vmul.f32 %v697_v22, %v7183_v17  ;;  %v924_v51 = vmul.f32 %v677_v54, %v7175_v13 }
 0x286   : > { %v925_v53 = vmul.f32 %v681_v63, %v7175_v13  ;;  %v932_v15 = vmul.f32 %v709_v6, %v7187_v19  ;;  %v933_v2 = vmul.f32 %v713_v61, %v7187_v19  ;;  %v7832_v12 = vmul.f32 %v705_v27, %v7177_v14  ;;  %v12134_v63 = vld [vmem:[#allocation8_spill] sm:$0xff] }
 0x287   : > { %v7810_v42 = vpop.permute.xlu1 %3547  ;;  %v936_v17 = vmul.f32 %v725_v25, %v7191_v21  ;;  %v937_v22 = vmul.f32 %v729_v58, %v7191_v21  ;;  %v7837_v49 = vmul.f32 %v717_v28, %v7181_v16  ;;  %v7841_v13 = vmul.f32 %v721_v62, %v7181_v16  ;;  %v12151_v58 = vld [vmem:[#allocation119_spill] sm:$0xff] }
 0x288   : > { %12126 = vst [vmem:[#allocation134_spill] sm:$0xff] %v7810_v42  ;;  %v7817_v38 = vpop.permute.xlu0 %1615  ;;  %6601 = vset.pattern.permute.xlu1 %v12032_v8  ;;  %3131 = vperm.xlu0 %6675, %v7128_v60   ;;  %v7844_v19 = vmul.f32 %v797_v50, %v7201_v26  ;;  %v1372_v14 = vmul.f32 %v1125_v36, %v7243_v5  ;;  %v12130_v50 = vld [vmem:[#allocation20_spill] sm:$0xff] }
 0x289   : > { %12127 = vst [vmem:[#allocation135_spill] sm:$0xff] %v7817_v38  ;;  %2059 = vperm.xlu1 %6601, %v7080_v48   ;;  %v7847_v48 = vmul.f32 %v801_v37, %v7201_v26  ;;  %v1373_v11 = vmul.f32 %v1129_v35, %v7243_v5  ;;  %v1370_v60 = vmul.f32 %v1117_v7, %v7233_v31  ;;  %v12131_v36 = vld [vmem:[#allocation32_spill] sm:$0xff] }
 0x28a   : > { %v1371_v16 = vmul.f32 %v1121_v32, %v7233_v31  ;;  %v1374_v28 = vmul.f32 %v1133_v24, %v7247_v9  ;;  %v1375_v54 = vmul.f32 %v1137_v52, %v7247_v9  ;;  %v1376_v26 = vmul.f32 %v1141_v45, %v7237_v33  ;;  %v7870_v24 = vld [vmem:[%s7023_s24 + $0x58] sm:$0xff]  ;;  %v6707_v45 = vld [vmem:[%s7023_s24 + $0x40] sm:$0xff] }
 0x28b   : > { %v1377_v27 = vmul.f32 %v1145_v18, %v7237_v33  ;;  %v1380_v62 = vmul.f32 %v1157_v44, %v7241_v3  ;;  %v7864_v61 = vmul.f32 %v845_v41, %v12130_v50  ;;  %v1381_v5 = vmul.f32 %v1161_v40, %v7241_v3  ;;  %v12132_v33 = vld [vmem:[#allocation31_spill] sm:$0xff]  ;;  %v12174_v38 = vld [vmem:[#allocation116_spill] sm:$0xff] }
 0x28c   : > { %v7850_v25 = vpop.permute.xlu1 %2031  ;;  %v7852_v21 = vpop.permute.xlu0 %1619  ;;  %v1384_v7 = vmul.f32 %v1173_v46, %v12131_v36  ;;  %v1385_v31 = vmul.f32 %v1177_v0, %v12131_v36  ;;  %v7874_v9 = vmul.f32 %v849_v23, %v12130_v50  ;;  %v7877_v18 = vmul.f32 %v917_v59, %v12132_v33  ;;  %3135 = vperm.xlu0 %6675, %v12134_v63   ;;  %v12147_v40 = vld [vmem:[#allocation103_spill] sm:$0xff]  ;;  %v12163_v63 = vld [vmem:[#allocation110_spill] sm:$0xff]  ;;  %v12166_v50 = vld [vmem:[#allocation121_spill] sm:$0xff] }
 0x28d   : > { %12128 = vst [vmem:[#allocation136_spill] sm:$0xff] %v7850_v25  ;;  %12129 = vst [vmem:[#allocation137_spill] sm:$0xff] %v7852_v21  ;;  %6602 = vset.pattern.permute.xlu1 %v12037_v4  ;;  %v7880_v56 = vmul.f32 %v921_v55, %v12132_v33  ;;  %v7882_v6 = vadd.f32 %v1372_v14, %v924_v51  ;;  %v7887_v32 = vadd.f32 %v1373_v11, %v925_v53  ;;  %v7925_v53 = vld [vmem:[%s7023_s24 + $0x48] sm:$0xff]  ;;  %v12155_v11 = vld [vmem:[#allocation123_spill] sm:$0xff]  ;;  %v12167_v21 = vmov 7  }
 0x28e   : > { %2567 = vperm.xlu1 %6602, %v7870_v24   ;;  %v7889_v35 = vadd.f32 %v1370_v60, %v922_v57  ;;  %v7891_v0 = vadd.f32 %v1371_v16, %v923_v34  ;;  %v7893_v23 = vadd.f32 %v1374_v28, %v926_v47  ;;  %v7897_v55 = vadd.f32 %v1375_v54, %v927_v30  ;;  %v12149_v30 = vld [vmem:[#allocation127_spill] sm:$0xff]  ;;  %v12156_v16 = vld [vmem:[#allocation129_spill] sm:$0xff]  ;;  %v12164_v28 = vld [vmem:[#allocation106_spill] sm:$0xff] }
 0x28f   : > { %12133 = vst [vmem:[#allocation20_spill] sm:$0xff] %v7882_v6  ;;  %12135 = vst [vmem:[#allocation32_spill] sm:$0xff] %v7887_v32  ;;  %v7899_v51 = vadd.f32 %v1376_v26, %v928_v29  ;;  %v7901_v37 = vadd.f32 %v1377_v27, %v929_v43  ;;  %v7903_v41 = vadd.f32 %v1380_v62, %v932_v15  ;;  %v7912_v47 = vsub.s32 4, %v12147_v40  ;;  %v12150_v29 = vld [vmem:[#allocation128_spill] sm:$0xff]  ;;  %v6705_v15 = vld [vmem:[%s7023_s24 + $0xd0] sm:$0xff] }
 0x290   : > { %v7884_v3 = vpop.permute.xlu0 %1623  ;;  %12136 = vst [vmem:[#allocation31_spill] sm:$0xff] %v7889_v35  ;;  %12137 = vst [vmem:[#allocation8_spill] sm:$0xff] %v7891_v0  ;;  %v7905_v46 = vadd.f32 %v1381_v5, %v933_v2  ;;  %v7907_v52 = vadd.f32 %v1384_v7, %v936_v17  ;;  %v7909_v34 = vadd.f32 %v1385_v31, %v937_v22  ;;  %v7922_v57 = vsub.s32 2, %v12147_v40  ;;  %v12153_v2 = vld [vmem:[#allocation120_spill] sm:$0xff]  ;;  %v12154_v22 = vld [vmem:[#allocation122_spill] sm:$0xff] }
 0x291   : > { %12138 = vst [vmem:[#allocation138_spill] sm:$0xff] %v7893_v23  ;;  %v7895_v59 = vpop.permute.xlu1 %2539  ;;  %12140 = vst [vmem:[#allocation140_spill] sm:$0xff] %v7897_v55  ;;  %3139 = vperm.xlu0 %6675, %v6705_v15   ;;  %v12158_v26 = vld [vmem:[#allocation131_spill] sm:$0xff]  ;;  %v12159_v62 = vld [vmem:[#allocation108_spill] sm:$0xff]  ;;  %v7964_v15 = vsub.s32 7, %v12147_v40 }
 0x292   : > { %12139 = vst [vmem:[#allocation139_spill] sm:$0xff] %v7895_v59  ;;  %12141 = vst [vmem:[#allocation141_spill] sm:$0xff] %v7899_v51  ;;  %6603 = vset.pattern.permute.xlu1 %v12058_v20  ;;  %v12160_v5 = vld [vmem:[#allocation124_spill] sm:$0xff]  ;;  %v12161_v7 = vld [vmem:[#allocation125_spill] sm:$0xff] }
 0x293   : > { %12142 = vst [vmem:[#allocation142_spill] sm:$0xff] %v7901_v37  ;;  %12143 = vst [vmem:[#allocation143_spill] sm:$0xff] %v7903_v41  ;;  %3583 = vperm.xlu1 %6603, %v7925_v53   ;;  %v1245_v36 = vrot.slane %v12160_v5, %v7747_v10  ;;  %v1249_v31 = vrot.slane %v12161_v7, %v7747_v10  ;;  %v12165_v27 = vld [vmem:[#allocation107_spill] sm:$0xff]  ;;  %v12169_v43 = vld [vmem:[#allocation112_spill] sm:$0xff]  ;;  %v1757_v32 = vrot.slane %v12160_v5, %v7922_v57 }
 0x294   : > { %12144 = vst [vmem:[#allocation144_spill] sm:$0xff] %v7905_v46  ;;  %12145 = vst [vmem:[#allocation145_spill] sm:$0xff] %v7907_v52  ;;  %v6706_v60 = vld [vmem:[%s7023_s24 + $0xd8] sm:$0xff]  ;;  %v1761_v17 = vrot.slane %v12161_v7, %v7922_v57  ;;  %v12178_v14 = vld [vmem:[#allocation41_spill] sm:$0xff] }
 0x295   : > { %12146 = vst [vmem:[#allocation146_spill] sm:$0xff] %v7909_v34  ;;  %12148 = vst [vmem:[#allocation103_spill] sm:$0xff] %v7912_v47  ;;  %v7937_v54 = vpop.permute.xlu0 %2011  ;;  %3143 = vperm.xlu0 %6675, %v6706_v60   ;;  %v12168_v44 = vld [vmem:[#allocation111_spill] sm:$0xff]  ;;  %v6708_v34 = vld [vmem:[%s7023_s24 + $0xe0] sm:$0xff] }
 0x296   : > { %12152 = vst [vmem:[#allocation127_spill] sm:$0xff] %v7922_v57  ;;  %12157 = vst [vmem:[#allocation128_spill] sm:$0xff] %v7937_v54  ;;  %v7947_v33 = vpop.permute.xlu1 %3555  ;;  %v7986_v54 = vsub.s32 3, %v12147_v40  ;;  %v12181_v41 = vld [vmem:[#allocation55_spill] sm:$0xff] }
 0x297   : > { %12162 = vst [vmem:[#allocation119_spill] sm:$0xff] %v7947_v33  ;;  %6604 = vset.pattern.permute.xlu1 %v12167_v21  ;;  %v1402_v37 = vmul.f32 %v1245_v36, %v12181_v41  ;;  %v1403_v51 = vmul.f32 %v1249_v31, %v12181_v41  ;;  %v12185_v36 = vld [vmem:[#allocation96_spill] sm:$0xff]  ;;  %v12187_v23 = vld [vmem:[#allocation43_spill] sm:$0xff] }
 0x298   : > { %4091 = vperm.xlu1 %6604, %v6707_v45   ;;  %12173 = vst [vmem:[#allocation122_spill] sm:$0xff] %v7986_v54  ;;  %v8027_v45 = vld [vmem:[%s7023_s24 + $0x60] sm:$0xff]  ;;  %v1914_v31 = vmul.f32 %v1757_v32, %v12185_v36  ;;  %v2269_v60 = vrot.slane %v12160_v5, %v7986_v54  ;;  %v2273_v52 = vrot.slane %v12161_v7, %v7986_v54 }
 0x299   : > { %v7977_v42 = vpop.permute.xlu0 %2039  ;;  %3147 = vperm.xlu0 %6675, %v6708_v34   ;;  %v6710_v34 = vld [vmem:[%s7023_s24 + $0xf0] sm:$0xff]  ;;  %v1805_v32 = vrot.slane %v12149_v30, %v7922_v57  ;;  %v1467_v7 = vadd.f32 %v1403_v51, %v7847_v48 }
 0x29a   : > { %12170 = vst [vmem:[#allocation120_spill] sm:$0xff] %v7977_v42  ;;  %v12175_v42 = vld [vmem:[#allocation118_spill] sm:$0xff] }
 0x29b   : > { %v7996_v6 = vpop.permute.xlu1 %4059 }
 0x29c   : > { %12176 = vst [vmem:[#allocation123_spill] sm:$0xff] %v7996_v6  ;;  %6605 = vset.pattern.permute.xlu1 %v12037_v4  ;;  %v12180_v4 = vrot.slane %v12150_v29, %v7747_v10 }
 0x29d   : > { %v8016_v33 = vpop.permute.xlu0 %2051  ;;  %2571 = vperm.xlu1 %6605, %v8027_v45   ;;  %3155 = vperm.xlu0 %6675, %v6710_v34   ;;  %v12186_v34 = vmov 5  }
 0x29e   : > { %12177 = vst [vmem:[#allocation129_spill] sm:$0xff] %v8016_v33  ;;  %v12179_v33 = vrot.slane %v12149_v30, %v7747_v10  ;;  %v1415_v46 = vmul.f32 %v12180_v4, %v12178_v14 }
 0x2a0   : > { %v1414_v6 = vmul.f32 %v12179_v33, %v12178_v14  ;;  %v8047_v33 = vsub.s32 5, %v12147_v40  ;;  %v8049_v55 = vpop.permute.xlu1 %2035  ;;  %v12188_v14 = vrot.slane %v12151_v58, %v7747_v10  ;;  %v1479_v5 = vadd.f32 %v1415_v46, %v7874_v9 }
 0x2a1   : > { %12183 = vst [vmem:[#allocation108_spill] sm:$0xff] %v8049_v55  ;;  %v8060_v41 = vpop.permute.xlu0 %2063  ;;  %v1915_v55 = vmul.f32 %v1761_v17, %v12185_v36  ;;  %6606 = vset.pattern.permute.xlu1 %v12186_v34  ;;  %v1809_v17 = vrot.slane %v12150_v29, %v7922_v57  ;;  %v1466_v36 = vadd.f32 %v1402_v37, %v7844_v19 }
 0x2a2   : > { %12182 = vst [vmem:[#allocation131_spill] sm:$0xff] %v8047_v33  ;;  %12184 = vst [vmem:[#allocation124_spill] sm:$0xff] %v8060_v41  ;;  %v1478_v4 = vadd.f32 %v1414_v6, %v7864_v61  ;;  %v1378_v25 = vmul.f32 %v12188_v14, %v12187_v23  ;;  %3079 = vperm.xlu1 %6606, %v7870_v24   ;;  %v6711_v6 = vld [vmem:[%s7023_s24 + $0xf8] sm:$0xff]  ;;  %v12189_v14 = vrot.slane %v12153_v2, %v7747_v10 }
 0x2a3   : > { %3159 = vperm.xlu0 %6675, %v6711_v6   ;;  %v1978_v37 = vadd.f32 %v1914_v31, %v1466_v36  ;;  %v1979_v46 = vadd.f32 %v1915_v55, %v1467_v7  ;;  %v12193_v9 = vrot.slane %v12155_v11, %v7747_v10  ;;  %v12195_v55 = vld [vmem:[#allocation50_spill] sm:$0xff] }
 0x2a4   : > { %v1379_v41 = vmul.f32 %v12189_v14, %v12187_v23  ;;  %v8098_v35 = vadd.f32 %v1378_v25, %v7828_v39  ;;  %v12191_v23 = vld [vmem:[#allocation45_spill] sm:$0xff]  ;;  %v12192_v14 = vrot.slane %v12154_v22, %v7747_v10  ;;  %v12196_v39 = vrot.slane %v12156_v16, %v7747_v10 }
 0x2a5   : > { %v8095_v48 = vpop.permute.xlu1 %2543  ;;  %v2076_v51 = vpop.permute.xlu0 %2075  ;;  %v1383_v19 = vmul.f32 %v12193_v9, %v12191_v23  ;;  %v12200_v9 = vld [vmem:[#allocation102_spill] sm:$0xff] }
 0x2a6   : > { %12190 = vst [vmem:[#allocation125_spill] sm:$0xff] %v8095_v48  ;;  %v2426_v61 = vmul.f32 %v2269_v60, %v2076_v51  ;;  %v2427_v0 = vmul.f32 %v2273_v52, %v2076_v51  ;;  %v1382_v59 = vmul.f32 %v12192_v14, %v12191_v23  ;;  %v8109_v48 = vsub.s32 6, %v12147_v40  ;;  %6607 = vset.pattern.permute.xlu1 %v12167_v21  ;;  %v12224_v14 = vld [vmem:[#allocation69_spill] sm:$0xff] }
 0x2a7   : > { %v1432_v25 = vmul.f32 %v12196_v39, %v12195_v55  ;;  %v12197_v52 = vrot.slane %v12158_v26, %v7747_v10  ;;  %4095 = vperm.xlu1 %6607, %v7925_v53   ;;  %v8126_v7 = vadd.f32 %v1379_v41, %v7832_v12  ;;  %v1926_v51 = vmul.f32 %v1805_v32, %v12200_v9  ;;  %v6712_v32 = vld [vmem:[%s7023_s24 + $0xe8] sm:$0xff] }
 0x2a8   : > { %12194 = vst [vmem:[#allocation110_spill] sm:$0xff] %v8109_v48  ;;  %v8120_v31 = vadd.f32 %v2426_v61, %v1978_v37  ;;  %v8122_v36 = vadd.f32 %v2427_v0, %v1979_v46  ;;  %v1927_v23 = vmul.f32 %v1809_v17, %v12200_v9  ;;  %6681 = vset.pattern.permute.xlu0 %v12167_v21  ;;  %v12234_v46 = vld [vmem:[#allocation114_spill] sm:$0xff] }
 0x2a9   : > { %v1433_v60 = vmul.f32 %v12197_v52, %v12195_v55  ;;  %v8132_v39 = vpop.permute.xlu0 %2087  ;;  %v1877_v0 = vrot.slane %v12156_v16, %v7922_v57  ;;  %v1881_v53 = vrot.slane %v12158_v26, %v7922_v57  ;;  %v2317_v12 = vrot.slane %v12149_v30, %v7986_v54  ;;  %4175 = vperm.xlu0 %6681, %v6712_v32  }
 0x2aa   : > { %12198 = vst [vmem:[#allocation106_spill] sm:$0xff] %v8120_v31  ;;  %12199 = vst [vmem:[#allocation107_spill] sm:$0xff] %v8122_v36  ;;  %v8139_v61 = vpop.permute.xlu1 %3559  ;;  %v2321_v41 = vrot.slane %v12150_v29, %v7986_v54  ;;  %v8147_v17 = vadd.f32 %v1382_v59, %v7837_v49  ;;  %v8150_v37 = vadd.f32 %v1383_v19, %v7841_v13  ;;  %v8164_v19 = vld [vmem:[%s7023_s24 + $0x70] sm:$0xff] }
 0x2ab   : > { %12201 = vst [vmem:[#allocation111_spill] sm:$0xff] %v8132_v39  ;;  %12202 = vst [vmem:[#allocation112_spill] sm:$0xff] %v8139_v61  ;;  %v1496_v52 = vadd.f32 %v1432_v25, %v7877_v18  ;;  %v1497_v30 = vadd.f32 %v1433_v60, %v7880_v56  ;;  %6608 = vset.pattern.permute.xlu1 %v12032_v8  ;;  %v1990_v13 = vadd.f32 %v1926_v51, %v1478_v4  ;;  %v12204_v4 = vld [vmem:[#allocation52_spill] sm:$0xff]  ;;  %v12243_v36 = vld [vmem:[#allocation70_spill] sm:$0xff] }
 0x2ac   : > { %v1991_v59 = vadd.f32 %v1927_v23, %v1479_v5  ;;  %12203 = vst [vmem:[#allocation116_spill] sm:$0xff] %v8164_v19  ;;  %2067 = vperm.xlu1 %6608, %v8164_v19   ;;  %v2389_v18 = vrot.slane %v12156_v16, %v7986_v54  ;;  %v2393_v56 = vrot.slane %v12158_v26, %v7986_v54 }
 0x2ad   : > { %v2100_v9 = vpop.permute.xlu0 %2099  ;;  %v1944_v25 = vmul.f32 %v1877_v0, %v7884_v3  ;;  %v1945_v60 = vmul.f32 %v1881_v53, %v7884_v3  ;;  %4183 = vperm.xlu0 %6681, %v6711_v6   ;;  %v12205_v5 = vrot.slane %v12159_v62, %v7912_v47  ;;  %v12206_v16 = vrot.slane %v12163_v63, %v7912_v47  ;;  %v12208_v6 = vld [vmem:[#allocation54_spill] sm:$0xff] }
 0x2ae   : > { %v2438_v32 = vmul.f32 %v2317_v12, %v2100_v9  ;;  %v2439_v29 = vmul.f32 %v2321_v41, %v2100_v9  ;;  %v12209_v53 = vrot.slane %v12164_v28, %v7912_v47  ;;  %v12216_v49 = vrot.slane %v7691_v1, %v7912_v47 }
 0x2af   : > { %v8177_v51 = vmul.f32 %v12205_v5, %v12204_v4  ;;  %v8183_v23 = vmul.f32 %v12206_v16, %v12204_v4  ;;  %v8189_v0 = vpop.permute.xlu1 %4067  ;;  %v12212_v5 = vrot.slane %v12165_v27, %v7912_v47 }
 0x2b0   : > { %12207 = vst [vmem:[#allocation118_spill] sm:$0xff] %v8189_v0  ;;  %v8195_v12 = vmul.f32 %v12209_v53, %v12208_v6  ;;  %v8199_v9 = vadd.f32 %v2438_v32, %v1990_v13  ;;  %v8201_v4 = vadd.f32 %v2439_v29, %v1991_v59  ;;  %6609 = vset.pattern.permute.xlu1 %v12186_v34 }
 0x2b1   : > { %v8207_v16 = vmul.f32 %v12212_v5, %v12208_v6  ;;  %v2136_v13 = vpop.permute.xlu0 %2135  ;;  %v2008_v29 = vadd.f32 %v1944_v25, %v1496_v52  ;;  %v2009_v59 = vadd.f32 %v1945_v60, %v1497_v30  ;;  %3083 = vperm.xlu1 %6609, %v8027_v45   ;;  %v12213_v6 = vld [vmem:[#allocation56_spill] sm:$0xff]  ;;  %v12214_v5 = vrot.slane %v12166_v50, %v7912_v47  ;;  %v12230_v52 = vld [vmem:[#allocation71_spill] sm:$0xff] }
 0x2b2   : > { %12210 = vst [vmem:[#allocation41_spill] sm:$0xff] %v8199_v9  ;;  %12211 = vst [vmem:[#allocation55_spill] sm:$0xff] %v8201_v4  ;;  %v2456_v32 = vmul.f32 %v2389_v18, %v2136_v13  ;;  %v2457_v41 = vmul.f32 %v2393_v56, %v2136_v13  ;;  %v8227_v3 = vmul.f32 %v12216_v49, %v12213_v6  ;;  %v12218_v18 = vld [vmem:[#allocation67_spill] sm:$0xff] }
 0x2b3   : > { %v8221_v26 = vmul.f32 %v12214_v5, %v12213_v6  ;;  %v12219_v56 = vrot.slane %v12159_v62, %v7922_v57  ;;  %v12220_v60 = vrot.slane %v12163_v63, %v7922_v57  ;;  %v12231_v53 = vrot.slane %v12168_v44, %v7922_v57 }
 0x2b4   : > { %12217 = vst [vmem:[#allocation43_spill] sm:$0xff] %v8227_v3  ;;  %v8241_v5 = vadd.f32 %v2456_v32, %v2008_v29  ;;  %v8243_v49 = vadd.f32 %v2457_v41, %v2009_v59  ;;  %v8245_v6 = vpop.permute.xlu1 %2547  ;;  %v12225_v29 = vrot.slane %v12164_v28, %v7922_v57  ;;  %v12226_v59 = vrot.slane %v12165_v27, %v7922_v57  ;;  %v12267_v3 = vld [vmem:[#allocation83_spill] sm:$0xff] }
 0x2b5   : > { %12215 = vst [vmem:[#allocation96_spill] sm:$0xff] %v8221_v26  ;;  %v1882_v25 = vmul.f32 %v12219_v56, %v12218_v18  ;;  %v1883_v13 = vmul.f32 %v12220_v60, %v12218_v18  ;;  %12223 = vst [vmem:[#allocation102_spill] sm:$0xff] %v8245_v6  ;;  %6610 = vset.pattern.permute.xlu1 %v12058_v20  ;;  %v12229_v18 = vld [vmem:[#allocation8_spill] sm:$0xff]  ;;  %v1888_v55 = vmul.f32 %v12231_v53, %v12230_v52  ;;  %v6844_v53 = vmov 1966171168  }
 0x2b6   : > { %12221 = vst [vmem:[#allocation45_spill] sm:$0xff] %v8241_v5  ;;  %12222 = vst [vmem:[#allocation50_spill] sm:$0xff] %v8243_v49  ;;  %v1886_v41 = vmul.f32 %v12225_v29, %v12224_v14  ;;  %v1887_v32 = vmul.f32 %v12226_v59, %v12224_v14  ;;  %v8268_v56 = vpop.permute.xlu0 %3551  ;;  %3591 = vperm.xlu1 %6610, %v7870_v24   ;;  %v12228_v14 = vld [vmem:[#allocation31_spill] sm:$0xff]  ;;  %v12232_v29 = vrot.slane %v12169_v43, %v7922_v57  ;;  %v12233_v5 = vld [vmem:[#allocation68_spill] sm:$0xff] }
 0x2b7   : > { %12227 = vst [vmem:[#allocation52_spill] sm:$0xff] %v8268_v56  ;;  %v8278_v59 = vadd.f32 %v1882_v25, %v12228_v14  ;;  %v8281_v60 = vadd.f32 %v1883_v13, %v12229_v18  ;;  %v12235_v49 = vrot.slane %v12234_v46, %v7964_v15  ;;  %v12237_v25 = vld [vmem:[#allocation115_spill] sm:$0xff]  ;;  %v12247_v14 = vrot.slane %v12153_v2, %v7964_v15 }
 0x2b8   : > { %v1889_v30 = vmul.f32 %v12232_v29, %v12230_v52  ;;  %v12238_v13 = vrot.slane %v12237_v25, %v7964_v15  ;;  %v12241_v52 = vld [vmem:[#allocation138_spill] sm:$0xff] }
 0x2b9   : > { %v8295_v4 = vmul.f32 %v12235_v49, %v12233_v5  ;;  %v8307_v9 = vpop.permute.xlu1 %3055  ;;  %v8310_v29 = vadd.f32 %v1886_v41, %v12241_v52  ;;  %v12242_v49 = vld [vmem:[#allocation140_spill] sm:$0xff]  ;;  %v12249_v41 = vld [vmem:[#allocation73_spill] sm:$0xff] }
 0x2ba   : > { %v8301_v18 = vmul.f32 %v12238_v13, %v12233_v5  ;;  %12240 = vst [vmem:[#allocation67_spill] sm:$0xff] %v8307_v9  ;;  %v8313_v39 = vadd.f32 %v1887_v32, %v12242_v49  ;;  %v12244_v5 = vrot.slane %v12151_v58, %v7964_v15  ;;  %v8321_v31 = vpop.permute.xlu0 %3563  ;;  %v12250_v32 = vrot.slane %v12174_v38, %v7922_v57 }
 0x2bb   : > { %12236 = vst [vmem:[#allocation54_spill] sm:$0xff] %v8295_v4  ;;  %12246 = vst [vmem:[#allocation31_spill] sm:$0xff] %v8321_v31  ;;  %v4738_v4 = vunpack.c.l.s4 %v6844_v53  ;;  %v12251_v49 = vrot.slane %v12175_v42, %v7922_v57  ;;  %6611 = vset.pattern.permute.xlu1 %v12032_v8  ;;  %v12252_v53 = vld [vmem:[#allocation141_spill] sm:$0xff]  ;;  %v8351_v31 = vld [vmem:[%s7023_s24 + $0x78] sm:$0xff]  ;;  %v12261_v8 = vrot.slane %v7691_v1, %v7964_v15 }
 0x2bc   : > { %12239 = vst [vmem:[#allocation56_spill] sm:$0xff] %v8301_v18  ;;  %v8319_v13 = vmul.f32 %v12244_v5, %v12243_v36  ;;  %v8327_v18 = vmul.f32 %v12247_v14, %v12243_v36  ;;  %v1892_v52 = vmul.f32 %v12250_v32, %v12249_v41  ;;  %v8341_v10 = vadd.f32 %v1888_v55, %v12252_v53  ;;  %v12253_v36 = vld [vmem:[#allocation142_spill] sm:$0xff]  ;;  %v12258_v55 = vld [vmem:[#allocation75_spill] sm:$0xff] }
 0x2bd   : > { %v1893_v5 = vmul.f32 %v12251_v49, %v12249_v41  ;;  %v8344_v14 = vadd.f32 %v1889_v30, %v12253_v36  ;;  %12254 = vst [vmem:[#allocation71_spill] sm:$0xff] %v8351_v31  ;;  %2071 = vperm.xlu1 %6611, %v8351_v31   ;;  %v12255_v41 = vld [vmem:[#allocation72_spill] sm:$0xff]  ;;  %v12256_v49 = vrot.slane %v12166_v50, %v7964_v15 }
 0x2be   : > { %12245 = vst [vmem:[#allocation69_spill] sm:$0xff] %v8319_v13  ;;  %12248 = vst [vmem:[#allocation8_spill] sm:$0xff] %v8327_v18  ;;  %v12259_v30 = vrot.slane %v12166_v50, %v7922_v57  ;;  %v12260_v36 = vrot.slane %v7691_v1, %v7922_v57  ;;  %v8374_v56 = vmul.f32 %v12261_v8, %v12255_v41  ;;  %v8382_v0 = vpop.permute.xlu0 %3575  ;;  %v12266_v18 = vld [vmem:[#allocation144_spill] sm:$0xff] }
 0x2bf   : > { %v8358_v13 = vmul.f32 %v12256_v49, %v12255_v41  ;;  %12264 = vst [vmem:[#allocation138_spill] sm:$0xff] %v8382_v0  ;;  %v8388_v61 = vadd.f32 %v1893_v5, %v12266_v18  ;;  %v12268_v8 = vrot.slane %v12234_v46, %v7922_v57  ;;  %v12270_v5 = vmov 4   ;;  %v12272_v49 = vld [vmem:[#allocation146_spill] sm:$0xff] }
 0x2c0   : > { %v1896_v53 = vmul.f32 %v12259_v30, %v12258_v55  ;;  %v1897_v32 = vmul.f32 %v12260_v36, %v12258_v55  ;;  %12262 = vst [vmem:[#allocation114_spill] sm:$0xff] %v8374_v56  ;;  %v4739_v55 = vunpack.c.0.s8 %v4738_v4  ;;  %v12265_v36 = vld [vmem:[#allocation143_spill] sm:$0xff]  ;;  %v12269_v30 = vrot.slane %v12237_v25, %v7922_v57  ;;  %v12281_v4 = vld [vmem:[#allocation20_spill] sm:$0xff] }
 0x2c1   : > { %12257 = vst [vmem:[#allocation68_spill] sm:$0xff] %v8358_v13  ;;  %v8380_v13 = vpop.permute.xlu1 %4071  ;;  %v8385_v9 = vadd.f32 %v1892_v52, %v12265_v36  ;;  %v1884_v41 = vmul.f32 %v12268_v8, %v12267_v3  ;;  %6612 = vset.pattern.permute.xlu1 %v12270_v5  ;;  %v12271_v36 = vld [vmem:[#allocation145_spill] sm:$0xff]  ;;  %v12276_v52 = vrot.slane %v12153_v2, %v7922_v57 }
 0x2c2   : > { %12263 = vst [vmem:[#allocation115_spill] sm:$0xff] %v8380_v13  ;;  %v1885_v56 = vmul.f32 %v12269_v30, %v12267_v3  ;;  %v8408_v8 = vadd.f32 %v1896_v53, %v12271_v36  ;;  %v8411_v0 = vadd.f32 %v1897_v32, %v12272_v49  ;;  %v12274_v13 = vld [vmem:[#allocation85_spill] sm:$0xff]  ;;  %v12275_v3 = vrot.slane %v12151_v58, %v7922_v57  ;;  %v12277_v53 = vld [vmem:[#allocation87_spill] sm:$0xff]  ;;  %v8433_v26 = vpop.permute.xlu0 %3587 }
 0x2c3   : > { %2579 = vperm.xlu1 %6612, %v8164_v19   ;;  %v1891_v18 = vmul.f32 %v12276_v52, %v12274_v13  ;;  %v12278_v32 = vrot.slane %v12154_v22, %v7922_v57  ;;  %12280 = vst [vmem:[#allocation73_spill] sm:$0xff] %v8433_v26  ;;  %v1948_v6 = vadd.f32 %v1884_v41, %v12281_v4  ;;  %v12287_v4 = vld [vmem:[#allocation97_spill] sm:$0xff] }
 0x2c4   : > { %12273 = vst [vmem:[#allocation140_spill] sm:$0xff] %v8411_v0  ;;  %v1890_v30 = vmul.f32 %v12275_v3, %v12274_v13  ;;  %v8431_v3 = vsub.s32 %v4739_v55, %v12147_v40  ;;  %v12282_v19 = vrot.slane %v12155_v11, %v7922_v57  ;;  %v12284_v0 = vld [vmem:[#allocation32_spill] sm:$0xff]  ;;  %v12285_v55 = vld [vmem:[#allocation95_spill] sm:$0xff]  ;;  %v12286_v26 = vrot.slane %v12234_v46, %v7986_v54 }
 0x2c5   : > { %v1894_v49 = vmul.f32 %v12278_v32, %v12277_v53  ;;  %v8440_v52 = vpop.permute.xlu1 %2043  ;;  %v1949_v40 = vadd.f32 %v1885_v56, %v12284_v0  ;;  %v12288_v57 = vrot.slane %v12164_v28, %v7986_v54  ;;  %v12290_v0 = vrot.slane %v12237_v25, %v7986_v54 }
 0x2c6   : > { %12279 = vst [vmem:[#allocation70_spill] sm:$0xff] %v8431_v3  ;;  %v1895_v13 = vmul.f32 %v12282_v19, %v12277_v53  ;;  %12283 = vst [vmem:[#allocation141_spill] sm:$0xff] %v8440_v52  ;;  %v2396_v41 = vmul.f32 %v12286_v26, %v12285_v55  ;;  %v12289_v53 = vrot.slane %v12165_v27, %v7986_v54  ;;  %v8486_v26 = vpop.permute.xlu0 %3599 }
 0x2c7   : > { %v2398_v19 = vmul.f32 %v12288_v57, %v12287_v4  ;;  %v8460_v52 = vadd.f32 %v1890_v30, %v8098_v35  ;;  %v2397_v56 = vmul.f32 %v12290_v0, %v12285_v55  ;;  %6613 = vset.pattern.permute.xlu1 %v12058_v20  ;;  %v8472_v36 = vadd.f32 %v1891_v18, %v8126_v7  ;;  %v12291_v35 = vld [vmem:[#allocation128_spill] sm:$0xff] }
 0x2c8   : > { %v2399_v32 = vmul.f32 %v12289_v53, %v12287_v4  ;;  %v8475_v4 = vadd.f32 %v1894_v49, %v8147_v17  ;;  %v12292_v30 = vrot.slane %v12159_v62, %v7986_v54  ;;  %v12293_v55 = vrot.slane %v12163_v63, %v7986_v54  ;;  %3595 = vperm.xlu1 %6613, %v8027_v45   ;;  %v12320_v18 = vld [vmem:[#allocation120_spill] sm:$0xff] }
 0x2c9   : > { %12294 = vst [vmem:[#allocation142_spill] sm:$0xff] %v8486_v26  ;;  %v8489_v7 = vadd.f32 %v1895_v13, %v8150_v37  ;;  %v2462_v57 = vadd.f32 %v2398_v19, %v8310_v29  ;;  %v2461_v13 = vadd.f32 %v2397_v56, %v1949_v40  ;;  %v12295_v26 = vld [vmem:[#allocation99_spill] sm:$0xff]  ;;  %v12296_v17 = vrot.slane %v12234_v46, %v7912_v47 }
 0x2ca   : > { %v2394_v53 = vmul.f32 %v12292_v30, %v12291_v35  ;;  %v2395_v0 = vmul.f32 %v12293_v55, %v12291_v35  ;;  %v2460_v30 = vadd.f32 %v2396_v41, %v1948_v6  ;;  %v2463_v35 = vadd.f32 %v2399_v32, %v8313_v39  ;;  %v8499_v55 = vpop.permute.xlu1 %3059  ;;  %v12298_v41 = vld [vmem:[#allocation101_spill] sm:$0xff]  ;;  %v12318_v37 = vld [vmem:[#allocation139_spill] sm:$0xff] }
 0x2cb   : > { %v2908_v20 = vmul.f32 %v12296_v17, %v12295_v26  ;;  %v12297_v49 = vrot.slane %v12237_v25, %v7912_v47  ;;  %v12299_v39 = vrot.slane %v12168_v44, %v7986_v54  ;;  %v12300_v32 = vrot.slane %v12169_v43, %v7986_v54  ;;  %v8522_v17 = vpop.permute.xlu0 %3611 }
 0x2cc   : > { %v2458_v19 = vadd.f32 %v2394_v53, %v8278_v59  ;;  %v2459_v56 = vadd.f32 %v2395_v0, %v8281_v60  ;;  %6614 = vset.pattern.permute.xlu1 %v12167_v21  ;;  %12301 = vst [vmem:[#allocation72_spill] sm:$0xff] %v8522_v17  ;;  %v8536_v53 = vadd.f32 %v8195_v12, %v2462_v57 }
 0x2cd   : > { %v2909_v6 = vmul.f32 %v12297_v49, %v12295_v26  ;;  %v2400_v29 = vmul.f32 %v12299_v39, %v12298_v41  ;;  %v2401_v40 = vmul.f32 %v12300_v32, %v12298_v41  ;;  %4103 = vperm.xlu1 %6614, %v7870_v24   ;;  %v8539_v0 = vadd.f32 %v8207_v16, %v2463_v35  ;;  %v12315_v24 = vld [vmem:[#allocation136_spill] sm:$0xff]  ;;  %v4704_v41 = vpop.f32.mrf.mxu0 }
 0x2ce   : > { %12302 = vst [vmem:[#allocation75_spill] sm:$0xff] %v8536_v53  ;;  %v8545_v32 = vadd.f32 %v2908_v20, %v2460_v30  ;;  %v8550_v39 = vpop.permute.xlu1 %3567  ;;  %v2970_v57 = vadd.f32 %v8177_v51, %v2458_v19  ;;  %v2971_v35 = vadd.f32 %v8183_v23, %v2459_v56  ;;  %v12306_v30 = vld [vmem:[#allocation117_spill] sm:$0xff]  ;;  %v12310_v51 = vrot.slane %v12168_v44, %v7912_v47  ;;  %v12311_v19 = vld [vmem:[#allocation104_spill] sm:$0xff] }
 0x2cf   : > { %12303 = vst [vmem:[#allocation143_spill] sm:$0xff] %v8539_v0  ;;  %v8547_v49 = vadd.f32 %v2909_v6, %v2461_v13  ;;  %v2464_v26 = vadd.f32 %v2400_v29, %v8341_v10  ;;  %12304 = vst [vmem:[#allocation144_spill] sm:$0xff] %v8550_v39  ;;  %v2465_v16 = vadd.f32 %v2401_v40, %v8344_v14  ;;  %v8557_v60 = vpop.permute.xlu0 %3623  ;;  %v12309_v14 = vld [vmem:[#allocation132_spill] sm:$0xff] }
 0x2d0   : > { %12305 = vst [vmem:[#allocation83_spill] sm:$0xff] %v8557_v60  ;;  %v12307_v10 = vrot.slane %v12151_v58, %v7986_v54  ;;  %v12308_v6 = vrot.slane %v12153_v2, %v7986_v54  ;;  %v2912_v23 = vmul.f32 %v12310_v51, %v12309_v14  ;;  %v12312_v56 = vrot.slane %v12159_v62, %v8047_v33 }
 0x2d1   : > { %6615 = vset.pattern.permute.xlu1 %v12270_v5  ;;  %v12313_v20 = vrot.slane %v12163_v63, %v8047_v33  ;;  %v12316_v12 = vrot.slane %v12174_v38, %v7986_v54  ;;  %v12323_v17 = vrot.slane %v12153_v2, %v7912_v47 }
 0x2d2   : > { %v2402_v13 = vmul.f32 %v12307_v10, %v12306_v30  ;;  %v2403_v29 = vmul.f32 %v12308_v6, %v12306_v30  ;;  %v3418_v10 = vmul.f32 %v12312_v56, %v12311_v19  ;;  %v12314_v6 = vrot.slane %v12169_v43, %v7912_v47  ;;  %2583 = vperm.xlu1 %6615, %v8351_v31   ;;  %v8613_v39 = vpop.permute.xlu1 %2047 }
 0x2d3   : > { %v3419_v30 = vmul.f32 %v12313_v20, %v12311_v19  ;;  %v2404_v40 = vmul.f32 %v12316_v12, %v12315_v24  ;;  %v12317_v56 = vrot.slane %v12175_v42, %v7986_v54  ;;  %v12319_v20 = vrot.slane %v12151_v58, %v7912_v47  ;;  %12324 = vst [vmem:[#allocation145_spill] sm:$0xff] %v8613_v39  ;;  %v8621_v0 = vpop.permute.xlu0 %3659 }
 0x2d4   : > { %v2913_v51 = vmul.f32 %v12314_v6, %v12309_v14  ;;  %v12321_v14 = vrot.slane %v12166_v50, %v7986_v54  ;;  %v12322_v12 = vrot.slane %v7691_v1, %v7986_v54  ;;  %v2466_v53 = vadd.f32 %v2402_v13, %v8460_v52  ;;  %12325 = vst [vmem:[#allocation146_spill] sm:$0xff] %v8621_v0 }
 0x2d5   : > { %v2405_v59 = vmul.f32 %v12317_v56, %v12315_v24  ;;  %v2914_v19 = vmul.f32 %v12319_v20, %v12318_v37  ;;  %v2915_v24 = vmul.f32 %v12323_v17, %v12318_v37  ;;  %v3482_v56 = vadd.f32 %v3418_v10, %v2970_v57  ;;  %v12326_v37 = vld [vmem:[#allocation134_spill] sm:$0xff] }
 0x2d6   : > { %v2408_v6 = vmul.f32 %v12321_v14, %v12320_v18  ;;  %v2409_v60 = vmul.f32 %v12322_v12, %v12320_v18  ;;  %v3483_v5 = vadd.f32 %v3419_v30, %v2971_v35  ;;  %v2467_v14 = vadd.f32 %v2403_v29, %v8472_v36  ;;  %6616 = vset.pattern.permute.xlu1 %v12186_v34  ;;  %v12330_v30 = vld [vmem:[#allocation116_spill] sm:$0xff] }
 0x2d7   : > { %v8619_v31 = vadd.f32 %v2912_v23, %v2464_v26  ;;  %v8625_v12 = vadd.f32 %v2913_v51, %v2465_v16  ;;  %v12327_v17 = vrot.slane %v12159_v62, %v8109_v48  ;;  %v12328_v52 = vrot.slane %v12163_v63, %v8109_v48  ;;  %v4706_v26 = vpop.f32.mrf.mxu0  ;;  %v12329_v23 = vld [vmem:[#allocation140_spill] sm:$0xff]  ;;  %3091 = vperm.xlu1 %6616, %v12330_v30  }
 0x2d8   : > { %v2468_v36 = vadd.f32 %v2404_v40, %v8385_v9  ;;  %v2469_v13 = vadd.f32 %v2405_v59, %v8388_v61  ;;  %v8638_v29 = vadd.f32 %v2914_v19, %v2466_v53  ;;  %v2472_v16 = vadd.f32 %v2408_v6, %v8408_v8  ;;  %v12334_v53 = vld [vmem:[#allocation125_spill] sm:$0xff] }
 0x2d9   : > { %v3930_v57 = vmul.f32 %v12327_v17, %v12326_v37  ;;  %v3931_v35 = vmul.f32 %v12328_v52, %v12326_v37  ;;  %v2473_v10 = vadd.f32 %v2409_v60, %v12329_v23  ;;  %v8643_v51 = vadd.f32 %v2915_v24, %v2467_v14  ;;  %v12331_v37 = vld [vmem:[#allocation108_spill] sm:$0xff]  ;;  %v8657_v24 = vpop.permute.xlu1 %2555 }
 0x2da   : > { %v12332_v9 = vrot.slane %v12154_v22, %v7986_v54  ;;  %v12333_v61 = vrot.slane %v12155_v11, %v7986_v54  ;;  %v12335_v8 = vrot.slane %v12174_v38, %v7912_v47  ;;  %v4735_v19 = vcombine.low %v4704_v41, %v4706_v26  ;;  %12336 = vst [vmem:[#allocation85_spill] sm:$0xff] %v8657_v24 }
 0x2db   : > { %v3994_v17 = vadd.f32 %v3930_v57, %v3482_v56  ;;  %v3995_v18 = vadd.f32 %v3931_v35, %v3483_v5  ;;  %v4736_v6 = vcombine.high %v4704_v41, %v4706_v26  ;;  %v12337_v5 = vld [vmem:[#allocation119_spill] sm:$0xff]  ;;  %v12338_v56 = vrot.slane %v12164_v28, %v8109_v48  ;;  %6617 = vset.pattern.permute.xlu1 %v12167_v21 }
 0x2dc   : > { %v2406_v40 = vmul.f32 %v12332_v9, %v12331_v37  ;;  %v2407_v59 = vmul.f32 %v12333_v61, %v12331_v37  ;;  %v2916_v60 = vmul.f32 %v12335_v8, %v12334_v53  ;;  %v12339_v57 = vld [vmem:[#allocation123_spill] sm:$0xff]  ;;  %v12340_v52 = vrot.slane %v12159_v62, %v7964_v15  ;;  %v3040_v9 = vpop.permute.xlu0 %3039  ;;  %4107 = vperm.xlu1 %6617, %v8027_v45  }
 0x2dd   : > { %v8663_v14 = vmul.f32 %v12338_v56, %v12337_v5  ;;  %v12341_v23 = vrot.slane %v12163_v63, %v7964_v15  ;;  %v12342_v41 = vrot.slane %v12175_v42, %v7912_v47  ;;  %v12343_v61 = vrot.slane %v12165_v27, %v8109_v48  ;;  %v12344_v56 = vld [vmem:[#allocation102_spill] sm:$0xff]  ;;  %v12346_v63 = vld [vmem:[#allocation96_spill] sm:$0xff] }
 0x2de   : > { %v4442_v35 = vmul.f32 %v12340_v52, %v12339_v57  ;;  %v12345_v62 = vrot.slane %v12154_v22, %v7912_v47  ;;  %v12357_v45 = vrot.slane %v12175_v42, %v8047_v33 }
 0x2df   : > { %v4443_v37 = vmul.f32 %v12341_v23, %v12339_v57  ;;  %v2917_v26 = vmul.f32 %v12342_v41, %v12334_v53  ;;  %v8681_v8 = vmul.f32 %v12343_v61, %v12337_v5  ;;  %v8689_v57 = vadd.f32 %v12346_v63, %v2472_v16  ;;  %v12348_v23 = vld [vmem:[#allocation43_spill] sm:$0xff] }
 0x2e0   : > { %v2918_v52 = vmul.f32 %v12345_v62, %v12344_v56  ;;  %v8692_v20 = vadd.f32 %v12348_v23, %v2473_v10  ;;  %v8694_v53 = vadd.f32 %v4442_v35, %v3994_v17  ;;  %v2470_v5 = vadd.f32 %v2406_v40, %v8475_v4  ;;  %v12353_v35 = vld [vmem:[#allocation112_spill] sm:$0xff]  ;;  %v12355_v40 = vld [vmem:[#allocation67_spill] sm:$0xff] }
 0x2e1   : > { %12347 = vst [vmem:[#allocation87_spill] sm:$0xff] %v8689_v57  ;;  %v8696_v41 = vadd.f32 %v4443_v37, %v3995_v18  ;;  %v12352_v61 = vrot.slane %v12155_v11, %v7912_v47  ;;  %v2471_v62 = vadd.f32 %v2407_v59, %v8489_v7  ;;  %v2980_v16 = vadd.f32 %v2916_v60, %v2468_v36  ;;  %v3044_v36 = vpop.permute.xlu0 %3043  ;;  %v12359_v60 = vld [vmem:[#allocation118_spill] sm:$0xff]  ;;  %v8767_v47 = vld [vmem:[%s7023_s24 + $0x88] sm:$0xff] }
 0x2e2   : > { %12349 = vst [vmem:[#allocation20_spill] sm:$0xff] %v8692_v20  ;;  %12350 = vst [vmem:[#allocation32_spill] sm:$0xff] %v8694_v53  ;;  %v4743_v63 = vrot.slane %v4735_v19, %v8431_v3  ;;  %v4750_v10 = vrot.slane %v4736_v6, %v8431_v3  ;;  %v2981_v17 = vadd.f32 %v2917_v26, %v2469_v13  ;;  %v12373_v20 = vld [vmem:[#allocation115_spill] sm:$0xff] }
 0x2e3   : > { %12351 = vst [vmem:[#allocation95_spill] sm:$0xff] %v8696_v41  ;;  %v2919_v0 = vmul.f32 %v12352_v61, %v12344_v56  ;;  %v12354_v18 = vrot.slane %v12168_v44, %v8109_v48  ;;  %v12356_v37 = vrot.slane %v12174_v38, %v8047_v33  ;;  %v3429_v7 = vmul.f32 %v12357_v45, %v12355_v40 }
 0x2e4   : > { %v12358_v13 = vrot.slane %v12169_v43, %v8109_v48  ;;  %v12360_v19 = vrot.slane %v12164_v28, %v7964_v15  ;;  %v12361_v26 = vrot.slane %v12165_v27, %v7964_v15  ;;  %v8739_v61 = vadd.f32 %v2918_v52, %v2470_v5  ;;  %v12367_v5 = vld [vmem:[#allocation31_spill] sm:$0xff]  ;;  %12370 = vst [vmem:[#allocation97_spill] sm:$0xff] %v8767_v47 }
 0x2e5   : > { %v8711_v4 = vmul.f32 %v12354_v18, %v12353_v35  ;;  %v3428_v56 = vmul.f32 %v12356_v37, %v12355_v40  ;;  %v8741_v18 = vpop.permute.xlu1 %3571  ;;  %v8743_v40 = vadd.f32 %v2919_v0, %v2471_v62  ;;  %v12363_v37 = vrot.slane %v12234_v46, %v8109_v48  ;;  %v3048_v57 = vpop.permute.xlu0 %3047 }
 0x2e6   : > { %v8725_v59 = vmul.f32 %v12358_v13, %v12353_v35  ;;  %v8731_v6 = vmul.f32 %v12360_v19, %v12359_v60  ;;  %v8737_v23 = vmul.f32 %v12361_v26, %v12359_v60  ;;  %v12362_v35 = vld [vmem:[#allocation52_spill] sm:$0xff]  ;;  %v12364_v13 = vrot.slane %v12237_v25, %v8109_v48 }
 0x2e7   : > { %v3932_v45 = vmul.f32 %v12363_v37, %v12362_v35  ;;  %v12365_v60 = vrot.slane %v12237_v25, %v8047_v33  ;;  %v12366_v52 = vmov 3   ;;  %v12368_v0 = vrot.slane %v12151_v58, %v8109_v48 }
 0x2e8   : > { %v3933_v19 = vmul.f32 %v12364_v13, %v12362_v35  ;;  %6618 = vset.pattern.permute.xlu1 %v12366_v52  ;;  %v4751_v39 = vcombine.high %v4743_v63, %v4743_v63  ;;  %v4752_v24 = vcombine.high %v4750_v10, %v4750_v10  ;;  %v12369_v37 = vrot.slane %v12234_v46, %v8047_v33 }
 0x2e9   : > { %v3421_v26 = vmul.f32 %v12365_v60, %v3040_v9  ;;  %v8761_v62 = vmul.f32 %v12368_v0, %v12367_v5  ;;  %2079 = vperm.xlu1 %6618, %v8767_v47   ;;  %v3492_v25 = vadd.f32 %v3428_v56, %v2980_v16  ;;  %v3493_v35 = vadd.f32 %v3429_v7, %v2981_v17  ;;  %v8806_v47 = vpop.permute.xlu1 %4079 }
 0x2ea   : > { %v3420_v54 = vmul.f32 %v12369_v37, %v3040_v9  ;;  %v12371_v13 = vrot.slane %v12153_v2, %v8109_v48  ;;  %v12372_v0 = vrot.slane %v12165_v27, %v8047_v33  ;;  %v12374_v46 = vrot.slane %v12168_v44, %v7964_v15  ;;  %v12377_v37 = vld [vmem:[#allocation138_spill] sm:$0xff] }
 0x2eb   : > { %v4759_v16 = vrot.slane %v4743_v63, %v8431_v3  ;;  %v8787_v17 = vrot.slane %v4750_v10, %v8431_v3  ;;  %v12375_v56 = vrot.slane %v12164_v28, %v8047_v33  ;;  %v12376_v27 = vrot.slane %v12169_v43, %v7964_v15 }
 0x2ec   : > { %v8774_v60 = vmul.f32 %v12371_v13, %v12367_v5  ;;  %v3423_v21 = vmul.f32 %v12372_v0, %v3044_v36  ;;  %v8783_v9 = vmul.f32 %v12374_v46, %v12373_v20  ;;  %v12378_v13 = vrot.slane %v12166_v50, %v8109_v48  ;;  %v12391_v50 = vld [vmem:[#allocation130_spill] sm:$0xff] }
 0x2ed   : > { %v3422_v7 = vmul.f32 %v12375_v56, %v3044_v36  ;;  %v4449_v5 = vmul.f32 %v12376_v27, %v12373_v20  ;;  %v3485_v63 = vadd.f32 %v3421_v26, %v8547_v49  ;;  %v12380_v10 = vrot.slane %v12169_v43, %v8047_v33  ;;  %6619 = vset.pattern.permute.xlu1 %v12186_v34  ;;  %v12390_v34 = vld [vmem:[#allocation75_spill] sm:$0xff] }
 0x2ee   : > { %v8800_v0 = vmul.f32 %v12378_v13, %v12377_v37  ;;  %v12381_v28 = vrot.slane %v7691_v1, %v8109_v48  ;;  %v4773_v20 = vrot.slane %v4751_v39, %v8431_v3  ;;  %v8816_v56 = vrot.slane %v4752_v24, %v8431_v3  ;;  %v12385_v13 = vld [vmem:[#allocation143_spill] sm:$0xff]  ;;  %v12389_v3 = vld [vmem:[#allocation109_spill] sm:$0xff] }
 0x2ef   : > { %v3425_v46 = vmul.f32 %v12380_v10, %v3048_v57  ;;  %v3484_v27 = vadd.f32 %v3420_v54, %v8545_v32  ;;  %v12383_v43 = vrot.slane %v12154_v22, %v8047_v33  ;;  %v12384_v26 = vrot.slane %v12155_v11, %v8047_v33 }
 0x2f0   : > { %12379 = vst [vmem:[#allocation128_spill] sm:$0xff] %v8800_v0  ;;  %v8812_v36 = vmul.f32 %v12381_v28, %v12377_v37  ;;  %v3487_v10 = vadd.f32 %v3423_v21, %v12385_v13  ;;  %v12386_v39 = vrot.slane %v12168_v44, %v8047_v33  ;;  %v12387_v28 = vld [vmem:[#allocation71_spill] sm:$0xff]  ;;  %v4781_v54 = vcombine.high %v4759_v16, %v4759_v16 }
 0x2f1   : > { %v3430_v49 = vmul.f32 %v12383_v43, %v8499_v55  ;;  %v3431_v37 = vmul.f32 %v12384_v26, %v8499_v55  ;;  %3095 = vperm.xlu1 %6619, %v12387_v28   ;;  %v8835_v32 = vcombine.high %v8787_v17, %v8787_v17  ;;  %v4938_v43 = vrot.slane %v4759_v16, %v12389_v3 }
 0x2f2   : > { %12382 = vst [vmem:[#allocation99_spill] sm:$0xff] %v8812_v36  ;;  %v3424_v24 = vmul.f32 %v12386_v39, %v3048_v57  ;;  %v3486_v0 = vadd.f32 %v3422_v7, %v12390_v34  ;;  %v3052_v36 = vpop.permute.xlu0 %3051  ;;  %v4942_v55 = vrot.slane %v4759_v16, %v12391_v50  ;;  %v3997_v26 = vadd.f32 %v3933_v19, %v3485_v63  ;;  %v8851_v34 = vpop.permute.xlu1 %2559  ;;  %v12393_v7 = vld [vmem:[#allocation144_spill] sm:$0xff] }
 0x2f3   : > { %12388 = vst [vmem:[#allocation101_spill] sm:$0xff] %v8835_v32  ;;  %v3489_v44 = vadd.f32 %v3425_v46, %v8625_v12  ;;  %v8843_v57 = vcombine.high %v4773_v20, %v4773_v20  ;;  %v8847_v13 = vcombine.high %v8816_v56, %v8816_v56  ;;  %v3996_v32 = vadd.f32 %v3932_v45, %v3484_v27 }
 0x2f4   : > { %v12394_v16 = vrot.slane %v12174_v38, %v8109_v48  ;;  %v3999_v12 = vadd.f32 %v8681_v8, %v3487_v10  ;;  %v3488_v19 = vadd.f32 %v3424_v24, %v8619_v31  ;;  %v12395_v63 = vrot.slane %v12151_v58, %v8047_v33  ;;  %v12399_v31 = vld [vmem:[#allocation56_spill] sm:$0xff] }
 0x2f5   : > { %12392 = vst [vmem:[#allocation117_spill] sm:$0xff] %v8847_v13  ;;  %v12396_v13 = vmov 6   ;;  %v5255_v45 = vmul.f32 %v4938_v43, %v8694_v53  ;;  %v12397_v27 = vrot.slane %v12175_v42, %v8109_v48  ;;  %v12398_v8 = vrot.slane %v12153_v2, %v8047_v33 }
 0x2f6   : > { %v3940_v21 = vmul.f32 %v12394_v16, %v12393_v7  ;;  %v3426_v46 = vmul.f32 %v12395_v63, %v3052_v36  ;;  %6620 = vset.pattern.permute.xlu1 %v12396_v13  ;;  %v3998_v16 = vadd.f32 %v8663_v14, %v3486_v0  ;;  %v5256_v58 = vmul.f32 %v4942_v55, %v8696_v41  ;;  %v12401_v14 = vld [vmem:[#allocation54_spill] sm:$0xff] }
 0x2f7   : > { %v3941_v39 = vmul.f32 %v12397_v27, %v12393_v7  ;;  %v3427_v10 = vmul.f32 %v12398_v8, %v3052_v36  ;;  %3603 = vperm.xlu1 %6620, %v12330_v30   ;;  %v8875_v24 = vadd.f32 %v12399_v31, %v3997_v26  ;;  %v4001_v43 = vadd.f32 %v8725_v59, %v3489_v44  ;;  %v8890_v44 = vpop.permute.xlu1 %3067 }
 0x2f8   : > { %v3490_v63 = vadd.f32 %v3426_v46, %v8638_v29  ;;  %v3494_v53 = vadd.f32 %v3430_v49, %v8739_v61  ;;  %v3495_v7 = vadd.f32 %v3431_v37, %v8743_v40  ;;  %v8882_v0 = vadd.f32 %v12401_v14, %v3996_v32  ;;  %v8904_v32 = vld [vmem:[%s7023_s24 + $0x90] sm:$0xff] }
 0x2f9   : > { %12400 = vst [vmem:[#allocation132_spill] sm:$0xff] %v8875_v24  ;;  %v3491_v2 = vadd.f32 %v3427_v10, %v8643_v51  ;;  %v4004_v36 = vadd.f32 %v3940_v21, %v3492_v25  ;;  %v4950_v55 = vrot.slane %v4773_v20, %v12391_v50  ;;  %v8887_v26 = vadd.f32 %v8737_v23, %v3999_v12  ;;  %v3064_v51 = vpop.permute.xlu0 %3063 }
 0x2fa   : > { %12402 = vst [vmem:[#allocation104_spill] sm:$0xff] %v8882_v0  ;;  %v4000_v59 = vadd.f32 %v8711_v4, %v3488_v19  ;;  %v4005_v29 = vadd.f32 %v3941_v39, %v3493_v35  ;;  %v4946_v61 = vrot.slane %v4773_v20, %v12389_v3  ;;  %v8894_v40 = vadd.f32 %v8731_v6, %v3998_v16  ;;  %v12409_v39 = vld [vmem:[#allocation8_spill] sm:$0xff] }
 0x2fb   : > { %12403 = vst [vmem:[#allocation136_spill] sm:$0xff] %v8887_v26  ;;  %v4003_v49 = vadd.f32 %v8774_v60, %v3491_v2  ;;  %6621 = vset.pattern.permute.xlu1 %v12366_v52  ;;  %v5258_v25 = vmul.f32 %v4950_v55, %v8875_v24  ;;  %v4958_v23 = vrot.slane %v4781_v54, %v12391_v50  ;;  %12406 = vst [vmem:[#allocation134_spill] sm:$0xff] %v8904_v32  ;;  %v4084_v31 = vpop.permute.xlu1 %4083  ;;  %v12416_v2 = vld [vmem:[#allocation121_spill] sm:$0xff] }
 0x2fc   : > { %12404 = vst [vmem:[#allocation139_spill] sm:$0xff] %v8894_v40  ;;  %v8900_v37 = vadd.f32 %v4449_v5, %v4001_v43  ;;  %v4002_v4 = vadd.f32 %v8761_v62, %v3490_v63  ;;  %2083 = vperm.xlu1 %6621, %v8904_v32   ;;  %v5257_v6 = vmul.f32 %v4946_v61, %v8882_v0  ;;  %v12414_v63 = vld [vmem:[#allocation69_spill] sm:$0xff] }
 0x2fd   : > { %v4954_v35 = vrot.slane %v4781_v54, %v12389_v3  ;;  %v12407_v60 = vrot.slane %v12154_v22, %v8109_v48  ;;  %v4966_v21 = vrot.slane %v8843_v57, %v12391_v50  ;;  %v5260_v5 = vmul.f32 %v4958_v23, %v8887_v26  ;;  %v12420_v23 = vld [vmem:[#allocation97_spill] sm:$0xff] }
 0x2fe   : > { %12405 = vst [vmem:[#allocation120_spill] sm:$0xff] %v8900_v37  ;;  %v8917_v62 = vadd.f32 %v8783_v9, %v4000_v59  ;;  %v8920_v12 = vadd.f32 %v12409_v39, %v4003_v49  ;;  %v12411_v19 = vrot.slane %v7691_v1, %v8047_v33  ;;  %v12412_v27 = vrot.slane %v12155_v11, %v8109_v48  ;;  %v12425_v39 = vld [vmem:[#allocation87_spill] sm:$0xff] }
 0x2ff   : > { %v3942_v20 = vmul.f32 %v12407_v60, %v8741_v18  ;;  %v5259_v46 = vmul.f32 %v4954_v35, %v8894_v40  ;;  %v4962_v8 = vrot.slane %v8843_v57, %v12389_v3  ;;  %v12413_v9 = vrot.slane %v12175_v42, %v7964_v15 }
 0x300   : > { %12408 = vst [vmem:[#allocation140_spill] sm:$0xff] %v8917_v62  ;;  %12410 = vst [vmem:[#allocation116_spill] sm:$0xff] %v8920_v12  ;;  %v3433_v54 = vmul.f32 %v12411_v19, %v3064_v51  ;;  %v3943_v16 = vmul.f32 %v12412_v27, %v8741_v18  ;;  %v5352_v43 = vsel %vm5350_vm4, %v5258_v25, 0.0  ;;  %v5262_v1 = vmul.f32 %v4966_v21, %v8900_v37  ;;  %v12422_v21 = vld [vmem:[#allocation20_spill] sm:$0xff]  ;;  %v12456_v37 = vld [vmem:[#allocation89_spill] sm:$0xff] }
 0x301   : > { %v4453_v10 = vmul.f32 %v12413_v9, %v8806_v47  ;;  %v8939_v14 = vadd.f32 %v12414_v63, %v4002_v4  ;;  %v12417_v55 = vrot.slane %v12416_v2, %v8047_v33  ;;  %v12418_v59 = vmov 4   ;;  %v8969_v9 = vpop.permute.xlu1 %2055  ;;  %v12432_v2 = vld [vmem:[#allocation101_spill] sm:$0xff] }
 0x302   : > { %6622 = vset.pattern.permute.xlu1 %v12418_v59  ;;  %v5351_v57 = vsel %vm5350_vm4, %v5256_v58, 0.0  ;;  %v5319_v61 = vadd.f32 %v5257_v6, %v5255_v45  ;;  %v4006_v49 = vadd.f32 %v3942_v20, %v3494_v53  ;;  %v12419_v42 = vrot.slane %v12174_v38, %v7964_v15  ;;  %12427 = vst [vmem:[#allocation119_spill] sm:$0xff] %v8969_v9 }
 0x303   : > { %12415 = vst [vmem:[#allocation108_spill] sm:$0xff] %v8939_v14  ;;  %v3432_v18 = vmul.f32 %v12417_v55, %v3064_v51  ;;  %2591 = vperm.xlu1 %6622, %v12420_v23   ;;  %v5354_v4 = vsel %vm5350_vm4, %v5260_v5, 0.0  ;;  %v5261_v35 = vmul.f32 %v4962_v8, %v8917_v62  ;;  %v12421_v51 = vrot.slane %v8787_v17, %v12391_v50 }
 0x304   : > { %v4452_v25 = vmul.f32 %v12419_v42, %v8806_v47  ;;  %v3497_v58 = vadd.f32 %v3433_v54, %v12422_v21  ;;  %v5353_v45 = vadd.f32 %v5352_v43, %v5351_v57  ;;  %v5320_v53 = vadd.f32 %v5319_v61, %v5259_v46  ;;  %v12430_v43 = vld [vmem:[#allocation99_spill] sm:$0xff]  ;;  %v9003_v57 = vld [vmem:[%s11610_s1 + $0x80] sm:$0xff]  ;;  %v9008_v61 = vld [vmem:[%s11610_s1 + $0x88] sm:$0xff] }
 0x305   : > { %v5264_v60 = vmul.f32 %v12421_v51, %v8920_v12  ;;  %v4007_v6 = vadd.f32 %v3943_v16, %v3495_v7  ;;  %v8958_v20 = vadd.f32 %v4453_v10, %v4005_v29  ;;  %v5356_v38 = vsel %vm5350_vm4, %v5262_v1, 0.0 }
 0x306   : > { %v12424_v47 = vrot.slane %v8787_v17, %v12389_v3  ;;  %v3496_v19 = vadd.f32 %v3432_v18, %v12425_v39  ;;  %v12426_v27 = vrot.slane %v12154_v22, %v7964_v15  ;;  %v5355_v54 = vadd.f32 %v5354_v4, %v5353_v45  ;;  %v8982_v17 = vld [vmem:[%s11610_s1 + $0x90] sm:$0xff] }
 0x307   : > { %12423 = vst [vmem:[#allocation125_spill] sm:$0xff] %v8958_v20  ;;  %v4982_v7 = vrot.slane %v8816_v56, %v12391_v50  ;;  %v8973_v29 = vadd.f32 %v4452_v25, %v4004_v36  ;;  %v12429_v46 = vrot.slane %v12155_v11, %v7964_v15  ;;  %6623 = vset.pattern.permute.xlu1 %v12396_v13  ;;  %v5358_v10 = vsel %vm5350_vm4, %v5264_v60, 0.0  ;;  %v8992_v11 = vld [vmem:[%s11610_s1 + $0x98] sm:$0xff]  ;;  %v12434_v25 = vld [vmem:[#allocation128_spill] sm:$0xff] }
 0x308   : > { %v5263_v5 = vmul.f32 %v12424_v47, %v8939_v14  ;;  %v4454_v8 = vmul.f32 %v12426_v27, %v4084_v31  ;;  %v5321_v22 = vadd.f32 %v5320_v53, %v5261_v35  ;;  %v4009_v1 = vadd.f32 %v12430_v43, %v3497_v58  ;;  %3607 = vperm.xlu1 %6623, %v12387_v28   ;;  %v9022_v58 = vpop.permute.xlu1 %3071  ;;  %v9029_v53 = vld [vmem:[%s11610_s1 + $0xa8] sm:$0xff] }
 0x309   : > { %12428 = vst [vmem:[#allocation123_spill] sm:$0xff] %v8973_v29  ;;  %v4455_v16 = vmul.f32 %v12429_v46, %v4084_v31  ;;  %v5357_v36 = vadd.f32 %v5356_v38, %v5355_v54  ;;  %v4978_v31 = vrot.slane %v8816_v56, %v12389_v3  ;;  %v4990_v55 = vrot.slane %v12432_v2, %v12391_v50  ;;  %v12435_v38 = vld [vmem:[#allocation114_spill] sm:$0xff]  ;;  %v12438_v54 = vld [vmem:[#allocation117_spill] sm:$0xff] }
 0x30a   : > { %v8986_v63 = vadd.f32 %v4454_v8, %v4006_v49  ;;  %v9013_v49 = vld [vmem:[%s11610_s1 + $0xa0] sm:$0xff]  ;;  %v5266_v56 = vmul.f32 %v4982_v7, %v8958_v20  ;;  %v5322_v42 = vadd.f32 %v5321_v22, %v5263_v5  ;;  %v4008_v4 = vadd.f32 %v12434_v25, %v3496_v19 }
 0x30b   : > { %v8998_v18 = vadd.f32 %v4455_v16, %v4007_v6  ;;  %v4986_v35 = vrot.slane %v12432_v2, %v12389_v3  ;;  %v741_v51 = vrot.slane %v8982_v17, %v12389_v3  ;;  %v5359_v60 = vadd.f32 %v5358_v10, %v5357_v36  ;;  %v12439_v16 = vld [vmem:[#allocation68_spill] sm:$0xff] }
 0x30c   : > { %12431 = vst [vmem:[#allocation102_spill] sm:$0xff] %v8986_v63  ;;  %v745_v45 = vrot.slane %v8992_v11, %v12389_v3  ;;  %v5265_v6 = vmul.f32 %v4978_v31, %v8973_v29  ;;  %v9033_v47 = vadd.f32 %v12435_v38, %v4009_v1  ;;  %v12437_v39 = vmov 7  }
 0x30d   : > { %12433 = vst [vmem:[#allocation96_spill] sm:$0xff] %v8998_v18  ;;  %v5268_v21 = vmul.f32 %v4990_v55, %v8998_v18  ;;  %v5267_v5 = vmul.f32 %v4986_v35, %v8986_v63  ;;  %6624 = vset.pattern.permute.xlu1 %v12437_v39  ;;  %v733_v19 = vrot.slane %v9003_v57, %v12389_v3  ;;  %v5360_v46 = vsel %vm5350_vm4, %v5266_v56, 0.0  ;;  %v12441_v55 = vld [vmem:[#allocation12_spill] sm:$0xff] }
 0x30e   : > { %12436 = vst [vmem:[#allocation43_spill] sm:$0xff] %v9033_v47  ;;  %v737_v27 = vrot.slane %v9008_v61, %v12389_v3  ;;  %v749_v8 = vrot.slane %v9013_v49, %v12389_v3  ;;  %v4998_v7 = vrot.slane %v12438_v54, %v12391_v50  ;;  %4115 = vperm.xlu1 %6624, %v12330_v30  }
 0x30f   : > { %v9048_v22 = vadd.f32 %v12439_v16, %v4008_v4  ;;  %v5323_v10 = vadd.f32 %v5322_v42, %v5265_v6  ;;  %v5362_v43 = vsel %vm5350_vm4, %v5268_v21, 0.0  ;;  %v753_v1 = vrot.slane %v9029_v53, %v12389_v3  ;;  %v9061_v4 = vpop.permute.xlu1 %3579 }
 0x310   : > { %v1189_v36 = vrot.slane %v8982_v17, %v12391_v50  ;;  %v1193_v31 = vrot.slane %v8992_v11, %v12391_v50  ;;  %v5361_v2 = vadd.f32 %v5360_v46, %v5359_v60  ;;  %v940_v30 = vmul.f32 %v741_v51, %v12441_v55  ;;  %v12442_v51 = vld [vmem:[#allocation9_spill] sm:$0xff]  ;;  %v12443_v46 = vld [vmem:[#allocation10_spill] sm:$0xff] }
 0x311   : > { %12440 = vst [vmem:[#allocation112_spill] sm:$0xff] %v9048_v22  ;;  %v4994_v56 = vrot.slane %v12438_v54, %v12389_v3  ;;  %v5270_v25 = vmul.f32 %v4998_v7, %v9033_v47  ;;  %v5324_v42 = vadd.f32 %v5323_v10, %v5267_v5  ;;  %v941_v35 = vmul.f32 %v745_v45, %v12441_v55  ;;  %v12444_v10 = vld [vmem:[#allocation33_spill] sm:$0xff]  ;;  %v12445_v55 = vld [vmem:[#allocation127_spill] sm:$0xff]  ;;  %v12454_v47 = vld [vmem:[#allocation58_spill] sm:$0xff] }
 0x312   : > { %v1181_v21 = vrot.slane %v9003_v57, %v12391_v50  ;;  %v1185_v6 = vrot.slane %v9008_v61, %v12391_v50  ;;  %v5363_v38 = vadd.f32 %v5362_v43, %v5361_v2  ;;  %6625 = vset.pattern.permute.xlu1 %v12418_v59  ;;  %v938_v60 = vmul.f32 %v733_v19, %v12442_v51 }
 0x313   : > { %v1197_v54 = vrot.slane %v9013_v49, %v12391_v50  ;;  %v1201_v5 = vrot.slane %v9029_v53, %v12391_v50  ;;  %v5269_v7 = vmul.f32 %v4994_v56, %v9048_v22  ;;  %2595 = vperm.xlu1 %6625, %v8904_v32   ;;  %v939_v45 = vmul.f32 %v737_v27, %v12442_v51  ;;  %v12447_v56 = vld [vmem:[#allocation47_spill] sm:$0xff] }
 0x314   : > { %v942_v16 = vmul.f32 %v749_v8, %v12443_v46  ;;  %v1388_v43 = vmul.f32 %v1189_v36, %v12444_v10  ;;  %v1389_v2 = vmul.f32 %v1193_v31, %v12444_v10  ;;  %v943_v19 = vmul.f32 %v753_v1, %v12443_v46  ;;  %v9090_v8 = vpop.permute.xlu1 %2059  ;;  %v12450_v31 = vld [vmem:[#allocation49_spill] sm:$0xff]  ;;  %v12451_v46 = vld [vmem:[#allocation103_spill] sm:$0xff] }
 0x315   : > { %v1701_v63 = vrot.slane %v8982_v17, %v12445_v55  ;;  %v5364_v29 = vsel %vm5350_vm4, %v5270_v25, 0.0  ;;  %v9084_v14 = vadd.f32 %v5324_v42, %v5269_v7  ;;  %v1386_v22 = vmul.f32 %v1181_v21, %v12447_v56  ;;  %12448 = vst [vmem:[#allocation118_spill] sm:$0xff] %v9090_v8 }
 0x316   : > { %v1387_v62 = vmul.f32 %v1185_v6, %v12447_v56  ;;  %v1705_v27 = vrot.slane %v8992_v11, %v12445_v55  ;;  %v9092_v36 = vadd.f32 %v5364_v29, %v5363_v38  ;;  %v1390_v1 = vmul.f32 %v1197_v54, %v12450_v31 }
 0x317   : > { %12446 = vst [vmem:[#allocation67_spill] sm:$0xff] %v9084_v14  ;;  %v1391_v51 = vmul.f32 %v1201_v5, %v12450_v31  ;;  %v2733_v25 = vrot.slane %v9013_v49, %v12451_v46  ;;  %v2737_v42 = vrot.slane %v9029_v53, %v12451_v46  ;;  %v12452_v21 = vmov 5  }
 0x318   : > { %12449 = vst [vmem:[#allocation52_spill] sm:$0xff] %v9092_v36  ;;  %6626 = vset.pattern.permute.xlu1 %v12452_v21  ;;  %v1452_v6 = vadd.f32 %v1388_v43, %v940_v30  ;;  %v1453_v7 = vadd.f32 %v1389_v2, %v941_v35  ;;  %v1693_v10 = vrot.slane %v9003_v57, %v12445_v55  ;;  %v12453_v2 = vld [vmem:[#allocation77_spill] sm:$0xff]  ;;  %v9122_v12 = vpop.permute.xlu1 %2567 }
 0x319   : > { %v1697_v29 = vrot.slane %v9008_v61, %v12445_v55  ;;  %3103 = vperm.xlu1 %6626, %v12420_v23   ;;  %v4269_v38 = vrot.slane %v9013_v49, %v7964_v15  ;;  %v4273_v54 = vrot.slane %v9029_v53, %v7964_v15  ;;  %v1709_v5 = vrot.slane %v9013_v49, %v12445_v55 }
 0x31a   : > { %v1713_v30 = vrot.slane %v9029_v53, %v12445_v55  ;;  %v1450_v35 = vadd.f32 %v1386_v22, %v938_v60  ;;  %v1451_v43 = vadd.f32 %v1387_v62, %v939_v45  ;;  %v1900_v56 = vmul.f32 %v1701_v63, %v12453_v2  ;;  %12455 = vst [vmem:[#allocation31_spill] sm:$0xff] %v9122_v12  ;;  %v12457_v22 = vld [vmem:[#allocation122_spill] sm:$0xff]  ;;  %v3076_v55 = vpop.permute.xlu0 %3075 }
 0x31b   : > { %v1901_v31 = vmul.f32 %v1705_v27, %v12453_v2  ;;  %v1454_v40 = vadd.f32 %v1390_v1, %v942_v16  ;;  %v1455_v0 = vadd.f32 %v1391_v51, %v943_v19  ;;  %v9117_v18 = vmul.f32 %v2733_v25, %v12454_v47  ;;  %v12458_v60 = vld [vmem:[#allocation74_spill] sm:$0xff]  ;;  %v12459_v16 = vld [vmem:[#allocation91_spill] sm:$0xff]  ;;  %v9139_v1 = vpop.f32.mrf.mxu0 }
 0x31c   : > { %v9120_v20 = vmul.f32 %v2737_v42, %v12454_v47  ;;  %v1898_v26 = vmul.f32 %v1693_v10, %v12456_v37  ;;  %v1899_v24 = vmul.f32 %v1697_v29, %v12456_v37  ;;  %v2221_v62 = vrot.slane %v9013_v49, %v12457_v22  ;;  %12460 = vst [vmem:[#allocation115_spill] sm:$0xff] %v9139_v1  ;;  %v9160_v2 = vpop.permute.xlu1 %3583 }
 0x31d   : > { %v2225_v63 = vrot.slane %v9029_v53, %v12457_v22  ;;  %6627 = vset.pattern.permute.xlu1 %v12437_v39  ;;  %v9132_v45 = vmul.f32 %v4269_v38, %v12458_v60  ;;  %v9135_v47 = vmul.f32 %v4273_v54, %v12458_v60  ;;  %v1902_v19 = vmul.f32 %v1709_v5, %v12459_v16  ;;  %v12461_v54 = vld [vmem:[#allocation129_spill] sm:$0xff]  ;;  %v9162_v60 = vpop.f32.mrf.mxu0 }
 0x31e   : > { %v1903_v27 = vmul.f32 %v1713_v30, %v12459_v16  ;;  %4119 = vperm.xlu1 %6627, %v12387_v28   ;;  %v9142_v37 = vadd.f32 %v1900_v56, %v1452_v6  ;;  %v9144_v51 = vadd.f32 %v1901_v31, %v1453_v7  ;;  %v2205_v25 = vrot.slane %v9003_v57, %v12457_v22 }
 0x31f   : > { %v2209_v42 = vrot.slane %v9008_v61, %v12457_v22  ;;  %v3757_v10 = vrot.slane %v9013_v49, %v8109_v48  ;;  %v3761_v29 = vrot.slane %v9029_v53, %v8109_v48  ;;  %v2213_v38 = vrot.slane %v8982_v17, %v12457_v22  ;;  %12462 = vst [vmem:[#allocation138_spill] sm:$0xff] %v9162_v60 }
 0x320   : > { %v2217_v28 = vrot.slane %v8992_v11, %v12457_v22  ;;  %v1962_v6 = vadd.f32 %v1898_v26, %v1450_v35  ;;  %v1963_v7 = vadd.f32 %v1899_v24, %v1451_v43  ;;  %v2414_v5 = vmul.f32 %v2221_v62, %v12461_v54  ;;  %v9178_v35 = vld [vmem:[%s7023_s24 + $0xa0] sm:$0xff]  ;;  %v12464_v43 = vld [vmem:[#allocation141_spill] sm:$0xff]  ;;  %v4092_v39 = vpop.permute.xlu1 %4091 }
 0x321   : > { %v2415_v30 = vmul.f32 %v2225_v63, %v12461_v54  ;;  %v1966_v56 = vadd.f32 %v1902_v19, %v1454_v40  ;;  %v1967_v31 = vadd.f32 %v1903_v27, %v1455_v0  ;;  %v2717_v16 = vrot.slane %v9003_v57, %v12451_v46  ;;  %12463 = vst [vmem:[#allocation143_spill] sm:$0xff] %v9178_v35 }
 0x322   : > { %v2721_v41 = vrot.slane %v9008_v61, %v12451_v46  ;;  %6628 = vset.pattern.permute.xlu1 %v12366_v52  ;;  %v2725_v24 = vrot.slane %v8982_v17, %v12451_v46  ;;  %v2729_v26 = vrot.slane %v8992_v11, %v12451_v46  ;;  %v3229_v40 = vrot.slane %v9003_v57, %v8047_v33 }
 0x323   : > { %v3233_v0 = vrot.slane %v9008_v61, %v8047_v33  ;;  %2091 = vperm.xlu1 %6628, %v9178_v35   ;;  %v2411_v62 = vmul.f32 %v2209_v42, %v12464_v43  ;;  %v3245_v63 = vrot.slane %v9013_v49, %v8047_v33  ;;  %v3249_v19 = vrot.slane %v9029_v53, %v8047_v33  ;;  %v12465_v42 = vld [vmem:[#allocation85_spill] sm:$0xff] }
 0x324   : > { %v3237_v27 = vrot.slane %v8982_v17, %v8047_v33  ;;  %v2478_v54 = vadd.f32 %v2414_v5, %v1966_v56  ;;  %v2479_v8 = vadd.f32 %v2415_v30, %v1967_v31  ;;  %v4785_v12 = vcombine.low %v9139_v1, %v9162_v60  ;;  %v12466_v60 = vld [vmem:[#allocation70_spill] sm:$0xff]  ;;  %v9220_v35 = vpop.permute.xlu1 %2571 }
 0x325   : > { %v3241_v9 = vrot.slane %v8992_v11, %v8047_v33  ;;  %v2410_v46 = vmul.f32 %v2205_v25, %v12464_v43  ;;  %v2923_v22 = vmul.f32 %v2721_v41, %v12465_v42  ;;  %v3741_v49 = vrot.slane %v9003_v57, %v8109_v48 }
 0x326   : > { %v3745_v53 = vrot.slane %v9008_v61, %v8109_v48  ;;  %v3749_v5 = vrot.slane %v8982_v17, %v8109_v48  ;;  %v3753_v30 = vrot.slane %v8992_v11, %v8109_v48  ;;  %v4253_v56 = vrot.slane %v9003_v57, %v7964_v15 }
 0x327   : > { %v4257_v41 = vrot.slane %v9008_v61, %v7964_v15  ;;  %6629 = vset.pattern.permute.xlu1 %v12452_v21  ;;  %v2475_v25 = vadd.f32 %v2411_v62, %v1963_v7  ;;  %v2922_v31 = vmul.f32 %v2717_v16, %v12465_v42  ;;  %v3435_v43 = vmul.f32 %v3233_v0, %v8890_v44  ;;  %v12467_v62 = vld [vmem:[#allocation73_spill] sm:$0xff] }
 0x328   : > { %3107 = vperm.xlu1 %6629, %v8904_v32   ;;  %v4261_v1 = vrot.slane %v8982_v17, %v7964_v15  ;;  %v4793_v33 = vrot.slane %v4785_v12, %v12466_v60  ;;  %v2990_v48 = vadd.f32 %v9117_v18, %v2478_v54  ;;  %v2991_v57 = vadd.f32 %v9120_v20, %v2479_v8  ;;  %v12468_v42 = vld [vmem:[#allocation145_spill] sm:$0xff]  ;;  %v9235_v54 = vpop.permute.xlu1 %3079 }
 0x329   : > { %v3439_v36 = vmul.f32 %v3249_v19, %v3076_v55  ;;  %v2474_v61 = vadd.f32 %v2410_v46, %v1962_v6  ;;  %v2987_v14 = vadd.f32 %v2923_v22, %v2475_v25  ;;  %v3434_v7 = vmul.f32 %v3229_v40, %v8890_v44 }
 0x32a   : > { %v3947_v16 = vmul.f32 %v3745_v53, %v9061_v4  ;;  %v3950_v0 = vmul.f32 %v3757_v10, %v12467_v62  ;;  %v2412_v21 = vmul.f32 %v2213_v38, %v12468_v42  ;;  %v2413_v32 = vmul.f32 %v2217_v28, %v12468_v42 }
 0x32b   : > { %v3438_v17 = vmul.f32 %v3245_v63, %v3076_v55  ;;  %v2986_v12 = vadd.f32 %v2922_v31, %v2474_v61  ;;  %v3499_v18 = vadd.f32 %v3435_v43, %v2987_v14  ;;  %v3946_v20 = vmul.f32 %v3741_v49, %v9061_v4 }
 0x32c   : > { %v4459_v8 = vmul.f32 %v4257_v41, %v4092_v39  ;;  %6630 = vset.pattern.permute.xlu1 %v12396_v13  ;;  %v3951_v44 = vmul.f32 %v3761_v29, %v12467_v62  ;;  %v4809_v46 = vrot.slane %v4793_v33, %v12466_v60  ;;  %v2924_v22 = vmul.f32 %v2725_v24, %v8851_v34 }
 0x32d   : > { %v3503_v10 = vadd.f32 %v3439_v36, %v2991_v57  ;;  %3615 = vperm.xlu1 %6630, %v12420_v23   ;;  %v2925_v55 = vmul.f32 %v2729_v26, %v8851_v34  ;;  %v3498_v38 = vadd.f32 %v3434_v7, %v2986_v12  ;;  %v4011_v28 = vadd.f32 %v3947_v16, %v3499_v18  ;;  %v12474_v16 = vld [vmem:[#allocation143_spill] sm:$0xff] }
 0x32e   : > { %v4458_v6 = vmul.f32 %v4253_v56, %v4092_v39  ;;  %v4801_v14 = vcombine.high %v4793_v33, %v4793_v33  ;;  %v2476_v4 = vadd.f32 %v2412_v21, %v9142_v37  ;;  %v3502_v40 = vadd.f32 %v3438_v17, %v2990_v48  ;;  %v4096_v56 = vpop.permute.xlu1 %4095 }
 0x32f   : > { %v3436_v63 = vmul.f32 %v3237_v27, %v9022_v58  ;;  %v2477_v29 = vadd.f32 %v2413_v32, %v9144_v51  ;;  %v3437_v19 = vmul.f32 %v3241_v9, %v9022_v58  ;;  %v4010_v24 = vadd.f32 %v3946_v20, %v3498_v38  ;;  %v9246_v58 = vld [vmem:[%s7023_s24 + $0xa8] sm:$0xff]  ;;  %v12480_v38 = vld [vmem:[#allocation134_spill] sm:$0xff] }
 0x330   : > { %v9233_v36 = vadd.f32 %v4459_v8, %v4011_v28  ;;  %v2988_v34 = vadd.f32 %v2924_v22, %v2476_v4  ;;  %v4015_v26 = vadd.f32 %v3951_v44, %v3503_v10  ;;  %v3948_v39 = vmul.f32 %v3749_v5, %v9160_v2  ;;  %12471 = vst [vmem:[#allocation75_spill] sm:$0xff] %v9246_v58  ;;  %v12479_v44 = vld [vmem:[#allocation52_spill] sm:$0xff] }
 0x331   : > { %6631 = vset.pattern.permute.xlu1 %v12366_v52  ;;  %v4265_v33 = vrot.slane %v8992_v11, %v7964_v15  ;;  %v2989_v48 = vadd.f32 %v2925_v55, %v2477_v29  ;;  %v3949_v21 = vmul.f32 %v3753_v30, %v9160_v2  ;;  %v9242_v32 = vadd.f32 %v4458_v6, %v4010_v24  ;;  %v9300_v29 = vld [vmem:[%s11610_s1 + $0xb8] sm:$0xff] }
 0x332   : > { %12469 = vst [vmem:[#allocation71_spill] sm:$0xff] %v9233_v36  ;;  %v5006_v9 = vrot.slane %v4809_v46, %v12391_v50  ;;  %2095 = vperm.xlu1 %6631, %v9246_v58   ;;  %v9250_v37 = vrot.slane %v4801_v14, %v12466_v60  ;;  %v4831_v51 = vcombine.high %v4809_v46, %v4809_v46  ;;  %v9278_v8 = vpop.permute.xlu1 %2067  ;;  %v12483_v24 = vmov 7  }
 0x333   : > { %12470 = vst [vmem:[#allocation109_spill] sm:$0xff] %v9242_v32  ;;  %v4014_v27 = vadd.f32 %v3950_v0, %v3502_v40  ;;  %v3500_v49 = vadd.f32 %v3436_v63, %v2988_v34  ;;  %v3501_v53 = vadd.f32 %v3437_v19, %v2989_v48  ;;  %v5002_v11 = vrot.slane %v4809_v46, %v12389_v3  ;;  %v9295_v63 = vld [vmem:[%s11610_s1 + $0xb0] sm:$0xff]  ;;  %v9311_v34 = vld [vmem:[%s11610_s1 + $0xd8] sm:$0xff] }
 0x334   : > { %v5272_v5 = vmul.f32 %v5006_v9, %v9233_v36  ;;  %v9255_v2 = vadd.f32 %v9135_v47, %v4015_v26  ;;  %v4460_v31 = vmul.f32 %v4261_v1, %v4096_v56  ;;  %v4461_v43 = vmul.f32 %v4265_v33, %v4096_v56  ;;  %12478 = vst [vmem:[#allocation8_spill] sm:$0xff] %v9278_v8  ;;  %v9305_v19 = vld [vmem:[%s11610_s1 + $0xd0] sm:$0xff]  ;;  %v9316_v26 = vld [vmem:[%s11610_s1 + $0xc0] sm:$0xff] }
 0x335   : > { %v4012_v30 = vadd.f32 %v3948_v39, %v3500_v49  ;;  %v4013_v41 = vadd.f32 %v3949_v21, %v3501_v53  ;;  %v5271_v25 = vmul.f32 %v5002_v11, %v9242_v32  ;;  %v5022_v57 = vrot.slane %v4831_v51, %v12391_v50  ;;  %v9321_v39 = vld [vmem:[%s11610_s1 + $0xc8] sm:$0xff] }
 0x336   : > { %12472 = vst [vmem:[#allocation130_spill] sm:$0xff] %v9255_v2  ;;  %6632 = vset.pattern.permute.xlu1 %v12418_v59  ;;  %v9261_v61 = vadd.f32 %v9132_v45, %v4014_v27  ;;  %v5010_v7 = vrot.slane %v9250_v37, %v12389_v3  ;;  %v5366_v47 = vsel %vm5350_vm4, %v5272_v5, 0.0  ;;  %v5014_v1 = vrot.slane %v9250_v37, %v12391_v50  ;;  %v12477_v45 = vld [vmem:[#allocation67_spill] sm:$0xff]  ;;  %v9288_v4 = vpop.permute.xlu1 %3083 }
 0x337   : > { %2603 = vperm.xlu1 %6632, %v12474_v16   ;;  %v9267_v62 = vadd.f32 %v4460_v31, %v4012_v30  ;;  %v9269_v0 = vadd.f32 %v4461_v43, %v4013_v41  ;;  %v5018_v42 = vrot.slane %v4831_v51, %v12389_v3  ;;  %v5276_v17 = vmul.f32 %v5022_v57, %v9255_v2  ;;  %v12486_v57 = vld [vmem:[#allocation15_spill] sm:$0xff] }
 0x338   : > { %12473 = vst [vmem:[#allocation144_spill] sm:$0xff] %v9261_v61  ;;  %v5326_v12 = vadd.f32 %v12477_v45, %v5271_v25  ;;  %v5367_v46 = vadd.f32 %v5366_v47, %v12479_v44  ;;  %v1205_v33 = vrot.slane %v9295_v63, %v12391_v50  ;;  %v1209_v48 = vrot.slane %v9300_v29, %v12391_v50  ;;  %v12485_v25 = vld [vmem:[#allocation14_spill] sm:$0xff]  ;;  %v12488_v44 = vld [vmem:[#allocation127_spill] sm:$0xff] }
 0x339   : > { %12475 = vst [vmem:[#allocation56_spill] sm:$0xff] %v9267_v62  ;;  %12476 = vst [vmem:[#allocation54_spill] sm:$0xff] %v9269_v0  ;;  %v5273_v18 = vmul.f32 %v5010_v7, %v9267_v62  ;;  %v5274_v20 = vmul.f32 %v5014_v1, %v9269_v0  ;;  %v5275_v22 = vmul.f32 %v5018_v42, %v9261_v61  ;;  %v5370_v6 = vsel %vm5350_vm4, %v5276_v17, 0.0  ;;  %v12487_v42 = vld [vmem:[#allocation11_spill] sm:$0xff]  ;;  %v12498_v0 = vld [vmem:[#allocation93_spill] sm:$0xff] }
 0x33a   : > { %v757_v21 = vrot.slane %v9295_v63, %v12389_v3  ;;  %v761_v9 = vrot.slane %v9300_v29, %v12389_v3  ;;  %v773_v51 = vrot.slane %v9305_v19, %v12389_v3  ;;  %v777_v27 = vrot.slane %v9311_v34, %v12389_v3  ;;  %v9340_v11 = vpop.permute.xlu1 %3591 }
 0x33b   : > { %6633 = vset.pattern.permute.xlu1 %v12396_v13  ;;  %v5327_v10 = vadd.f32 %v5326_v12, %v5273_v18  ;;  %v5368_v55 = vsel %vm5350_vm4, %v5274_v20, 0.0  ;;  %v765_v49 = vrot.slane %v9316_v26, %v12389_v3  ;;  %v769_v53 = vrot.slane %v9321_v39, %v12389_v3 }
 0x33c   : > { %3619 = vperm.xlu1 %6633, %v12480_v38   ;;  %v5369_v28 = vadd.f32 %v5368_v55, %v5367_v46  ;;  %v1221_v56 = vrot.slane %v9305_v19, %v12391_v50  ;;  %v1225_v41 = vrot.slane %v9311_v34, %v12391_v50  ;;  %v944_v31 = vmul.f32 %v757_v21, %v12485_v25  ;;  %v12490_v55 = vld [vmem:[#allocation35_spill] sm:$0xff] }
 0x33d   : > { %v9286_v14 = vadd.f32 %v5327_v10, %v5275_v22  ;;  %v945_v43 = vmul.f32 %v761_v9, %v12485_v25  ;;  %v948_v7 = vmul.f32 %v773_v51, %v12486_v57  ;;  %v1213_v47 = vrot.slane %v9316_v26, %v12391_v50  ;;  %v12492_v9 = vld [vmem:[#allocation51_spill] sm:$0xff] }
 0x33e   : > { %v9290_v40 = vadd.f32 %v5370_v6, %v5369_v28  ;;  %v949_v1 = vmul.f32 %v777_v27, %v12486_v57  ;;  %v946_v17 = vmul.f32 %v765_v49, %v12487_v42  ;;  %v947_v45 = vmul.f32 %v769_v53, %v12487_v42  ;;  %v9364_v10 = vpop.permute.xlu1 %2071  ;;  %v12493_v49 = vld [vmem:[#allocation122_spill] sm:$0xff]  ;;  %v12495_v57 = vld [vmem:[#allocation81_spill] sm:$0xff] }
 0x33f   : > { %12481 = vst [vmem:[#allocation69_spill] sm:$0xff] %v9286_v14  ;;  %v1217_v12 = vrot.slane %v9321_v39, %v12391_v50  ;;  %v1733_v46 = vrot.slane %v9305_v19, %v12488_v44  ;;  %v1737_v22 = vrot.slane %v9311_v34, %v12488_v44  ;;  %12489 = vst [vmem:[#allocation97_spill] sm:$0xff] %v9364_v10  ;;  %v12491_v21 = vmov 5   ;;  %v12499_v10 = vld [vmem:[#allocation124_spill] sm:$0xff] }
 0x340   : > { %12482 = vst [vmem:[#allocation121_spill] sm:$0xff] %v9290_v40  ;;  %6634 = vset.pattern.permute.xlu1 %v12483_v24  ;;  %v1396_v28 = vmul.f32 %v1221_v56, %v12490_v55  ;;  %v1397_v6 = vmul.f32 %v1225_v41, %v12490_v55  ;;  %v1394_v51 = vmul.f32 %v1213_v47, %v12492_v9  ;;  %v12500_v40 = vld [vmem:[#allocation60_spill] sm:$0xff] }
 0x341   : > { %4127 = vperm.xlu1 %6634, %v12420_v23   ;;  %v12484_v23 = vld [vmem:[#allocation34_spill] sm:$0xff]  ;;  %v1725_v27 = vrot.slane %v9316_v26, %v12488_v44  ;;  %v2245_v53 = vrot.slane %v9305_v19, %v12493_v49  ;;  %v1729_v25 = vrot.slane %v9321_v39, %v12488_v44  ;;  %v1908_v47 = vmul.f32 %v1733_v46, %v12495_v57 }
 0x342   : > { %v1392_v5 = vmul.f32 %v1205_v33, %v12484_v23  ;;  %v1393_v30 = vmul.f32 %v1209_v48, %v12484_v23  ;;  %v1717_v33 = vrot.slane %v9295_v63, %v12488_v44  ;;  %v1721_v48 = vrot.slane %v9300_v29, %v12488_v44  ;;  %v9396_v32 = vpop.permute.xlu1 %2579 }
 0x343   : > { %v2249_v23 = vrot.slane %v9311_v34, %v12493_v49  ;;  %v1909_v42 = vmul.f32 %v1737_v22, %v12495_v57  ;;  %v1461_v55 = vadd.f32 %v1397_v6, %v949_v1  ;;  %12497 = vst [vmem:[#allocation20_spill] sm:$0xff] %v9396_v32  ;;  %v1458_v2 = vadd.f32 %v1394_v51, %v946_v17 }
 0x344   : > { %v1456_v18 = vadd.f32 %v1392_v5, %v944_v31  ;;  %v1457_v20 = vadd.f32 %v1393_v30, %v945_v43  ;;  %v1395_v5 = vmul.f32 %v1217_v12, %v12492_v9  ;;  %v12494_v30 = vld [vmem:[#allocation103_spill] sm:$0xff]  ;;  %v4293_v31 = vrot.slane %v9305_v19, %v7964_v15 }
 0x345   : > { %6635 = vset.pattern.permute.xlu1 %v12418_v59  ;;  %v2757_v56 = vrot.slane %v9305_v19, %v12494_v30  ;;  %v2761_v41 = vrot.slane %v9311_v34, %v12494_v30  ;;  %v4297_v43 = vrot.slane %v9311_v34, %v7964_v15  ;;  %v1460_v12 = vadd.f32 %v1396_v28, %v948_v7  ;;  %v12496_v9 = vld [vmem:[#allocation79_spill] sm:$0xff]  ;;  %v12501_v28 = vld [vmem:[#allocation76_spill] sm:$0xff] }
 0x346   : > { %2607 = vperm.xlu1 %6635, %v9246_v58   ;;  %v1904_v61 = vmul.f32 %v1717_v33, %v12496_v9  ;;  %v1905_v62 = vmul.f32 %v1721_v48, %v12496_v9  ;;  %v1906_v36 = vmul.f32 %v1725_v27, %v12498_v0  ;;  %v2420_v8 = vmul.f32 %v2245_v53, %v12499_v10  ;;  %v12502_v27 = vld [vmem:[#allocation110_spill] sm:$0xff] }
 0x347   : > { %v2421_v44 = vmul.f32 %v2249_v23, %v12499_v10  ;;  %v1459_v46 = vadd.f32 %v1395_v5, %v947_v45  ;;  %v2932_v22 = vmul.f32 %v2757_v56, %v12500_v40  ;;  %v2933_v7 = vmul.f32 %v2761_v41, %v12500_v40  ;;  %v9420_v5 = vpop.permute.xlu1 %3595  ;;  %v3088_v41 = vpop.permute.xlu0 %3087 }
 0x348   : > { %v1907_v1 = vmul.f32 %v1729_v25, %v12498_v0  ;;  %v9407_v6 = vmul.f32 %v4293_v31, %v12501_v28  ;;  %v9410_v17 = vmul.f32 %v4297_v43, %v12501_v28  ;;  %v1972_v33 = vadd.f32 %v1908_v47, %v1460_v12  ;;  %v12505_v25 = vld [vmem:[#allocation119_spill] sm:$0xff]  ;;  %v12506_v47 = vld [vmem:[#allocation138_spill] sm:$0xff] }
 0x349   : > { %v1973_v48 = vadd.f32 %v1909_v42, %v1461_v55  ;;  %v1968_v10 = vadd.f32 %v1904_v61, %v1456_v18  ;;  %v1969_v51 = vadd.f32 %v1905_v62, %v1457_v20  ;;  %v3781_v45 = vrot.slane %v9305_v19, %v12502_v27  ;;  %v12503_v61 = vld [vmem:[#allocation131_spill] sm:$0xff] }
 0x34a   : > { %6636 = vset.pattern.permute.xlu1 %v12491_v21  ;;  %v2233_v40 = vrot.slane %v9300_v29, %v12493_v49  ;;  %v9416_v0 = vadd.f32 %v1906_v36, %v1458_v2  ;;  %v3785_v23 = vrot.slane %v9311_v34, %v12502_v27  ;;  %v9422_v56 = vadd.f32 %v1907_v1, %v1459_v46  ;;  %v12507_v42 = vld [vmem:[#allocation115_spill] sm:$0xff] }
 0x34b   : > { %3115 = vperm.xlu1 %6636, %v12474_v16   ;;  %v2485_v53 = vadd.f32 %v2421_v44, %v1973_v48  ;;  %v3269_v62 = vrot.slane %v9305_v19, %v12503_v61  ;;  %v2229_v18 = vrot.slane %v9295_v63, %v12493_v49  ;;  %v2745_v20 = vrot.slane %v9300_v29, %v12494_v30  ;;  %v9440_v44 = vld [vmem:[%s7023_s24 + $0xb8] sm:$0xff]  ;;  %v4104_v32 = vpop.permute.xlu1 %4103 }
 0x34c   : > { %v3273_v36 = vrot.slane %v9311_v34, %v12503_v61  ;;  %v2237_v2 = vrot.slane %v9316_v26, %v12493_v49  ;;  %v2741_v19 = vrot.slane %v9295_v63, %v12494_v30  ;;  %12504 = vst [vmem:[#allocation87_spill] sm:$0xff] %v9440_v44  ;;  %v2417_v31 = vmul.f32 %v2233_v40, %v12505_v25  ;;  %v12508_v28 = vld [vmem:[#allocation31_spill] sm:$0xff] }
 0x34d   : > { %v2749_v43 = vrot.slane %v9316_v26, %v12494_v30  ;;  %v2753_v34 = vrot.slane %v9321_v39, %v12494_v30  ;;  %v3257_v57 = vrot.slane %v9300_v29, %v12503_v61  ;;  %v4786_v12 = vcombine.high %v12507_v42, %v12506_v47 }
 0x34e   : > { %v2997_v9 = vadd.f32 %v2933_v7, %v2485_v53  ;;  %v3253_v46 = vrot.slane %v9295_v63, %v12503_v61  ;;  %v2416_v1 = vmul.f32 %v2229_v18, %v12505_v25  ;;  %v3261_v48 = vrot.slane %v9316_v26, %v12503_v61  ;;  %v12509_v25 = vld [vmem:[#allocation142_spill] sm:$0xff] }
 0x34f   : > { %6637 = vset.pattern.permute.xlu1 %v12483_v24  ;;  %v3769_v40 = vrot.slane %v9300_v29, %v12502_v27  ;;  %v3445_v30 = vmul.f32 %v3273_v36, %v3088_v41  ;;  %v3265_v47 = vrot.slane %v9321_v39, %v12503_v61  ;;  %v3773_v7 = vrot.slane %v9316_v26, %v12502_v27 }
 0x350   : > { %4131 = vperm.xlu1 %6637, %v12480_v38   ;;  %v2484_v38 = vadd.f32 %v2420_v8, %v1972_v33  ;;  %v2241_v8 = vrot.slane %v9321_v39, %v12493_v49  ;;  %v2929_v33 = vmul.f32 %v2745_v20, %v12508_v28  ;;  %v2928_v53 = vmul.f32 %v2741_v19, %v12508_v28  ;;  %v12510_v49 = vld [vmem:[#allocation118_spill] sm:$0xff] }
 0x351   : > { %v3441_v18 = vmul.f32 %v3257_v57, %v9235_v54  ;;  %v4281_v20 = vrot.slane %v9300_v29, %v7964_v15  ;;  %v4800_v36 = vrot.slane %v4786_v12, %v12466_v60  ;;  %v3957_v42 = vmul.f32 %v3785_v23, %v12509_v25 }
 0x352   : > { %v2996_v55 = vadd.f32 %v2932_v22, %v2484_v38  ;;  %v3765_v22 = vrot.slane %v9295_v63, %v12502_v27  ;;  %v2481_v38 = vadd.f32 %v2417_v31, %v1969_v51  ;;  %v3777_v61 = vrot.slane %v9321_v39, %v12502_v27 }
 0x353   : > { %v2480_v51 = vadd.f32 %v2416_v1, %v1968_v10  ;;  %v3440_v19 = vmul.f32 %v3253_v46, %v9235_v54  ;;  %v3953_v57 = vmul.f32 %v3769_v40, %v9340_v11  ;;  %v3444_v28 = vmul.f32 %v3269_v62, %v3088_v41 }
 0x354   : > { %6638 = vset.pattern.permute.xlu1 %v12366_v52  ;;  %v2993_v31 = vadd.f32 %v2929_v33, %v2481_v38  ;;  %v3509_v29 = vadd.f32 %v3445_v30, %v2997_v9  ;;  %v2418_v24 = vmul.f32 %v2237_v2, %v12510_v49  ;;  %v2419_v12 = vmul.f32 %v2241_v8, %v12510_v49 }
 0x355   : > { %2103 = vperm.xlu1 %6638, %v9440_v44   ;;  %v2992_v23 = vadd.f32 %v2928_v53, %v2480_v51  ;;  %v3952_v27 = vmul.f32 %v3765_v22, %v9340_v11  ;;  %v4465_v44 = vmul.f32 %v4281_v20, %v4104_v32  ;;  %v3956_v54 = vmul.f32 %v3781_v45, %v12509_v25 }
 0x356   : > { %v3505_v14 = vadd.f32 %v3441_v18, %v2993_v31  ;;  %v2930_v10 = vmul.f32 %v2749_v43, %v9220_v35  ;;  %v4833_v30 = vcombine.high %v9250_v37, %v9250_v37  ;;  %v2931_v49 = vmul.f32 %v2753_v34, %v9220_v35 }
 0x357   : > { %v3504_v62 = vadd.f32 %v3440_v19, %v2992_v23  ;;  %v3508_v41 = vadd.f32 %v3444_v28, %v2996_v55  ;;  %v4021_v11 = vadd.f32 %v3957_v42, %v3509_v29  ;;  %v2482_v9 = vadd.f32 %v2418_v24, %v9416_v0 }
 0x358   : > { %v4017_v2 = vadd.f32 %v3953_v57, %v3505_v14  ;;  %v3442_v46 = vmul.f32 %v3261_v48, %v9288_v4  ;;  %v2483_v45 = vadd.f32 %v2419_v12, %v9422_v56  ;;  %v3443_v43 = vmul.f32 %v3265_v47, %v9288_v4  ;;  %v9509_v4 = vld [vmem:[%s7023_s24 + $0xc0] sm:$0xff]  ;;  %v12519_v57 = vld [vmem:[#allocation69_spill] sm:$0xff] }
 0x359   : > { %6640 = vset.pattern.permute.xlu1 %v12491_v21  ;;  %v4277_v21 = vrot.slane %v9295_v63, %v7964_v15  ;;  %v4802_v63 = vcombine.high %v4800_v36, %v4800_v36  ;;  %v4016_v1 = vadd.f32 %v3952_v27, %v3504_v62  ;;  %v2994_v35 = vadd.f32 %v2930_v10, %v2482_v9  ;;  %v9555_v10 = vld [vmem:[%s11610_s1 + $0xf0] sm:$0xff] }
 0x35a   : > { %3119 = vperm.xlu1 %6640, %v9246_v58   ;;  %v9482_v58 = vpop.permute.xlu1 %2583  ;;  %v9496_v37 = vadd.f32 %v4465_v44, %v4017_v2  ;;  %v3954_v14 = vmul.f32 %v3773_v7, %v9420_v5  ;;  %v4285_v24 = vrot.slane %v9316_v26, %v7964_v15  ;;  %v3955_v0 = vmul.f32 %v3777_v61, %v9420_v5  ;;  %v9578_v9 = vld [vmem:[%s11610_s1 + $0x110] sm:$0xff] }
 0x35b   : > { %v4464_v8 = vmul.f32 %v4277_v21, %v4104_v32  ;;  %v5030_v32 = vrot.slane %v4833_v30, %v12391_v50  ;;  %v2995_v21 = vadd.f32 %v2931_v49, %v2483_v45  ;;  %12513 = vst [vmem:[#allocation128_spill] sm:$0xff] %v9509_v4  ;;  %v4289_v27 = vrot.slane %v9321_v39, %v7964_v15  ;;  %v9583_v45 = vld [vmem:[%s11610_s1 + $0x118] sm:$0xff] }
 0x35c   : > { %12511 = vst [vmem:[#allocation99_spill] sm:$0xff] %v9496_v37  ;;  %v9515_v44 = vrot.slane %v4800_v36, %v12466_v60  ;;  %v9518_v34 = vrot.slane %v4802_v63, %v12466_v60  ;;  %v4020_v55 = vadd.f32 %v3956_v54, %v3508_v41  ;;  %v3506_v26 = vadd.f32 %v3442_v46, %v2994_v35  ;;  %v12521_v63 = vld [vmem:[#allocation121_spill] sm:$0xff]  ;;  %v9568_v41 = vld [vmem:[%s11610_s1 + $0xe0] sm:$0xff] }
 0x35d   : > { %v9506_v56 = vadd.f32 %v4464_v8, %v4016_v1  ;;  %v3507_v48 = vadd.f32 %v3443_v43, %v2995_v21  ;;  %v5026_v5 = vrot.slane %v4833_v30, %v12389_v3  ;;  %v5278_v61 = vmul.f32 %v5030_v32, %v9496_v37  ;;  %v9560_v30 = vld [vmem:[%s11610_s1 + $0xf8] sm:$0xff]  ;;  %12523 = vst [vmem:[#allocation10_spill] sm:$0xff] %v9578_v9  ;;  %v9588_v43 = vld [vmem:[%s11610_s1 + $0x130] sm:$0xff]  ;;  %v9608_v21 = vld [vmem:[%s11610_s1 + $0x128] sm:$0xff] }
 0x35e   : > { %6641 = vset.pattern.permute.xlu1 %v12396_v13  ;;  %v9498_v33 = vpop.permute.xlu1 %3091  ;;  %v9523_v40 = vadd.f32 %v9410_v17, %v4021_v11  ;;  %v4018_v47 = vadd.f32 %v3954_v14, %v3506_v26  ;;  %v5046_v18 = vrot.slane %v9518_v34, %v12391_v50  ;;  %v9530_v20 = vadd.f32 %v9407_v6, %v4020_v55  ;;  %v12516_v17 = vld [vmem:[#allocation87_spill] sm:$0xff]  ;;  %v9573_v11 = vld [vmem:[%s11610_s1 + $0xe8] sm:$0xff] }
 0x35f   : > { %3627 = vperm.xlu1 %6641, %v12474_v16   ;;  %12512 = vst [vmem:[#allocation101_spill] sm:$0xff] %v9506_v56  ;;  %v4019_v7 = vadd.f32 %v3955_v0, %v3507_v48  ;;  %v5277_v39 = vmul.f32 %v5026_v5, %v9506_v56  ;;  %v5034_v36 = vrot.slane %v9515_v44, %v12389_v3  ;;  %v5372_v25 = vsel %vm5350_vm4, %v5278_v61, 0.0  ;;  %v12522_v8 = vld [vmem:[#allocation75_spill] sm:$0xff]  ;;  %v9613_v0 = vld [vmem:[%s11610_s1 + $0x150] sm:$0xff]  ;;  %v12540_v56 = vld [vmem:[#allocation21_spill] sm:$0xff] }
 0x360   : > { %12514 = vst [vmem:[#allocation114_spill] sm:$0xff] %v9523_v40  ;;  %12515 = vst [vmem:[#allocation117_spill] sm:$0xff] %v9530_v20  ;;  %v5038_v31 = vrot.slane %v9515_v44, %v12391_v50  ;;  %v5042_v19 = vrot.slane %v9518_v34, %v12389_v3  ;;  %v5282_v6 = vmul.f32 %v5046_v18, %v9523_v40  ;;  %v9593_v1 = vld [vmem:[%s11610_s1 + $0x138] sm:$0xff] }
 0x361   : > { %v5329_v28 = vadd.f32 %v12519_v57, %v5277_v39  ;;  %v5373_v54 = vadd.f32 %v5372_v25, %v12521_v63  ;;  %12524 = vst [vmem:[#allocation33_spill] sm:$0xff] %v9583_v45  ;;  %12525 = vst [vmem:[#allocation47_spill] sm:$0xff] %v9588_v43  ;;  %v789_v32 = vrot.slane %v9555_v10, %v12389_v3  ;;  %v9628_v61 = vld [vmem:[%s11610_s1 + $0x158] sm:$0xff]  ;;  %v12533_v39 = vmov 7   ;;  %v12534_v57 = vld [vmem:[#allocation17_spill] sm:$0xff] }
 0x362   : > { %v4108_v22 = vpop.permute.xlu1 %4107  ;;  %v5281_v49 = vmul.f32 %v5042_v19, %v9530_v20  ;;  %12526 = vst [vmem:[#allocation49_spill] sm:$0xff] %v9593_v1  ;;  %v5376_v35 = vsel %vm5350_vm4, %v5282_v6, 0.0  ;;  %12528 = vst [vmem:[#allocation58_spill] sm:$0xff] %v9608_v21  ;;  %v793_v26 = vrot.slane %v9560_v30, %v12389_v3  ;;  %v781_v48 = vrot.slane %v9568_v41, %v12389_v3 }
 0x363   : > { %6643 = vset.pattern.permute.xlu1 %v12366_v52  ;;  %v4466_v38 = vmul.f32 %v4285_v24, %v4108_v22  ;;  %v4467_v53 = vmul.f32 %v4289_v27, %v4108_v22  ;;  %v9603_v24 = vld [vmem:[%s11610_s1 + $0x120] sm:$0xff]  ;;  %12529 = vst [vmem:[#allocation89_spill] sm:$0xff] %v9613_v0  ;;  %v785_v5 = vrot.slane %v9573_v11, %v12389_v3  ;;  %12530 = vst [vmem:[#allocation74_spill] sm:$0xff] %v9628_v61  ;;  %v9638_v22 = vld [vmem:[%s11610_s1 + $0x148] sm:$0xff] }
 0x364   : > { %2107 = vperm.xlu1 %6643, %v9509_v4   ;;  %12527 = vst [vmem:[#allocation77_spill] sm:$0xff] %v9603_v24  ;;  %12532 = vst [vmem:[#allocation129_spill] sm:$0xff] %v9638_v22  ;;  %v821_v18 = vrot.slane %v9588_v43, %v12389_v3  ;;  %v825_v25 = vrot.slane %v9593_v1, %v12389_v3  ;;  %v817_v19 = vrot.slane %v9608_v21, %v12389_v3 }
 0x365   : > { %v9536_v42 = vadd.f32 %v4466_v38, %v4018_v47  ;;  %v9538_v51 = vadd.f32 %v4467_v53, %v4019_v7  ;;  %v9633_v47 = vld [vmem:[%s11610_s1 + $0x140] sm:$0xff]  ;;  %v1237_v7 = vrot.slane %v9555_v10, %v12391_v50  ;;  %v805_v38 = vrot.slane %v9578_v9, %v12389_v3 }
 0x366   : > { %v9548_v23 = vpop.permute.xlu1 %2079  ;;  %12531 = vst [vmem:[#allocation91_spill] sm:$0xff] %v9633_v47  ;;  %v809_v53 = vrot.slane %v9583_v45, %v12389_v3  ;;  %v837_v6 = vrot.slane %v9613_v0, %v12389_v3  ;;  %v953_v63 = vmul.f32 %v793_v26, %v12534_v57  ;;  %v9680_v40 = vmul.f32 %v821_v18, %v12540_v56  ;;  %v9787_v0 = vld [vmem:[%s7023_s24 + $0xb0] sm:$0xff] }
 0x367   : > { %12517 = vst [vmem:[#allocation68_spill] sm:$0xff] %v9536_v42  ;;  %12518 = vst [vmem:[#allocation12_spill] sm:$0xff] %v9538_v51  ;;  %v5279_v29 = vmul.f32 %v5034_v36, %v9536_v42  ;;  %v5280_v12 = vmul.f32 %v5038_v31, %v9538_v51  ;;  %v1241_v36 = vrot.slane %v9560_v30, %v12391_v50 }
 0x368   : > { %6644 = vset.pattern.permute.xlu1 %v12418_v59  ;;  %12520 = vst [vmem:[#allocation9_spill] sm:$0xff] %v9548_v23  ;;  %v813_v31 = vrot.slane %v9603_v24, %v12389_v3  ;;  %12541 = vst [vmem:[#allocation73_spill] sm:$0xff] %v9680_v40  ;;  %v9685_v26 = vmul.f32 %v825_v25, %v12540_v56  ;;  %v12547_v25 = vld [vmem:[#allocation18_spill] sm:$0xff]  ;;  %v9756_v23 = vld [vmem:[%s11610_s1 + $0x100] sm:$0xff] }
 0x369   : > { %2615 = vperm.xlu1 %6644, %v12516_v17   ;;  %v5330_v62 = vadd.f32 %v5329_v28, %v5279_v29  ;;  %v5374_v2 = vsel %vm5350_vm4, %v5280_v12, 0.0  ;;  %v952_v28 = vmul.f32 %v789_v32, %v12534_v57  ;;  %v841_v29 = vrot.slane %v9628_v61, %v12389_v3  ;;  %v12537_v32 = vld [vmem:[#allocation19_spill] sm:$0xff] }
 0x36a   : > { %v5375_v46 = vadd.f32 %v5374_v2, %v5373_v54  ;;  %v833_v12 = vrot.slane %v9638_v22, %v12389_v3  ;;  %v12535_v54 = vld [vmem:[#allocation13_spill] sm:$0xff]  ;;  %v12536_v2 = vld [vmem:[#allocation36_spill] sm:$0xff]  ;;  %v9674_v20 = vmul.f32 %v805_v38, %v12537_v32  ;;  %v9677_v42 = vmul.f32 %v809_v53, %v12537_v32  ;;  %12542 = vst [vmem:[#allocation145_spill] sm:$0xff] %v9685_v26  ;;  %v12550_v32 = vld [vmem:[#allocation127_spill] sm:$0xff] }
 0x36b   : > { %v9596_v14 = vadd.f32 %v5330_v62, %v5281_v49  ;;  %v950_v49 = vmul.f32 %v781_v48, %v12535_v54  ;;  %v951_v62 = vmul.f32 %v785_v5, %v12535_v54  ;;  %v1401_v51 = vmul.f32 %v1241_v36, %v12536_v2  ;;  %v12543_v48 = vld [vmem:[#allocation16_spill] sm:$0xff]  ;;  %v9695_v53 = vld [vmem:[%s7023_s24 + $0xc8] sm:$0xff]  ;;  %v12544_v36 = vld [vmem:[#allocation23_spill] sm:$0xff] }
 0x36c   : > { %v9615_v27 = vpop.permute.xlu1 %3095  ;;  %v9617_v55 = vadd.f32 %v5376_v35, %v5375_v46  ;;  %v1400_v46 = vmul.f32 %v1237_v7, %v12536_v2  ;;  %12538 = vst [vmem:[#allocation141_spill] sm:$0xff] %v9674_v20  ;;  %12539 = vst [vmem:[#allocation85_spill] sm:$0xff] %v9677_v42  ;;  %v9688_v5 = vmul.f32 %v813_v31, %v12543_v48  ;;  %v12556_v26 = vld [vmem:[#allocation8_spill] sm:$0xff]  ;;  %v12557_v20 = vld [vmem:[#allocation131_spill] sm:$0xff] }
 0x36d   : > { %6645 = vset.pattern.permute.xlu1 %v12396_v13  ;;  %v1229_v7 = vrot.slane %v9568_v41, %v12391_v50  ;;  %v1233_v38 = vrot.slane %v9573_v11, %v12391_v50  ;;  %v9699_v18 = vmul.f32 %v817_v19, %v12543_v48  ;;  %v9702_v57 = vmul.f32 %v837_v6, %v12544_v36  ;;  %v12559_v22 = vld [vmem:[#allocation110_spill] sm:$0xff] }
 0x36e   : > { %3631 = vperm.xlu1 %6645, %v12522_v8   ;;  %v9705_v56 = vmul.f32 %v841_v29, %v12544_v36  ;;  %v9711_v54 = vmul.f32 %v833_v12, %v12547_v25  ;;  %v9713_v2 = vadd.f32 %v1400_v46, %v952_v28  ;;  %v1741_v37 = vrot.slane %v9568_v41, %v12550_v32  ;;  %v12551_v36 = vld [vmem:[#allocation53_spill] sm:$0xff]  ;;  %v12552_v29 = vld [vmem:[#allocation122_spill] sm:$0xff] }
 0x36f   : > { %12545 = vst [vmem:[#allocation143_spill] sm:$0xff] %v9702_v57  ;;  %v1745_v19 = vrot.slane %v9573_v11, %v12550_v32  ;;  %v9719_v48 = vadd.f32 %v1401_v51, %v953_v63  ;;  %v1398_v51 = vmul.f32 %v1229_v7, %v12551_v36  ;;  %v1399_v63 = vmul.f32 %v1233_v38, %v12551_v36  ;;  %v12553_v36 = vld [vmem:[#allocation94_spill] sm:$0xff] }
 0x370   : > { %12546 = vst [vmem:[#allocation67_spill] sm:$0xff] %v9705_v56  ;;  %12549 = vst [vmem:[#allocation134_spill] sm:$0xff] %v9711_v54  ;;  %v2253_v6 = vrot.slane %v9568_v41, %v12552_v29  ;;  %v2257_v28 = vrot.slane %v9573_v11, %v12552_v29  ;;  %v1261_v38 = vrot.slane %v9603_v24, %v12391_v50  ;;  %v12554_v56 = vld [vmem:[#allocation103_spill] sm:$0xff] }
 0x371   : > { %v1910_v46 = vmul.f32 %v1741_v37, %v12553_v36  ;;  %v2781_v57 = vrot.slane %v9756_v23, %v12554_v56  ;;  %v2765_v7 = vrot.slane %v9568_v41, %v12554_v56  ;;  %v1462_v37 = vadd.f32 %v1398_v51, %v950_v49 }
 0x372   : > { %6646 = vset.pattern.permute.xlu1 %v12533_v39  ;;  %v9671_v35 = vpop.permute.xlu1 %3603  ;;  %v1749_v54 = vrot.slane %v9555_v10, %v12550_v32  ;;  %v2422_v40 = vmul.f32 %v2253_v6, %v12556_v26  ;;  %v2423_v42 = vmul.f32 %v2257_v28, %v12556_v26  ;;  %v3277_v49 = vrot.slane %v9568_v41, %v12557_v20  ;;  %v12558_v26 = vld [vmem:[#allocation20_spill] sm:$0xff] }
 0x373   : > { %4139 = vperm.xlu1 %6646, %v12474_v16   ;;  %v829_v16 = vrot.slane %v9633_v47, %v12389_v3  ;;  %v1974_v61 = vadd.f32 %v1910_v46, %v1462_v37  ;;  %v2934_v6 = vmul.f32 %v2765_v7, %v12558_v26  ;;  %v3789_v47 = vrot.slane %v9568_v41, %v12559_v22 }
 0x374   : > { %v3793_v45 = vrot.slane %v9573_v11, %v12559_v22 }
 0x375   : > { %v9708_v31 = vmul.f32 %v829_v16, %v12547_v25  ;;  %v1911_v25 = vmul.f32 %v1745_v19, %v12553_v36  ;;  %v1463_v19 = vadd.f32 %v1399_v63, %v951_v62  ;;  %v9767_v36 = vld [vmem:[%s11610_s1 + $0x108] sm:$0xff]  ;;  %v3281_v62 = vrot.slane %v9573_v11, %v12557_v20 }
 0x376   : > { %v2785_v16 = vrot.slane %v9767_v36, %v12554_v56  ;;  %v1753_v63 = vrot.slane %v9560_v30, %v12550_v32  ;;  %v2486_v7 = vadd.f32 %v2422_v40, %v1974_v61  ;;  %v4305_v40 = vrot.slane %v9573_v11, %v7964_v15 }
 0x377   : > { %6647 = vset.pattern.permute.xlu1 %v12366_v52  ;;  %12548 = vst [vmem:[#allocation52_spill] sm:$0xff] %v9708_v31  ;;  %v9727_v12 = vpop.permute.xlu1 %2083 }
 0x378   : > { %2111 = vperm.xlu1 %6647, %v9695_v53   ;;  %v2998_v61 = vadd.f32 %v2934_v6, %v2486_v7 }
 0x37c   : > { %6648 = vset.pattern.permute.xlu1 %v12418_v59 }
 0x37d   : > { %2619 = vperm.xlu1 %6648, %v9509_v4   ;;  %v2769_v4 = vrot.slane %v9573_v11, %v12554_v56  ;;  %v3297_v11 = vrot.slane %v9767_v36, %v12557_v20 }
 0x37e   : > { %v9773_v31 = vpop.permute.xlu1 %2591 }
 0x37f   : > { %12555 = vst [vmem:[#allocation34_spill] sm:$0xff] %v9773_v31  ;;  %v1975_v31 = vadd.f32 %v1911_v25, %v1463_v19  ;;  %v2935_v28 = vmul.f32 %v2769_v4, %v12558_v26  ;;  %v12560_v25 = vld [vmem:[#allocation82_spill] sm:$0xff]  ;;  %v3446_v4 = vmul.f32 %v3277_v49, %v9498_v33  ;;  %v3447_v26 = vmul.f32 %v3281_v62, %v9498_v33  ;;  %v12562_v62 = vld [vmem:[#allocation57_spill] sm:$0xff] }
 0x380   : > { %v1912_v37 = vmul.f32 %v1749_v54, %v12560_v25  ;;  %v1913_v1 = vmul.f32 %v1753_v63, %v12560_v25  ;;  %v4301_v54 = vrot.slane %v9568_v41, %v7964_v15  ;;  %v3958_v33 = vmul.f32 %v3789_v47, %v9671_v35  ;;  %v12563_v25 = vld [vmem:[#allocation62_spill] sm:$0xff]  ;;  %v3100_v47 = vpop.permute.xlu0 %3099 }
 0x381   : > { %6649 = vset.pattern.permute.xlu1 %v12396_v13  ;;  %v2487_v9 = vadd.f32 %v2423_v42, %v1975_v31  ;;  %v9815_v42 = vpop.f32.mrf.mxu0  ;;  %v3959_v49 = vmul.f32 %v3793_v45, %v9671_v35  ;;  %v9821_v63 = vmul.f32 %v1261_v38, %v12562_v62  ;;  %v2938_v51 = vmul.f32 %v2781_v57, %v12563_v25 }
 0x382   : > { %3635 = vperm.xlu1 %6649, %v9787_v0   ;;  %12561 = vst [vmem:[#allocation14_spill] sm:$0xff] %v9815_v42  ;;  %v2939_v41 = vmul.f32 %v2785_v16, %v12563_v25  ;;  %v1976_v19 = vadd.f32 %v1912_v37, %v9713_v2  ;;  %v3510_v6 = vadd.f32 %v3446_v4, %v2998_v61  ;;  %v12565_v4 = vld [vmem:[#allocation106_spill] sm:$0xff] }
 0x383   : > { %v9805_v43 = vpop.permute.xlu1 %3607  ;;  %v2999_v31 = vadd.f32 %v2935_v28, %v2487_v9  ;;  %v4832_v9 = vcombine.high %v9515_v44, %v9515_v44  ;;  %v3805_v35 = vrot.slane %v9756_v23, %v12559_v22  ;;  %v3809_v57 = vrot.slane %v9767_v36, %v12559_v22  ;;  %v9837_v2 = vpop.f32.mrf.mxu0 }
 0x384   : > { %v3293_v16 = vrot.slane %v9756_v23, %v12557_v20  ;;  %12564 = vst [vmem:[#allocation15_spill] sm:$0xff] %v9837_v2  ;;  %v4022_v28 = vadd.f32 %v3958_v33, %v3510_v6  ;;  %v2265_v61 = vrot.slane %v9560_v30, %v12552_v29  ;;  %v2773_v6 = vrot.slane %v9555_v10, %v12554_v56 }
 0x385   : > { %v3511_v45 = vadd.f32 %v3447_v26, %v2999_v31  ;;  %v2261_v26 = vrot.slane %v9555_v10, %v12552_v29  ;;  %v9846_v31 = vld [vmem:[%s7023_s24 + $0xd0] sm:$0xff] }
 0x386   : > { %6650 = vset.pattern.permute.xlu1 %v12533_v39  ;;  %12566 = vst [vmem:[#allocation11_spill] sm:$0xff] %v9846_v31 }
 0x387   : > { %4143 = vperm.xlu1 %6650, %v12522_v8   ;;  %v1977_v8 = vadd.f32 %v1913_v1, %v9719_v48  ;;  %v4023_v44 = vadd.f32 %v3959_v49, %v3511_v45  ;;  %v3002_v1 = vadd.f32 %v2938_v51, %v12565_v4  ;;  %v3451_v48 = vmul.f32 %v3297_v11, %v3100_v47  ;;  %v12569_v49 = vld [vmem:[#allocation107_spill] sm:$0xff] }
 0x388   : > { %v4835_v51 = vcombine.low %v9815_v42, %v9837_v2  ;;  %v3003_v11 = vadd.f32 %v2939_v41, %v12569_v49  ;;  %v2777_v45 = vrot.slane %v9560_v30, %v12554_v56  ;;  %v3285_v41 = vrot.slane %v9555_v10, %v12557_v20 }
 0x389   : > { %v4116_v38 = vpop.permute.xlu1 %4115  ;;  %v3289_v49 = vrot.slane %v9560_v30, %v12557_v20 }
 0x38a   : > { %v4470_v37 = vmul.f32 %v4301_v54, %v4116_v38  ;;  %v4471_v7 = vmul.f32 %v4305_v40, %v4116_v38  ;;  %v5050_v54 = vrot.slane %v4832_v9, %v12389_v3  ;;  %v5054_v40 = vrot.slane %v4832_v9, %v12391_v50  ;;  %v12570_v38 = vld [vmem:[#allocation72_spill] sm:$0xff]  ;;  %v12571_v9 = vld [vmem:[#allocation97_spill] sm:$0xff] }
 0x38b   : > { %6651 = vset.pattern.permute.xlu1 %v12366_v52  ;;  %v2424_v46 = vmul.f32 %v2261_v26, %v12571_v9  ;;  %v2425_v42 = vmul.f32 %v2265_v61, %v12571_v9  ;;  %v2936_v26 = vmul.f32 %v2773_v6, %v9482_v58  ;;  %v2937_v61 = vmul.f32 %v2777_v45, %v9482_v58 }
 0x38c   : > { %2115 = vperm.xlu1 %6651, %v9846_v31   ;;  %v9849_v25 = vadd.f32 %v4470_v37, %v4022_v28  ;;  %v9851_v33 = vadd.f32 %v4471_v7, %v4023_v44  ;;  %v3963_v28 = vmul.f32 %v3809_v57, %v12570_v38  ;;  %v3450_v37 = vmul.f32 %v3293_v16, %v3100_v47 }
 0x38d   : > { %v3515_v57 = vadd.f32 %v3451_v48, %v3003_v11  ;;  %v3797_v47 = vrot.slane %v9555_v10, %v12559_v22  ;;  %v12572_v48 = vrot.slane %v9608_v21, %v12391_v50  ;;  %v9893_v11 = vrot.slane %v4835_v51, %v12466_v60 }
 0x38e   : > { %12567 = vst [vmem:[#allocation35_spill] sm:$0xff] %v9849_v25  ;;  %12568 = vst [vmem:[#allocation51_spill] sm:$0xff] %v9851_v33  ;;  %v5283_v44 = vmul.f32 %v5050_v54, %v9849_v25  ;;  %v5284_v7 = vmul.f32 %v5054_v40, %v9851_v33  ;;  %v9865_v4 = vpop.permute.xlu1 %2595  ;;  %v3801_v40 = vrot.slane %v9560_v30, %v12559_v22 }
 0x38f   : > { %v2488_v6 = vadd.f32 %v2424_v46, %v1976_v19  ;;  %v2489_v25 = vadd.f32 %v2425_v42, %v1977_v8  ;;  %v3448_v58 = vmul.f32 %v3285_v41, %v9615_v27  ;;  %v3449_v45 = vmul.f32 %v3289_v49, %v9615_v27 }
 0x390   : > { %6652 = vset.pattern.permute.xlu1 %v12418_v59  ;;  %v9877_v16 = vadd.f32 %v9596_v14, %v5283_v44  ;;  %v5378_v54 = vsel %vm5350_vm4, %v5284_v7, 0.0  ;;  %v1407_v14 = vmul.f32 %v12572_v48, %v12562_v62  ;;  %v3962_v44 = vmul.f32 %v3805_v35, %v12570_v38 }
 0x391   : > { %2623 = vperm.xlu1 %6652, %v9695_v53   ;;  %v9886_v9 = vadd.f32 %v5378_v54, %v9617_v55  ;;  %v3514_v7 = vadd.f32 %v3450_v37, %v3002_v1  ;;  %v12573_v55 = vld [vmem:[#allocation78_spill] sm:$0xff]  ;;  %v12574_v54 = vrot.slane %v9767_v36, %v7964_v15  ;;  %v4027_v62 = vadd.f32 %v3963_v28, %v3515_v57 }
 0x392   : > { %v4309_v35 = vrot.slane %v9555_v10, %v7964_v15  ;;  %v4313_v46 = vrot.slane %v9560_v30, %v7964_v15  ;;  %v3000_v19 = vadd.f32 %v2936_v26, %v2488_v6  ;;  %v3001_v42 = vadd.f32 %v2937_v61, %v2489_v25  ;;  %v12577_v25 = vld [vmem:[#allocation98_spill] sm:$0xff] }
 0x393   : > { %v4475_v2 = vmul.f32 %v12574_v54, %v12573_v55  ;;  %v3960_v27 = vmul.f32 %v3797_v47, %v9805_v43  ;;  %v3961_v8 = vmul.f32 %v3801_v40, %v9805_v43  ;;  %v1470_v36 = vadd.f32 %v9821_v63, %v9688_v5 }
 0x394   : > { %v9898_v33 = vpop.permute.xlu1 %3103  ;;  %v12575_v1 = vrot.slane %v9756_v23, %v7964_v15  ;;  %v9920_v10 = vrot.slane %v9893_v11, %v12466_v60  ;;  %v4026_v30 = vadd.f32 %v3962_v44, %v3514_v7  ;;  %v12578_v38 = vrot.slane %v9603_v24, %v12550_v32 }
 0x395   : > { %6653 = vset.pattern.permute.xlu1 %v12396_v13  ;;  %v3512_v28 = vadd.f32 %v3448_v58, %v3000_v19  ;;  %v3513_v37 = vadd.f32 %v3449_v45, %v3001_v42  ;;  %v4834_v5 = vcombine.high %v9518_v34, %v9518_v34  ;;  %v12579_v23 = vrot.slane %v9608_v21, %v12550_v32 }
 0x396   : > { %3639 = vperm.xlu1 %6653, %v12516_v17   ;;  %v4474_v51 = vmul.f32 %v12575_v1, %v12573_v55  ;;  %12576 = vst [vmem:[#allocation81_spill] sm:$0xff] %v9920_v10  ;;  %v1918_v43 = vmul.f32 %v12578_v38, %v12577_v25  ;;  %v9932_v41 = vadd.f32 %v4475_v2, %v4027_v62  ;;  %v9975_v38 = vld [vmem:[%s7023_s24 + $0xd8] sm:$0xff] }
 0x397   : > { %v1919_v63 = vmul.f32 %v12579_v23, %v12577_v25  ;;  %v2285_v49 = vrot.slane %v9603_v24, %v12552_v29  ;;  %v2289_v57 = vrot.slane %v9608_v21, %v12552_v29  ;;  %v4024_v26 = vadd.f32 %v3960_v27, %v3512_v28 }
 0x398   : > { %12580 = vst [vmem:[#allocation79_spill] sm:$0xff] %v9932_v41  ;;  %v4025_v61 = vadd.f32 %v3961_v8, %v3513_v37  ;;  %v5070_v34 = vrot.slane %v9920_v10, %v12391_v50  ;;  %v9941_v44 = vadd.f32 %v4474_v51, %v4026_v30  ;;  %v2797_v2 = vrot.slane %v9603_v24, %v12554_v56  ;;  %v12585_v37 = vld [vmem:[#allocation47_spill] sm:$0xff] }
 0x399   : > { %v4120_v47 = vpop.permute.xlu1 %4119  ;;  %v2801_v7 = vrot.slane %v9608_v21, %v12554_v56  ;;  %v5058_v45 = vrot.slane %v4834_v5, %v12389_v3  ;;  %v5062_v55 = vrot.slane %v4834_v5, %v12391_v50  ;;  %v1471_v54 = vadd.f32 %v1407_v14, %v9699_v18  ;;  %v12609_v5 = vld [vmem:[#allocation145_spill] sm:$0xff] }
 0x39a   : > { %v4472_v40 = vmul.f32 %v4309_v35, %v4120_v47  ;;  %v4473_v48 = vmul.f32 %v4313_v46, %v4120_v47  ;;  %6654 = vset.pattern.permute.xlu1 %v12533_v39  ;;  %12581 = vst [vmem:[#allocation93_spill] sm:$0xff] %v9941_v44  ;;  %v1982_v62 = vadd.f32 %v1918_v43, %v1470_v36  ;;  %v12584_v43 = vld [vmem:[#allocation49_spill] sm:$0xff] }
 0x39b   : > { %4147 = vperm.xlu1 %6654, %v9787_v0   ;;  %v5066_v35 = vrot.slane %v9920_v10, %v12389_v3  ;;  %v5288_v46 = vmul.f32 %v5070_v34, %v9932_v41  ;;  %v2430_v19 = vmul.f32 %v2285_v49, %v9727_v12  ;;  %v2431_v0 = vmul.f32 %v2289_v57, %v9727_v12  ;;  %v12587_v47 = vld [vmem:[#allocation37_spill] sm:$0xff] }
 0x39c   : > { %v9948_v6 = vadd.f32 %v4472_v40, %v4024_v26  ;;  %v9950_v58 = vadd.f32 %v4473_v48, %v4025_v61  ;;  %v1983_v1 = vadd.f32 %v1919_v63, %v1471_v54  ;;  %v3309_v14 = vrot.slane %v9603_v24, %v12557_v20  ;;  %v12588_v26 = vld [vmem:[#allocation10_spill] sm:$0xff]  ;;  %v12590_v48 = vld [vmem:[#allocation33_spill] sm:$0xff] }
 0x39d   : > { %v5287_v18 = vmul.f32 %v5066_v35, %v9941_v44  ;;  %v3313_v36 = vrot.slane %v9608_v21, %v12557_v20  ;;  %v2942_v51 = vmul.f32 %v2797_v2, %v9865_v4  ;;  %v2943_v12 = vmul.f32 %v2801_v7, %v9865_v4  ;;  %v12592_v7 = vld [vmem:[#allocation38_spill] sm:$0xff] }
 0x39e   : > { %12582 = vst [vmem:[#allocation124_spill] sm:$0xff] %v9948_v6  ;;  %12583 = vst [vmem:[#allocation60_spill] sm:$0xff] %v9950_v58  ;;  %v5285_v42 = vmul.f32 %v5058_v45, %v9948_v6  ;;  %v5286_v27 = vmul.f32 %v5062_v55, %v9950_v58  ;;  %v9962_v8 = vpop.permute.xlu1 %2091  ;;  %v2809_v28 = vrot.slane %v12584_v43, %v12554_v56  ;;  %v5382_v57 = vsel %vm5350_vm4, %v5288_v46, 0.0 }
 0x39f   : > { %6655 = vset.pattern.permute.xlu1 %v12366_v52  ;;  %v2494_v4 = vadd.f32 %v2430_v19, %v1982_v62  ;;  %v2495_v49 = vadd.f32 %v2431_v0, %v1983_v1  ;;  %v12589_v61 = vrot.slane %v12588_v26, %v12391_v50  ;;  %v12591_v34 = vrot.slane %v12590_v48, %v12391_v50 }
 0x3a0   : > { %v5333_v30 = vadd.f32 %v9877_v16, %v5285_v42  ;;  %v5380_v25 = vsel %vm5350_vm4, %v5286_v27, 0.0  ;;  %2119 = vperm.xlu1 %6655, %v9975_v38   ;;  %v12595_v0 = vrot.slane %v12584_v43, %v12391_v50  ;;  %v1765_v27 = vrot.slane %v12588_v26, %v12550_v32 }
 0x3a1   : > { %v5381_v63 = vadd.f32 %v5380_v25, %v9886_v9  ;;  %v1404_v40 = vmul.f32 %v12589_v61, %v12587_v47  ;;  %v1405_v2 = vmul.f32 %v12591_v34, %v12587_v47  ;;  %v12593_v9 = vrot.slane %v12585_v37, %v12391_v50  ;;  %v12602_v47 = vld [vmem:[#allocation89_spill] sm:$0xff] }
 0x3a2   : > { %v9985_v16 = vadd.f32 %v5333_v30, %v5287_v18  ;;  %v3006_v62 = vadd.f32 %v2942_v51, %v2494_v4  ;;  %v3007_v35 = vadd.f32 %v2943_v12, %v2495_v49  ;;  %v1409_v42 = vmul.f32 %v12595_v0, %v12592_v7  ;;  %v12599_v30 = vld [vmem:[#allocation129_spill] sm:$0xff] }
 0x3a3   : > { %v1408_v45 = vmul.f32 %v12593_v9, %v12592_v7  ;;  %v3108_v55 = vpop.permute.xlu1 %3107  ;;  %v10000_v54 = vadd.f32 %v5382_v57, %v5381_v63  ;;  %v1769_v1 = vrot.slane %v12590_v48, %v12550_v32  ;;  %v1781_v18 = vrot.slane %v12585_v37, %v12550_v32  ;;  %v12601_v57 = vld [vmem:[#allocation40_spill] sm:$0xff]  ;;  %v12604_v7 = vld [vmem:[#allocation74_spill] sm:$0xff] }
 0x3a4   : > { %12586 = vst [vmem:[#allocation76_spill] sm:$0xff] %v9985_v16  ;;  %v3454_v46 = vmul.f32 %v3309_v14, %v3108_v55  ;;  %v3455_v19 = vmul.f32 %v3313_v36, %v3108_v55  ;;  %6656 = vset.pattern.permute.xlu1 %v12418_v59  ;;  %v12596_v14 = vld [vmem:[#allocation39_spill] sm:$0xff]  ;;  %v12600_v25 = vrot.slane %v12599_v30, %v12391_v50 }
 0x3a5   : > { %12594 = vst [vmem:[#allocation119_spill] sm:$0xff] %v10000_v54  ;;  %2627 = vperm.xlu1 %6656, %v9846_v31   ;;  %v12597_v36 = vld [vmem:[#allocation91_spill] sm:$0xff]  ;;  %v12603_v61 = vrot.slane %v12602_v47, %v12391_v50  ;;  %v12605_v9 = vrot.slane %v12604_v7, %v12391_v50  ;;  %v1785_v0 = vrot.slane %v12584_v43, %v12550_v32  ;;  %v12614_v31 = vld [vmem:[#allocation128_spill] sm:$0xff] }
 0x3a6   : > { %v12598_v51 = vrot.slane %v12597_v36, %v12391_v50  ;;  %v1411_v63 = vmul.f32 %v12600_v25, %v12596_v14  ;;  %v10022_v4 = vadd.f32 %v3454_v46, %v3006_v62  ;;  %v10024_v49 = vadd.f32 %v3455_v19, %v3007_v35  ;;  %v12606_v62 = vld [vmem:[#allocation141_spill] sm:$0xff] }
 0x3a7   : > { %v1412_v34 = vmul.f32 %v12603_v61, %v12601_v57  ;;  %v1413_v55 = vmul.f32 %v12605_v9, %v12601_v57  ;;  %v1468_v46 = vadd.f32 %v1404_v40, %v12606_v62  ;;  %v12607_v35 = vld [vmem:[#allocation85_spill] sm:$0xff]  ;;  %v1801_v61 = vrot.slane %v12604_v7, %v12550_v32  ;;  %v12610_v57 = vld [vmem:[#allocation84_spill] sm:$0xff] }
 0x3a8   : > { %v1410_v12 = vmul.f32 %v12598_v51, %v12596_v14  ;;  %v1797_v14 = vrot.slane %v12602_v47, %v12550_v32  ;;  %v1469_v19 = vadd.f32 %v1405_v2, %v12607_v35  ;;  %v12608_v51 = vld [vmem:[#allocation73_spill] sm:$0xff]  ;;  %v10043_v23 = vpop.permute.xlu1 %3615  ;;  %v1473_v6 = vadd.f32 %v1409_v42, %v12609_v5  ;;  %v12611_v40 = vld [vmem:[#allocation52_spill] sm:$0xff]  ;;  %v12615_v5 = vld [vmem:[#allocation143_spill] sm:$0xff] }
 0x3a9   : > { %v1472_v25 = vadd.f32 %v1408_v45, %v12608_v51  ;;  %v1916_v9 = vmul.f32 %v1765_v27, %v12610_v57  ;;  %v1789_v58 = vrot.slane %v12597_v36, %v12550_v32  ;;  %v1793_v44 = vrot.slane %v12599_v30, %v12550_v32  ;;  %6657 = vset.pattern.permute.xlu1 %v12396_v13  ;;  %v12612_v45 = vld [vmem:[#allocation134_spill] sm:$0xff]  ;;  %v12616_v27 = vld [vmem:[#allocation67_spill] sm:$0xff] }
 0x3aa   : > { %v1474_v2 = vadd.f32 %v1410_v12, %v12611_v40  ;;  %v1475_v62 = vadd.f32 %v1411_v63, %v12612_v45  ;;  %v1917_v35 = vmul.f32 %v1769_v1, %v12610_v57  ;;  %v12613_v51 = vld [vmem:[#allocation86_spill] sm:$0xff]  ;;  %3643 = vperm.xlu1 %6657, %v12614_v31   ;;  %v10058_v42 = vadd.f32 %v1412_v34, %v12615_v5  ;;  %v12617_v40 = vld [vmem:[#allocation64_spill] sm:$0xff] }
 0x3ab   : > { %v1920_v41 = vmul.f32 %v1781_v18, %v12613_v51  ;;  %v10061_v10 = vadd.f32 %v1413_v55, %v12616_v27  ;;  %v2301_v32 = vrot.slane %v12597_v36, %v12552_v29  ;;  %v2305_v12 = vrot.slane %v12599_v30, %v12552_v29  ;;  %v12619_v45 = vld [vmem:[#allocation100_spill] sm:$0xff] }
 0x3ac   : > { %v12618_v1 = vrot.slane %v12585_v37, %v12554_v56  ;;  %v10074_v18 = vmul.f32 %v2809_v28, %v12617_v40  ;;  %v1921_v34 = vmul.f32 %v1785_v0, %v12613_v51  ;;  %v2293_v55 = vrot.slane %v12585_v37, %v12552_v29 }
 0x3ad   : > { %v1980_v57 = vadd.f32 %v1916_v9, %v1468_v46  ;;  %v1922_v5 = vmul.f32 %v1789_v58, %v12619_v45  ;;  %v1923_v27 = vmul.f32 %v1793_v44, %v12619_v45  ;;  %v2297_v54 = vrot.slane %v12584_v43, %v12552_v29  ;;  %v10083_v31 = vpop.permute.xlu1 %2095 }
 0x3ae   : > { %v10071_v63 = vmul.f32 %v12618_v1, %v12617_v40  ;;  %v1981_v1 = vadd.f32 %v1917_v35, %v1469_v19  ;;  %v10085_v16 = vadd.f32 %v1920_v41, %v1472_v25  ;;  %v2277_v28 = vrot.slane %v12588_v26, %v12552_v29  ;;  %6658 = vset.pattern.permute.xlu1 %v12533_v39  ;;  %v12620_v25 = vld [vmem:[#allocation88_spill] sm:$0xff]  ;;  %v12621_v40 = vld [vmem:[#allocation9_spill] sm:$0xff] }
 0x3af   : > { %v2281_v0 = vrot.slane %v12590_v48, %v12552_v29  ;;  %v2434_v58 = vmul.f32 %v2301_v32, %v9962_v8  ;;  %v2435_v44 = vmul.f32 %v2305_v12, %v9962_v8  ;;  %4151 = vperm.xlu1 %6658, %v12516_v17   ;;  %v2813_v46 = vrot.slane %v12597_v36, %v12554_v56 }
 0x3b0   : > { %v2817_v41 = vrot.slane %v12599_v30, %v12554_v56  ;;  %v1985_v19 = vadd.f32 %v1921_v34, %v1473_v6  ;;  %v1924_v9 = vmul.f32 %v1797_v14, %v12620_v25  ;;  %v10101_v35 = vmul.f32 %v1801_v61, %v12620_v25 }
 0x3b1   : > { %v1986_v32 = vadd.f32 %v1922_v5, %v1474_v2  ;;  %v1987_v8 = vadd.f32 %v1923_v27, %v1475_v62  ;;  %v2789_v17 = vrot.slane %v12588_v26, %v12554_v56  ;;  %v2793_v12 = vrot.slane %v12590_v48, %v12554_v56 }
 0x3b2   : > { %v2428_v45 = vmul.f32 %v2277_v28, %v12621_v40  ;;  %v2429_v6 = vmul.f32 %v2281_v0, %v12621_v40  ;;  %v3301_v14 = vrot.slane %v12588_v26, %v12557_v20  ;;  %v3305_v61 = vrot.slane %v12590_v48, %v12557_v20  ;;  %v2604_v34 = vpop.permute.xlu1 %2603  ;;  %v10121_v0 = vld [vmem:[%s7023_s24 + $0xe0] sm:$0xff] }
 0x3b3   : > { %v2498_v2 = vadd.f32 %v2434_v58, %v1986_v32  ;;  %v2499_v5 = vadd.f32 %v2435_v44, %v1987_v8  ;;  %v2946_v62 = vmul.f32 %v2813_v46, %v2604_v34  ;;  %v2947_v27 = vmul.f32 %v2817_v41, %v2604_v34  ;;  %6659 = vset.pattern.permute.xlu1 %v12366_v52  ;;  %v12623_v44 = vld [vmem:[#allocation34_spill] sm:$0xff]  ;;  %v12624_v34 = vld [vmem:[#allocation111_spill] sm:$0xff] }
 0x3b4   : > { %v3813_v25 = vrot.slane %v12588_v26, %v12559_v22  ;;  %v3817_v28 = vrot.slane %v12590_v48, %v12559_v22  ;;  %12622 = vst [vmem:[#allocation138_spill] sm:$0xff] %v10121_v0  ;;  %2123 = vperm.xlu1 %6659, %v10121_v0   ;;  %v3821_v40 = vrot.slane %v9603_v24, %v12559_v22 }
 0x3b5   : > { %v3825_v58 = vrot.slane %v9608_v21, %v12559_v22  ;;  %v2940_v46 = vmul.f32 %v2789_v17, %v12623_v44  ;;  %v2941_v41 = vmul.f32 %v2793_v12, %v12623_v44  ;;  %v10130_v32 = vadd.f32 %v2946_v62, %v2498_v2 }
 0x3b6   : > { %v10132_v8 = vadd.f32 %v2947_v27, %v2499_v5  ;;  %v2432_v51 = vmul.f32 %v2293_v55, %v12624_v34  ;;  %v2433_v52 = vmul.f32 %v2297_v54, %v12624_v34  ;;  %v4851_v0 = vcombine.high %v9893_v11, %v9893_v11 }
 0x3b7   : > { %v3833_v24 = vrot.slane %v12584_v43, %v12559_v22  ;;  %v2492_v30 = vadd.f32 %v2428_v45, %v1980_v57  ;;  %v2493_v21 = vadd.f32 %v2429_v6, %v1981_v1  ;;  %v3452_v17 = vmul.f32 %v3301_v14, %v9898_v33  ;;  %v3620_v2 = vpop.permute.xlu1 %3619 }
 0x3b8   : > { %v3453_v12 = vmul.f32 %v3305_v61, %v9898_v33  ;;  %v3966_v62 = vmul.f32 %v3821_v40, %v3620_v2  ;;  %v3967_v5 = vmul.f32 %v3825_v58, %v3620_v2  ;;  %6660 = vset.pattern.permute.xlu1 %v12418_v59  ;;  %v4325_v54 = vrot.slane %v12588_v26, %v7964_v15  ;;  %v3112_v40 = vpop.permute.xlu0 %3111  ;;  %v12627_v2 = vld [vmem:[#allocation83_spill] sm:$0xff] }
 0x3b9   : > { %v4329_v11 = vrot.slane %v12590_v48, %v7964_v15  ;;  %v3004_v55 = vadd.f32 %v2940_v46, %v2492_v30  ;;  %v3005_v27 = vadd.f32 %v2941_v41, %v2493_v21  ;;  %v3964_v57 = vmul.f32 %v3813_v25, %v10043_v23  ;;  %2631 = vperm.xlu1 %6660, %v9975_v38  }
 0x3ba   : > { %v3965_v1 = vmul.f32 %v3817_v28, %v10043_v23  ;;  %v2309_v33 = vrot.slane %v12602_v47, %v12552_v29  ;;  %v2313_v45 = vrot.slane %v12604_v7, %v12552_v29  ;;  %v10155_v6 = vadd.f32 %v3966_v62, %v10022_v4 }
 0x3bb   : > { %v10158_v26 = vadd.f32 %v3967_v5, %v10024_v49  ;;  %v1988_v21 = vadd.f32 %v1924_v9, %v10058_v42  ;;  %v4873_v48 = vrot.slane %v4851_v0, %v12466_v60  ;;  %v3516_v30 = vadd.f32 %v3452_v17, %v3004_v55 }
 0x3bc   : > { %v3517_v23 = vadd.f32 %v3453_v12, %v3005_v27  ;;  %v2496_v14 = vadd.f32 %v2432_v51, %v10085_v16  ;;  %v2497_v61 = vadd.f32 %v2433_v52, %v1985_v19  ;;  %v3317_v25 = vrot.slane %v12585_v37, %v12557_v20  ;;  %v4128_v4 = vpop.permute.xlu1 %4127 }
 0x3bd   : > { %v3321_v28 = vrot.slane %v12584_v43, %v12557_v20  ;;  %v4028_v58 = vadd.f32 %v3964_v57, %v3516_v30  ;;  %v4476_v44 = vmul.f32 %v4325_v54, %v4128_v4  ;;  %v4477_v46 = vmul.f32 %v4329_v11, %v4128_v4  ;;  %6661 = vset.pattern.permute.xlu1 %v12396_v13 }
 0x3be   : > { %v4029_v49 = vadd.f32 %v3965_v1, %v3517_v23  ;;  %v2436_v42 = vmul.f32 %v2309_v33, %v10083_v31  ;;  %v2437_v9 = vmul.f32 %v2313_v45, %v10083_v31  ;;  %3647 = vperm.xlu1 %6661, %v9695_v53   ;;  %v2821_v52 = vrot.slane %v12602_v47, %v12554_v56  ;;  %v12630_v45 = vld [vmem:[#allocation129_spill] sm:$0xff] }
 0x3bf   : > { %v2825_v16 = vrot.slane %v12604_v7, %v12554_v56  ;;  %v10175_v19 = vadd.f32 %v4476_v44, %v4028_v58  ;;  %v5074_v0 = vrot.slane %v4873_v48, %v12389_v3  ;;  %v5078_v41 = vrot.slane %v4873_v48, %v12391_v50 }
 0x3c0   : > { %v10177_v51 = vadd.f32 %v4477_v46, %v4029_v49  ;;  %v1989_v34 = vadd.f32 %v10101_v35, %v10061_v10  ;;  %v3008_v31 = vadd.f32 %v10071_v63, %v2496_v14  ;;  %v3009_v17 = vadd.f32 %v10074_v18, %v2497_v61  ;;  %v12628_v10 = vld [vmem:[#allocation76_spill] sm:$0xff] }
 0x3c1   : > { %12625 = vst [vmem:[#allocation115_spill] sm:$0xff] %v10175_v19  ;;  %v3457_v12 = vmul.f32 %v3321_v28, %v3112_v40  ;;  %v3969_v62 = vmul.f32 %v3833_v24, %v12627_v2  ;;  %v3456_v5 = vmul.f32 %v3317_v25, %v3112_v40  ;;  %v5289_v54 = vmul.f32 %v5074_v0, %v10175_v19  ;;  %v2608_v55 = vpop.permute.xlu1 %2607  ;;  %v12629_v18 = vld [vmem:[#allocation128_spill] sm:$0xff] }
 0x3c2   : > { %12626 = vst [vmem:[#allocation31_spill] sm:$0xff] %v10177_v51  ;;  %v5290_v11 = vmul.f32 %v5078_v41, %v10177_v51  ;;  %v2500_v27 = vadd.f32 %v2436_v42, %v1988_v21  ;;  %v2501_v57 = vadd.f32 %v2437_v9, %v1989_v34  ;;  %v2948_v1 = vmul.f32 %v2821_v52, %v2608_v55  ;;  %v12631_v21 = vld [vmem:[#allocation119_spill] sm:$0xff]  ;;  %v12633_v49 = vld [vmem:[#allocation80_spill] sm:$0xff]  ;;  %v10215_v34 = vld [vmem:[%s7023_s24 + $0xe8] sm:$0xff] }
 0x3c3   : > { %v2949_v33 = vmul.f32 %v2825_v16, %v2608_v55  ;;  %6662 = vset.pattern.permute.xlu1 %v12533_v39  ;;  %v5335_v35 = vadd.f32 %v12628_v10, %v5289_v54  ;;  %v3325_v24 = vrot.slane %v12597_v36, %v12557_v20  ;;  %v3329_v30 = vrot.slane %v12630_v45, %v12557_v20  ;;  %v12642_v10 = vld [vmem:[#allocation138_spill] sm:$0xff]  ;;  %v12666_v51 = vld [vmem:[#allocation55_spill] sm:$0xff] }
 0x3c4   : > { %v5384_v63 = vsel %vm5350_vm4, %v5290_v11, 0.0  ;;  %4155 = vperm.xlu1 %6662, %v12629_v18   ;;  %v3521_v23 = vadd.f32 %v3457_v12, %v3009_v17  ;;  %v10197_v61 = vadd.f32 %v2948_v1, %v2500_v27  ;;  %v12632_v28 = vrot.slane %v12585_v37, %v12559_v22 }
 0x3c5   : > { %v5385_v14 = vadd.f32 %v5384_v63, %v12631_v21  ;;  %v10199_v25 = vadd.f32 %v2949_v33, %v2501_v57  ;;  %v3520_v40 = vadd.f32 %v3456_v5, %v3008_v31  ;;  %v12634_v44 = vrot.slane %v12585_v37, %v7964_v15  ;;  %v12637_v31 = vld [vmem:[#allocation77_spill] sm:$0xff]  ;;  %v12638_v37 = vld [vmem:[#allocation58_spill] sm:$0xff] }
 0x3c6   : > { %v3968_v4 = vmul.f32 %v12632_v28, %v12627_v2  ;;  %v3116_v58 = vpop.permute.xlu1 %3115  ;;  %v12635_v52 = vmov 3   ;;  %v12636_v16 = vrot.slane %v12584_v43, %v7964_v15  ;;  %v4033_v41 = vadd.f32 %v3969_v62, %v3521_v23  ;;  %v12639_v43 = vld [vmem:[#allocation81_spill] sm:$0xff] }
 0x3c7   : > { %v4480_v46 = vmul.f32 %v12634_v44, %v12633_v49  ;;  %v3458_v42 = vmul.f32 %v3325_v24, %v3116_v58  ;;  %v3459_v9 = vmul.f32 %v3329_v30, %v3116_v58  ;;  %v4333_v17 = vrot.slane %v12637_v31, %v7964_v15  ;;  %v10271_v58 = vld [vmem:[%s11610_s1 + $0x188] sm:$0xff] }
 0x3c8   : > { %6663 = vset.pattern.permute.xlu1 %v12635_v52  ;;  %v4481_v0 = vmul.f32 %v12636_v16, %v12633_v49  ;;  %v4337_v12 = vrot.slane %v12638_v37, %v7964_v15  ;;  %v4883_v2 = vcombine.high %v4873_v48, %v4873_v48  ;;  %v4032_v5 = vadd.f32 %v3968_v4, %v3520_v40  ;;  %v10261_v4 = vld [vmem:[%s11610_s1 + $0x178] sm:$0xff]  ;;  %v10266_v40 = vld [vmem:[%s11610_s1 + $0x180] sm:$0xff] }
 0x3c9   : > { %2127 = vperm.xlu1 %6663, %v10215_v34   ;;  %v10223_v54 = vadd.f32 %v3458_v42, %v10130_v32  ;;  %v10226_v11 = vadd.f32 %v3459_v9, %v10132_v8  ;;  %v4881_v62 = vcombine.high %v12639_v43, %v12639_v43  ;;  %12645 = vst [vmem:[#allocation121_spill] sm:$0xff] %v10266_v40  ;;  %12646 = vst [vmem:[#allocation75_spill] sm:$0xff] %v10271_v58 }
 0x3ca   : > { %v10230_v27 = vadd.f32 %v4481_v0, %v4033_v41  ;;  %v5094_v33 = vrot.slane %v4883_v2, %v12391_v50  ;;  %v10234_v48 = vadd.f32 %v4480_v46, %v4032_v5  ;;  %v5090_v24 = vrot.slane %v4883_v2, %v12389_v3  ;;  %v12647_v46 = vld [vmem:[#allocation11_spill] sm:$0xff] }
 0x3cb   : > { %v4132_v55 = vpop.permute.xlu1 %4131  ;;  %v5082_v63 = vrot.slane %v4881_v62, %v12389_v3  ;;  %v5086_v18 = vrot.slane %v4881_v62, %v12391_v50  ;;  %v3333_v42 = vrot.slane %v12602_v47, %v12557_v20  ;;  %v3337_v9 = vrot.slane %v12604_v7, %v12557_v20 }
 0x3cc   : > { %12640 = vst [vmem:[#allocation142_spill] sm:$0xff] %v10230_v27  ;;  %v4478_v57 = vmul.f32 %v4333_v17, %v4132_v55  ;;  %v4479_v1 = vmul.f32 %v4337_v12, %v4132_v55  ;;  %12641 = vst [vmem:[#allocation118_spill] sm:$0xff] %v10234_v48  ;;  %v5294_v30 = vmul.f32 %v5094_v33, %v10230_v27  ;;  %v12648_v33 = vld [vmem:[#allocation127_spill] sm:$0xff] }
 0x3cd   : > { %6664 = vset.pattern.permute.xlu1 %v12418_v59  ;;  %v861_v17 = vrot.slane %v10266_v40, %v12389_v3  ;;  %v865_v47 = vrot.slane %v10271_v58, %v12389_v3  ;;  %v1313_v2 = vrot.slane %v10271_v58, %v12391_v50  ;;  %v1305_v55 = vrot.slane %v10261_v4, %v12391_v50 }
 0x3ce   : > { %2635 = vperm.xlu1 %6664, %v12642_v10   ;;  %v10238_v32 = vadd.f32 %v4478_v57, %v10155_v6  ;;  %v10241_v8 = vadd.f32 %v4479_v1, %v10158_v26  ;;  %v10254_v6 = vld [vmem:[%s11610_s1 + $0x170] sm:$0xff]  ;;  %v5293_v26 = vmul.f32 %v5090_v24, %v10234_v48  ;;  %v5388_v31 = vsel %vm5350_vm4, %v5294_v30, 0.0 }
 0x3cf   : > { %v853_v0 = vrot.slane %v10254_v6, %v12389_v3  ;;  %v1301_v62 = vrot.slane %v10254_v6, %v12391_v50  ;;  %v3837_v57 = vrot.slane %v12597_v36, %v12559_v22  ;;  %v3841_v1 = vrot.slane %v12630_v45, %v12559_v22 }
 0x3d0   : > { %12643 = vst [vmem:[#allocation87_spill] sm:$0xff] %v10238_v32  ;;  %12644 = vst [vmem:[#allocation69_spill] sm:$0xff] %v10241_v8  ;;  %v5291_v23 = vmul.f32 %v5082_v63, %v10238_v32  ;;  %v5292_v21 = vmul.f32 %v5086_v18, %v10241_v8  ;;  %v10249_v28 = vpop.permute.xlu1 %2103  ;;  %v1821_v63 = vrot.slane %v10266_v40, %v12648_v33 }
 0x3d1   : > { %v1825_v18 = vrot.slane %v10271_v58, %v12648_v33 }
 0x3d2   : > { %6665 = vset.pattern.permute.xlu1 %v12396_v13  ;;  %v5336_v49 = vadd.f32 %v5335_v35, %v5291_v23  ;;  %v5386_v44 = vsel %vm5350_vm4, %v5292_v21, 0.0  ;;  %v857_v35 = vrot.slane %v10261_v4, %v12389_v3  ;;  %v12649_v23 = vld [vmem:[#allocation25_spill] sm:$0xff]  ;;  %v12650_v21 = vld [vmem:[#allocation22_spill] sm:$0xff] }
 0x3d3   : > { %3651 = vperm.xlu1 %6665, %v12647_v46   ;;  %v5387_v16 = vadd.f32 %v5386_v44, %v5385_v14  ;;  %v1309_v14 = vrot.slane %v10266_v40, %v12391_v50  ;;  %v971_v45 = vmul.f32 %v865_v47, %v12650_v21 }
 0x3d4   : > { %v10281_v41 = vadd.f32 %v5336_v49, %v5293_v26  ;;  %v969_v36 = vmul.f32 %v857_v35, %v12649_v23  ;;  %v970_v26 = vmul.f32 %v861_v17, %v12650_v21  ;;  %v12651_v49 = vld [vmem:[#allocation42_spill] sm:$0xff]  ;;  %v12653_v17 = vld [vmem:[#allocation105_spill] sm:$0xff] }
 0x3d5   : > { %v3120_v37 = vpop.permute.xlu1 %3119  ;;  %v10290_v12 = vadd.f32 %v5388_v31, %v5387_v16  ;;  %v1418_v44 = vmul.f32 %v1309_v14, %v12651_v49  ;;  %v12652_v16 = vld [vmem:[#allocation59_spill] sm:$0xff]  ;;  %v1930_v47 = vmul.f32 %v1821_v63, %v12653_v17  ;;  %v1931_v14 = vmul.f32 %v1825_v18, %v12653_v17  ;;  %v12654_v21 = vld [vmem:[#allocation90_spill] sm:$0xff] }
 0x3d6   : > { %v3460_v5 = vmul.f32 %v3333_v42, %v3120_v37  ;;  %v3461_v43 = vmul.f32 %v3337_v9, %v3120_v37  ;;  %v1419_v42 = vmul.f32 %v1313_v2, %v12651_v49  ;;  %v1417_v31 = vmul.f32 %v1305_v55, %v12652_v16  ;;  %v10332_v2 = vld [vmem:[%s7023_s24 + $0xf0] sm:$0xff] }
 0x3d7   : > { %6666 = vset.pattern.permute.xlu1 %v12533_v39 }
 0x3d8   : > { %4159 = vperm.xlu1 %6666, %v9695_v53   ;;  %v10311_v24 = vadd.f32 %v3460_v5, %v10197_v61  ;;  %v10314_v30 = vadd.f32 %v3461_v43, %v10199_v25  ;;  %v968_v53 = vmul.f32 %v853_v0, %v12649_v23  ;;  %v1813_v61 = vrot.slane %v10254_v6, %v12648_v33 }
 0x3d9   : > { %v1817_v25 = vrot.slane %v10261_v4, %v12648_v33  ;;  %v1416_v0 = vmul.f32 %v1301_v62, %v12652_v16  ;;  %v2333_v5 = vrot.slane %v10266_v40, %v12552_v29  ;;  %v2337_v43 = vrot.slane %v10271_v58, %v12552_v29 }
 0x3da   : > { %v3628_v9 = vpop.permute.xlu1 %3627  ;;  %v2325_v62 = vrot.slane %v10254_v6, %v12552_v29  ;;  %v1483_v63 = vadd.f32 %v1419_v42, %v971_v45  ;;  %v1481_v23 = vadd.f32 %v1417_v31, %v969_v36  ;;  %v1928_v49 = vmul.f32 %v1813_v61, %v12654_v21  ;;  %v12655_v42 = vld [vmem:[#allocation15_spill] sm:$0xff]  ;;  %v12656_v61 = vld [vmem:[#allocation14_spill] sm:$0xff] }
 0x3db   : > { %v3970_v35 = vmul.f32 %v3837_v57, %v3628_v9  ;;  %v3971_v37 = vmul.f32 %v3841_v1, %v3628_v9  ;;  %v1482_v1 = vadd.f32 %v1418_v44, %v970_v26  ;;  %v1480_v18 = vadd.f32 %v1416_v0, %v968_v53 }
 0x3dc   : > { %6668 = vset.pattern.permute.xlu1 %v12635_v52  ;;  %v2329_v52 = vrot.slane %v10261_v4, %v12552_v29  ;;  %v1929_v9 = vmul.f32 %v1817_v25, %v12654_v21  ;;  %v1995_v48 = vadd.f32 %v1931_v14, %v1483_v63  ;;  %v2440_v27 = vmul.f32 %v2325_v62, %v10249_v28 }
 0x3dd   : > { %2131 = vperm.xlu1 %6668, %v10332_v2   ;;  %v4034_v55 = vadd.f32 %v3970_v35, %v10223_v54  ;;  %v4035_v57 = vadd.f32 %v3971_v37, %v10226_v11  ;;  %v1994_v17 = vadd.f32 %v1930_v47, %v1482_v1  ;;  %v2837_v11 = vrot.slane %v10254_v6, %v12554_v56  ;;  %v6732_v1 = vld [vmem:[%s11610_s1 + $0x148] sm:$0xff] }
 0x3de   : > { %v2441_v54 = vmul.f32 %v2329_v52, %v10249_v28  ;;  %v2841_v53 = vrot.slane %v10261_v4, %v12554_v56  ;;  %v1992_v45 = vadd.f32 %v1928_v49, %v1480_v18  ;;  %v1993_v44 = vadd.f32 %v1929_v9, %v1481_v23  ;;  %v6731_v52 = vld [vmem:[%s11610_s1 + $0x140] sm:$0xff] }
 0x3df   : > { %v2108_v16 = vpop.permute.xlu1 %2107  ;;  %v4836_v25 = vcombine.high %v12656_v61, %v12655_v42  ;;  %v4353_v63 = vrot.slane %v6732_v1, %v7964_v15  ;;  %v10435_v61 = vld [vmem:[%s11610_s1 + $0x198] sm:$0xff] }
 0x3e0   : > { %v2442_v32 = vmul.f32 %v2333_v5, %v2108_v16  ;;  %v2443_v19 = vmul.f32 %v2337_v43, %v2108_v16  ;;  %v2504_v31 = vadd.f32 %v2440_v27, %v1992_v45  ;;  %v2505_v28 = vadd.f32 %v2441_v54, %v1993_v44  ;;  %v10403_v16 = vld [vmem:[%s11610_s1 + $0x190] sm:$0xff]  ;;  %v10424_v45 = vld [vmem:[%s11610_s1 + $0x160] sm:$0xff]  ;;  %v12660_v1 = vld [vmem:[#allocation27_spill] sm:$0xff] }
 0x3e1   : > { %6669 = vset.pattern.permute.xlu1 %v12418_v59  ;;  %v10377_v14 = vrot.slane %v4836_v25, %v12466_v60  ;;  %v10440_v25 = vld [vmem:[%s11610_s1 + $0x1a8] sm:$0xff]  ;;  %v3853_v8 = vrot.slane %v10424_v45, %v12559_v22 }
 0x3e2   : > { %2639 = vperm.xlu1 %6669, %v10215_v34   ;;  %v10355_v36 = vadd.f32 %v2442_v32, %v1994_v17  ;;  %v10357_v26 = vadd.f32 %v2443_v19, %v1995_v48  ;;  %v10366_v32 = vld [vmem:[%s11610_s1 + $0x150] sm:$0xff]  ;;  %v3849_v48 = vrot.slane %v12604_v7, %v12559_v22  ;;  %v4349_v7 = vrot.slane %v6731_v52, %v7964_v15  ;;  %v3124_v52 = vpop.permute.xlu0 %3123 }
 0x3e3   : > { %v3845_v19 = vrot.slane %v10366_v32, %v12559_v22 }
 0x3e4   : > { %v2616_v0 = vpop.permute.xlu1 %2615 }
 0x3e5   : > { %v2952_v35 = vmul.f32 %v2837_v11, %v2616_v0  ;;  %v2953_v37 = vmul.f32 %v2841_v53, %v2616_v0  ;;  %v869_v53 = vrot.slane %v10403_v16, %v12389_v3 }
 0x3e6   : > { %6670 = vset.pattern.permute.xlu1 %v12396_v13 }
 0x3e7   : > { %3655 = vperm.xlu1 %6670, %v9975_v38   ;;  %v10372_v47 = vadd.f32 %v2952_v35, %v2504_v31  ;;  %v10374_v27 = vadd.f32 %v2953_v37, %v2505_v28  ;;  %v10447_v31 = vld [vmem:[%s11610_s1 + $0x168] sm:$0xff]  ;;  %v3341_v35 = vrot.slane %v10424_v45, %v12557_v20  ;;  %v12659_v37 = vmov 5  }
 0x3e8   : > { %v2833_v28 = vrot.slane %v10447_v31, %v12554_v56 }
 0x3e9   : > { %v3632_v5 = vpop.permute.xlu1 %3631 }
 0x3ea   : > { %v3972_v43 = vmul.f32 %v3845_v19, %v3632_v5  ;;  %v3973_v62 = vmul.f32 %v3849_v48, %v3632_v5  ;;  %v2845_v5 = vrot.slane %v10266_v40, %v12554_v56 }
 0x3eb   : > { %6671 = vset.pattern.permute.xlu1 %v12533_v39 }
 0x3ec   : > { %4163 = vperm.xlu1 %6671, %v12647_v46   ;;  %v10390_v18 = vadd.f32 %v3972_v43, %v10311_v24  ;;  %v10393_v23 = vadd.f32 %v3973_v62, %v10314_v30  ;;  %v10397_v46 = vrot.slane %v10377_v14, %v12466_v60  ;;  %v10409_v24 = vld [vmem:[%s11610_s1 + $0x1a0] sm:$0xff]  ;;  %v2849_v43 = vrot.slane %v10271_v58, %v12554_v56 }
 0x3ed   : > { %v877_v0 = vrot.slane %v10409_v24, %v12389_v3  ;;  %v3345_v62 = vrot.slane %v10447_v31, %v12557_v20  ;;  %v12667_v58 = vld [vmem:[#allocation44_spill] sm:$0xff] }
 0x3ee   : > { %v4140_v21 = vpop.permute.xlu1 %4139  ;;  %v5098_v54 = vrot.slane %v10397_v46, %v12389_v3  ;;  %v5102_v11 = vrot.slane %v10397_v46, %v12391_v50 }
 0x3ef   : > { %v4482_v49 = vmul.f32 %v4349_v7, %v4140_v21  ;;  %v4483_v9 = vmul.f32 %v4353_v63, %v4140_v21  ;;  %v972_v63 = vmul.f32 %v869_v53, %v12660_v1  ;;  %v881_v21 = vrot.slane %v10440_v25, %v12389_v3 }
 0x3f0   : > { %6673 = vset.pattern.permute.xlu1 %v12418_v59  ;;  %v3462_v53 = vmul.f32 %v3341_v35, %v3124_v52  ;;  %v12663_v35 = vld [vmem:[#allocation41_spill] sm:$0xff] }
 0x3f1   : > { %2643 = vperm.xlu1 %6673, %v10332_v2   ;;  %v10411_v30 = vadd.f32 %v4482_v49, %v4034_v55  ;;  %v10413_v17 = vadd.f32 %v4483_v9, %v4035_v57  ;;  %v2829_v55 = vrot.slane %v10424_v45, %v12554_v56  ;;  %v12661_v49 = vld [vmem:[#allocation66_spill] sm:$0xff] }
 0x3f3   : > { %12657 = vst [vmem:[#allocation17_spill] sm:$0xff] %v10411_v30  ;;  %12658 = vst [vmem:[#allocation13_spill] sm:$0xff] %v10413_v17  ;;  %v5295_v57 = vmul.f32 %v5098_v54, %v10411_v30  ;;  %v5296_v44 = vmul.f32 %v5102_v11, %v10413_v17  ;;  %v10430_v42 = vpop.permute.xlu1 %2111  ;;  %v2950_v9 = vmul.f32 %v2829_v55, %v12661_v49  ;;  %v12662_v54 = vld [vmem:[#allocation24_spill] sm:$0xff] }
 0x3f4   : > { %v974_v11 = vmul.f32 %v877_v0, %v12662_v54  ;;  %v1321_v55 = vrot.slane %v10435_v61, %v12391_v50  ;;  %v3463_v0 = vmul.f32 %v3345_v62, %v3124_v52  ;;  %v1837_v62 = vrot.slane %v10409_v24, %v12648_v33 }
 0x3f5   : > { %6674 = vset.pattern.permute.xlu1 %v12659_v37  ;;  %v10455_v19 = vadd.f32 %v10281_v41, %v5295_v57  ;;  %v5390_v48 = vsel %vm5350_vm4, %v5296_v44, 0.0  ;;  %v873_v41 = vrot.slane %v10435_v61, %v12389_v3  ;;  %v1317_v57 = vrot.slane %v10403_v16, %v12391_v50 }
 0x3f6   : > { %3151 = vperm.xlu1 %6674, %v10215_v34   ;;  %v10466_v7 = vadd.f32 %v5390_v48, %v10290_v12  ;;  %v1325_v44 = vrot.slane %v10409_v24, %v12391_v50  ;;  %v2951_v12 = vmul.f32 %v2833_v28, %v12661_v49  ;;  %v1329_v48 = vrot.slane %v10440_v25, %v12391_v50 }
 0x3f7   : > { %v3857_v28 = vrot.slane %v10447_v31, %v12559_v22  ;;  %v4852_v49 = vcombine.high %v10377_v14, %v10377_v14  ;;  %v1841_v52 = vrot.slane %v10440_v25, %v12648_v33 }
 0x3f8   : > { %v2620_v37 = vpop.permute.xlu1 %2619  ;;  %v3015_v14 = vadd.f32 %v2951_v12, %v12666_v51 }
 0x3f9   : > { %v2954_v30 = vmul.f32 %v2845_v5, %v2620_v37  ;;  %v2955_v17 = vmul.f32 %v2849_v43, %v2620_v37  ;;  %v3014_v5 = vadd.f32 %v2950_v9, %v12663_v35  ;;  %v1420_v9 = vmul.f32 %v1317_v57, %v12667_v58  ;;  %v12668_v35 = vld [vmem:[#allocation61_spill] sm:$0xff] }
 0x3fa   : > { %6676 = vset.pattern.permute.xlu1 %v12533_v39  ;;  %v3527_v40 = vadd.f32 %v3463_v0, %v3015_v14  ;;  %v10522_v57 = vrot.slane %v4852_v49, %v12466_v60  ;;  %v12670_v0 = vmov 0.0   ;;  %v975_v49 = vmul.f32 %v881_v21, %v12662_v54  ;;  %v12671_v60 = vld [vmem:[#allocation92_spill] sm:$0xff] }
 0x3fb   : > { %4167 = vperm.xlu1 %6676, %v9975_v38   ;;  %v10494_v43 = vadd.f32 %v2954_v30, %v10355_v36  ;;  %v10497_v37 = vadd.f32 %v2955_v17, %v10357_v26  ;;  %v1829_v38 = vrot.slane %v10403_v16, %v12648_v33  ;;  %v1422_v36 = vmul.f32 %v1325_v44, %v12668_v35  ;;  %v10525_v44 = vld [vmem:[%s7023_s24 + $0xf8] sm:$0xff] }
 0x3fc   : > { %v1423_v30 = vmul.f32 %v1329_v48, %v12668_v35  ;;  %v3526_v26 = vadd.f32 %v3462_v53, %v3014_v5  ;;  %v4357_v48 = vrot.slane %v10366_v32, %v7964_v15  ;;  %v6736_v53 = vld [vmem:[%s11610_s1 + $0x158] sm:$0xff]  ;;  %v1421_v14 = vmul.f32 %v1321_v55, %v12667_v58  ;;  %v10558_v58 = vld [vmem:[%s11611_s2 + $0x60] sm:$0xff] }
 0x3fd   : > { %12664 = vst [vmem:[#allocation36_spill] sm:$0xff] %v10494_v43  ;;  %12665 = vst [vmem:[#allocation19_spill] sm:$0xff] %v10497_v37  ;;  %v3636_v17 = vpop.permute.xlu1 %3635  ;;  %v10512_v37 = vld [vmem:[%s11611_s2 + $0x78] sm:$0xff]  ;;  %v10517_v43 = vld [vmem:[%s11611_s2 + $0x70] sm:$0xff]  ;;  %v1484_v35 = vadd.f32 %v1420_v9, %v972_v63  ;;  %v5106_v55 = vrot.slane %v10522_v57, %v12389_v3  ;;  %v2345_v9 = vrot.slane %v10435_v61, %v12552_v29 }
 0x3fe   : > { %12669 = vst [vmem:[#allocation21_spill] sm:$0xff] %v10512_v37  ;;  %v3974_v51 = vmul.f32 %v3853_v8, %v3636_v17  ;;  %v3975_v12 = vmul.f32 %v3857_v28, %v3636_v17  ;;  %5420 = vmatpush1.msra.mxu1 %v10512_v37  ;;  %v4361_v8 = vrot.slane %v6736_v53, %v7964_v15  ;;  %12673 = vst [vmem:[#allocation16_spill] sm:$0xff] %v10558_v58 }
 0x3ff   : > { %6677 = vset.pattern.permute.xlu1 %v12418_v59  ;;  %5421 = vmatprep.subr.mxu1 %v12670_v0  ;;  %v10538_v59 = vld [vmem:[%s11611_s2 + $0x68] sm:$0xff]  ;;  %v973_v28 = vmul.f32 %v873_v41, %v12660_v1  ;;  %v1486_v17 = vadd.f32 %v1422_v36, %v974_v11  ;;  %v1833_v53 = vrot.slane %v10435_v61, %v12648_v33 }
 0x400   : > { %2647 = vperm.xlu1 %6677, %v10525_v44   ;;  %v10542_v5 = vadd.f32 %v3974_v51, %v3526_v26  ;;  %v10544_v32 = vadd.f32 %v3975_v12, %v3527_v40  ;;  %5422 = vmatpush1.msra.mxu1 %v10517_v43  ;;  %v1487_v37 = vadd.f32 %v1423_v30, %v975_v49  ;;  %v12672_v1 = vld [vmem:[#allocation113_spill] sm:$0xff] }
 0x401   : > { %5423 = vmatprep.subr.mxu1 %v12670_v0  ;;  %v1932_v41 = vmul.f32 %v1829_v38, %v12671_v60  ;;  %v1934_v21 = vmul.f32 %v1837_v62, %v12672_v1  ;;  %v1935_v54 = vmul.f32 %v1841_v52, %v12672_v1  ;;  %v2341_v38 = vrot.slane %v10403_v16, %v12552_v29 }
 0x402   : > { %v4144_v40 = vpop.permute.xlu1 %4143  ;;  %5424 = vmatpush1.msra.mxu1 %v10538_v59  ;;  %v2349_v62 = vrot.slane %v10409_v24, %v12552_v29  ;;  %v2353_v52 = vrot.slane %v10440_v25, %v12552_v29  ;;  %v1485_v26 = vadd.f32 %v1421_v14, %v973_v28  ;;  %v1933_v51 = vmul.f32 %v1833_v53, %v12671_v60  ;;  %v10600_v28 = vld [vmem:[%s11611_s2 + $0x50] sm:$0xff]  ;;  %v3128_v14 = vpop.permute.xlu0 %3127 }
 0x403   : > { %v4484_v63 = vmul.f32 %v4357_v48, %v4144_v40  ;;  %v4485_v11 = vmul.f32 %v4361_v8, %v4144_v40  ;;  %5425 = vmatprep.subr.mxu1 %v12670_v0  ;;  %v1996_v12 = vadd.f32 %v1932_v41, %v1484_v35  ;;  %v1998_v48 = vadd.f32 %v1934_v21, %v1486_v17 }
 0x404   : > { %6678 = vset.pattern.permute.xlu1 %v12396_v13  ;;  %5426 = vmatpush1.msra.mxu1 %v10558_v58  ;;  %v1999_v8 = vadd.f32 %v1935_v54, %v1487_v37  ;;  %v3349_v49 = vrot.slane %v10254_v6, %v12557_v20  ;;  %v2444_v40 = vmul.f32 %v2341_v38, %v10430_v42  ;;  %v10595_v37 = vld [vmem:[%s11611_s2 + $0x58] sm:$0xff] }
 0x405   : > { %3663 = vperm.xlu1 %6678, %v10215_v34   ;;  %v10575_v36 = vadd.f32 %v4484_v63, %v10390_v18  ;;  %v10578_v30 = vadd.f32 %v4485_v11, %v10393_v23  ;;  %v5110_v34 = vrot.slane %v10522_v57, %v12391_v50  ;;  %5427 = vmatprep.subr.mxu1 %v12670_v0 }
 0x406   : > { %v2853_v60 = vrot.slane %v10403_v16, %v12554_v56  ;;  %12676 = vst [vmem:[#allocation53_spill] sm:$0xff] %v10595_v37  ;;  %12677 = vst [vmem:[#allocation122_spill] sm:$0xff] %v10600_v28  ;;  %v2445_v35 = vmul.f32 %v2345_v9, %v10430_v42  ;;  %v2857_v41 = vrot.slane %v10435_v61, %v12554_v56  ;;  %5428 = vmatpush1.msra.mxu1 %v10595_v37 }
 0x407   : > { %12674 = vst [vmem:[#allocation23_spill] sm:$0xff] %v10575_v36  ;;  %12675 = vst [vmem:[#allocation18_spill] sm:$0xff] %v10578_v30  ;;  %v5297_v18 = vmul.f32 %v5106_v55, %v10575_v36  ;;  %v5298_v1 = vmul.f32 %v5110_v34, %v10578_v30  ;;  %v2116_v23 = vpop.permute.xlu1 %2115  ;;  %v3353_v21 = vrot.slane %v10261_v4, %v12557_v20  ;;  %5429 = vmatprep.subr.mxu1 %v12670_v0 }
 0x408   : > { %v2446_v63 = vmul.f32 %v2349_v62, %v2116_v23  ;;  %v2447_v11 = vmul.f32 %v2353_v52, %v2116_v23  ;;  %5430 = vmatpush1.msra.mxu1 %v10600_v28  ;;  %v2508_v38 = vadd.f32 %v2444_v40, %v1996_v12  ;;  %v10626_v52 = vld [vmem:[%s11611_s2 + $0x48] sm:$0xff]  ;;  %v10643_v12 = vld [vmem:[%s11610_s1 + $0x1b8] sm:$0xff]  ;;  %v10667_v40 = vld [vmem:[%s11611_s2 + $0x30] sm:$0xff]  ;;  %v4389_v37 = vrot.slane %v10403_v16, %v7964_v15 }
 0x409   : > { %6679 = vset.pattern.permute.xlu1 %v12533_v39  ;;  %v10604_v17 = vadd.f32 %v10455_v19, %v5297_v18  ;;  %v5392_v53 = vsel %vm5350_vm4, %v5298_v1, 0.0  ;;  %v1997_v19 = vadd.f32 %v1933_v51, %v1485_v26  ;;  %5431 = vmatprep.subr.mxu1 %v12670_v0  ;;  %12678 = vst [vmem:[#allocation94_spill] sm:$0xff] %v10626_v52  ;;  %v10638_v51 = vld [vmem:[%s11610_s1 + $0x1b0] sm:$0xff]  ;;  %12681 = vst [vmem:[#allocation131_spill] sm:$0xff] %v10667_v40 }
 0x40a   : > { %4171 = vperm.xlu1 %6679, %v12642_v10   ;;  %v10614_v54 = vadd.f32 %v5392_v53, %v10466_v7  ;;  %v10616_v55 = vadd.f32 %v2446_v63, %v1998_v48  ;;  %v10618_v42 = vadd.f32 %v2447_v11, %v1999_v8  ;;  %v3464_v10 = vmul.f32 %v3349_v49, %v3128_v14  ;;  %v10631_v7 = vld [vmem:[%s11611_s2 + $0x40] sm:$0xff]  ;;  %v10654_v49 = vld [vmem:[%s11611_s2 + $0x38] sm:$0xff] }
 0x40b   : > { %12679 = vst [vmem:[#allocation103_spill] sm:$0xff] %v10631_v7  ;;  %v2509_v9 = vadd.f32 %v2445_v35, %v1997_v19  ;;  %5432 = vmatpush1.msra.mxu1 %v10626_v52  ;;  %v3465_v48 = vmul.f32 %v3353_v21, %v3128_v14  ;;  %v3861_v8 = vrot.slane %v10254_v6, %v12559_v22  ;;  %12680 = vst [vmem:[#allocation8_spill] sm:$0xff] %v10654_v49  ;;  %v10683_v19 = vld [vmem:[%s11611_s2 + $0x28] sm:$0xff] }
 0x40c   : > { %v2624_v62 = vpop.permute.xlu1 %2623  ;;  %5433 = vmatprep.subr.mxu1 %v12670_v0  ;;  %v1333_v23 = vrot.slane %v10638_v51, %v12391_v50  ;;  %v885_v63 = vrot.slane %v10638_v51, %v12389_v3  ;;  %v889_v11 = vrot.slane %v10643_v12, %v12389_v3  ;;  %v3528_v14 = vadd.f32 %v3464_v10, %v10372_v47  ;;  %v12683_v10 = vld [vmem:[#allocation46_spill] sm:$0xff] }
 0x40d   : > { %v2956_v34 = vmul.f32 %v2853_v60, %v2624_v62  ;;  %v2957_v26 = vmul.f32 %v2857_v41, %v2624_v62  ;;  %5434 = vmatpush1.msra.mxu1 %v10631_v7  ;;  %v1337_v60 = vrot.slane %v10643_v12, %v12391_v50  ;;  %v3529_v53 = vadd.f32 %v3465_v48, %v10374_v27 }
 0x40e   : > { %6680 = vset.pattern.permute.xlu1 %v12396_v13  ;;  %v3865_v13 = vrot.slane %v10261_v4, %v12559_v22  ;;  %5435 = vmatprep.subr.mxu1 %v12670_v0  ;;  %12682 = vst [vmem:[#allocation20_spill] sm:$0xff] %v10683_v19  ;;  %v4365_v47 = vrot.slane %v10424_v45, %v7964_v15  ;;  %v10703_v45 = vld [vmem:[%s11611_s2 + $0x20] sm:$0xff] }
 0x40f   : > { %3667 = vperm.xlu1 %6680, %v10332_v2   ;;  %v10656_v18 = vadd.f32 %v2956_v34, %v2508_v38  ;;  %v10658_v1 = vadd.f32 %v2957_v26, %v2509_v9  ;;  %5436 = vmatpush1.msra.mxu1 %v10654_v49  ;;  %v1845_v38 = vrot.slane %v10638_v51, %v12648_v33  ;;  %v12685_v26 = vld [vmem:[#allocation29_spill] sm:$0xff] }
 0x410   : > { %5437 = vmatprep.subr.mxu1 %v12670_v0  ;;  %v4369_v27 = vrot.slane %v10447_v31, %v7964_v15  ;;  %v1849_v62 = vrot.slane %v10643_v12, %v12648_v33  ;;  %12684 = vst [vmem:[#allocation110_spill] sm:$0xff] %v10703_v45  ;;  %v4882_v31 = vcombine.high %v10397_v46, %v10397_v46 }
 0x411   : > { %v3640_v35 = vpop.permute.xlu1 %3639  ;;  %5438 = vmatpush1.msra.mxu1 %v10667_v40  ;;  %v976_v48 = vmul.f32 %v885_v63, %v12685_v26  ;;  %v4393_v58 = vrot.slane %v10435_v61, %v7964_v15 }
 0x412   : > { %v3976_v41 = vmul.f32 %v3861_v8, %v3640_v35  ;;  %v3977_v21 = vmul.f32 %v3865_v13, %v3640_v35  ;;  %5439 = vmatprep.subr.mxu1 %v12670_v0  ;;  %v977_v8 = vmul.f32 %v889_v11, %v12685_v26  ;;  %v1425_v13 = vmul.f32 %v1337_v60, %v12683_v10  ;;  %v12687_v35 = vld [vmem:[#allocation126_spill] sm:$0xff] }
 0x413   : > { %3671 = vperm.xlu1 %6680, %v10525_v44   ;;  %v1424_v44 = vmul.f32 %v1333_v23, %v12683_v10  ;;  %5440 = vmatpush1.msra.mxu1 %v10683_v19  ;;  %v1936_v46 = vmul.f32 %v1845_v38, %v12687_v35  ;;  %v1937_v11 = vmul.f32 %v1849_v62, %v12687_v35  ;;  %v10756_v35 = vld [vmem:[%s11611_s2] sm:$0xff] }
 0x414   : > { %v10695_v9 = vadd.f32 %v3976_v41, %v3528_v14  ;;  %v10697_v34 = vadd.f32 %v3977_v21, %v3529_v53  ;;  %5441 = vmatprep.subr.mxu1 %v12670_v0  ;;  %v10716_v14 = vld [vmem:[%s11611_s2 + $0x18] sm:$0xff]  ;;  %v2361_v60 = vrot.slane %v10643_v12, %v12552_v29  ;;  %v1489_v10 = vadd.f32 %v1425_v13, %v977_v8 }
 0x415   : > { %12686 = vst [vmem:[#allocation82_spill] sm:$0xff] %v10716_v14  ;;  %5442 = vmatpush1.msra.mxu1 %v10703_v45  ;;  %v1488_v63 = vadd.f32 %v1424_v44, %v976_v48  ;;  %v12692_v48 = vld [vmem:[#allocation121_spill] sm:$0xff]  ;;  %12693 = vst [vmem:[#allocation72_spill] sm:$0xff] %v10756_v35 }
 0x416   : > { %v4148_v23 = vpop.permute.xlu1 %4147  ;;  %5443 = vmatprep.subr.mxu1 %v12670_v0  ;;  %v2001_v26 = vadd.f32 %v1937_v11, %v1489_v10  ;;  %v12694_v11 = vld [vmem:[#allocation75_spill] sm:$0xff]  ;;  %v3132_v10 = vpop.permute.xlu0 %3131 }
 0x417   : > { %6682 = vset.pattern.permute.xlu1 %v12533_v39  ;;  %v4486_v53 = vmul.f32 %v4365_v47, %v4148_v23  ;;  %v4487_v41 = vmul.f32 %v4369_v27, %v4148_v23  ;;  %v2357_v39 = vrot.slane %v10638_v51, %v12552_v29  ;;  %v5118_v47 = vrot.slane %v4882_v31, %v12391_v50  ;;  %v10739_v27 = vld [vmem:[%s11611_s2 + $0x10] sm:$0xff] }
 0x418   : > { %4179 = vperm.xlu1 %6682, %v10332_v2   ;;  %v5114_v2 = vrot.slane %v4882_v31, %v12389_v3  ;;  %5444 = vmatpush1.msra.mxu1 %v10716_v14  ;;  %12690 = vst [vmem:[#allocation106_spill] sm:$0xff] %v10739_v27  ;;  %v3357_v23 = vrot.slane %v12692_v48, %v12557_v20  ;;  %v12702_v14 = vld [vmem:[#allocation26_spill] sm:$0xff] }
 0x419   : > { %v10728_v21 = vadd.f32 %v4486_v53, %v10542_v5  ;;  %v10731_v38 = vadd.f32 %v4487_v41, %v10544_v32  ;;  %5445 = vmatprep.subr.mxu1 %v12670_v0  ;;  %v10745_v5 = vld [vmem:[%s11611_s2 + $0x8] sm:$0xff]  ;;  %v2000_v32 = vadd.f32 %v1936_v46, %v1488_v63  ;;  %v2861_v41 = vrot.slane %v10409_v24, %v12554_v56 }
 0x41a   : > { %12691 = vst [vmem:[#allocation107_spill] sm:$0xff] %v10745_v5  ;;  %5446 = vmatpush1.msra.mxu1 %v10739_v27  ;;  %v2865_v63 = vrot.slane %v10440_v25, %v12554_v56  ;;  %v4373_v27 = vrot.slane %v10254_v6, %v7964_v15 }
 0x41b   : > { %12688 = vst [vmem:[#allocation57_spill] sm:$0xff] %v10728_v21  ;;  %12689 = vst [vmem:[#allocation62_spill] sm:$0xff] %v10731_v38  ;;  %v5299_v44 = vmul.f32 %v5114_v2, %v10728_v21  ;;  %v5300_v62 = vmul.f32 %v5118_v47, %v10731_v38  ;;  %v2120_v31 = vpop.permute.xlu1 %2119  ;;  %5447 = vmatprep.subr.mxu1 %v12670_v0  ;;  %v10780_v47 = vld [vmem:[%s11611_s2 + $0x98] sm:$0xff]  ;;  %v12703_v38 = vld [vmem:[#allocation133_spill] sm:$0xff] }
 0x41c   : > { %v2448_v8 = vmul.f32 %v2357_v39, %v2120_v31  ;;  %v2449_v13 = vmul.f32 %v2361_v60, %v2120_v31  ;;  %5448 = vmatpush1.msra.mxu1 %v10745_v5  ;;  %v3361_v39 = vrot.slane %v12694_v11, %v12557_v20  ;;  %12695 = vst [vmem:[#allocation97_spill] sm:$0xff] %v10780_v47  ;;  %v12700_v21 = vld [vmem:[#allocation19_spill] sm:$0xff] }
 0x41d   : > { %v10759_v46 = vadd.f32 %v10604_v17, %v5299_v44  ;;  %v5394_v53 = vsel %vm5350_vm4, %v5300_v62, 0.0  ;;  %5449 = vmatprep.subr.mxu1 %v12670_v0  ;;  %v3466_v31 = vmul.f32 %v3357_v23, %v3132_v10  ;;  %v10810_v23 = vld [vmem:[%s11610_s1 + $0x1c0] sm:$0xff] }
 0x41e   : > { %v10770_v60 = vadd.f32 %v5394_v53, %v10614_v54  ;;  %v10772_v2 = vadd.f32 %v2448_v8, %v2000_v32  ;;  %v10774_v17 = vadd.f32 %v2449_v13, %v2001_v26  ;;  %5450 = vmatpush1.msra.mxu1 %v10756_v35  ;;  %v10787_v54 = vld [vmem:[%s11611_s2 + $0x90] sm:$0xff]  ;;  %v3467_v26 = vmul.f32 %v3361_v39, %v3132_v10  ;;  %v10798_v53 = vld [vmem:[%s11611_s2 + $0x88] sm:$0xff] }
 0x41f   : > { %5475 = vmatprep.subr.mxu1 %v12670_v0  ;;  %12696 = vst [vmem:[#allocation78_spill] sm:$0xff] %v10787_v54  ;;  %v3869_v8 = vrot.slane %v12692_v48, %v12559_v22  ;;  %v3873_v13 = vrot.slane %v12694_v11, %v12559_v22  ;;  %12697 = vst [vmem:[#allocation98_spill] sm:$0xff] %v10798_v53  ;;  %v10815_v39 = vld [vmem:[%s11610_s1 + $0x1c8] sm:$0xff]  ;;  %v893_v35 = vrot.slane %v10810_v23, %v12389_v3 }
 0x420   : > { %v2628_v44 = vpop.permute.xlu1 %2627  ;;  %5476 = vmatpush2.msra.mxu1 %v10780_v47  ;;  %v1345_v10 = vrot.slane %v10815_v39, %v12391_v50  ;;  %v3531_v36 = vadd.f32 %v3467_v26, %v12700_v21  ;;  %v897_v5 = vrot.slane %v10815_v39, %v12389_v3  ;;  %v1853_v21 = vrot.slane %v10810_v23, %v12648_v33 }
 0x421   : > { %v2958_v32 = vmul.f32 %v2861_v41, %v2628_v44  ;;  %v2959_v62 = vmul.f32 %v2865_v63, %v2628_v44  ;;  %5477 = vmatprep.subr.mxu1 %v12670_v0 }
 0x422   : > { %5478 = vmatpush2.msra.mxu1 %v10787_v54  ;;  %v1938_v30 = vmul.f32 %v1853_v21, %v12703_v38 }
 0x423   : > { %v10801_v41 = vadd.f32 %v2958_v32, %v10616_v55  ;;  %v10804_v63 = vadd.f32 %v2959_v62, %v10618_v42  ;;  %5479 = vmatprep.subr.mxu1 %v12670_v0  ;;  %v10821_v55 = vld [vmem:[%s11611_s2 + $0x80] sm:$0xff]  ;;  %v1341_v42 = vrot.slane %v10810_v23, %v12391_v50 }
 0x424   : > { %12698 = vst [vmem:[#allocation49_spill] sm:$0xff] %v10821_v55  ;;  %5480 = vmatpush2.msra.mxu1 %v10798_v53  ;;  %v12699_v32 = vld [vmem:[#allocation36_spill] sm:$0xff]  ;;  %v4377_v53 = vrot.slane %v10261_v4, %v7964_v15  ;;  %v978_v4 = vmul.f32 %v893_v35, %v12702_v14 }
 0x425   : > { %v3644_v44 = vpop.permute.xlu1 %3643  ;;  %v3530_v62 = vadd.f32 %v3466_v31, %v12699_v32  ;;  %5481 = vmatprep.subr.mxu1 %v12670_v0  ;;  %v1857_v0 = vrot.slane %v10815_v39, %v12648_v33 }
 0x426   : > { %v3978_v54 = vmul.f32 %v3869_v8, %v3644_v44  ;;  %v3979_v47 = vmul.f32 %v3873_v13, %v3644_v44  ;;  %5482 = vmatpush2.msra.mxu1 %v10821_v55  ;;  %v4884_v8 = vcombine.high %v10522_v57, %v10522_v57  ;;  %v12701_v13 = vld [vmem:[#allocation63_spill] sm:$0xff]  ;;  %v979_v55 = vmul.f32 %v897_v5, %v12702_v14 }
 0x427   : > { %v1426_v44 = vmul.f32 %v1341_v42, %v12701_v13  ;;  %v1427_v6 = vmul.f32 %v1345_v10, %v12701_v13  ;;  %v1939_v40 = vmul.f32 %v1857_v0, %v12703_v38  ;;  %v2369_v57 = vrot.slane %v10815_v39, %v12552_v29 }
 0x428   : > { %v4042_v31 = vadd.f32 %v3978_v54, %v3530_v62  ;;  %v4043_v26 = vadd.f32 %v3979_v47, %v3531_v36  ;;  %v2365_v36 = vrot.slane %v10810_v23, %v12552_v29  ;;  %v5122_v14 = vrot.slane %v4884_v8, %v12389_v3 }
 0x429   : > { %v1490_v5 = vadd.f32 %v1426_v44, %v978_v4  ;;  %v1491_v35 = vadd.f32 %v1427_v6, %v979_v55  ;;  %v2869_v0 = vrot.slane %v10638_v51, %v12554_v56  ;;  %v2873_v55 = vrot.slane %v10643_v12, %v12554_v56 }
 0x42a   : > { %v4152_v32 = vpop.permute.xlu1 %4151 }
 0x42b   : > { %v4488_v45 = vmul.f32 %v4373_v27, %v4152_v32  ;;  %v4489_v19 = vmul.f32 %v4377_v53, %v4152_v32  ;;  %v5126_v27 = vrot.slane %v4884_v8, %v12391_v50  ;;  %v10864_v53 = vpop.f32.mrf.mxu0  ;;  %v2002_v62 = vadd.f32 %v1938_v30, %v1490_v5 }
 0x42c   : > { %v2003_v21 = vadd.f32 %v1939_v40, %v1491_v35  ;;  %v4385_v5 = vrot.slane %v12694_v11, %v7964_v15 }
 0x42d   : > { %v10857_v47 = vadd.f32 %v4488_v45, %v10695_v9  ;;  %v10860_v54 = vadd.f32 %v4489_v19, %v10697_v34  ;;  %v10874_v8 = vpop.f32.mrf.mxu0 }
 0x42e   : > { %v4885_v40 = vcombine.low %v10864_v53, %v10874_v8 }
 0x42f   : > { %12704 = vst [vmem:[#allocation47_spill] sm:$0xff] %v10857_v47  ;;  %12705 = vst [vmem:[#allocation37_spill] sm:$0xff] %v10860_v54  ;;  %v5301_v38 = vmul.f32 %v5122_v14, %v10857_v47  ;;  %v5302_v42 = vmul.f32 %v5126_v27, %v10860_v54  ;;  %v2124_v10 = vpop.permute.xlu1 %2123  ;;  %v12709_v54 = vld [vmem:[#allocation146_spill] sm:$0xff] }
 0x430   : > { %v2450_v9 = vmul.f32 %v2365_v36, %v2124_v10  ;;  %v2451_v45 = vmul.f32 %v2369_v57, %v2124_v10  ;;  %v12706_v57 = vld [vmem:[#allocation70_spill] sm:$0xff] }
 0x431   : > { %v5341_v19 = vadd.f32 %v10759_v46, %v5301_v38  ;;  %v5396_v34 = vsel %vm5350_vm4, %v5302_v42, 0.0  ;;  %v4893_v14 = vrot.slane %v4885_v40, %v12706_v57  ;;  %v3136_v38 = vpop.permute.xlu0 %3135 }
 0x432   : > { %v5397_v13 = vadd.f32 %v5396_v34, %v10770_v60  ;;  %v2514_v44 = vadd.f32 %v2450_v9, %v2002_v62  ;;  %v2515_v6 = vadd.f32 %v2451_v45, %v2003_v21  ;;  %v4381_v60 = vrot.slane %v12692_v48, %v7964_v15 }
 0x433   : > { %v10891_v35 = vrot.slane %v4893_v14, %v12706_v57  ;;  %v4901_v47 = vcombine.high %v4893_v14, %v4893_v14 }
 0x434   : > { %v2632_v30 = vpop.permute.xlu1 %2631 }
 0x435   : > { %v2960_v32 = vmul.f32 %v2869_v0, %v2632_v30  ;;  %v2961_v46 = vmul.f32 %v2873_v55, %v2632_v30  ;;  %v5130_v21 = vrot.slane %v10891_v35, %v12389_v3  ;;  %v5134_v48 = vrot.slane %v10891_v35, %v12391_v50  ;;  %v10901_v9 = vpop.permute.xlu0 %3139 }
 0x436   : > { %v2881_v55 = vrot.slane %v10815_v39, %v12554_v56  ;;  %v10941_v14 = vrot.slane %v4901_v47, %v12706_v57 }
 0x437   : > { %v10880_v4 = vadd.f32 %v2960_v32, %v10772_v2  ;;  %v10883_v36 = vadd.f32 %v2961_v46, %v10774_v17  ;;  %v3389_v32 = vrot.slane %v10810_v23, %v12557_v20  ;;  %v3393_v46 = vrot.slane %v10815_v39, %v12557_v20 }
 0x439   : > { %v3648_v27 = vpop.permute.xlu1 %3647  ;;  %v10912_v30 = vpop.permute.xlu0 %3143 }
 0x43f   : > { %v4156_v42 = vpop.permute.xlu1 %4155 }
 0x440   : > { %v4490_v10 = vmul.f32 %v4381_v60, %v4156_v42  ;;  %v4491_v2 = vmul.f32 %v4385_v5, %v4156_v42  ;;  %v3905_v60 = vrot.slane %v10815_v39, %v12559_v22  ;;  %v3365_v42 = vrot.slane %v10403_v16, %v12557_v20 }
 0x442   : > { %v10893_v62 = vadd.f32 %v4490_v10, %v4042_v31  ;;  %v10895_v17 = vadd.f32 %v4491_v2, %v4043_v26  ;;  %v2877_v26 = vrot.slane %v10810_v23, %v12554_v56  ;;  %v3369_v10 = vrot.slane %v10435_v61, %v12557_v20 }
 0x443   : > { %v3987_v7 = vmul.f32 %v3905_v60, %v12709_v54  ;;  %v3468_v52 = vmul.f32 %v3365_v42, %v3136_v38 }
 0x444   : > { %12707 = vst [vmem:[#allocation10_spill] sm:$0xff] %v10893_v62  ;;  %12708 = vst [vmem:[#allocation33_spill] sm:$0xff] %v10895_v17  ;;  %v5303_v11 = vmul.f32 %v5130_v21, %v10893_v62  ;;  %v5304_v45 = vmul.f32 %v5134_v48, %v10895_v17  ;;  %v10905_v34 = vpop.permute.xlu1 %2127  ;;  %v3877_v21 = vrot.slane %v10403_v16, %v12559_v22 }
 0x445   : > { %v3881_v48 = vrot.slane %v10435_v61, %v12559_v22  ;;  %v3469_v28 = vmul.f32 %v3369_v10, %v3136_v38  ;;  %v3377_v10 = vrot.slane %v10440_v25, %v12557_v20 }
 0x446   : > { %v5342_v0 = vadd.f32 %v5341_v19, %v5303_v11  ;;  %v5398_v31 = vsel %vm5350_vm4, %v5304_v45, 0.0  ;;  %v3901_v19 = vrot.slane %v10810_v23, %v12559_v22  ;;  %v3148_v11 = vpop.permute.xlu0 %3147 }
 0x447   : > { %v5399_v40 = vadd.f32 %v5398_v31, %v5397_v13  ;;  %v3474_v45 = vmul.f32 %v3389_v32, %v3148_v11  ;;  %v3475_v31 = vmul.f32 %v3393_v46, %v3148_v11  ;;  %v3980_v32 = vmul.f32 %v3877_v21, %v3648_v27  ;;  %v10980_v11 = vld [vmem:[%s11610_s1 + $0x1d8] sm:$0xff] }
 0x448   : > { %v3986_v49 = vmul.f32 %v3901_v19, %v12709_v54  ;;  %v3981_v46 = vmul.f32 %v3881_v48, %v3648_v27  ;;  %v3532_v54 = vadd.f32 %v3468_v52, %v10656_v18  ;;  %v3533_v38 = vadd.f32 %v3469_v28, %v10658_v1 }
 0x449   : > { %v2636_v5 = vpop.permute.xlu1 %2635  ;;  %v3373_v27 = vrot.slane %v10409_v24, %v12557_v20 }
 0x44a   : > { %v2962_v13 = vmul.f32 %v2877_v26, %v2636_v5  ;;  %v2963_v2 = vmul.f32 %v2881_v55, %v2636_v5  ;;  %v4045_v19 = vadd.f32 %v3981_v46, %v3533_v38 }
 0x44b   : > { %v3470_v21 = vmul.f32 %v3373_v27, %v10901_v9  ;;  %v12712_v27 = vld [vmem:[#allocation30_spill] sm:$0xff] }
 0x44c   : > { %v3026_v62 = vadd.f32 %v2962_v13, %v2514_v44  ;;  %v3027_v17 = vadd.f32 %v2963_v2, %v2515_v6  ;;  %v3885_v13 = vrot.slane %v10409_v24, %v12559_v22  ;;  %v3889_v2 = vrot.slane %v10440_v25, %v12559_v22 }
 0x44e   : > { %v3538_v26 = vadd.f32 %v3474_v45, %v3026_v62  ;;  %v3539_v55 = vadd.f32 %v3475_v31, %v3027_v17  ;;  %v3652_v5 = vpop.permute.xlu1 %3651  ;;  %v4044_v17 = vadd.f32 %v3980_v32, %v3532_v54  ;;  %v3534_v32 = vadd.f32 %v3470_v21, %v10801_v41 }
 0x44f   : > { %v3982_v45 = vmul.f32 %v3885_v13, %v3652_v5  ;;  %v3983_v31 = vmul.f32 %v3889_v2, %v3652_v5  ;;  %v4931_v54 = vcombine.high %v10891_v35, %v10891_v35 }
 0x450   : > { %v10936_v44 = vadd.f32 %v3986_v49, %v3538_v26  ;;  %v10938_v6 = vadd.f32 %v3987_v7, %v3539_v55  ;;  %v5138_v7 = vrot.slane %v10941_v14, %v12389_v3  ;;  %v5142_v49 = vrot.slane %v10941_v14, %v12391_v50  ;;  %v10989_v55 = vld [vmem:[%s11610_s1 + $0x1e0] sm:$0xff] }
 0x451   : > { %v4397_v26 = vrot.slane %v10409_v24, %v7964_v15  ;;  %v905_v24 = vrot.slane %v10980_v11, %v12389_v3  ;;  %v4046_v41 = vadd.f32 %v3982_v45, %v3534_v32  ;;  %v909_v35 = vrot.slane %v10989_v55, %v12389_v3 }
 0x452   : > { %v1865_v32 = vrot.slane %v10980_v11, %v12648_v33 }
 0x453   : > { %v4160_v62 = vpop.permute.xlu1 %4159  ;;  %v981_v13 = vmul.f32 %v905_v24, %v12712_v27 }
 0x454   : > { %v4492_v16 = vmul.f32 %v4389_v37, %v4160_v62  ;;  %v4493_v60 = vmul.f32 %v4393_v58, %v4160_v62  ;;  %v11004_v62 = vld [vmem:[%s11610_s1 + $0x1e8] sm:$0xff] }
 0x455   : > { %v913_v2 = vrot.slane %v11004_v62, %v12389_v3  ;;  %v1361_v21 = vrot.slane %v11004_v62, %v12391_v50 }
 0x456   : > { %v10945_v42 = vadd.f32 %v4492_v16, %v4044_v17  ;;  %v10947_v61 = vadd.f32 %v4493_v60, %v4045_v19  ;;  %v1353_v16 = vrot.slane %v10980_v11, %v12391_v50  ;;  %v1357_v60 = vrot.slane %v10989_v55, %v12391_v50 }
 0x458   : > { %12710 = vst [vmem:[#allocation38_spill] sm:$0xff] %v10945_v42  ;;  %v5305_v47 = vmul.f32 %v5138_v7, %v10945_v42  ;;  %v5306_v52 = vmul.f32 %v5142_v49, %v10947_v61  ;;  %v10955_v28 = vpop.permute.xlu1 %2131  ;;  %v4886_v7 = vcombine.high %v10864_v53, %v10874_v8 }
 0x45a   : > { %v5343_v18 = vadd.f32 %v5342_v0, %v5305_v47  ;;  %v5400_v37 = vsel %vm5350_vm4, %v5306_v52, 0.0  ;;  %v3471_v0 = vmul.f32 %v3377_v10, %v10901_v9  ;;  %v4401_v9 = vrot.slane %v10440_v25, %v7964_v15 }
 0x45b   : > { %v5401_v58 = vadd.f32 %v5400_v37, %v5399_v40  ;;  %v10975_v40 = vld [vmem:[%s11610_s1 + $0x1d0] sm:$0xff]  ;;  %v5146_v52 = vrot.slane %v4931_v54, %v12389_v3  ;;  %v5150_v37 = vrot.slane %v4931_v54, %v12391_v50  ;;  %v3385_v54 = vrot.slane %v10643_v12, %v12557_v20 }
 0x45c   : > { %v3535_v46 = vadd.f32 %v3471_v0, %v10804_v63  ;;  %v901_v5 = vrot.slane %v10975_v40, %v12389_v3  ;;  %v1349_v25 = vrot.slane %v10975_v40, %v12391_v50  ;;  %v12713_v0 = vld [vmem:[#allocation48_spill] sm:$0xff]  ;;  %v1861_v8 = vrot.slane %v10975_v40, %v12648_v33 }
 0x45d   : > { %v10958_v1 = vpop.permute.xlu1 %2639 }
 0x45e   : > { %v4047_v63 = vadd.f32 %v3983_v31, %v3535_v46  ;;  %v980_v10 = vmul.f32 %v901_v5, %v12712_v27  ;;  %v1428_v53 = vmul.f32 %v1349_v25, %v12713_v0  ;;  %v3381_v46 = vrot.slane %v10638_v51, %v12557_v20  ;;  %v12714_v5 = vld [vmem:[#allocation65_spill] sm:$0xff]  ;;  %v12716_v27 = vld [vmem:[#allocation135_spill] sm:$0xff] }
 0x45f   : > { %v1430_v24 = vmul.f32 %v1357_v60, %v12714_v5  ;;  %v4900_v25 = vrot.slane %v4886_v7, %v12706_v57  ;;  %v1431_v60 = vmul.f32 %v1361_v21, %v12714_v5  ;;  %v1940_v7 = vmul.f32 %v1861_v8, %v12716_v27 }
 0x462   : > { %v10970_v48 = vpop.permute.xlu1 %3655 }
 0x467   : > { %v4164_v38 = vpop.permute.xlu1 %4163 }
 0x468   : > { %v4494_v17 = vmul.f32 %v4397_v26, %v4164_v38  ;;  %v4495_v19 = vmul.f32 %v4401_v9, %v4164_v38  ;;  %v1429_v9 = vmul.f32 %v1353_v16, %v12713_v0  ;;  %v3897_v16 = vrot.slane %v10643_v12, %v12559_v22 }
 0x469   : > { %v1492_v0 = vadd.f32 %v1428_v53, %v980_v10  ;;  %v4405_v10 = vrot.slane %v10638_v51, %v7964_v15  ;;  %v4409_v53 = vrot.slane %v10643_v12, %v7964_v15 }
 0x46a   : > { %v11014_v49 = vadd.f32 %v4494_v17, %v4046_v41  ;;  %v11016_v47 = vadd.f32 %v4495_v19, %v4047_v63  ;;  %v12715_v63 = vld [vmem:[#allocation28_spill] sm:$0xff]  ;;  %v3893_v19 = vrot.slane %v10638_v51, %v12559_v22  ;;  %v1493_v42 = vadd.f32 %v1429_v9, %v981_v13 }
 0x46b   : > { %v982_v17 = vmul.f32 %v909_v35, %v12715_v63  ;;  %v1941_v35 = vmul.f32 %v1865_v32, %v12716_v27  ;;  %v3985_v8 = vmul.f32 %v3897_v16, %v10970_v48  ;;  %v4933_v13 = vcombine.high %v10941_v14, %v10941_v14 }
 0x46c   : > { %12711 = vst [vmem:[#allocation39_spill] sm:$0xff] %v11014_v49  ;;  %v5307_v45 = vmul.f32 %v5146_v52, %v11014_v49  ;;  %v5308_v31 = vmul.f32 %v5150_v37, %v11016_v47  ;;  %v11031_v26 = vpop.permute.xlu1 %2643  ;;  %v983_v37 = vmul.f32 %v913_v2, %v12715_v63  ;;  %v1873_v2 = vrot.slane %v11004_v62, %v12648_v33 }
 0x46d   : > { %v3984_v21 = vmul.f32 %v3893_v19, %v10970_v48  ;;  %v2005_v9 = vadd.f32 %v1941_v35, %v1493_v42  ;;  %v2377_v48 = vrot.slane %v10980_v11, %v12552_v29  ;;  %v2373_v63 = vrot.slane %v10975_v40, %v12552_v29 }
 0x46e   : > { %v11042_v38 = vadd.f32 %v5343_v18, %v5307_v45  ;;  %v5402_v41 = vsel %vm5350_vm4, %v5308_v31, 0.0  ;;  %v1869_v18 = vrot.slane %v10989_v55, %v12648_v33  ;;  %v3472_v45 = vmul.f32 %v3381_v46, %v10912_v30 }
 0x46f   : > { %v11050_v52 = vadd.f32 %v5402_v41, %v5401_v58  ;;  %v3473_v31 = vmul.f32 %v3385_v54, %v10912_v30  ;;  %v1494_v58 = vadd.f32 %v1430_v24, %v982_v17  ;;  %v4902_v41 = vcombine.high %v4900_v25, %v4900_v25  ;;  %v12717_v30 = vld [vmem:[#allocation137_spill] sm:$0xff]  ;;  %v11075_v24 = vpop.permute.xlu0 %3155 }
 0x470   : > { %v1495_v32 = vadd.f32 %v1431_v60, %v983_v37  ;;  %v2004_v46 = vadd.f32 %v1940_v7, %v1492_v0  ;;  %v1942_v54 = vmul.f32 %v1869_v18, %v12717_v30  ;;  %v3536_v33 = vadd.f32 %v3472_v45, %v10880_v4 }
 0x471   : > { %v3152_v49 = vpop.permute.xlu1 %3151  ;;  %v3537_v5 = vadd.f32 %v3473_v31, %v10883_v36  ;;  %v1943_v51 = vmul.f32 %v1873_v2, %v12717_v30  ;;  %v11079_v12 = vrot.slane %v4902_v41, %v12706_v57  ;;  %v2889_v14 = vrot.slane %v10980_v11, %v12554_v56 }
 0x472   : > { %v4048_v4 = vadd.f32 %v3984_v21, %v3536_v33  ;;  %v11085_v16 = vadd.f32 %v1942_v54, %v1494_v58  ;;  %v2885_v37 = vrot.slane %v10975_v40, %v12554_v56  ;;  %v5154_v60 = vrot.slane %v4933_v13, %v12389_v3 }
 0x473   : > { %v4049_v17 = vadd.f32 %v3985_v8, %v3537_v5  ;;  %v5158_v27 = vrot.slane %v4933_v13, %v12391_v50  ;;  %v2453_v7 = vmul.f32 %v2377_v48, %v10905_v34  ;;  %v3401_v18 = vrot.slane %v10980_v11, %v12557_v20  ;;  %v3160_v41 = vpop.permute.xlu0 %3159 }
 0x474   : > { %v11098_v45 = vadd.f32 %v1943_v51, %v1495_v32  ;;  %v11101_v31 = vrot.slane %v4900_v25, %v12706_v57  ;;  %v2452_v58 = vmul.f32 %v2373_v63, %v10905_v34  ;;  %v3397_v2 = vrot.slane %v10975_v40, %v12557_v20 }
 0x475   : > { %v2965_v21 = vmul.f32 %v2889_v14, %v10958_v1  ;;  %v5170_v32 = vrot.slane %v11079_v12, %v12389_v3  ;;  %v2964_v30 = vmul.f32 %v2885_v37, %v10958_v1  ;;  %v3909_v57 = vrot.slane %v10975_v40, %v12559_v22  ;;  %v11147_v37 = vld [vmem:[%s11610_s1 + $0x1f8] sm:$0xff] }
 0x476   : > { %v4168_v42 = vpop.permute.xlu1 %4167  ;;  %v3913_v34 = vrot.slane %v10980_v11, %v12559_v22  ;;  %v5174_v25 = vrot.slane %v11079_v12, %v12391_v50  ;;  %v2517_v54 = vadd.f32 %v2453_v7, %v2005_v9  ;;  %v3477_v13 = vmul.f32 %v3401_v18, %v3152_v49 }
 0x477   : > { %v4496_v36 = vmul.f32 %v4405_v10, %v4168_v42  ;;  %v4497_v19 = vmul.f32 %v4409_v53, %v4168_v42  ;;  %v2516_v48 = vadd.f32 %v2452_v58, %v2004_v46  ;;  %v3476_v51 = vmul.f32 %v3397_v2, %v3152_v49 }
 0x478   : > { %v4425_v63 = vrot.slane %v10980_v11, %v7964_v15  ;;  %v3405_v14 = vrot.slane %v10989_v55, %v12557_v20  ;;  %v3029_v42 = vadd.f32 %v2965_v21, %v2517_v54  ;;  %v5162_v9 = vrot.slane %v11101_v31, %v12389_v3 }
 0x479   : > { %v11094_v0 = vadd.f32 %v4496_v36, %v4048_v4  ;;  %v11096_v35 = vadd.f32 %v4497_v19, %v4049_v17  ;;  %v4176_v4 = vpop.permute.xlu0 %4175  ;;  %v3409_v49 = vrot.slane %v11004_v62, %v12557_v20  ;;  %v3028_v46 = vadd.f32 %v2964_v30, %v2516_v48 }
 0x47a   : > { %v4421_v36 = vrot.slane %v10975_v40, %v7964_v15  ;;  %v3541_v19 = vadd.f32 %v3477_v13, %v3029_v42  ;;  %v4501_v58 = vmul.f32 %v4425_v63, %v4176_v4  ;;  %v4413_v2 = vrot.slane %v10810_v23, %v7964_v15 }
 0x47b   : > { %v5309_v8 = vmul.f32 %v5154_v60, %v11094_v0  ;;  %v5310_v10 = vmul.f32 %v5158_v27, %v11096_v35  ;;  %v2648_v53 = vpop.permute.xlu1 %2647  ;;  %v2905_v60 = vrot.slane %v11147_v37, %v12554_v56  ;;  %v3540_v18 = vadd.f32 %v3476_v51, %v3028_v46 }
 0x47c   : > { %v4417_v21 = vrot.slane %v10815_v39, %v7964_v15  ;;  %v3417_v40 = vrot.slane %v11147_v37, %v12557_v20  ;;  %v4500_v23 = vmul.f32 %v4421_v36, %v4176_v4  ;;  %v3479_v13 = vmul.f32 %v3409_v49, %v11075_v24 }
 0x47d   : > { %v11119_v33 = vadd.f32 %v11042_v38, %v5309_v8  ;;  %v5404_v5 = vsel %vm5350_vm4, %v5310_v10, 0.0  ;;  %v5166_v38 = vrot.slane %v11101_v31, %v12391_v50  ;;  %v2381_v8 = vrot.slane %v10989_v55, %v12552_v29 }
 0x47e   : > { %v11123_v1 = vadd.f32 %v5404_v5, %v11050_v52  ;;  %v11138_v52 = vld [vmem:[%s11610_s1 + $0x1f0] sm:$0xff]  ;;  %v2385_v10 = vrot.slane %v11004_v62, %v12552_v29  ;;  %v2897_v5 = vrot.slane %v11004_v62, %v12554_v56  ;;  %v2969_v51 = vmul.f32 %v2905_v60, %v2648_v53 }
 0x47f   : > { %v3413_v11 = vrot.slane %v11138_v52, %v12557_v20  ;;  %v2893_v20 = vrot.slane %v10989_v55, %v12554_v56  ;;  %v3481_v42 = vmul.f32 %v3417_v40, %v3160_v41  ;;  %v2454_v46 = vmul.f32 %v2381_v8, %v10955_v28  ;;  %v12718_v60 = vld [vmem:[#allocation50_spill] sm:$0xff]  ;;  %v12719_v40 = vld [vmem:[#allocation45_spill] sm:$0xff] }
 0x480   : > { %v3664_v17 = vpop.permute.xlu1 %3663  ;;  %v2455_v4 = vmul.f32 %v2385_v10, %v10955_v28  ;;  %v4441_v28 = vrot.slane %v11147_v37, %v7964_v15  ;;  %v4437_v10 = vrot.slane %v11138_v52, %v7964_v15 }
 0x481   : > { %v3988_v27 = vmul.f32 %v3909_v57, %v3664_v17  ;;  %v3989_v7 = vmul.f32 %v3913_v34, %v3664_v17  ;;  %v3478_v57 = vmul.f32 %v3405_v14, %v11075_v24  ;;  %v2901_v34 = vrot.slane %v11138_v52, %v12554_v56 }
 0x482   : > { %v3480_v39 = vmul.f32 %v3413_v11, %v3160_v41  ;;  %v3917_v24 = vrot.slane %v10989_v55, %v12559_v22  ;;  %v2966_v36 = vmul.f32 %v2893_v20, %v11031_v26  ;;  %v2967_v41 = vmul.f32 %v2897_v5, %v11031_v26 }
 0x483   : > { %v4053_v30 = vadd.f32 %v3989_v7, %v3541_v19  ;;  %v4052_v54 = vadd.f32 %v3988_v27, %v3540_v18  ;;  %v2968_v49 = vmul.f32 %v2901_v34, %v2648_v53  ;;  %v3921_v19 = vrot.slane %v11004_v62, %v12559_v22  ;;  %v4184_v18 = vpop.permute.xlu0 %4183 }
 0x484   : > { %v3033_v53 = vadd.f32 %v2969_v51, %v12718_v60  ;;  %v2519_v26 = vadd.f32 %v2455_v4, %v11098_v45 }
 0x485   : > { %v4172_v48 = vpop.permute.xlu1 %4171  ;;  %v11169_v29 = vadd.f32 %v4501_v58, %v4053_v30  ;;  %v11175_v11 = vadd.f32 %v4500_v23, %v4052_v54  ;;  %v2518_v58 = vadd.f32 %v2454_v46, %v11085_v16  ;;  %v3032_v8 = vadd.f32 %v2968_v49, %v12719_v40 }
 0x486   : > { %v4498_v63 = vmul.f32 %v4413_v2, %v4172_v48  ;;  %v4499_v14 = vmul.f32 %v4417_v21, %v4172_v48  ;;  %v3925_v2 = vrot.slane %v11138_v52, %v12559_v22  ;;  %v3929_v21 = vrot.slane %v11147_v37, %v12559_v22 }
 0x487   : > { %v5314_v27 = vmul.f32 %v5174_v25, %v11169_v29  ;;  %v5313_v25 = vmul.f32 %v5170_v32, %v11175_v11  ;;  %v3030_v16 = vadd.f32 %v2966_v36, %v2518_v58  ;;  %v4505_v30 = vmul.f32 %v4441_v28, %v4184_v18 }
 0x488   : > { %v11178_v17 = vadd.f32 %v4498_v63, %v10936_v44  ;;  %v11181_v56 = vadd.f32 %v4499_v14, %v10938_v6  ;;  %v3031_v34 = vadd.f32 %v2967_v41, %v2519_v26  ;;  %v3545_v54 = vadd.f32 %v3481_v42, %v3033_v53 }
 0x489   : > { %v5408_v22 = vsel %vm5350_vm4, %v5314_v27, 0.0  ;;  %v3544_v51 = vadd.f32 %v3480_v39, %v3032_v8  ;;  %v4429_v63 = vrot.slane %v10989_v55, %v7964_v15  ;;  %v3542_v52 = vadd.f32 %v3478_v57, %v3030_v16 }
 0x48a   : > { %v5311_v44 = vmul.f32 %v5162_v9, %v11178_v17  ;;  %v5312_v7 = vmul.f32 %v5166_v38, %v11181_v56  ;;  %v3668_v6 = vpop.permute.xlu1 %3667  ;;  %v4934_v46 = vcombine.high %v11079_v12, %v11079_v12  ;;  %v4932_v42 = vcombine.high %v11101_v31, %v11101_v31 }
 0x48b   : > { %v3990_v20 = vmul.f32 %v3917_v24, %v3668_v6  ;;  %v3543_v4 = vadd.f32 %v3479_v13, %v3031_v34  ;;  %v4504_v49 = vmul.f32 %v4437_v10, %v4184_v18 }
 0x48c   : > { %v5346_v9 = vadd.f32 %v11119_v33, %v5311_v44  ;;  %v5406_v38 = vsel %vm5350_vm4, %v5312_v7, 0.0  ;;  %v3991_v33 = vmul.f32 %v3921_v19, %v3668_v6  ;;  %v5182_v31 = vrot.slane %v4932_v42, %v12391_v50 }
 0x48d   : > { %v5407_v45 = vadd.f32 %v5406_v38, %v11123_v1  ;;  %v4433_v1 = vrot.slane %v11004_v62, %v7964_v15  ;;  %v4054_v36 = vadd.f32 %v3990_v20, %v3542_v52  ;;  %v5190_v15 = vrot.slane %v4934_v46, %v12391_v50 }
 0x48e   : > { %v3672_v37 = vpop.permute.xlu1 %3671  ;;  %v5347_v23 = vadd.f32 %v5346_v9, %v5313_v25  ;;  %v4055_v39 = vadd.f32 %v3991_v33, %v3543_v4  ;;  %v5178_v62 = vrot.slane %v4932_v42, %v12389_v3  ;;  %v5186_v13 = vrot.slane %v4934_v46, %v12389_v3 }
 0x48f   : > { %v3992_v5 = vmul.f32 %v3925_v2, %v3672_v37  ;;  %v3993_v32 = vmul.f32 %v3929_v21, %v3672_v37  ;;  %v5409_v48 = vadd.f32 %v5408_v22, %v5407_v45 }
 0x491   : > { %v4057_v14 = vadd.f32 %v3993_v32, %v3545_v54  ;;  %v4056_v24 = vadd.f32 %v3992_v5, %v3544_v51 }
 0x493   : > { %v4180_v41 = vpop.permute.xlu1 %4179  ;;  %v11218_v19 = vadd.f32 %v4505_v30, %v4057_v14  ;;  %v11222_v57 = vadd.f32 %v4504_v49, %v4056_v24 }
 0x494   : > { %v4502_v55 = vmul.f32 %v4429_v63, %v4180_v41  ;;  %v4503_v28 = vmul.f32 %v4433_v1, %v4180_v41 }
 0x495   : > { %v5318_v53 = vmul.f32 %v5190_v15, %v11218_v19  ;;  %v5317_v7 = vmul.f32 %v5186_v13, %v11222_v57 }
 0x496   : > { %v11224_v12 = vadd.f32 %v4502_v55, %v4054_v36  ;;  %v11226_v60 = vadd.f32 %v4503_v28, %v4055_v39 }
 0x497   : > { %v5412_v26 = vsel %vm5350_vm4, %v5318_v53, 0.0 }
 0x498   : > { %v5315_v27 = vmul.f32 %v5178_v62, %v11224_v12  ;;  %v5316_v44 = vmul.f32 %v5182_v31, %v11226_v60 }
 0x49a   : > { %v5348_v6 = vadd.f32 %v5347_v23, %v5315_v27  ;;  %v5410_v18 = vsel %vm5350_vm4, %v5316_v44, 0.0 }
 0x49b   : > { %v5411_v58 = vadd.f32 %v5410_v18, %v5409_v48 }
 0x49c   : > { %v5349_v2 = vadd.f32 %v5348_v6, %v5317_v7 }
 0x49d   : > { %v5413_v21 = vadd.f32 %v5412_v26, %v5411_v58 }
 0x49e   : > { %v5414_v40 = vmul.f32 %v5349_v2, %v5349_v2 }
 0x49f   : > { %v5415_v50 = vmul.f32 %v5413_v21, %v5413_v21 }
 0x4a1   : > { %6425 = vmatprep.mubr.msk.f32.mxu1 %vm5350_vm4, %v5415_v50 }
 0x4a2   : > { %5484 = vmatmul.mubr.f32.vlgmr.msra.gmra.mxu1 %v5414_v40 }
 0x562   : > { %v5485_v3 = vpop.f32.mrf.mxu1 }
 0x563   : > { %v5489_v8 = vadd.f32 1e-09, %v5485_v3  ;;  %v5492_v25 = vadd.f32 1.0, %v5485_v3 }
 0x564   : > { %v5487_v9 = vpop.f32.mrf.mxu1 }
 0x565   : > { %6699 = vrsqrt.f32 %v5489_v8 }
 0x566   : > { %6701 = vrcp.f32 %v5492_v25 }
 0x572   : > { %v6700_v38 = vpop.eup %6699 }
 0x573   : > { %v5491_v16 = vmul.f32 %v6700_v38, %v5485_v3  ;;  %v6702_v45 = vpop.eup %6701 }
 0x575   : > { %v5494_v10 = vmul.f32 %v6702_v45, %v5491_v16 }
 0x577   : > { %6428 = vmatmul.mubr.msk.f32.vlgmr.msra.gmra.mxu0 %vm4574_vm2, %v5494_v10 }
 0x637   : > { %v5564_v30 = vpop.f32.mrf.mxu0 }
 0x638   : > { %v11239_v34 = vmul.f32 %v5564_v30, %v5349_v2  ;;  %5576 = sbr.rel (%p6429_p6) target bundleno = 1934 (0x78e), region = 86 }
 0x639   : > { %v5566_v22 = vpop.f32.mrf.mxu0 }
 0x63a   : > { %5571 = vst [vmem:[%s7025_s27] sm:$0xff] %v11239_v34  ;;  %v11243_v37 = vmul.f32 %v5566_v22, %v5413_v21 }
 0x63c   : > { %5572 = vst.msk [vmem:[%s7025_s27 + $0x8] sm:$0xff] %vm5350_vm4, %v11243_v37 }
 0x63d   : > { %v12720_v54 = vld [vmem:[#allocation95_spill] sm:$0xff]  ;;  %v12721_v20 = vld [vmem:[#allocation132_spill] sm:$0xff]  ;;  %v6845_v33 = vmov 0.0   ;;  %v12725_v14 = vld [vmem:[#allocation125_spill] sm:$0xff]  ;;  %vm6125_vm5 = vcmask 1041409   ;;  %vm6127_vm6 = vcmask 1042434  }
 0x63e   : > { %v5578_v23 = vmul.f32 %v11243_v37, %v12720_v54  ;;  %v5580_v5 = vmul.f32 %v11243_v37, %v12721_v20  ;;  %v12722_v32 = vld [vmem:[#allocation136_spill] sm:$0xff]  ;;  %6200 = vmatprep.subr.mxu0 %v6845_v33  ;;  %6440 = vmatprep.subr.mxu1 %v6845_v33  ;;  %v5588_v46 = vmul.f32 %v11243_v37, %v12725_v14  ;;  %v12726_v42 = vld [vmem:[#allocation21_spill] sm:$0xff]  ;;  %v12728_v49 = vld [vmem:[#allocation43_spill] sm:$0xff]  ;;  %vm6129_vm7 = vcmask 1043459  }
 0x63f   : > { %v5582_v48 = vmul.f32 %v11243_v37, %v12722_v32  ;;  %v12723_v51 = vld [vmem:[#allocation120_spill] sm:$0xff]  ;;  %6201 = vmatpush1.msra.mxu0 %v12726_v42  ;;  %6460 = vmatpush1.msra.mxu1 %v12726_v42  ;;  %v5592_v36 = vmul.f32 %v11243_v37, %v12728_v49  ;;  %v12730_v22 = vld [vmem:[#allocation53_spill] sm:$0xff]  ;;  %vm6131_vm8 = vcmask 1044484   ;;  %vm6133_vm9 = vcmask 1045509  }
 0x640   : > { %v5584_v63 = vmul.f32 %v11243_v37, %v12723_v51  ;;  %v12724_v1 = vld [vmem:[#allocation116_spill] sm:$0xff]  ;;  %v5647_v41 = vsel %vm5350_vm4, %v5578_v23, 0.0  ;;  %v5660_v39 = vsel %vm5350_vm4, %v5580_v5, 0.0  ;;  %6202 = vmatprep.subr.mxu0 %v6845_v33  ;;  %6441 = vmatprep.subr.mxu1 %v6845_v33  ;;  %v5712_v27 = vsel %vm5350_vm4, %v5588_v46, 0.0 }
 0x641   : > { %v5586_v52 = vmul.f32 %v11243_v37, %v12724_v1  ;;  %v12727_v4 = vld [vmem:[#allocation96_spill] sm:$0xff]  ;;  %v5648_v55 = vrot.slane %v5647_v41, 4  ;;  %v5661_v28 = vrot.slane %v5660_v39, 4  ;;  %v5673_v15 = vsel %vm5350_vm4, %v5582_v48, 0.0  ;;  %6203 = vmatpush1.msra.mxu0 %v10517_v43  ;;  %6461 = vmatpush1.msra.mxu1 %v10517_v43 }
 0x642   : > { %v5590_v24 = vmul.f32 %v11243_v37, %v12727_v4  ;;  %v5686_v62 = vsel %vm5350_vm4, %v5584_v63, 0.0  ;;  %v5674_v31 = vrot.slane %v5673_v15, 4  ;;  %6204 = vmatprep.subr.mxu0 %v6845_v33  ;;  %6442 = vmatprep.subr.mxu1 %v6845_v33  ;;  %v5713_v18 = vrot.slane %v5712_v27, 4  ;;  %v12729_v8 = vld [vmem:[#allocation16_spill] sm:$0xff]  ;;  %v12731_v63 = vld [vmem:[#allocation122_spill] sm:$0xff] }
 0x643   : > { %v5687_v13 = vrot.slane %v5686_v62, 4  ;;  %v5699_v53 = vsel %vm5350_vm4, %v5586_v52, 0.0  ;;  %v5649_v44 = vadd.f32 %v5648_v55, %v5647_v41  ;;  %v5662_v7 = vadd.f32 %v5661_v28, %v5660_v39  ;;  %6205 = vmatpush1.msra.mxu0 %v10538_v59  ;;  %6462 = vmatpush1.msra.mxu1 %v10538_v59 }
 0x644   : > { %v5700_v6 = vrot.slane %v5699_v53, 4  ;;  %v5675_v58 = vadd.f32 %v5674_v31, %v5673_v15  ;;  %v5725_v26 = vsel %vm5350_vm4, %v5590_v24, 0.0  ;;  %v5738_v2 = vsel %vm5350_vm4, %v5592_v36, 0.0  ;;  %6206 = vmatprep.subr.mxu0 %v6845_v33  ;;  %6443 = vmatprep.subr.mxu1 %v6845_v33  ;;  %v12732_v36 = vld [vmem:[#allocation94_spill] sm:$0xff]  ;;  %v12733_v31 = vld [vmem:[#allocation103_spill] sm:$0xff] }
 0x645   : > { %v5688_v43 = vadd.f32 %v5687_v13, %v5686_v62  ;;  %v5650_v21 = vrot.slane %v5649_v44, 2  ;;  %v5663_v50 = vrot.slane %v5662_v7, 2  ;;  %v5714_v3 = vadd.f32 %v5713_v18, %v5712_v27  ;;  %6207 = vmatpush1.msra.mxu0 %v12729_v8  ;;  %6463 = vmatpush1.msra.mxu1 %v12729_v8 }
 0x646   : > { %v5701_v40 = vadd.f32 %v5700_v6, %v5699_v53  ;;  %v5676_v59 = vrot.slane %v5675_v58, 2  ;;  %v5726_v9 = vrot.slane %v5725_v26, 4  ;;  %v5739_v38 = vrot.slane %v5738_v2, 4  ;;  %6208 = vmatprep.subr.mxu0 %v6845_v33  ;;  %6444 = vmatprep.subr.mxu1 %v6845_v33  ;;  %v12735_v6 = vld [vmem:[#allocation31_spill] sm:$0xff] }
 0x647   : > { %v5689_v25 = vrot.slane %v5688_v43, 2  ;;  %v5651_v16 = vadd.f32 %v5650_v21, %v5649_v44  ;;  %v5664_v45 = vadd.f32 %v5663_v50, %v5662_v7  ;;  %v5715_v30 = vrot.slane %v5714_v3, 2  ;;  %6209 = vmatpush1.msra.mxu0 %v12730_v22  ;;  %6464 = vmatpush1.msra.mxu1 %v12730_v22  ;;  %v12734_v44 = vld [vmem:[#allocation79_spill] sm:$0xff]  ;;  %v12737_v21 = vld [vmem:[#allocation69_spill] sm:$0xff] }
 0x648   : > { %v5702_v10 = vrot.slane %v5701_v40, 2  ;;  %v5677_v54 = vadd.f32 %v5676_v59, %v5675_v58  ;;  %v5727_v20 = vadd.f32 %v5726_v9, %v5725_v26  ;;  %6210 = vmatprep.subr.mxu0 %v6845_v33  ;;  %6445 = vmatprep.subr.mxu1 %v6845_v33  ;;  %v5740_v46 = vadd.f32 %v5739_v38, %v5738_v2  ;;  %v12736_v58 = vld [vmem:[#allocation8_spill] sm:$0xff]  ;;  %v12739_v59 = vld [vmem:[#allocation13_spill] sm:$0xff]  ;;  %v12740_v38 = vld [vmem:[#allocation131_spill] sm:$0xff] }
 0x649   : > { %v5690_v23 = vadd.f32 %v5689_v25, %v5688_v43  ;;  %v5652_v5 = vrot.slane %v5651_v16, 1  ;;  %v5665_v32 = vrot.slane %v5664_v45, 1  ;;  %v5716_v51 = vadd.f32 %v5715_v30, %v5714_v3  ;;  %6211 = vmatpush1.msra.mxu0 %v12731_v63  ;;  %6465 = vmatpush1.msra.mxu1 %v12731_v63  ;;  %v12738_v3 = vld [vmem:[#allocation142_spill] sm:$0xff] }
 0x64a   : > { %v5703_v48 = vadd.f32 %v5702_v10, %v5701_v40  ;;  %v5678_v1 = vrot.slane %v5677_v54, 1  ;;  %v5728_v14 = vrot.slane %v5727_v20, 2  ;;  %6212 = vmatprep.subr.mxu0 %v6845_v33  ;;  %6446 = vmatprep.subr.mxu1 %v6845_v33  ;;  %v5741_v28 = vrot.slane %v5740_v46, 2  ;;  %v12741_v10 = vld [vmem:[#allocation18_spill] sm:$0xff] }
 0x64b   : > { %v5691_v52 = vrot.slane %v5690_v23, 1  ;;  %v5653_v42 = vadd.f32 %v5652_v5, %v5651_v16  ;;  %v5666_v4 = vadd.f32 %v5665_v32, %v5664_v45  ;;  %v5717_v49 = vrot.slane %v5716_v51, 1  ;;  %6213 = vmatpush1.msra.mxu0 %v12732_v36  ;;  %6466 = vmatpush1.msra.mxu1 %v12732_v36  ;;  %v12743_v5 = vld [vmem:[#allocation37_spill] sm:$0xff] }
 0x64c   : > { %v5704_v24 = vrot.slane %v5703_v48, 1  ;;  %v5679_v41 = vadd.f32 %v5678_v1, %v5677_v54  ;;  %v5729_v55 = vadd.f32 %v5728_v14, %v5727_v20  ;;  %6214 = vmatprep.subr.mxu0 %v6845_v33  ;;  %6447 = vmatprep.subr.mxu1 %v6845_v33  ;;  %v5742_v53 = vadd.f32 %v5741_v28, %v5740_v46 }
 0x64d   : > { %v5692_v39 = vadd.f32 %v5691_v52, %v5690_v23  ;;  %v5718_v62 = vadd.f32 %v5717_v49, %v5716_v51  ;;  %6215 = vmatpush1.msra.mxu0 %v12733_v31  ;;  %6467 = vmatpush1.msra.mxu1 %v12733_v31  ;;  %vm6135_vm10 = vcmask 1046534   ;;  %vm6137_vm11 = vcmask 1047559   ;;  %v12742_v23 = vld [vmem:[#allocation62_spill] sm:$0xff]  ;;  %v12744_v51 = vld [vmem:[#allocation20_spill] sm:$0xff] }
 0x64e   : > { %v5705_v15 = vadd.f32 %v5704_v24, %v5703_v48  ;;  %v5730_v13 = vrot.slane %v5729_v55, 1  ;;  %6216 = vmatprep.subr.mxu0 %v6845_v33  ;;  %6448 = vmatprep.subr.mxu1 %v6845_v33  ;;  %v6139_v27 = vsel %vm6125_vm5, %v5666_v4, %v5653_v42  ;;  %v5610_v7 = vmul.f32 %v11243_v37, %v12734_v44  ;;  %v12745_v49 = vld [vmem:[#allocation110_spill] sm:$0xff] }
 0x64f   : > { %v5612_v18 = vmul.f32 %v11243_v37, %v12735_v6  ;;  %6217 = vmatpush1.msra.mxu0 %v12736_v58  ;;  %6468 = vmatpush1.msra.mxu1 %v12736_v58  ;;  %v5743_v26 = vrot.slane %v5742_v53, 1  ;;  %v6140_v2 = vsel %vm6127_vm6, %v5679_v41, %v6139_v27  ;;  %v5614_v50 = vmul.f32 %v11243_v37, %v12737_v21 }
 0x650   : > { %v5731_v43 = vadd.f32 %v5730_v13, %v5729_v55  ;;  %6218 = vmatprep.subr.mxu0 %v6845_v33  ;;  %6449 = vmatprep.subr.mxu1 %v6845_v33  ;;  %v6141_v40 = vsel %vm6129_vm7, %v5692_v39, %v6140_v2  ;;  %v5616_v8 = vmul.f32 %v11243_v37, %v12738_v3  ;;  %v5855_v9 = vsel %vm5350_vm4, %v5610_v7, 0.0  ;;  %v12746_v13 = vld [vmem:[#allocation82_spill] sm:$0xff] }
 0x651   : > { %v5618_v25 = vmul.f32 %v11243_v37, %v12739_v59  ;;  %6219 = vmatpush1.msra.mxu0 %v12740_v38  ;;  %6469 = vmatpush1.msra.mxu1 %v12740_v38  ;;  %v5744_v16 = vadd.f32 %v5743_v26, %v5742_v53  ;;  %v6142_v45 = vsel %vm6131_vm8, %v5705_v15, %v6141_v40  ;;  %v5856_v22 = vrot.slane %v5855_v9, 4  ;;  %v12747_v26 = vld [vmem:[#allocation106_spill] sm:$0xff] }
 0x652   : > { %v5620_v30 = vmul.f32 %v11243_v37, %v12741_v10  ;;  %6220 = vmatprep.subr.mxu0 %v6845_v33  ;;  %6450 = vmatprep.subr.mxu1 %v6845_v33  ;;  %v6143_v54 = vsel %vm6133_vm9, %v5718_v62, %v6142_v45  ;;  %v5622_v20 = vmul.f32 %v11243_v37, %v12742_v23  ;;  %v5868_v48 = vsel %vm5350_vm4, %v5612_v18, 0.0  ;;  %v12749_v23 = vld [vmem:[#allocation72_spill] sm:$0xff] }
 0x653   : > { %v5624_v32 = vmul.f32 %v11243_v37, %v12743_v5  ;;  %6221 = vmatpush1.msra.mxu0 %v12744_v51  ;;  %6470 = vmatpush1.msra.mxu1 %v12744_v51  ;;  %v6144_v63 = vsel %vm6135_vm10, %v5731_v43, %v6143_v54  ;;  %v5857_v1 = vadd.f32 %v5856_v22, %v5855_v9  ;;  %v5869_v52 = vrot.slane %v5868_v48, 4 }
 0x654   : > { %v5881_v14 = vsel %vm5350_vm4, %v5614_v50, 0.0  ;;  %6222 = vmatprep.subr.mxu0 %v6845_v33  ;;  %6451 = vmatprep.subr.mxu1 %v6845_v33  ;;  %v11345_v46 = vsel %vm6137_vm11, %v5744_v16, %v6144_v63  ;;  %v5894_v4 = vsel %vm5350_vm4, %v5616_v8, 0.0  ;;  %v5907_v24 = vsel %vm5350_vm4, %v5618_v25, 0.0  ;;  %v12748_v25 = vld [vmem:[#allocation107_spill] sm:$0xff] }
 0x655   : > { %v5882_v42 = vrot.slane %v5881_v14, 4  ;;  %6223 = vmatpush1.msra.mxu0 %v12745_v49  ;;  %6471 = vmatpush1.msra.mxu1 %v12745_v49  ;;  %v5858_v36 = vrot.slane %v5857_v1, 2  ;;  %v5870_v41 = vadd.f32 %v5869_v52, %v5868_v48  ;;  %v5895_v39 = vrot.slane %v5894_v4, 4  ;;  %v12750_v48 = vld [vmem:[#allocation32_spill] sm:$0xff] }
 0x656   : > { %v5908_v55 = vrot.slane %v5907_v24, 4  ;;  %6224 = vmatprep.subr.mxu0 %v6845_v33  ;;  %6452 = vmatprep.subr.mxu1 %v6845_v33  ;;  %v5920_v15 = vsel %vm5350_vm4, %v5620_v30, 0.0  ;;  %v5933_v62 = vsel %vm5350_vm4, %v5622_v20, 0.0  ;;  %v5946_v31 = vsel %vm5350_vm4, %v5624_v32, 0.0 }
 0x657   : > { %v5883_v28 = vadd.f32 %v5882_v42, %v5881_v14  ;;  %6225 = vmatpush1.msra.mxu0 %v12746_v13  ;;  %6472 = vmatpush1.msra.mxu1 %v12746_v13  ;;  %v5859_v53 = vadd.f32 %v5858_v36, %v5857_v1  ;;  %v5871_v27 = vrot.slane %v5870_v41, 2  ;;  %v5896_v44 = vadd.f32 %v5895_v39, %v5894_v4  ;;  %v12751_v42 = vld [vmem:[#allocation97_spill] sm:$0xff]  ;;  %v12754_v13 = vld [vmem:[#allocation139_spill] sm:$0xff] }
 0x658   : > { %v5909_v7 = vadd.f32 %v5908_v55, %v5907_v24  ;;  %6226 = vmatprep.subr.mxu0 %v6845_v33  ;;  %6453 = vmatprep.subr.mxu1 %v6845_v33  ;;  %v5921_v18 = vrot.slane %v5920_v15, 4  ;;  %v5934_v58 = vrot.slane %v5933_v62, 4  ;;  %v5947_v43 = vrot.slane %v5946_v31, 4 }
 0x659   : > { %v5884_v6 = vrot.slane %v5883_v28, 2  ;;  %6227 = vmatpush1.msra.mxu0 %v12747_v26  ;;  %6473 = vmatpush1.msra.mxu1 %v12747_v26  ;;  %v5860_v2 = vrot.slane %v5859_v53, 1  ;;  %v5872_v21 = vadd.f32 %v5871_v27, %v5870_v41  ;;  %v5897_v50 = vrot.slane %v5896_v44, 2 }
 0x65a   : > { %v5910_v40 = vrot.slane %v5909_v7, 2  ;;  %6228 = vmatprep.subr.mxu0 %v6845_v33  ;;  %6454 = vmatprep.subr.mxu1 %v6845_v33  ;;  %v5922_v8 = vadd.f32 %v5921_v18, %v5920_v15  ;;  %v5935_v59 = vadd.f32 %v5934_v58, %v5933_v62  ;;  %v5948_v54 = vadd.f32 %v5947_v43, %v5946_v31  ;;  %v12753_v62 = vld [vmem:[#allocation104_spill] sm:$0xff]  ;;  %v12755_v58 = vld [vmem:[#allocation98_spill] sm:$0xff] }
 0x65b   : > { %v5885_v3 = vadd.f32 %v5884_v6, %v5883_v28  ;;  %6229 = vmatpush1.msra.mxu0 %v12748_v25  ;;  %6474 = vmatpush1.msra.mxu1 %v12748_v25  ;;  %v5861_v9 = vadd.f32 %v5860_v2, %v5859_v53  ;;  %v5873_v38 = vrot.slane %v5872_v21, 1  ;;  %v5898_v16 = vadd.f32 %v5897_v50, %v5896_v44  ;;  %v12752_v28 = vld [vmem:[#allocation78_spill] sm:$0xff]  ;;  %v12756_v43 = vld [vmem:[#allocation140_spill] sm:$0xff]  ;;  %v12758_v50 = vld [vmem:[#allocation123_spill] sm:$0xff] }
 0x65c   : > { %v5911_v45 = vadd.f32 %v5910_v40, %v5909_v7  ;;  %6230 = vmatprep.subr.mxu0 %v6845_v33  ;;  %6455 = vmatprep.subr.mxu1 %v6845_v33  ;;  %v5923_v30 = vrot.slane %v5922_v8, 2  ;;  %v5936_v22 = vrot.slane %v5935_v59, 2  ;;  %v5577_v51 = vmul.f32 %v11239_v34, %v12750_v48  ;;  %v12757_v2 = vld [vmem:[#allocation108_spill] sm:$0xff]  ;;  %v12759_v25 = vld [vmem:[#allocation102_spill] sm:$0xff] }
 0x65d   : > { %v5886_v10 = vrot.slane %v5885_v3, 1  ;;  %6231 = vmatpush1.msra.mxu0 %v12749_v23  ;;  %6475 = vmatpush1.msra.mxu1 %v12749_v23  ;;  %v5874_v20 = vadd.f32 %v5873_v38, %v5872_v21  ;;  %v5899_v5 = vrot.slane %v5898_v16, 1  ;;  %v5949_v14 = vrot.slane %v5948_v54, 2 }
 0x65e   : > { %v5912_v32 = vrot.slane %v5911_v45, 1  ;;  %6256 = vmatprep.subr.mxu0 %v6845_v33  ;;  %6456 = vmatprep.subr.mxu1 %v6845_v33  ;;  %v5924_v1 = vadd.f32 %v5923_v30, %v5922_v8  ;;  %v5937_v52 = vadd.f32 %v5936_v22, %v5935_v59  ;;  %v5579_v31 = vmul.f32 %v11239_v34, %v12753_v62 }
 0x65f   : > { %v5887_v63 = vadd.f32 %v5886_v10, %v5885_v3  ;;  %6257 = vmatpush2.msra.mxu0 %v12751_v42  ;;  %6476 = vmatpush2.msra.mxu1 %v12751_v42  ;;  %v5900_v4 = vadd.f32 %v5899_v5, %v5898_v16  ;;  %v6167_v49 = vsel %vm6125_vm5, %v5874_v20, %v5861_v9  ;;  %v5641_v27 = vrot.slane %v5577_v51, 4  ;;  %v12760_v16 = vld [vmem:[#allocation49_spill] sm:$0xff]  ;;  %v12761_v10 = vld [vmem:[#allocation112_spill] sm:$0xff] }
 0x660   : > { %v5913_v24 = vadd.f32 %v5912_v32, %v5911_v45  ;;  %6258 = vmatprep.subr.mxu0 %v6845_v33  ;;  %6457 = vmatprep.subr.mxu1 %v6845_v33  ;;  %v5925_v36 = vrot.slane %v5924_v1, 1  ;;  %v5938_v41 = vrot.slane %v5937_v52, 1  ;;  %v5950_v39 = vadd.f32 %v5949_v14, %v5948_v54 }
 0x661   : > { %v6168_v55 = vsel %vm6127_vm6, %v5887_v63, %v6167_v49  ;;  %6259 = vmatpush2.msra.mxu0 %v12752_v28  ;;  %6477 = vmatpush2.msra.mxu1 %v12752_v28  ;;  %v5581_v53 = vmul.f32 %v11239_v34, %v12754_v13  ;;  %v5583_v26 = vmul.f32 %v11239_v34, %v12756_v43  ;;  %v5654_v3 = vrot.slane %v5579_v31, 4 }
 0x662   : > { %v6169_v15 = vsel %vm6129_vm7, %v5900_v4, %v6168_v55  ;;  %6260 = vmatprep.subr.mxu0 %v6845_v33  ;;  %6458 = vmatprep.subr.mxu1 %v6845_v33  ;;  %v5926_v44 = vadd.f32 %v5925_v36, %v5924_v1  ;;  %v5939_v7 = vadd.f32 %v5938_v41, %v5937_v52  ;;  %v5951_v6 = vrot.slane %v5950_v39, 1 }
 0x663   : > { %v6170_v18 = vsel %vm6131_vm8, %v5913_v24, %v6169_v15  ;;  %6261 = vmatpush2.msra.mxu0 %v12755_v58  ;;  %6478 = vmatpush2.msra.mxu1 %v12755_v58  ;;  %v5585_v21 = vmul.f32 %v11239_v34, %v12757_v2  ;;  %v5587_v40 = vmul.f32 %v11239_v34, %v12758_v50  ;;  %v5667_v38 = vrot.slane %v5581_v53, 4 }
 0x664   : > { %6262 = vmatprep.subr.mxu0 %v6845_v33  ;;  %6459 = vmatprep.subr.mxu1 %v6845_v33  ;;  %v5952_v8 = vadd.f32 %v5951_v6, %v5950_v39  ;;  %v6171_v59 = vsel %vm6133_vm9, %v5926_v44, %v6170_v18  ;;  %v5589_v9 = vmul.f32 %v11239_v34, %v12759_v25  ;;  %v5680_v54 = vrot.slane %v5583_v26, 4 }
 0x665   : > { %6263 = vmatpush2.msra.mxu0 %v12760_v16  ;;  %6479 = vmatpush2.msra.mxu1 %v12760_v16  ;;  %v6172_v45 = vsel %vm6135_vm10, %v5939_v7, %v6171_v59  ;;  %v5591_v30 = vmul.f32 %v11239_v34, %v12761_v10  ;;  %v5642_v22 = vadd.f32 %v5641_v27, %v5577_v51  ;;  %v5693_v5 = vrot.slane %v5585_v21, 4  ;;  %v12763_v16 = vld [vmem:[#allocation115_spill] sm:$0xff] }
 0x666   : > { %6430 = vmatprep.mubr.msk.f32.mxu0 %vm5350_vm4, %v11345_v46  ;;  %v6173_v33 = vsel %vm6137_vm11, %v5952_v8, %v6172_v45  ;;  %v5655_v23 = vadd.f32 %v5654_v3, %v5579_v31  ;;  %v5668_v20 = vadd.f32 %v5667_v38, %v5581_v53  ;;  %v5681_v48 = vadd.f32 %v5680_v54, %v5583_v26  ;;  %v12762_v8 = vld [vmem:[#allocation93_spill] sm:$0xff]  ;;  %v12764_v54 = vld [vmem:[#allocation87_spill] sm:$0xff] }
 0x667   : > { %6432 = vmatprep.mubr.msk.f32.mxu1 %vm5350_vm4, %v6173_v33  ;;  %v5643_v32 = vrot.slane %v5642_v22, 2  ;;  %v5706_v63 = vrot.slane %v5587_v40, 4  ;;  %v5719_v1 = vrot.slane %v5589_v9, 4  ;;  %v5694_v42 = vadd.f32 %v5693_v5, %v5585_v21  ;;  %v12765_v5 = vld [vmem:[#allocation118_spill] sm:$0xff] }
 0x668   : > { %v5656_v52 = vrot.slane %v5655_v23, 2  ;;  %v5669_v14 = vrot.slane %v5668_v20, 2  ;;  %v5732_v4 = vrot.slane %v5591_v30, 4  ;;  %v5682_v24 = vrot.slane %v5681_v48, 2 }
 0x669   : > { %v5644_v51 = vadd.f32 %v5643_v32, %v5642_v22  ;;  %v5707_v49 = vadd.f32 %v5706_v63, %v5587_v40  ;;  %v5720_v36 = vadd.f32 %v5719_v1, %v5589_v9  ;;  %v5695_v39 = vrot.slane %v5694_v42, 2 }
 0x66a   : > { %v5657_v46 = vadd.f32 %v5656_v52, %v5655_v23  ;;  %v5670_v41 = vadd.f32 %v5669_v14, %v5668_v20  ;;  %v5733_v55 = vadd.f32 %v5732_v4, %v5591_v30  ;;  %v5683_v15 = vadd.f32 %v5682_v24, %v5681_v48  ;;  %v12766_v48 = vld [vmem:[#allocation17_spill] sm:$0xff]  ;;  %v12767_v52 = vld [vmem:[#allocation23_spill] sm:$0xff] }
 0x66b   : > { %v5645_v28 = vrot.slane %v5644_v51, 1  ;;  %v5708_v62 = vrot.slane %v5707_v49, 2  ;;  %v5721_v31 = vrot.slane %v5720_v36, 2  ;;  %v5696_v27 = vadd.f32 %v5695_v39, %v5694_v42  ;;  %v12768_v42 = vld [vmem:[#allocation57_spill] sm:$0xff] }
 0x66c   : > { %v5658_v13 = vrot.slane %v5657_v46, 1  ;;  %v5671_v53 = vrot.slane %v5670_v41, 1  ;;  %v5734_v44 = vrot.slane %v5733_v55, 2  ;;  %v5684_v6 = vrot.slane %v5683_v15, 1 }
 0x66d   : > { %v5646_v7 = vadd.f32 %v5645_v28, %v5644_v51  ;;  %v5709_v18 = vadd.f32 %v5708_v62, %v5707_v49  ;;  %v5722_v58 = vadd.f32 %v5721_v31, %v5720_v36  ;;  %v5697_v2 = vrot.slane %v5696_v27, 1  ;;  %v12769_v51 = vld [vmem:[#allocation47_spill] sm:$0xff] }
 0x66e   : > { %v5659_v43 = vadd.f32 %v5658_v13, %v5657_v46  ;;  %v5672_v26 = vadd.f32 %v5671_v53, %v5670_v41  ;;  %v5735_v21 = vadd.f32 %v5734_v44, %v5733_v55  ;;  %v5685_v50 = vadd.f32 %v5684_v6, %v5683_v15 }
 0x66f   : > { %v5710_v40 = vrot.slane %v5709_v18, 1  ;;  %v5723_v3 = vrot.slane %v5722_v58, 1  ;;  %v5609_v59 = vmul.f32 %v11239_v34, %v12762_v8  ;;  %v5698_v25 = vadd.f32 %v5697_v2, %v5696_v27 }
 0x670   : > { %v5736_v9 = vrot.slane %v5735_v21, 1  ;;  %v6126_v38 = vsel %vm6125_vm5, %v5659_v43, %v5646_v7  ;;  %v5611_v45 = vmul.f32 %v11239_v34, %v12763_v16  ;;  %v5613_v33 = vmul.f32 %v11239_v34, %v12764_v54 }
 0x671   : > { %v5711_v10 = vadd.f32 %v5710_v40, %v5709_v18  ;;  %v5724_v30 = vadd.f32 %v5723_v3, %v5722_v58  ;;  %v6128_v22 = vsel %vm6127_vm6, %v5672_v26, %v6126_v38  ;;  %v5615_v32 = vmul.f32 %v11239_v34, %v12765_v5 }
 0x672   : > { %v5737_v23 = vadd.f32 %v5736_v9, %v5735_v21  ;;  %v6130_v20 = vsel %vm6129_vm7, %v5685_v50, %v6128_v22  ;;  %v5617_v63 = vmul.f32 %v11239_v34, %v12766_v48  ;;  %v5619_v14 = vmul.f32 %v11239_v34, %v12767_v52 }
 0x673   : > { %v6132_v1 = vsel %vm6131_vm8, %v5698_v25, %v6130_v20  ;;  %v5621_v4 = vmul.f32 %v11239_v34, %v12768_v42  ;;  %v5623_v24 = vmul.f32 %v11239_v34, %v12769_v51  ;;  %v5849_v36 = vrot.slane %v5609_v59, 4 }
 0x674   : > { %v6134_v49 = vsel %vm6133_vm9, %v5711_v10, %v6132_v1  ;;  %v5862_v46 = vrot.slane %v5611_v45, 4  ;;  %v5875_v41 = vrot.slane %v5613_v33, 4  ;;  %v5888_v55 = vrot.slane %v5615_v32, 4 }
 0x675   : > { %v6136_v39 = vsel %vm6135_vm10, %v5724_v30, %v6134_v49  ;;  %v5901_v28 = vrot.slane %v5617_v63, 4  ;;  %v5914_v15 = vrot.slane %v5619_v14, 4  ;;  %v5850_v31 = vadd.f32 %v5849_v36, %v5609_v59  ;;  %v12770_v49 = vld [vmem:[#allocation71_spill] sm:$0xff] }
 0x676   : > { %v6138_v62 = vsel %vm6137_vm11, %v5737_v23, %v6136_v39  ;;  %v5863_v13 = vadd.f32 %v5862_v46, %v5611_v45  ;;  %v5876_v53 = vadd.f32 %v5875_v41, %v5613_v33  ;;  %v5889_v27 = vadd.f32 %v5888_v55, %v5615_v32  ;;  %v12771_v46 = vld [vmem:[#allocation54_spill] sm:$0xff] }
 0x677   : > { %6265 = vmatmul.mubr.f32.vlgmr.msra.gmra.mxu0 %v6138_v62  ;;  %v5902_v44 = vadd.f32 %v5901_v28, %v5617_v63  ;;  %v5915_v7 = vadd.f32 %v5914_v15, %v5619_v14  ;;  %v5927_v6 = vrot.slane %v5621_v4, 4  ;;  %v5851_v18 = vrot.slane %v5850_v31, 2  ;;  %v12772_v28 = vld [vmem:[#allocation130_spill] sm:$0xff]  ;;  %v12773_v62 = vld [vmem:[#allocation99_spill] sm:$0xff] }
 0x678   : > { %v5864_v58 = vrot.slane %v5863_v13, 2  ;;  %v5877_v43 = vrot.slane %v5876_v53, 2  ;;  %v5940_v26 = vrot.slane %v5623_v24, 4  ;;  %v5890_v2 = vrot.slane %v5889_v27, 2 }
 0x679   : > { %v5903_v21 = vrot.slane %v5902_v44, 2  ;;  %v5916_v50 = vrot.slane %v5915_v7, 2  ;;  %v5928_v40 = vadd.f32 %v5927_v6, %v5621_v4  ;;  %v5852_v3 = vadd.f32 %v5851_v18, %v5850_v31 }
 0x67a   : > { %v5865_v8 = vadd.f32 %v5864_v58, %v5863_v13  ;;  %v5878_v25 = vadd.f32 %v5877_v43, %v5876_v53  ;;  %v5941_v9 = vadd.f32 %v5940_v26, %v5623_v24  ;;  %v5891_v59 = vadd.f32 %v5890_v2, %v5889_v27  ;;  %v12774_v27 = vld [vmem:[#allocation12_spill] sm:$0xff]  ;;  %v12776_v58 = vld [vmem:[#allocation51_spill] sm:$0xff] }
 0x67b   : > { %v5904_v38 = vadd.f32 %v5903_v21, %v5902_v44  ;;  %v5917_v16 = vadd.f32 %v5916_v50, %v5915_v7  ;;  %v5929_v45 = vrot.slane %v5928_v40, 2  ;;  %v5853_v10 = vrot.slane %v5852_v3, 1  ;;  %v12775_v7 = vld [vmem:[#allocation114_spill] sm:$0xff]  ;;  %v12777_v26 = vld [vmem:[#allocation60_spill] sm:$0xff] }
 0x67c   : > { %v5866_v30 = vrot.slane %v5865_v8, 1  ;;  %v5879_v22 = vrot.slane %v5878_v25, 1  ;;  %v5942_v54 = vrot.slane %v5941_v9, 2  ;;  %v5892_v33 = vrot.slane %v5891_v59, 1 }
 0x67d   : > { %v5905_v23 = vrot.slane %v5904_v38, 1  ;;  %v5918_v20 = vrot.slane %v5917_v16, 1  ;;  %v5930_v5 = vadd.f32 %v5929_v45, %v5928_v40  ;;  %v5854_v32 = vadd.f32 %v5853_v10, %v5852_v3 }
 0x67e   : > { %v5867_v48 = vadd.f32 %v5866_v30, %v5865_v8  ;;  %v5880_v63 = vadd.f32 %v5879_v22, %v5878_v25  ;;  %v5943_v1 = vadd.f32 %v5942_v54, %v5941_v9  ;;  %v5893_v52 = vadd.f32 %v5892_v33, %v5891_v59 }
 0x67f   : > { %v5906_v14 = vadd.f32 %v5905_v23, %v5904_v38  ;;  %v5919_v42 = vadd.f32 %v5918_v20, %v5917_v16  ;;  %v5931_v4 = vrot.slane %v5930_v5, 1  ;;  %v5594_v36 = vmul.f32 %v11243_v37, %v12770_v49 }
 0x680   : > { %v5944_v51 = vrot.slane %v5943_v1, 1  ;;  %v6160_v24 = vsel %vm6125_vm5, %v5867_v48, %v5854_v32  ;;  %v5596_v41 = vmul.f32 %v11243_v37, %v12771_v46  ;;  %v5598_v15 = vmul.f32 %v11243_v37, %v12772_v28 }
 0x681   : > { %v5932_v39 = vadd.f32 %v5931_v4, %v5930_v5  ;;  %v6161_v55 = vsel %vm6127_vm6, %v5880_v63, %v6160_v24  ;;  %v5600_v31 = vmul.f32 %v11243_v37, %v12773_v62  ;;  %v5602_v44 = vmul.f32 %v11243_v37, %v12774_v27 }
 0x682   : > { %v5945_v13 = vadd.f32 %v5944_v51, %v5943_v1  ;;  %v6162_v53 = vsel %vm6129_vm7, %v5893_v52, %v6161_v55  ;;  %v5604_v6 = vmul.f32 %v11243_v37, %v12775_v7  ;;  %v5606_v43 = vmul.f32 %v11243_v37, %v12776_v58 }
 0x683   : > { %v6163_v18 = vsel %vm6131_vm8, %v5906_v14, %v6162_v53  ;;  %v5608_v2 = vmul.f32 %v11243_v37, %v12777_v26  ;;  %v5751_v21 = vsel %vm5350_vm4, %v5594_v36, 0.0  ;;  %v5764_v3 = vsel %vm5350_vm4, %v5596_v41, 0.0 }
 0x684   : > { %v6164_v50 = vsel %vm6133_vm9, %v5919_v42, %v6163_v18  ;;  %v5752_v40 = vrot.slane %v5751_v21, 4  ;;  %v5777_v8 = vsel %vm5350_vm4, %v5598_v15, 0.0  ;;  %v5765_v9 = vrot.slane %v5764_v3, 4 }
 0x685   : > { %v6165_v25 = vsel %vm6135_vm10, %v5932_v39, %v6164_v50  ;;  %v5778_v59 = vrot.slane %v5777_v8, 4  ;;  %v5790_v38 = vsel %vm5350_vm4, %v5600_v31, 0.0  ;;  %v5803_v30 = vsel %vm5350_vm4, %v5602_v44, 0.0 }
 0x686   : > { %v6166_v16 = vsel %vm6137_vm11, %v5945_v13, %v6165_v25  ;;  %v5753_v45 = vadd.f32 %v5752_v40, %v5751_v21  ;;  %v5791_v10 = vrot.slane %v5790_v38, 4  ;;  %v5766_v22 = vadd.f32 %v5765_v9, %v5764_v3  ;;  %v12778_v40 = vld [vmem:[#allocation33_spill] sm:$0xff] }
 0x687   : > { %6275 = vmatmul.mubr.f32.vlgmr.msra.gmra.mxu1 %v6166_v16  ;;  %v5779_v54 = vadd.f32 %v5778_v59, %v5777_v8  ;;  %v5804_v33 = vrot.slane %v5803_v30, 4  ;;  %v5816_v23 = vsel %vm5350_vm4, %v5604_v6, 0.0  ;;  %v5829_v48 = vsel %vm5350_vm4, %v5606_v43, 0.0 }
 0x688   : > { %v5754_v20 = vrot.slane %v5753_v45, 2  ;;  %v5792_v5 = vadd.f32 %v5791_v10, %v5790_v38  ;;  %v5817_v32 = vrot.slane %v5816_v23, 4  ;;  %v5767_v63 = vrot.slane %v5766_v22, 2 }
 0x689   : > { %v5780_v1 = vrot.slane %v5779_v54, 2  ;;  %v5805_v52 = vadd.f32 %v5804_v33, %v5803_v30  ;;  %v5830_v14 = vrot.slane %v5829_v48, 4  ;;  %v5842_v24 = vsel %vm5350_vm4, %v5608_v2, 0.0 }
 0x68a   : > { %v5755_v42 = vadd.f32 %v5754_v20, %v5753_v45  ;;  %v5793_v4 = vrot.slane %v5792_v5, 2  ;;  %v5818_v51 = vadd.f32 %v5817_v32, %v5816_v23  ;;  %v5768_v49 = vadd.f32 %v5767_v63, %v5766_v22 }
 0x68b   : > { %v5781_v36 = vadd.f32 %v5780_v1, %v5779_v54  ;;  %v5806_v46 = vrot.slane %v5805_v52, 2  ;;  %v5831_v41 = vadd.f32 %v5830_v14, %v5829_v48  ;;  %v5843_v15 = vrot.slane %v5842_v24, 4 }
 0x68c   : > { %v5756_v39 = vrot.slane %v5755_v42, 1  ;;  %v5794_v55 = vadd.f32 %v5793_v4, %v5792_v5  ;;  %v5819_v28 = vrot.slane %v5818_v51, 2  ;;  %v5769_v62 = vrot.slane %v5768_v49, 1 }
 0x68d   : > { %v5782_v31 = vrot.slane %v5781_v36, 1  ;;  %v5807_v13 = vadd.f32 %v5806_v46, %v5805_v52  ;;  %v5832_v53 = vrot.slane %v5831_v41, 2  ;;  %v5844_v6 = vadd.f32 %v5843_v15, %v5842_v24 }
 0x68e   : > { %v5757_v27 = vadd.f32 %v5756_v39, %v5755_v42  ;;  %v5795_v44 = vrot.slane %v5794_v55, 1  ;;  %v5820_v7 = vadd.f32 %v5819_v28, %v5818_v51  ;;  %v5770_v18 = vadd.f32 %v5769_v62, %v5768_v49 }
 0x68f   : > { %v5783_v58 = vadd.f32 %v5782_v31, %v5781_v36  ;;  %v5808_v43 = vrot.slane %v5807_v13, 1  ;;  %v5833_v26 = vadd.f32 %v5832_v53, %v5831_v41  ;;  %v5845_v50 = vrot.slane %v5844_v6, 2 }
 0x690   : > { %v5796_v2 = vadd.f32 %v5795_v44, %v5794_v55  ;;  %v5821_v21 = vrot.slane %v5820_v7, 1  ;;  %v5626_v3 = vmul.f32 %v11243_v37, %v12778_v40  ;;  %v6153_v9 = vsel %vm6125_vm5, %v5770_v18, %v5757_v27 }
 0x691   : > { %v5809_v8 = vadd.f32 %v5808_v43, %v5807_v13  ;;  %v5834_v25 = vrot.slane %v5833_v26, 1  ;;  %v5628_v59 = vmul.f32 %v11243_v37, %v10947_v61  ;;  %v5846_v16 = vadd.f32 %v5845_v50, %v5844_v6 }
 0x692   : > { %v5822_v38 = vadd.f32 %v5821_v21, %v5820_v7  ;;  %v6154_v45 = vsel %vm6127_vm6, %v5783_v58, %v6153_v9  ;;  %v5630_v10 = vmul.f32 %v11243_v37, %v11016_v47  ;;  %v5632_v54 = vmul.f32 %v11243_v37, %v11096_v35 }
 0x693   : > { %v5835_v30 = vadd.f32 %v5834_v25, %v5833_v26  ;;  %v6155_v22 = vsel %vm6129_vm7, %v5796_v2, %v6154_v45  ;;  %v5634_v33 = vmul.f32 %v11243_v37, %v11181_v56  ;;  %v5847_v23 = vrot.slane %v5846_v16, 1 }
 0x694   : > { %v6156_v20 = vsel %vm6131_vm8, %v5809_v8, %v6155_v22  ;;  %v5636_v61 = vmul.f32 %v11243_v37, %v11169_v29  ;;  %v5638_v5 = vmul.f32 %v11243_v37, %v11226_v60  ;;  %v5640_v32 = vmul.f32 %v11243_v37, %v11218_v19 }
 0x695   : > { %v6157_v47 = vsel %vm6133_vm9, %v5822_v38, %v6156_v20  ;;  %v5959_v48 = vsel %vm5350_vm4, %v5626_v3, 0.0  ;;  %v5972_v35 = vsel %vm5350_vm4, %v5628_v59, 0.0  ;;  %v5848_v63 = vadd.f32 %v5847_v23, %v5846_v16  ;;  %v12779_v20 = vld [vmem:[#allocation109_spill] sm:$0xff] }
 0x696   : > { %v6158_v56 = vsel %vm6135_vm10, %v5835_v30, %v6157_v47  ;;  %v5960_v1 = vrot.slane %v5959_v48, 4  ;;  %v5973_v52 = vrot.slane %v5972_v35, 4  ;;  %v5985_v14 = vsel %vm5350_vm4, %v5630_v10, 0.0 }
 0x697   : > { %v5998_v29 = vsel %vm5350_vm4, %v5632_v54, 0.0  ;;  %v6011_v60 = vsel %vm5350_vm4, %v5634_v33, 0.0  ;;  %v6024_v42 = vsel %vm5350_vm4, %v5636_v61, 0.0  ;;  %v6159_v4 = vsel %vm6137_vm11, %v5848_v63, %v6158_v56  ;;  %v12780_v56 = vld [vmem:[#allocation56_spill] sm:$0xff] }
 0x698   : > { %v5961_v19 = vadd.f32 %v5960_v1, %v5959_v48  ;;  %v5974_v37 = vadd.f32 %v5973_v52, %v5972_v35  ;;  %v5986_v51 = vrot.slane %v5985_v14, 4  ;;  %6431 = vmatprep.mubr.msk.f32.mxu0 %vm5350_vm4, %v6159_v4  ;;  %v5999_v24 = vrot.slane %v5998_v29, 4  ;;  %v12781_v52 = vld [vmem:[#allocation144_spill] sm:$0xff] }
 0x699   : > { %v6012_v49 = vrot.slane %v6011_v60, 4  ;;  %v6025_v36 = vrot.slane %v6024_v42, 4  ;;  %v6037_v46 = vsel %vm5350_vm4, %v5638_v5, 0.0  ;;  %v6050_v13 = vsel %vm5350_vm4, %v5640_v32, 0.0 }
 0x69a   : > { %v5962_v41 = vrot.slane %v5961_v19, 2  ;;  %v5975_v39 = vrot.slane %v5974_v37, 2  ;;  %v5987_v55 = vadd.f32 %v5986_v51, %v5985_v14  ;;  %v6038_v28 = vrot.slane %v6037_v46, 4 }
 0x69b   : > { %v6000_v15 = vadd.f32 %v5999_v24, %v5998_v29  ;;  %v6013_v62 = vadd.f32 %v6012_v49, %v6011_v60  ;;  %v6026_v31 = vadd.f32 %v6025_v36, %v6024_v42  ;;  %v6051_v43 = vrot.slane %v6050_v13, 4  ;;  %v12782_v42 = vld [vmem:[#allocation101_spill] sm:$0xff]  ;;  %v12785_v36 = vld [vmem:[#allocation35_spill] sm:$0xff] }
 0x69c   : > { %v5963_v53 = vadd.f32 %v5962_v41, %v5961_v19  ;;  %v5976_v27 = vadd.f32 %v5975_v39, %v5974_v37  ;;  %v5988_v44 = vrot.slane %v5987_v55, 2  ;;  %v6039_v7 = vadd.f32 %v6038_v28, %v6037_v46  ;;  %v12783_v19 = vld [vmem:[#allocation68_spill] sm:$0xff]  ;;  %v12784_v24 = vld [vmem:[#allocation117_spill] sm:$0xff] }
 0x69d   : > { %v6001_v6 = vrot.slane %v6000_v15, 2  ;;  %v6014_v18 = vrot.slane %v6013_v62, 2  ;;  %v6027_v58 = vrot.slane %v6026_v31, 2  ;;  %v6052_v25 = vadd.f32 %v6051_v43, %v6050_v13  ;;  %v12786_v41 = vld [vmem:[#allocation124_spill] sm:$0xff] }
 0x69e   : > { %v5964_v26 = vrot.slane %v5963_v53, 1  ;;  %v5977_v2 = vrot.slane %v5976_v27, 1  ;;  %v5989_v21 = vadd.f32 %v5988_v44, %v5987_v55  ;;  %v6040_v50 = vrot.slane %v6039_v7, 2 }
 0x69f   : > { %v6002_v40 = vadd.f32 %v6001_v6, %v6000_v15  ;;  %v6015_v3 = vadd.f32 %v6014_v18, %v6013_v62  ;;  %v6028_v8 = vadd.f32 %v6027_v58, %v6026_v31  ;;  %v6053_v22 = vrot.slane %v6052_v25, 2 }
 0x6a0   : > { %v5965_v9 = vadd.f32 %v5964_v26, %v5963_v53  ;;  %v5978_v59 = vadd.f32 %v5977_v2, %v5976_v27  ;;  %v5990_v38 = vrot.slane %v5989_v21, 1  ;;  %v6041_v16 = vadd.f32 %v6040_v50, %v6039_v7 }
 0x6a1   : > { %v6003_v45 = vrot.slane %v6002_v40, 1  ;;  %v6016_v10 = vrot.slane %v6015_v3, 1  ;;  %v6029_v30 = vrot.slane %v6028_v8, 1  ;;  %v5593_v61 = vmul.f32 %v11239_v34, %v12779_v20 }
 0x6a2   : > { %v5991_v54 = vadd.f32 %v5990_v38, %v5989_v21  ;;  %v6042_v33 = vrot.slane %v6041_v16, 1  ;;  %v6181_v23 = vsel %vm6125_vm5, %v5978_v59, %v5965_v9  ;;  %v6054_v48 = vadd.f32 %v6053_v22, %v6052_v25 }
 0x6a3   : > { %v6004_v5 = vadd.f32 %v6003_v45, %v6002_v40  ;;  %v6017_v47 = vadd.f32 %v6016_v10, %v6015_v3  ;;  %v6030_v32 = vadd.f32 %v6029_v30, %v6028_v8  ;;  %v5595_v1 = vmul.f32 %v11239_v34, %v12780_v56 }
 0x6a4   : > { %v6043_v35 = vadd.f32 %v6042_v33, %v6041_v16  ;;  %v6182_v63 = vsel %vm6127_vm6, %v5991_v54, %v6181_v23  ;;  %v5597_v14 = vmul.f32 %v11239_v34, %v12781_v52  ;;  %v6055_v29 = vrot.slane %v6054_v48, 1 }
 0x6a5   : > { %v6183_v60 = vsel %vm6129_vm7, %v6004_v5, %v6182_v63  ;;  %v5599_v4 = vmul.f32 %v11239_v34, %v12782_v42  ;;  %v5601_v37 = vmul.f32 %v11239_v34, %v12783_v19  ;;  %v5603_v49 = vmul.f32 %v11239_v34, %v12784_v24 }
 0x6a6   : > { %v6184_v51 = vsel %vm6131_vm8, %v6017_v47, %v6183_v60  ;;  %v5605_v46 = vmul.f32 %v11239_v34, %v12785_v36  ;;  %v5607_v39 = vmul.f32 %v11239_v34, %v12786_v41  ;;  %v6056_v55 = vadd.f32 %v6055_v29, %v6054_v48 }
 0x6a7   : > { %v6185_v28 = vsel %vm6133_vm9, %v6030_v32, %v6184_v51  ;;  %v5745_v15 = vrot.slane %v5593_v61, 4  ;;  %v5758_v62 = vrot.slane %v5595_v1, 4  ;;  %v5771_v13 = vrot.slane %v5597_v14, 4  ;;  %v12787_v51 = vld [vmem:[#allocation10_spill] sm:$0xff] }
 0x6a8   : > { %v6186_v31 = vsel %vm6135_vm10, %v6043_v35, %v6185_v28  ;;  %v5784_v53 = vrot.slane %v5599_v4, 4  ;;  %v5797_v27 = vrot.slane %v5601_v37, 4  ;;  %v5810_v18 = vrot.slane %v5603_v49, 4 }
 0x6a9   : > { %v6187_v44 = vsel %vm6137_vm11, %v6056_v55, %v6186_v31  ;;  %v5746_v7 = vadd.f32 %v5745_v15, %v5593_v61  ;;  %v5759_v6 = vadd.f32 %v5758_v62, %v5595_v1  ;;  %v5772_v58 = vadd.f32 %v5771_v13, %v5597_v14 }
 0x6aa   : > { %6433 = vmatprep.mubr.msk.f32.mxu1 %vm5350_vm4, %v6187_v44  ;;  %v5785_v43 = vadd.f32 %v5784_v53, %v5599_v4  ;;  %v5798_v26 = vadd.f32 %v5797_v27, %v5601_v37  ;;  %v5823_v2 = vrot.slane %v5605_v46, 4  ;;  %v5811_v40 = vadd.f32 %v5810_v18, %v5603_v49 }
 0x6ab   : > { %v5747_v21 = vrot.slane %v5746_v7, 2  ;;  %v5760_v50 = vrot.slane %v5759_v6, 2  ;;  %v5836_v3 = vrot.slane %v5607_v39, 4  ;;  %v5773_v8 = vrot.slane %v5772_v58, 2 }
 0x6ac   : > { %v5786_v25 = vrot.slane %v5785_v43, 2  ;;  %v5799_v9 = vrot.slane %v5798_v26, 2  ;;  %v5824_v59 = vadd.f32 %v5823_v2, %v5605_v46  ;;  %v5812_v45 = vrot.slane %v5811_v40, 2  ;;  %v12788_v46 = vld [vmem:[#allocation38_spill] sm:$0xff] }
 0x6ad   : > { %v5748_v38 = vadd.f32 %v5747_v21, %v5746_v7  ;;  %v5761_v16 = vadd.f32 %v5760_v50, %v5759_v6  ;;  %v5837_v10 = vadd.f32 %v5836_v3, %v5607_v39  ;;  %v5774_v30 = vadd.f32 %v5773_v8, %v5772_v58  ;;  %v12789_v39 = vld [vmem:[#allocation39_spill] sm:$0xff] }
 0x6ae   : > { %v5787_v22 = vadd.f32 %v5786_v25, %v5785_v43  ;;  %v5800_v54 = vadd.f32 %v5799_v9, %v5798_v26  ;;  %v5825_v33 = vrot.slane %v5824_v59, 2  ;;  %v5813_v61 = vadd.f32 %v5812_v45, %v5811_v40 }
 0x6af   : > { %v5749_v23 = vrot.slane %v5748_v38, 1  ;;  %v5762_v20 = vrot.slane %v5761_v16, 1  ;;  %v5838_v5 = vrot.slane %v5837_v10, 2  ;;  %v5775_v47 = vrot.slane %v5774_v30, 1 }
 0x6b0   : > { %v5788_v32 = vrot.slane %v5787_v22, 1  ;;  %v5801_v48 = vrot.slane %v5800_v54, 1  ;;  %v5826_v35 = vadd.f32 %v5825_v33, %v5824_v59  ;;  %v5814_v1 = vrot.slane %v5813_v61, 1 }
 0x6b1   : > { %v5750_v63 = vadd.f32 %v5749_v23, %v5748_v38  ;;  %v5763_v56 = vadd.f32 %v5762_v20, %v5761_v16  ;;  %v5839_v52 = vadd.f32 %v5838_v5, %v5837_v10  ;;  %v5776_v14 = vadd.f32 %v5775_v47, %v5774_v30 }
 0x6b2   : > { %v5789_v29 = vadd.f32 %v5788_v32, %v5787_v22  ;;  %v5802_v60 = vadd.f32 %v5801_v48, %v5800_v54  ;;  %v5827_v42 = vrot.slane %v5826_v35, 1  ;;  %v5815_v4 = vadd.f32 %v5814_v1, %v5813_v61 }
 0x6b3   : > { %v5840_v19 = vrot.slane %v5839_v52, 1  ;;  %v6146_v37 = vsel %vm6125_vm5, %v5763_v56, %v5750_v63  ;;  %v5625_v24 = vmul.f32 %v11239_v34, %v12787_v51  ;;  %v5627_v41 = vmul.f32 %v11239_v34, %v12788_v46 }
 0x6b4   : > { %v5828_v49 = vadd.f32 %v5827_v42, %v5826_v35  ;;  %v6147_v36 = vsel %vm6127_vm6, %v5776_v14, %v6146_v37  ;;  %v5629_v55 = vmul.f32 %v11239_v34, %v12789_v39  ;;  %v5631_v62 = vmul.f32 %v11239_v34, %v11094_v0 }
 0x6b5   : > { %v5841_v28 = vadd.f32 %v5840_v19, %v5839_v52  ;;  %v6148_v15 = vsel %vm6129_vm7, %v5789_v29, %v6147_v36  ;;  %v5633_v31 = vmul.f32 %v11239_v34, %v11178_v17  ;;  %v5635_v53 = vmul.f32 %v11239_v34, %v11175_v11 }
 0x6b6   : > { %v6149_v13 = vsel %vm6131_vm8, %v5802_v60, %v6148_v15  ;;  %v5637_v27 = vmul.f32 %v11239_v34, %v11224_v12  ;;  %v5639_v44 = vmul.f32 %v11239_v34, %v11222_v57  ;;  %v5953_v6 = vrot.slane %v5625_v24, 4 }
 0x6b7   : > { %v6150_v7 = vsel %vm6133_vm9, %v5815_v4, %v6149_v13  ;;  %v5966_v18 = vrot.slane %v5627_v41, 4  ;;  %v5979_v58 = vrot.slane %v5629_v55, 4  ;;  %v5992_v43 = vrot.slane %v5631_v62, 4 }
 0x6b8   : > { %v6151_v0 = vsel %vm6135_vm10, %v5828_v49, %v6150_v7  ;;  %v6005_v17 = vrot.slane %v5633_v31, 4  ;;  %v6018_v26 = vrot.slane %v5635_v53, 4  ;;  %v5954_v21 = vadd.f32 %v5953_v6, %v5625_v24 }
 0x6b9   : > { %v6152_v2 = vsel %vm6137_vm11, %v5841_v28, %v6151_v0  ;;  %v5967_v11 = vadd.f32 %v5966_v18, %v5627_v41  ;;  %v5980_v50 = vadd.f32 %v5979_v58, %v5629_v55  ;;  %v5993_v12 = vadd.f32 %v5992_v43, %v5631_v62  ;;  %v6057_v62 = vld [vmem:[#allocation3] sm:$0xff]  ;;  %v6058_v18 = vld [vmem:[#allocation3 + $0x8] sm:$0xff] }
 0x6ba   : > { %6270 = vmatmul.mubr.f32.gmra.mxu0 %v6152_v2  ;;  %v6006_v40 = vadd.f32 %v6005_v17, %v5633_v31  ;;  %v6019_v3 = vadd.f32 %v6018_v26, %v5635_v53  ;;  %v6031_v57 = vrot.slane %v5637_v27, 4  ;;  %v5955_v34 = vrot.slane %v5954_v21, 2  ;;  %v6060_v17 = vld [vmem:[#allocation3 + $0x18] sm:$0xff] }
 0x6bb   : > { %v5968_v8 = vrot.slane %v5967_v11, 2  ;;  %v5981_v25 = vrot.slane %v5980_v50, 2  ;;  %v6044_v9 = vrot.slane %v5639_v44, 4  ;;  %v5994_v59 = vrot.slane %v5993_v12, 2 }
 0x6bc   : > { %v6007_v38 = vrot.slane %v6006_v40, 2  ;;  %v6020_v16 = vrot.slane %v6019_v3, 2  ;;  %v6032_v45 = vadd.f32 %v6031_v57, %v5637_v27  ;;  %v5956_v10 = vadd.f32 %v5955_v34, %v5954_v21  ;;  %v6059_v27 = vld [vmem:[#allocation3 + $0x10] sm:$0xff] }
 0x6bd   : > { %v5969_v30 = vadd.f32 %v5968_v8, %v5967_v11  ;;  %v5982_v22 = vadd.f32 %v5981_v25, %v5980_v50  ;;  %v6045_v54 = vadd.f32 %v6044_v9, %v5639_v44  ;;  %v5995_v33 = vadd.f32 %v5994_v59, %v5993_v12 }
 0x6be   : > { %v6008_v23 = vadd.f32 %v6007_v38, %v6006_v40  ;;  %v6021_v20 = vadd.f32 %v6020_v16, %v6019_v3  ;;  %v6033_v61 = vrot.slane %v6032_v45, 2  ;;  %v5957_v5 = vrot.slane %v5956_v10, 1 }
 0x6bf   : > { %v5970_v47 = vrot.slane %v5969_v30, 1  ;;  %v5983_v32 = vrot.slane %v5982_v22, 1  ;;  %v6046_v48 = vrot.slane %v6045_v54, 2  ;;  %v5996_v35 = vrot.slane %v5995_v33, 1 }
 0x6c0   : > { %v6009_v63 = vrot.slane %v6008_v23, 1  ;;  %v6022_v56 = vrot.slane %v6021_v20, 1  ;;  %v6034_v1 = vadd.f32 %v6033_v61, %v6032_v45  ;;  %v5958_v52 = vadd.f32 %v5957_v5, %v5956_v10 }
 0x6c1   : > { %v5971_v14 = vadd.f32 %v5970_v47, %v5969_v30  ;;  %v5984_v29 = vadd.f32 %v5983_v32, %v5982_v22  ;;  %v6047_v60 = vadd.f32 %v6046_v48, %v6045_v54  ;;  %v5997_v42 = vadd.f32 %v5996_v35, %v5995_v33 }
 0x6c2   : > { %v6010_v4 = vadd.f32 %v6009_v63, %v6008_v23  ;;  %v6035_v19 = vrot.slane %v6034_v1, 1  ;;  %v6023_v37 = vadd.f32 %v6022_v56, %v6021_v20 }
 0x6c3   : > { %v6048_v51 = vrot.slane %v6047_v60, 1  ;;  %v6174_v24 = vsel %vm6125_vm5, %v5971_v14, %v5958_v52 }
 0x6c4   : > { %v6036_v49 = vadd.f32 %v6035_v19, %v6034_v1  ;;  %v6175_v36 = vsel %vm6127_vm6, %v5984_v29, %v6174_v24 }
 0x6c5   : > { %v6049_v46 = vadd.f32 %v6048_v51, %v6047_v60  ;;  %v6176_v41 = vsel %vm6129_vm7, %v5997_v42, %v6175_v36 }
 0x6c6   : > { %v6177_v39 = vsel %vm6131_vm8, %v6010_v4, %v6176_v41 }
 0x6c7   : > { %v6178_v55 = vsel %vm6133_vm9, %v6023_v37, %v6177_v39 }
 0x6c8   : > { %v6179_v28 = vsel %vm6135_vm10, %v6036_v49, %v6178_v55 }
 0x6c9   : > { %v6180_v15 = vsel %vm6137_vm11, %v6049_v46, %v6179_v28 }
 0x6ca   : > { %6280 = vmatmul.mubr.f32.gmra.mxu1 %v6180_v15 }
 0x737   : > { %v6266_v31 = vpop.f32.mrf.mxu0 }
 0x738   : > { %v6285_v13 = vadd.f32 %v6266_v31, %v6057_v62 }
 0x739   : > { %v6268_v53 = vpop.f32.mrf.mxu0 }
 0x73a   : > { %6289 = vst.msk [vmem:[#allocation3] sm:$0xff] %vm4574_vm2, %v6285_v13 }
 0x747   : > { %v6276_v44 = vpop.f32.mrf.mxu1 }
 0x748   : > { %v6287_v7 = vadd.f32 %v6276_v44, %v6059_v27 }
 0x749   : > { %v6278_v6 = vpop.f32.mrf.mxu1 }
 0x74a   : > { %6291 = vst.msk [vmem:[#allocation3 + $0x10] sm:$0xff] %vm4574_vm2, %v6287_v7 }
 0x77a   : > { %v6271_v58 = vpop.f32.mrf.mxu0 }
 0x77b   : > { %v6286_v0 = vadd.f32 %v6271_v58, %v6058_v18 }
 0x77c   : > { %v6273_v43 = vpop.f32.mrf.mxu0 }
 0x77d   : > { %6290 = vst.msk [vmem:[#allocation3 + $0x8] sm:$0xff] %vm4574_vm2, %v6286_v0 }
 0x78a   : > { %v6281_v26 = vpop.f32.mrf.mxu1 }
 0x78b   : > { %v6288_v2 = vadd.f32 %v6281_v26, %v6060_v17 }
 0x78c   : > { %v6283_v21 = vpop.f32.mrf.mxu1 }
 0x78d   : > { %6292 = vst.msk [vmem:[#allocation3 + $0x18] sm:$0xff] %vm4574_vm2, %v6288_v2 }
 0x78e PF: > { %p6293_p7 = scmp.eq.s32.totalorder %s6815_s18, 1 }
 0x790   : > { %p6294_p9 = pnand %p6293_p7, %p5573_p5 }
 0x792   : > { %6297 = sbr.rel (%p6294_p9) target bundleno = 1952 (0x7a0), region = 90 }
 0x797   : > { %v6298_v11 = vld [vmem:[#allocation2] sm:$0xff]  ;;  %v6299_v12 = vld [vmem:[#allocation2 + $0x8] sm:$0xff]  ;;  %v6300_v57 = vld [vmem:[#allocation2 + $0x10] sm:$0xff] }
 0x798   : > { %v6302_v50 = vld [vmem:[#allocation3] sm:$0xff]  ;;  %v6303_v3 = vld [vmem:[#allocation3 + $0x8] sm:$0xff]  ;;  %v6304_v34 = vld [vmem:[#allocation3 + $0x10] sm:$0xff] }
 0x799   : > { %v6306_v40 = vmul.f32 0.0625, %v6302_v50  ;;  %v6307_v8 = vmul.f32 0.0625, %v6303_v3  ;;  %v6308_v25 = vmul.f32 0.0625, %v6304_v34  ;;  %v6301_v9 = vld [vmem:[#allocation2 + $0x18] sm:$0xff] }
 0x79a   : > { %v6305_v59 = vld [vmem:[#allocation3 + $0x18] sm:$0xff] }
 0x79b   : > { %v6310_v38 = vadd.f32 %v6306_v40, %v6298_v11  ;;  %v6309_v16 = vmul.f32 0.0625, %v6305_v59  ;;  %v6311_v45 = vadd.f32 %v6307_v8, %v6299_v12  ;;  %v6312_v10 = vadd.f32 %v6308_v25, %v6300_v57 }
 0x79d   : > { %6314 = vst.msk [vmem:[#allocation2] sm:$0xff] %vm4574_vm2, %v6310_v38  ;;  %v6313_v30 = vadd.f32 %v6309_v16, %v6301_v9  ;;  %6315 = vst.msk [vmem:[#allocation2 + $0x8] sm:$0xff] %vm4574_vm2, %v6311_v45 }
 0x79e   : > { %6316 = vst.msk [vmem:[#allocation2 + $0x10] sm:$0xff] %vm4574_vm2, %v6312_v10 }
 0x79f   : > { %6317 = vst.msk [vmem:[#allocation2 + $0x18] sm:$0xff] %vm4574_vm2, %v6313_v30 }
 0x7a0 PF: > { %s6439_s19 = sshll.u32 %s6815_s18, 8  ;;  %s6333_s8 = sshll.u32 %s7025_s27, 4  ;;  %s6334_s8 = int_to_ptr.vmem [resolvable:$true] %s6333_s8 }
 0x7a1   : > { %s6331_s7 = scalar_lea.hbm %s11613_s4, %s6439_s19  ;;  %s6319_s9 = scalar_lea.sflag [#allocation6], %s7017_s13 }
 0x7a2   : > { %s6739_s10 = scalar_lea.vmem %s6334_s8, 256  ;;  %s6846_s11 = smov [#allocation5]  }
 0x7a3   : > { %p6740_p11 = scmp.ne.s32.totalorder %s6334_s8, %s6739_s10  ;;  %s6743_s12 = sshll.u32 %s6846_s11, 4  ;;  %s6744_s12 = int_to_ptr.vmem [resolvable:$false] %s6743_s12 }
 0x7a4   : > { %s6745_s14 = scalar_lea.vmem %s6744_s12, 512  ;;  %p6746_p0 = scmp.lt.s32.totalorder %s6334_s8, %s6744_s12 }
 0x7a5   : > { %p6741_p12 = pnand %p6740_p11, %p6932_p8  ;;  %p6747_p1 = scmp.lt.s32.totalorder %s6745_s14, %s6739_s10 }
 0x7a7   : > { %p6742_p13 = pneg %p6741_p12  ;;  %p6748_p2 = por %p6747_p1, %p6746_p0 }
 0x7a9   : > { %p6749_p3 = pnand %p6748_p2, %p6742_p13 }
 0x7ab   : > { %6752 = shalt.err (!%p6749_p3)
}
 0x7ac   : > { %s6753_s18 = scalar_lea.hbm %s6331_s7, 256  ;;  %s6757_s23 = scalar_lea.hbm %s11613_s4, 512 }
 0x7ad   : > { %p6754_p4 = scmp.ne.s32.totalorder %s6331_s7, %s6753_s18  ;;  %p6758_p7 = scmp.lt.s32.totalorder %s6331_s7, %s11613_s4 }
 0x7ae   : > { %p6759_p9 = scmp.lt.s32.totalorder %s6757_s23, %s6753_s18 }
 0x7af   : > { %p6755_p5 = pnand %p6754_p4, %p6932_p8 }
 0x7b0   : > { %p6760_p11 = por %p6759_p9, %p6758_p7 }
 0x7b1   : > { %p6756_p6 = pneg %p6755_p5 }
 0x7b3   : > { %p6761_p12 = pnand %p6760_p11, %p6756_p6 }
 0x7b5   : > { %6764 = shalt.err (!%p6761_p12)
}
 0x7b6   : > { %6480 = dma.vmem_to_hbm [thread:$0]  (%p6932_p8), %s6334_s8, 256, %s6331_s7, %s6319_s9  }
 0x7b7 PF: > { %p6486_p13 = scmp.ge.s32.totalorder %s6831_s22, 2  ;;  %s6345_s6 = sand.u32 1, %s6803_s15  }
 0x7b8   : > { %s6346_s24 = scalar_lea.sflag [#allocation6], %s6345_s6 }
 0x7b9   : > { %p6483_p0 = pnand %p6486_p13, %p6936_p10 }
 0x7bb   : > { %p6484_p1 = pneg %p6483_p0 }
 0x7bd   : > { %6798 = dma.done.wait (%p6484_p1), %s6346_s24, 256  }
 0x7be   : > { %6800 = vsyncadd (%p6484_p1), %s6346_s24, 4294967040  ;;  %s17_s22 = sadd.s32 1, %s6831_s22   ;;  %s12790_s15 = smov %s6807_s16 }
 0x7bf   : > { %p14_p2 = scmp.ge.s32.totalorder %s17_s22, 8   ;;  %s12791_s16 = smov %s6811_s17 }
 0x7c0   : > { %s12792_s17 = smov %s6930_s29  ;;  %s12793_s18 = smov %s6823_s20 }
 0x7c1   : > { %s12794_s19 = smov %s6827_s21  ;;  %s12795_s20 = smov %s12798_s25 }
 0x7c2   : > { %s12796_s21 = smov %s12802_s26  ;;  %16 = sbr.rel (!%p14_p2) target bundleno = 5 (0x5), region = 130 }
 0x7c7   :  { %6351 = vsyncpa [#allocation6], 1 }
 0x7c8   :  { %6353 = vsyncpa [#allocation6 + $0x1], 1 }

</bundles_post_ra>
